<compile_context>
chip_gen: v5e
topology: v5e:2x2
jax: 0.10.0
libtpu: 0.0.40
codegen_flags: <defaults>
</compile_context>

<pallas_src>
import functools

import jax
import jax.numpy as jnp
from jax import lax
from jax.experimental import pallas as pl
from jax.experimental.pallas import tpu as pltpu

# ---------------- configuration ----------------
N_POINTS = 64      # total number of points (nodes)
N_BATCH = 2        # number of point clouds (contiguous, equal-sized batch vector)
IN_CH = 6          # 3 (pos) + 3 (color)  == opt.in_channels
CHANNELS = 16      # opt.n_filters
K = 4              # opt.kernel_size
N_BLOCKS = 3       # opt.n_blocks
N_CLASSES = 13     # opt.n_classes
FUSION_DIM = 1024
OUT_PAD = 128      # lane-dense padded logits width (sliced back to N_CLASSES outside)

# Set to jnp.float32 to recover exact f32 semantics for the big MLP matmuls.
# TODO(synk): on v7x-only deployments the two large weights (p1_wf, p2_w) could be fp8.
MLP_WEIGHT_DTYPE = jnp.bfloat16

# TODO(synk): stochastic dilated-knn sampling (opt.stochastic=True), train-mode Dropout /
# BatchNorm and ragged (non-contiguous / unequal) batch vectors are not implemented;
# this reproduces the deterministic eval-mode forward for equal-size contiguous batches.
# TODO(synk): the dense (seg,seg)/(K*seg,seg) kNN buffers scale quadratically; tile the
# graph build over query-row blocks before growing seg beyond ~1.3k points (v7x VMEM).


# ---------------- fused forward kernel (one grid step == one point cloud) ----------------
def _fused_forward_kernel(*refs, seg, k, n_blocks):
    it = iter(refs)
    x_ref = next(it)                                                    # (seg, in_ch)
    conv_w = [(next(it), next(it), next(it)) for _ in range(n_blocks)]  # (ws, wn, b)
    fus_w = next(it)                                                    # (48, 1024)
    fus_b = next(it)                                                    # (1, 1024) f32
    p1_wf = next(it)                                                    # (1024, 512)
    p1_wfeat = next(it)                                                 # (48, 512)
    p1_b = next(it)                                                     # (1, 512) f32
    p2_w = next(it)                                                     # (512, 256)
    p2_b = next(it)                                                     # (1, 256) f32
    p3_w = next(it)                                                     # (256, OUT_PAD)
    p3_b = next(it)                                                     # (1, OUT_PAD) f32
    o_ref = next(it)                                                    # (seg, OUT_PAD) f32

    f32 = jnp.float32
    n = seg
    BIG = f32(1e30)
    INT_BIG = jnp.int32(jnp.iinfo(jnp.int32).max)
    idx_bits = max(1, (n - 1).bit_length())
    idx_mask = (1 << idx_bits) - 1

    rows = lax.broadcasted_iota(jnp.int32, (n, n), 0)
    cols = lax.broadcasted_iota(jnp.int32, (n, n), 1)
    not_self = rows != cols                                      # knn_graph(loop=False)

    def knn_keys(f):
        # ||x_i - x_j||^2 from one NT matmul; row norms from a tiny lane reduce;
        # clamp >= 0 (cancellation) and push self-pairs to +BIG.  The sort key fuses
        # distance and lowest-column tie-break: the f32 bit pattern of a non-negative
        # float is order-preserving as int32, and the low idx_bits carry the column.
        gram = lax.dot_general(f, f, (((1,), (1,)), ((), ())),
                               preferred_element_type=f32)       # (n, n) == f @ f.T
        sq_i = jnp.sum(f * f, axis=1, keepdims=True)             # (n, 1)
        diag = jnp.where(rows == cols, gram, 0.0)
        sq_j = jnp.sum(diag, axis=0, keepdims=True)              # (1, n)
        d = jnp.maximum(sq_i + sq_j - 2.0 * gram, 0.0)
        d = jnp.where(not_self, d, BIG)
        key = (pltpu.bitcast(d, jnp.int32) & jnp.int32(~idx_mask)) | cols
        return key

    def knn_onehots(key, dilation):
        # Pick the next-nearest neighbor per row (ascending distance, lowest-index
        # tie-break) and keep every `dilation`-th -- one int32 min-reduce per step.
        sel = []
        for t in range(k * dilation):
            kmin = jnp.min(key, axis=1, keepdims=True)           # (n, 1)
            onehot = key == kmin                                 # exactly one True / row
            if t % dilation == 0:
                sel.append(onehot.astype(f32))
            key = jnp.where(onehot, INT_BIG, key)
        return jnp.concatenate(sel, axis=0)                      # (k*n, n)

    def edge_conv(x_src, onehots, ws_ref, wn_ref, b_ref):
        # EdgeConv: out_i = max_j relu(x_i @ (W1 - W2) + x_j @ W2 + b)
        # Neighbor weight is applied BEFORE the one-hot gather (fewer MXU passes).
        hn = jnp.dot(x_src, wn_ref[...], preferred_element_type=f32)   # (n, cout)
        hj = jnp.dot(onehots, hn, preferred_element_type=f32)          # (k*n, cout)
        ci = jnp.dot(x_src, ws_ref[...], preferred_element_type=f32) + b_ref[...]
        out = jnp.maximum(ci + hj[0:n, :], 0.0)
        for j in range(1, k):
            out = jnp.maximum(out, jnp.maximum(ci + hj[j * n:(j + 1) * n, :], 0.0))
        return out

    x = x_ref[...]

    # head: kNN on xyz coords (= x[:, 0:3]), EdgeConv(in_ch -> channels)
    oh = knn_onehots(knn_keys(x[:, 0:3]), 1)
    feats = [edge_conv(x, oh, *conv_w[0])]

    # res backbone: DynConv (kNN on current features, dilation 1+i) + residual (scale 1)
    for i in range(1, n_blocks):
        prev = feats[-1]
        oh = knn_onehots(knn_keys(prev), i)
        feats.append(prev + edge_conv(prev, oh, *conv_w[i]))

    wdt = fus_w.dtype
    feat = jnp.concatenate(feats, axis=1)                        # (n, channels*n_blocks)
    feat_w = feat.astype(wdt)                                    # cast once for the MXU

    # fusion MLP (48 -> 1024) + relu, then scatter_('max') over this segment
    fusion = jnp.maximum(
        jnp.dot(feat_w, fus_w[...], preferred_element_type=f32) + fus_b[...], 0.0)
    pooled = jnp.max(fusion, axis=0, keepdims=True)              # (1, 1024)

    # prediction: MLP(1024+48 -> 512)+relu, MLP(512 -> 256)+relu, Dropout (eval: identity),
    # Linear(256 -> n_classes).  The pooled row goes through p1_wf before the per-point
    # broadcast (repeat_interleave is just the sublane broadcast in the add below).
    pooled8 = jnp.broadcast_to(pooled, (8, fusion.shape[1]))     # pad to 8 sublanes
    h_fus = jnp.dot(pooled8.astype(wdt), p1_wf[...],
                    preferred_element_type=f32)[0:1, :]          # (1, 512)
    h = jnp.maximum(
        h_fus + jnp.dot(feat_w, p1_wfeat[...], preferred_element_type=f32) + p1_b[...],
        0.0)
    h = jnp.maximum(
        jnp.dot(h.astype(wdt), p2_w[...], preferred_element_type=f32) + p2_b[...], 0.0)
    o_ref[...] = jnp.dot(h.astype(wdt), p3_w[...], preferred_element_type=f32) + p3_b[...]


# ---------------- wrapper ----------------
def _row_bias(b):
    return b.reshape(1, -1).astype(jnp.float32)


def sparse_deep_gcn(pos, color, batch, params):
    """Eval-mode forward.  `batch` is assumed contiguous and equal-sized; each grid step
    processes one point-cloud segment."""
    del batch
    n = pos.shape[0]
    seg = n // N_BATCH
    assert n % N_BATCH == 0 and seg % 8 == 0
    # every point needs k * max_dilation valid same-segment neighbours
    assert seg - 1 >= K * max(1, N_BLOCKS - 1), "segment too small for dilated kNN"

    x = jnp.concatenate([pos, color], axis=1).astype(jnp.float32)   # (n, in_channels)
    wdt = MLP_WEIGHT_DTYPE

    def split_conv_w(w, cin):
        # x_i @ W1 + (x_j - x_i) @ W2 == x_i @ (W1 - W2) + x_j @ W2
        w1, w2 = w[:cin], w[cin:]
        return w1 - w2, w2

    inputs = [x]
    hws, hwn = split_conv_w(params['head_w'], IN_CH)
    inputs += [hws, hwn, _row_bias(params['head_b'])]
    for i in range(N_BLOCKS - 1):
        ws, wn = split_conv_w(params[f'blk{i}_w'], CHANNELS)
        inputs += [ws, wn, _row_bias(params[f'blk{i}_b'])]

    # fusion / prediction weights (un-split: single 48-deep contraction for the feats)
    inputs += [params['fus_w'].astype(wdt), _row_bias(params['fus_b'])]
    inputs += [params['p1_w'][:FUSION_DIM].astype(wdt),      # rows acting on fusion
               params['p1_w'][FUSION_DIM:].astype(wdt),      # rows acting on feats (48)
               _row_bias(params['p1_b'])]
    inputs += [params['p2_w'].astype(wdt), _row_bias(params['p2_b'])]

    # final layer zero-padded to a lane-dense (128-wide) output, bf16 like the rest
    pad = OUT_PAD - N_CLASSES
    inputs += [jnp.pad(params['p3_w'], ((0, 0), (0, pad))).astype(wdt),
               _row_bias(jnp.pad(params['p3_b'], ((0, pad),)))]

    kern = functools.partial(_fused_forward_kernel, seg=seg, k=K, n_blocks=N_BLOCKS)
    # point features / logits are blocked per segment (grid axis); all weights use a
    # constant index_map so they are fetched once and stay VMEM-resident across steps.
    in_specs = ([pl.BlockSpec((seg, IN_CH), lambda b: (b, 0))]
                + [pl.BlockSpec(a.shape, lambda b: (0, 0)) for a in inputs[1:]])
    out = pl.pallas_call(
        kern,
        out_shape=jax.ShapeDtypeStruct((n, OUT_PAD), jnp.float32),
        grid=(N_BATCH,),
        in_specs=in_specs,
        out_specs=pl.BlockSpec((seg, OUT_PAD), lambda b: (b, 0)),
        compiler_params=pltpu.CompilerParams(
            dimension_semantics=("parallel",),
            vmem_limit_bytes=32 * 1024 * 1024),
    )(*inputs)
    return out[:, :N_CLASSES]


# ---------------- parameters (kaiming_normal_ weights, zero biases) ----------------
def _kaiming(key, fan_in, fan_out):
    return jax.random.normal(key, (fan_in, fan_out), jnp.float32) * jnp.sqrt(2.0 / fan_in)


def init_params(key):
    keys = jax.random.split(key, 4 + N_BLOCKS)
    p = {}
    p['head_w'] = _kaiming(keys[0], 2 * IN_CH, CHANNELS)
    p['head_b'] = jnp.zeros((CHANNELS,), jnp.float32)
    for i in range(N_BLOCKS - 1):
        p[f'blk{i}_w'] = _kaiming(keys[1 + i], 2 * CHANNELS, CHANNELS)
        p[f'blk{i}_b'] = jnp.zeros((CHANNELS,), jnp.float32)
    feat_dim = CHANNELS * N_BLOCKS
    p['fus_w'] = _kaiming(keys[N_BLOCKS], feat_dim, FUSION_DIM)
    p['fus_b'] = jnp.zeros((FUSION_DIM,), jnp.float32)
    p['p1_w'] = _kaiming(keys[N_BLOCKS + 1], FUSION_DIM + feat_dim, 512)
    p['p1_b'] = jnp.zeros((512,), jnp.float32)
    p['p2_w'] = _kaiming(keys[N_BLOCKS + 2], 512, 256)
    p['p2_b'] = jnp.zeros((256,), jnp.float32)
    p['p3_w'] = _kaiming(keys[N_BLOCKS + 3], 256, N_CLASSES)
    p['p3_b'] = jnp.zeros((N_CLASSES,), jnp.float32)
    return p


# ---------------- main ----------------
if __name__ == "__main__":
    key = jax.random.PRNGKey(0)
    kparam, kpos, kcol = jax.random.split(key, 3)
    params = init_params(kparam)

    pos = jax.random.normal(kpos, (N_POINTS, 3), jnp.float32)      # data.pos
    color = jax.random.uniform(kcol, (N_POINTS, 3), jnp.float32)   # data.x
    batch = jnp.repeat(jnp.arange(N_BATCH, dtype=jnp.int32), N_POINTS // N_BATCH)

    fwd = jax.jit(sparse_deep_gcn)
    out = jax.block_until_ready(fwd(pos, color, batch, params))

    assert out.shape == (N_POINTS, N_CLASSES), out.shape
    assert bool(jnp.all(jnp.isfinite(out)))
    print("KERNEL_OK")
</pallas_src>

<mosaic_0001>
module attributes {stable_mosaic.version = 11 : i64} {
  func.func @_fused_forward_kernel(%arg0: i32, %arg1: memref<32x6xf32, #tpu.memory_space<vmem>>, %arg2: memref<6x16xf32, #tpu.memory_space<vmem>>, %arg3: memref<6x16xf32, #tpu.memory_space<vmem>>, %arg4: memref<1x16xf32, #tpu.memory_space<vmem>>, %arg5: memref<16x16xf32, #tpu.memory_space<vmem>>, %arg6: memref<16x16xf32, #tpu.memory_space<vmem>>, %arg7: memref<1x16xf32, #tpu.memory_space<vmem>>, %arg8: memref<16x16xf32, #tpu.memory_space<vmem>>, %arg9: memref<16x16xf32, #tpu.memory_space<vmem>>, %arg10: memref<1x16xf32, #tpu.memory_space<vmem>>, %arg11: memref<48x1024xbf16, #tpu.memory_space<vmem>>, %arg12: memref<1x1024xf32, #tpu.memory_space<vmem>>, %arg13: memref<1024x512xbf16, #tpu.memory_space<vmem>>, %arg14: memref<48x512xbf16, #tpu.memory_space<vmem>>, %arg15: memref<1x512xf32, #tpu.memory_space<vmem>>, %arg16: memref<512x256xbf16, #tpu.memory_space<vmem>>, %arg17: memref<1x256xf32, #tpu.memory_space<vmem>>, %arg18: memref<256x128xbf16, #tpu.memory_space<vmem>>, %arg19: memref<1x128xf32, #tpu.memory_space<vmem>>, %arg20: memref<32x128xf32, #tpu.memory_space<vmem>>) attributes {dimension_semantics = [#tpu.dimension_semantics<parallel>], iteration_bounds = array<i64: 2>, scalar_prefetch = 0 : i64, scratch_operands = 0 : i64, tpu.core_type = #tpu.core_type<tc>, window_params = [{transform_indices = @transform_0, window_bounds = array<i64: 32, 6>}, {pipeline_mode = #tpu.pipeline_mode<synchronous>, transform_indices = @transform_1, window_bounds = array<i64: 6, 16>}, {pipeline_mode = #tpu.pipeline_mode<synchronous>, transform_indices = @transform_2, window_bounds = array<i64: 6, 16>}, {pipeline_mode = #tpu.pipeline_mode<synchronous>, transform_indices = @transform_3, window_bounds = array<i64: 1, 16>}, {pipeline_mode = #tpu.pipeline_mode<synchronous>, transform_indices = @transform_4, window_bounds = array<i64: 16, 16>}, {pipeline_mode = #tpu.pipeline_mode<synchronous>, transform_indices = @transform_5, window_bounds = array<i64: 16, 16>}, {pipeline_mode = #tpu.pipeline_mode<synchronous>, transform_indices = @transform_6, window_bounds = array<i64: 1, 16>}, {pipeline_mode = #tpu.pipeline_mode<synchronous>, transform_indices = @transform_7, window_bounds = array<i64: 16, 16>}, {pipeline_mode = #tpu.pipeline_mode<synchronous>, transform_indices = @transform_8, window_bounds = array<i64: 16, 16>}, {pipeline_mode = #tpu.pipeline_mode<synchronous>, transform_indices = @transform_9, window_bounds = array<i64: 1, 16>}, {pipeline_mode = #tpu.pipeline_mode<synchronous>, transform_indices = @transform_10, window_bounds = array<i64: 48, 1024>}, {pipeline_mode = #tpu.pipeline_mode<synchronous>, transform_indices = @transform_11, window_bounds = array<i64: 1, 1024>}, {pipeline_mode = #tpu.pipeline_mode<synchronous>, transform_indices = @transform_12, window_bounds = array<i64: 1024, 512>}, {pipeline_mode = #tpu.pipeline_mode<synchronous>, transform_indices = @transform_13, window_bounds = array<i64: 48, 512>}, {pipeline_mode = #tpu.pipeline_mode<synchronous>, transform_indices = @transform_14, window_bounds = array<i64: 1, 512>}, {pipeline_mode = #tpu.pipeline_mode<synchronous>, transform_indices = @transform_15, window_bounds = array<i64: 512, 256>}, {pipeline_mode = #tpu.pipeline_mode<synchronous>, transform_indices = @transform_16, window_bounds = array<i64: 1, 256>}, {pipeline_mode = #tpu.pipeline_mode<synchronous>, transform_indices = @transform_17, window_bounds = array<i64: 256, 128>}, {pipeline_mode = #tpu.pipeline_mode<synchronous>, transform_indices = @transform_18, window_bounds = array<i64: 1, 128>}, {transform_indices = @transform_19, window_bounds = array<i64: 32, 128>}]} {
    %0 = tpu.iota {dimensions = array<i32: 0>} : vector<32x32xi32>
    %1 = tpu.iota {dimensions = array<i32: 1>} : vector<32x32xi32>
    %2 = arith.cmpi ne, %0, %1 : vector<32x32xi32>
    %c0 = arith.constant 0 : index
    %c0_0 = arith.constant 0 : index
    %3 = vector.load %arg1[%c0, %c0_0] : memref<32x6xf32, #tpu.memory_space<vmem>>, vector<32x6xf32>
    %4 = vector.extract_strided_slice %3 {offsets = [0, 0], sizes = [32, 3], strides = [1, 1]} : vector<32x6xf32> to vector<32x3xf32>
    %cst = arith.constant dense<0.000000e+00> : vector<32x32xf32>
    %5 = tpu.matmul %4, %4, %cst {dimension_numbers = #tpu.dot_dimension_numbers<[1], [1], [0], [0], [0, 0, 1, 0], [], []>} : vector<32x3xf32>, vector<32x3xf32>, vector<32x32xf32> -> vector<32x32xf32>
    %6 = arith.mulf %4, %4 : vector<32x3xf32>
    %cst_1 = arith.constant dense<0.000000e+00> : vector<32xf32>
    %7 = vector.multi_reduction <add>, %6, %cst_1 [1] : vector<32x3xf32> to vector<32xf32>
    %8 = vector.shape_cast %7 : vector<32xf32> to vector<32x1xf32>
    %9 = arith.cmpi eq, %0, %1 : vector<32x32xi32>
    %cst_2 = arith.constant 0.000000e+00 : f32
    %10 = vector.broadcast %cst_2 : f32 to vector<32x32xf32>
    %11 = arith.select %9, %5, %10 : vector<32x32xi1>, vector<32x32xf32>
    %cst_3 = arith.constant dense<0.000000e+00> : vector<32xf32>
    %12 = vector.multi_reduction <add>, %11, %cst_3 [0] : vector<32x32xf32> to vector<32xf32>
    %13 = vector.shape_cast %12 : vector<32xf32> to vector<1x32xf32>
    %14 = vector.broadcast %8 : vector<32x1xf32> to vector<32x32xf32>
    %15 = vector.broadcast %13 : vector<1x32xf32> to vector<32x32xf32>
    %16 = arith.addf %14, %15 : vector<32x32xf32>
    %cst_4 = arith.constant 2.000000e+00 : f32
    %17 = vector.broadcast %cst_4 : f32 to vector<32x32xf32>
    %18 = arith.mulf %17, %5 : vector<32x32xf32>
    %19 = arith.subf %16, %18 : vector<32x32xf32>
    %cst_5 = arith.constant 0.000000e+00 : f32
    %20 = vector.broadcast %cst_5 : f32 to vector<32x32xf32>
    %21 = arith.maximumf %19, %20 : vector<32x32xf32>
    %cst_6 = arith.constant 1.000000e+30 : f32
    %22 = vector.broadcast %cst_6 : f32 to vector<32x32xf32>
    %23 = arith.select %2, %21, %22 : vector<32x32xi1>, vector<32x32xf32>
    %24 = tpu.bitcast %23 : vector<32x32xf32> -> vector<32x32xi32>
    %c-32_i32 = arith.constant -32 : i32
    %25 = vector.broadcast %c-32_i32 : i32 to vector<32x32xi32>
    %26 = arith.andi %24, %25 : vector<32x32xi32>
    %27 = arith.ori %26, %1 : vector<32x32xi32>
    %cst_7 = arith.constant dense<2147483647> : vector<32xi32>
    %28 = vector.multi_reduction <minsi>, %27, %cst_7 [1] : vector<32x32xi32> to vector<32xi32>
    %29 = vector.shape_cast %28 : vector<32xi32> to vector<32x1xi32>
    %30 = vector.broadcast %29 : vector<32x1xi32> to vector<32x32xi32>
    %31 = arith.cmpi eq, %27, %30 : vector<32x32xi32>
    %32 = arith.extui %31 : vector<32x32xi1> to vector<32x32xi32>
    %33 = arith.sitofp %32 : vector<32x32xi32> to vector<32x32xf32>
    %c2147483647_i32 = arith.constant 2147483647 : i32
    %34 = vector.broadcast %c2147483647_i32 : i32 to vector<32x32xi32>
    %35 = arith.select %31, %34, %27 : vector<32x32xi1>, vector<32x32xi32>
    %cst_8 = arith.constant dense<2147483647> : vector<32xi32>
    %36 = vector.multi_reduction <minsi>, %35, %cst_8 [1] : vector<32x32xi32> to vector<32xi32>
    %37 = vector.shape_cast %36 : vector<32xi32> to vector<32x1xi32>
    %38 = vector.broadcast %37 : vector<32x1xi32> to vector<32x32xi32>
    %39 = arith.cmpi eq, %35, %38 : vector<32x32xi32>
    %40 = arith.extui %39 : vector<32x32xi1> to vector<32x32xi32>
    %41 = arith.sitofp %40 : vector<32x32xi32> to vector<32x32xf32>
    %c2147483647_i32_9 = arith.constant 2147483647 : i32
    %42 = vector.broadcast %c2147483647_i32_9 : i32 to vector<32x32xi32>
    %43 = arith.select %39, %42, %35 : vector<32x32xi1>, vector<32x32xi32>
    %cst_10 = arith.constant dense<2147483647> : vector<32xi32>
    %44 = vector.multi_reduction <minsi>, %43, %cst_10 [1] : vector<32x32xi32> to vector<32xi32>
    %45 = vector.shape_cast %44 : vector<32xi32> to vector<32x1xi32>
    %46 = vector.broadcast %45 : vector<32x1xi32> to vector<32x32xi32>
    %47 = arith.cmpi eq, %43, %46 : vector<32x32xi32>
    %48 = arith.extui %47 : vector<32x32xi1> to vector<32x32xi32>
    %49 = arith.sitofp %48 : vector<32x32xi32> to vector<32x32xf32>
    %c2147483647_i32_11 = arith.constant 2147483647 : i32
    %50 = vector.broadcast %c2147483647_i32_11 : i32 to vector<32x32xi32>
    %51 = arith.select %47, %50, %43 : vector<32x32xi1>, vector<32x32xi32>
    %cst_12 = arith.constant dense<2147483647> : vector<32xi32>
    %52 = vector.multi_reduction <minsi>, %51, %cst_12 [1] : vector<32x32xi32> to vector<32xi32>
    %53 = vector.shape_cast %52 : vector<32xi32> to vector<32x1xi32>
    %54 = vector.broadcast %53 : vector<32x1xi32> to vector<32x32xi32>
    %55 = arith.cmpi eq, %51, %54 : vector<32x32xi32>
    %56 = arith.extui %55 : vector<32x32xi1> to vector<32x32xi32>
    %57 = arith.sitofp %56 : vector<32x32xi32> to vector<32x32xf32>
    %58 = tpu.concatenate %33, %41, %49, %57 in 0 : vector<32x32xf32>, vector<32x32xf32>, vector<32x32xf32>, vector<32x32xf32> -> vector<128x32xf32>
    %c0_13 = arith.constant 0 : index
    %c0_14 = arith.constant 0 : index
    %59 = vector.load %arg3[%c0_13, %c0_14] : memref<6x16xf32, #tpu.memory_space<vmem>>, vector<6x16xf32>
    %cst_15 = arith.constant dense<0.000000e+00> : vector<32x16xf32>
    %60 = tpu.matmul %3, %59, %cst_15 {dimension_numbers = #tpu.dot_dimension_numbers<[1], [0], [0], [1], [0, 0, 1, 1], [], []>} : vector<32x6xf32>, vector<6x16xf32>, vector<32x16xf32> -> vector<32x16xf32>
    %cst_16 = arith.constant dense<0.000000e+00> : vector<128x16xf32>
    %61 = tpu.matmul %58, %60, %cst_16 {dimension_numbers = #tpu.dot_dimension_numbers<[1], [0], [0], [1], [0, 0, 1, 1], [], []>} : vector<128x32xf32>, vector<32x16xf32>, vector<128x16xf32> -> vector<128x16xf32>
    %c0_17 = arith.constant 0 : index
    %c0_18 = arith.constant 0 : index
    %62 = vector.load %arg2[%c0_17, %c0_18] : memref<6x16xf32, #tpu.memory_space<vmem>>, vector<6x16xf32>
    %cst_19 = arith.constant dense<0.000000e+00> : vector<32x16xf32>
    %63 = tpu.matmul %3, %62, %cst_19 {dimension_numbers = #tpu.dot_dimension_numbers<[1], [0], [0], [1], [0, 0, 1, 1], [], []>} : vector<32x6xf32>, vector<6x16xf32>, vector<32x16xf32> -> vector<32x16xf32>
    %c0_20 = arith.constant 0 : index
    %c0_21 = arith.constant 0 : index
    %64 = vector.load %arg4[%c0_20, %c0_21] : memref<1x16xf32, #tpu.memory_space<vmem>>, vector<1x16xf32>
    %65 = vector.broadcast %64 : vector<1x16xf32> to vector<32x16xf32>
    %66 = arith.addf %63, %65 : vector<32x16xf32>
    %67 = vector.extract_strided_slice %61 {offsets = [0, 0], sizes = [32, 16], strides = [1, 1]} : vector<128x16xf32> to vector<32x16xf32>
    %68 = arith.addf %66, %67 : vector<32x16xf32>
    %cst_22 = arith.constant 0.000000e+00 : f32
    %69 = vector.broadcast %cst_22 : f32 to vector<32x16xf32>
    %70 = arith.maximumf %68, %69 : vector<32x16xf32>
    %71 = vector.extract_strided_slice %61 {offsets = [32, 0], sizes = [32, 16], strides = [1, 1]} : vector<128x16xf32> to vector<32x16xf32>
    %72 = arith.addf %66, %71 : vector<32x16xf32>
    %cst_23 = arith.constant 0.000000e+00 : f32
    %73 = vector.broadcast %cst_23 : f32 to vector<32x16xf32>
    %74 = arith.maximumf %72, %73 : vector<32x16xf32>
    %75 = arith.maximumf %70, %74 : vector<32x16xf32>
    %76 = vector.extract_strided_slice %61 {offsets = [64, 0], sizes = [32, 16], strides = [1, 1]} : vector<128x16xf32> to vector<32x16xf32>
    %77 = arith.addf %66, %76 : vector<32x16xf32>
    %cst_24 = arith.constant 0.000000e+00 : f32
    %78 = vector.broadcast %cst_24 : f32 to vector<32x16xf32>
    %79 = arith.maximumf %77, %78 : vector<32x16xf32>
    %80 = arith.maximumf %75, %79 : vector<32x16xf32>
    %81 = vector.extract_strided_slice %61 {offsets = [96, 0], sizes = [32, 16], strides = [1, 1]} : vector<128x16xf32> to vector<32x16xf32>
    %82 = arith.addf %66, %81 : vector<32x16xf32>
    %cst_25 = arith.constant 0.000000e+00 : f32
    %83 = vector.broadcast %cst_25 : f32 to vector<32x16xf32>
    %84 = arith.maximumf %82, %83 : vector<32x16xf32>
    %85 = arith.maximumf %80, %84 : vector<32x16xf32>
    %cst_26 = arith.constant dense<0.000000e+00> : vector<32x32xf32>
    %86 = tpu.matmul %85, %85, %cst_26 {dimension_numbers = #tpu.dot_dimension_numbers<[1], [1], [0], [0], [0, 0, 1, 0], [], []>} : vector<32x16xf32>, vector<32x16xf32>, vector<32x32xf32> -> vector<32x32xf32>
    %87 = arith.mulf %85, %85 : vector<32x16xf32>
    %cst_27 = arith.constant dense<0.000000e+00> : vector<32xf32>
    %88 = vector.multi_reduction <add>, %87, %cst_27 [1] : vector<32x16xf32> to vector<32xf32>
    %89 = vector.shape_cast %88 : vector<32xf32> to vector<32x1xf32>
    %90 = arith.cmpi eq, %0, %1 : vector<32x32xi32>
    %cst_28 = arith.constant 0.000000e+00 : f32
    %91 = vector.broadcast %cst_28 : f32 to vector<32x32xf32>
    %92 = arith.select %90, %86, %91 : vector<32x32xi1>, vector<32x32xf32>
    %cst_29 = arith.constant dense<0.000000e+00> : vector<32xf32>
    %93 = vector.multi_reduction <add>, %92, %cst_29 [0] : vector<32x32xf32> to vector<32xf32>
    %94 = vector.shape_cast %93 : vector<32xf32> to vector<1x32xf32>
    %95 = vector.broadcast %89 : vector<32x1xf32> to vector<32x32xf32>
    %96 = vector.broadcast %94 : vector<1x32xf32> to vector<32x32xf32>
    %97 = arith.addf %95, %96 : vector<32x32xf32>
    %cst_30 = arith.constant 2.000000e+00 : f32
    %98 = vector.broadcast %cst_30 : f32 to vector<32x32xf32>
    %99 = arith.mulf %98, %86 : vector<32x32xf32>
    %100 = arith.subf %97, %99 : vector<32x32xf32>
    %cst_31 = arith.constant 0.000000e+00 : f32
    %101 = vector.broadcast %cst_31 : f32 to vector<32x32xf32>
    %102 = arith.maximumf %100, %101 : vector<32x32xf32>
    %cst_32 = arith.constant 1.000000e+30 : f32
    %103 = vector.broadcast %cst_32 : f32 to vector<32x32xf32>
    %104 = arith.select %2, %102, %103 : vector<32x32xi1>, vector<32x32xf32>
    %105 = tpu.bitcast %104 : vector<32x32xf32> -> vector<32x32xi32>
    %c-32_i32_33 = arith.constant -32 : i32
    %106 = vector.broadcast %c-32_i32_33 : i32 to vector<32x32xi32>
    %107 = arith.andi %105, %106 : vector<32x32xi32>
    %108 = arith.ori %107, %1 : vector<32x32xi32>
    %cst_34 = arith.constant dense<2147483647> : vector<32xi32>
    %109 = vector.multi_reduction <minsi>, %108, %cst_34 [1] : vector<32x32xi32> to vector<32xi32>
    %110 = vector.shape_cast %109 : vector<32xi32> to vector<32x1xi32>
    %111 = vector.broadcast %110 : vector<32x1xi32> to vector<32x32xi32>
    %112 = arith.cmpi eq, %108, %111 : vector<32x32xi32>
    %113 = arith.extui %112 : vector<32x32xi1> to vector<32x32xi32>
    %114 = arith.sitofp %113 : vector<32x32xi32> to vector<32x32xf32>
    %c2147483647_i32_35 = arith.constant 2147483647 : i32
    %115 = vector.broadcast %c2147483647_i32_35 : i32 to vector<32x32xi32>
    %116 = arith.select %112, %115, %108 : vector<32x32xi1>, vector<32x32xi32>
    %cst_36 = arith.constant dense<2147483647> : vector<32xi32>
    %117 = vector.multi_reduction <minsi>, %116, %cst_36 [1] : vector<32x32xi32> to vector<32xi32>
    %118 = vector.shape_cast %117 : vector<32xi32> to vector<32x1xi32>
    %119 = vector.broadcast %118 : vector<32x1xi32> to vector<32x32xi32>
    %120 = arith.cmpi eq, %116, %119 : vector<32x32xi32>
    %121 = arith.extui %120 : vector<32x32xi1> to vector<32x32xi32>
    %122 = arith.sitofp %121 : vector<32x32xi32> to vector<32x32xf32>
    %c2147483647_i32_37 = arith.constant 2147483647 : i32
    %123 = vector.broadcast %c2147483647_i32_37 : i32 to vector<32x32xi32>
    %124 = arith.select %120, %123, %116 : vector<32x32xi1>, vector<32x32xi32>
    %cst_38 = arith.constant dense<2147483647> : vector<32xi32>
    %125 = vector.multi_reduction <minsi>, %124, %cst_38 [1] : vector<32x32xi32> to vector<32xi32>
    %126 = vector.shape_cast %125 : vector<32xi32> to vector<32x1xi32>
    %127 = vector.broadcast %126 : vector<32x1xi32> to vector<32x32xi32>
    %128 = arith.cmpi eq, %124, %127 : vector<32x32xi32>
    %129 = arith.extui %128 : vector<32x32xi1> to vector<32x32xi32>
    %130 = arith.sitofp %129 : vector<32x32xi32> to vector<32x32xf32>
    %c2147483647_i32_39 = arith.constant 2147483647 : i32
    %131 = vector.broadcast %c2147483647_i32_39 : i32 to vector<32x32xi32>
    %132 = arith.select %128, %131, %124 : vector<32x32xi1>, vector<32x32xi32>
    %cst_40 = arith.constant dense<2147483647> : vector<32xi32>
    %133 = vector.multi_reduction <minsi>, %132, %cst_40 [1] : vector<32x32xi32> to vector<32xi32>
    %134 = vector.shape_cast %133 : vector<32xi32> to vector<32x1xi32>
    %135 = vector.broadcast %134 : vector<32x1xi32> to vector<32x32xi32>
    %136 = arith.cmpi eq, %132, %135 : vector<32x32xi32>
    %137 = arith.extui %136 : vector<32x32xi1> to vector<32x32xi32>
    %138 = arith.sitofp %137 : vector<32x32xi32> to vector<32x32xf32>
    %139 = tpu.concatenate %114, %122, %130, %138 in 0 : vector<32x32xf32>, vector<32x32xf32>, vector<32x32xf32>, vector<32x32xf32> -> vector<128x32xf32>
    %c0_41 = arith.constant 0 : index
    %c0_42 = arith.constant 0 : index
    %140 = vector.load %arg6[%c0_41, %c0_42] : memref<16x16xf32, #tpu.memory_space<vmem>>, vector<16x16xf32>
    %cst_43 = arith.constant dense<0.000000e+00> : vector<32x16xf32>
    %141 = tpu.matmul %85, %140, %cst_43 {dimension_numbers = #tpu.dot_dimension_numbers<[1], [0], [0], [1], [0, 0, 1, 1], [], []>} : vector<32x16xf32>, vector<16x16xf32>, vector<32x16xf32> -> vector<32x16xf32>
    %cst_44 = arith.constant dense<0.000000e+00> : vector<128x16xf32>
    %142 = tpu.matmul %139, %141, %cst_44 {dimension_numbers = #tpu.dot_dimension_numbers<[1], [0], [0], [1], [0, 0, 1, 1], [], []>} : vector<128x32xf32>, vector<32x16xf32>, vector<128x16xf32> -> vector<128x16xf32>
    %c0_45 = arith.constant 0 : index
    %c0_46 = arith.constant 0 : index
    %143 = vector.load %arg5[%c0_45, %c0_46] : memref<16x16xf32, #tpu.memory_space<vmem>>, vector<16x16xf32>
    %cst_47 = arith.constant dense<0.000000e+00> : vector<32x16xf32>
    %144 = tpu.matmul %85, %143, %cst_47 {dimension_numbers = #tpu.dot_dimension_numbers<[1], [0], [0], [1], [0, 0, 1, 1], [], []>} : vector<32x16xf32>, vector<16x16xf32>, vector<32x16xf32> -> vector<32x16xf32>
    %c0_48 = arith.constant 0 : index
    %c0_49 = arith.constant 0 : index
    %145 = vector.load %arg7[%c0_48, %c0_49] : memref<1x16xf32, #tpu.memory_space<vmem>>, vector<1x16xf32>
    %146 = vector.broadcast %145 : vector<1x16xf32> to vector<32x16xf32>
    %147 = arith.addf %144, %146 : vector<32x16xf32>
    %148 = vector.extract_strided_slice %142 {offsets = [0, 0], sizes = [32, 16], strides = [1, 1]} : vector<128x16xf32> to vector<32x16xf32>
    %149 = arith.addf %147, %148 : vector<32x16xf32>
    %cst_50 = arith.constant 0.000000e+00 : f32
    %150 = vector.broadcast %cst_50 : f32 to vector<32x16xf32>
    %151 = arith.maximumf %149, %150 : vector<32x16xf32>
    %152 = vector.extract_strided_slice %142 {offsets = [32, 0], sizes = [32, 16], strides = [1, 1]} : vector<128x16xf32> to vector<32x16xf32>
    %153 = arith.addf %147, %152 : vector<32x16xf32>
    %cst_51 = arith.constant 0.000000e+00 : f32
    %154 = vector.broadcast %cst_51 : f32 to vector<32x16xf32>
    %155 = arith.maximumf %153, %154 : vector<32x16xf32>
    %156 = arith.maximumf %151, %155 : vector<32x16xf32>
    %157 = vector.extract_strided_slice %142 {offsets = [64, 0], sizes = [32, 16], strides = [1, 1]} : vector<128x16xf32> to vector<32x16xf32>
    %158 = arith.addf %147, %157 : vector<32x16xf32>
    %cst_52 = arith.constant 0.000000e+00 : f32
    %159 = vector.broadcast %cst_52 : f32 to vector<32x16xf32>
    %160 = arith.maximumf %158, %159 : vector<32x16xf32>
    %161 = arith.maximumf %156, %160 : vector<32x16xf32>
    %162 = vector.extract_strided_slice %142 {offsets = [96, 0], sizes = [32, 16], strides = [1, 1]} : vector<128x16xf32> to vector<32x16xf32>
    %163 = arith.addf %147, %162 : vector<32x16xf32>
    %cst_53 = arith.constant 0.000000e+00 : f32
    %164 = vector.broadcast %cst_53 : f32 to vector<32x16xf32>
    %165 = arith.maximumf %163, %164 : vector<32x16xf32>
    %166 = arith.maximumf %161, %165 : vector<32x16xf32>
    %167 = arith.addf %85, %166 : vector<32x16xf32>
    %cst_54 = arith.constant dense<0.000000e+00> : vector<32x32xf32>
    %168 = tpu.matmul %167, %167, %cst_54 {dimension_numbers = #tpu.dot_dimension_numbers<[1], [1], [0], [0], [0, 0, 1, 0], [], []>} : vector<32x16xf32>, vector<32x16xf32>, vector<32x32xf32> -> vector<32x32xf32>
    %169 = arith.mulf %167, %167 : vector<32x16xf32>
    %cst_55 = arith.constant dense<0.000000e+00> : vector<32xf32>
    %170 = vector.multi_reduction <add>, %169, %cst_55 [1] : vector<32x16xf32> to vector<32xf32>
    %171 = vector.shape_cast %170 : vector<32xf32> to vector<32x1xf32>
    %172 = arith.cmpi eq, %0, %1 : vector<32x32xi32>
    %cst_56 = arith.constant 0.000000e+00 : f32
    %173 = vector.broadcast %cst_56 : f32 to vector<32x32xf32>
    %174 = arith.select %172, %168, %173 : vector<32x32xi1>, vector<32x32xf32>
    %cst_57 = arith.constant dense<0.000000e+00> : vector<32xf32>
    %175 = vector.multi_reduction <add>, %174, %cst_57 [0] : vector<32x32xf32> to vector<32xf32>
    %176 = vector.shape_cast %175 : vector<32xf32> to vector<1x32xf32>
    %177 = vector.broadcast %171 : vector<32x1xf32> to vector<32x32xf32>
    %178 = vector.broadcast %176 : vector<1x32xf32> to vector<32x32xf32>
    %179 = arith.addf %177, %178 : vector<32x32xf32>
    %cst_58 = arith.constant 2.000000e+00 : f32
    %180 = vector.broadcast %cst_58 : f32 to vector<32x32xf32>
    %181 = arith.mulf %180, %168 : vector<32x32xf32>
    %182 = arith.subf %179, %181 : vector<32x32xf32>
    %cst_59 = arith.constant 0.000000e+00 : f32
    %183 = vector.broadcast %cst_59 : f32 to vector<32x32xf32>
    %184 = arith.maximumf %182, %183 : vector<32x32xf32>
    %cst_60 = arith.constant 1.000000e+30 : f32
    %185 = vector.broadcast %cst_60 : f32 to vector<32x32xf32>
    %186 = arith.select %2, %184, %185 : vector<32x32xi1>, vector<32x32xf32>
    %187 = tpu.bitcast %186 : vector<32x32xf32> -> vector<32x32xi32>
    %c-32_i32_61 = arith.constant -32 : i32
    %188 = vector.broadcast %c-32_i32_61 : i32 to vector<32x32xi32>
    %189 = arith.andi %187, %188 : vector<32x32xi32>
    %190 = arith.ori %189, %1 : vector<32x32xi32>
    %cst_62 = arith.constant dense<2147483647> : vector<32xi32>
    %191 = vector.multi_reduction <minsi>, %190, %cst_62 [1] : vector<32x32xi32> to vector<32xi32>
    %192 = vector.shape_cast %191 : vector<32xi32> to vector<32x1xi32>
    %193 = vector.broadcast %192 : vector<32x1xi32> to vector<32x32xi32>
    %194 = arith.cmpi eq, %190, %193 : vector<32x32xi32>
    %195 = arith.extui %194 : vector<32x32xi1> to vector<32x32xi32>
    %196 = arith.sitofp %195 : vector<32x32xi32> to vector<32x32xf32>
    %c2147483647_i32_63 = arith.constant 2147483647 : i32
    %197 = vector.broadcast %c2147483647_i32_63 : i32 to vector<32x32xi32>
    %198 = arith.select %194, %197, %190 : vector<32x32xi1>, vector<32x32xi32>
    %cst_64 = arith.constant dense<2147483647> : vector<32xi32>
    %199 = vector.multi_reduction <minsi>, %198, %cst_64 [1] : vector<32x32xi32> to vector<32xi32>
    %200 = vector.shape_cast %199 : vector<32xi32> to vector<32x1xi32>
    %201 = vector.broadcast %200 : vector<32x1xi32> to vector<32x32xi32>
    %202 = arith.cmpi eq, %198, %201 : vector<32x32xi32>
    %c2147483647_i32_65 = arith.constant 2147483647 : i32
    %203 = vector.broadcast %c2147483647_i32_65 : i32 to vector<32x32xi32>
    %204 = arith.select %202, %203, %198 : vector<32x32xi1>, vector<32x32xi32>
    %cst_66 = arith.constant dense<2147483647> : vector<32xi32>
    %205 = vector.multi_reduction <minsi>, %204, %cst_66 [1] : vector<32x32xi32> to vector<32xi32>
    %206 = vector.shape_cast %205 : vector<32xi32> to vector<32x1xi32>
    %207 = vector.broadcast %206 : vector<32x1xi32> to vector<32x32xi32>
    %208 = arith.cmpi eq, %204, %207 : vector<32x32xi32>
    %209 = arith.extui %208 : vector<32x32xi1> to vector<32x32xi32>
    %210 = arith.sitofp %209 : vector<32x32xi32> to vector<32x32xf32>
    %c2147483647_i32_67 = arith.constant 2147483647 : i32
    %211 = vector.broadcast %c2147483647_i32_67 : i32 to vector<32x32xi32>
    %212 = arith.select %208, %211, %204 : vector<32x32xi1>, vector<32x32xi32>
    %cst_68 = arith.constant dense<2147483647> : vector<32xi32>
    %213 = vector.multi_reduction <minsi>, %212, %cst_68 [1] : vector<32x32xi32> to vector<32xi32>
    %214 = vector.shape_cast %213 : vector<32xi32> to vector<32x1xi32>
    %215 = vector.broadcast %214 : vector<32x1xi32> to vector<32x32xi32>
    %216 = arith.cmpi eq, %212, %215 : vector<32x32xi32>
    %c2147483647_i32_69 = arith.constant 2147483647 : i32
    %217 = vector.broadcast %c2147483647_i32_69 : i32 to vector<32x32xi32>
    %218 = arith.select %216, %217, %212 : vector<32x32xi1>, vector<32x32xi32>
    %cst_70 = arith.constant dense<2147483647> : vector<32xi32>
    %219 = vector.multi_reduction <minsi>, %218, %cst_70 [1] : vector<32x32xi32> to vector<32xi32>
    %220 = vector.shape_cast %219 : vector<32xi32> to vector<32x1xi32>
    %221 = vector.broadcast %220 : vector<32x1xi32> to vector<32x32xi32>
    %222 = arith.cmpi eq, %218, %221 : vector<32x32xi32>
    %223 = arith.extui %222 : vector<32x32xi1> to vector<32x32xi32>
    %224 = arith.sitofp %223 : vector<32x32xi32> to vector<32x32xf32>
    %c2147483647_i32_71 = arith.constant 2147483647 : i32
    %225 = vector.broadcast %c2147483647_i32_71 : i32 to vector<32x32xi32>
    %226 = arith.select %222, %225, %218 : vector<32x32xi1>, vector<32x32xi32>
    %cst_72 = arith.constant dense<2147483647> : vector<32xi32>
    %227 = vector.multi_reduction <minsi>, %226, %cst_72 [1] : vector<32x32xi32> to vector<32xi32>
    %228 = vector.shape_cast %227 : vector<32xi32> to vector<32x1xi32>
    %229 = vector.broadcast %228 : vector<32x1xi32> to vector<32x32xi32>
    %230 = arith.cmpi eq, %226, %229 : vector<32x32xi32>
    %c2147483647_i32_73 = arith.constant 2147483647 : i32
    %231 = vector.broadcast %c2147483647_i32_73 : i32 to vector<32x32xi32>
    %232 = arith.select %230, %231, %226 : vector<32x32xi1>, vector<32x32xi32>
    %cst_74 = arith.constant dense<2147483647> : vector<32xi32>
    %233 = vector.multi_reduction <minsi>, %232, %cst_74 [1] : vector<32x32xi32> to vector<32xi32>
    %234 = vector.shape_cast %233 : vector<32xi32> to vector<32x1xi32>
    %235 = vector.broadcast %234 : vector<32x1xi32> to vector<32x32xi32>
    %236 = arith.cmpi eq, %232, %235 : vector<32x32xi32>
    %237 = arith.extui %236 : vector<32x32xi1> to vector<32x32xi32>
    %238 = arith.sitofp %237 : vector<32x32xi32> to vector<32x32xf32>
    %239 = tpu.concatenate %196, %210, %224, %238 in 0 : vector<32x32xf32>, vector<32x32xf32>, vector<32x32xf32>, vector<32x32xf32> -> vector<128x32xf32>
    %c0_75 = arith.constant 0 : index
    %c0_76 = arith.constant 0 : index
    %240 = vector.load %arg9[%c0_75, %c0_76] : memref<16x16xf32, #tpu.memory_space<vmem>>, vector<16x16xf32>
    %cst_77 = arith.constant dense<0.000000e+00> : vector<32x16xf32>
    %241 = tpu.matmul %167, %240, %cst_77 {dimension_numbers = #tpu.dot_dimension_numbers<[1], [0], [0], [1], [0, 0, 1, 1], [], []>} : vector<32x16xf32>, vector<16x16xf32>, vector<32x16xf32> -> vector<32x16xf32>
    %cst_78 = arith.constant dense<0.000000e+00> : vector<128x16xf32>
    %242 = tpu.matmul %239, %241, %cst_78 {dimension_numbers = #tpu.dot_dimension_numbers<[1], [0], [0], [1], [0, 0, 1, 1], [], []>} : vector<128x32xf32>, vector<32x16xf32>, vector<128x16xf32> -> vector<128x16xf32>
    %c0_79 = arith.constant 0 : index
    %c0_80 = arith.constant 0 : index
    %243 = vector.load %arg8[%c0_79, %c0_80] : memref<16x16xf32, #tpu.memory_space<vmem>>, vector<16x16xf32>
    %cst_81 = arith.constant dense<0.000000e+00> : vector<32x16xf32>
    %244 = tpu.matmul %167, %243, %cst_81 {dimension_numbers = #tpu.dot_dimension_numbers<[1], [0], [0], [1], [0, 0, 1, 1], [], []>} : vector<32x16xf32>, vector<16x16xf32>, vector<32x16xf32> -> vector<32x16xf32>
    %c0_82 = arith.constant 0 : index
    %c0_83 = arith.constant 0 : index
    %245 = vector.load %arg10[%c0_82, %c0_83] : memref<1x16xf32, #tpu.memory_space<vmem>>, vector<1x16xf32>
    %246 = vector.broadcast %245 : vector<1x16xf32> to vector<32x16xf32>
    %247 = arith.addf %244, %246 : vector<32x16xf32>
    %248 = vector.extract_strided_slice %242 {offsets = [0, 0], sizes = [32, 16], strides = [1, 1]} : vector<128x16xf32> to vector<32x16xf32>
    %249 = arith.addf %247, %248 : vector<32x16xf32>
    %cst_84 = arith.constant 0.000000e+00 : f32
    %250 = vector.broadcast %cst_84 : f32 to vector<32x16xf32>
    %251 = arith.maximumf %249, %250 : vector<32x16xf32>
    %252 = vector.extract_strided_slice %242 {offsets = [32, 0], sizes = [32, 16], strides = [1, 1]} : vector<128x16xf32> to vector<32x16xf32>
    %253 = arith.addf %247, %252 : vector<32x16xf32>
    %cst_85 = arith.constant 0.000000e+00 : f32
    %254 = vector.broadcast %cst_85 : f32 to vector<32x16xf32>
    %255 = arith.maximumf %253, %254 : vector<32x16xf32>
    %256 = arith.maximumf %251, %255 : vector<32x16xf32>
    %257 = vector.extract_strided_slice %242 {offsets = [64, 0], sizes = [32, 16], strides = [1, 1]} : vector<128x16xf32> to vector<32x16xf32>
    %258 = arith.addf %247, %257 : vector<32x16xf32>
    %cst_86 = arith.constant 0.000000e+00 : f32
    %259 = vector.broadcast %cst_86 : f32 to vector<32x16xf32>
    %260 = arith.maximumf %258, %259 : vector<32x16xf32>
    %261 = arith.maximumf %256, %260 : vector<32x16xf32>
    %262 = vector.extract_strided_slice %242 {offsets = [96, 0], sizes = [32, 16], strides = [1, 1]} : vector<128x16xf32> to vector<32x16xf32>
    %263 = arith.addf %247, %262 : vector<32x16xf32>
    %cst_87 = arith.constant 0.000000e+00 : f32
    %264 = vector.broadcast %cst_87 : f32 to vector<32x16xf32>
    %265 = arith.maximumf %263, %264 : vector<32x16xf32>
    %266 = arith.maximumf %261, %265 : vector<32x16xf32>
    %267 = arith.addf %167, %266 : vector<32x16xf32>
    %268 = tpu.concatenate %85, %167, %267 in 1 : vector<32x16xf32>, vector<32x16xf32>, vector<32x16xf32> -> vector<32x48xf32>
    %269 = arith.truncf %268 : vector<32x48xf32> to vector<32x48xbf16>
    %c0_88 = arith.constant 0 : index
    %c0_89 = arith.constant 0 : index
    %270 = vector.load %arg11[%c0_88, %c0_89] : memref<48x1024xbf16, #tpu.memory_space<vmem>>, vector<48x1024xbf16>
    %cst_90 = arith.constant dense<0.000000e+00> : vector<32x1024xf32>
    %271 = tpu.matmul %269, %270, %cst_90 {dimension_numbers = #tpu.dot_dimension_numbers<[1], [0], [0], [1], [0, 0, 1, 1], [], []>} : vector<32x48xbf16>, vector<48x1024xbf16>, vector<32x1024xf32> -> vector<32x1024xf32>
    %c0_91 = arith.constant 0 : index
    %c0_92 = arith.constant 0 : index
    %272 = vector.load %arg12[%c0_91, %c0_92] : memref<1x1024xf32, #tpu.memory_space<vmem>>, vector<1x1024xf32>
    %273 = vector.broadcast %272 : vector<1x1024xf32> to vector<32x1024xf32>
    %274 = arith.addf %271, %273 : vector<32x1024xf32>
    %cst_93 = arith.constant 0.000000e+00 : f32
    %275 = vector.broadcast %cst_93 : f32 to vector<32x1024xf32>
    %276 = arith.maximumf %274, %275 : vector<32x1024xf32>
    %cst_94 = arith.constant dense<0xFF800000> : vector<1024xf32>
    %277 = vector.multi_reduction <maximumf>, %276, %cst_94 [0] : vector<32x1024xf32> to vector<1024xf32>
    %278 = vector.shape_cast %277 : vector<1024xf32> to vector<1x1024xf32>
    %279 = vector.shape_cast %278 : vector<1x1024xf32> to vector<1x1024xf32>
    %280 = vector.broadcast %279 : vector<1x1024xf32> to vector<8x1024xf32>
    %281 = arith.truncf %280 : vector<8x1024xf32> to vector<8x1024xbf16>
    %c0_95 = arith.constant 0 : index
    %c0_96 = arith.constant 0 : index
    %282 = vector.load %arg13[%c0_95, %c0_96] : memref<1024x512xbf16, #tpu.memory_space<vmem>>, vector<1024x512xbf16>
    %cst_97 = arith.constant dense<0.000000e+00> : vector<8x512xf32>
    %283 = tpu.matmul %281, %282, %cst_97 {dimension_numbers = #tpu.dot_dimension_numbers<[1], [0], [0], [1], [0, 0, 1, 1], [], []>} : vector<8x1024xbf16>, vector<1024x512xbf16>, vector<8x512xf32> -> vector<8x512xf32>
    %284 = vector.extract_strided_slice %283 {offsets = [0, 0], sizes = [1, 512], strides = [1, 1]} : vector<8x512xf32> to vector<1x512xf32>
    %c0_98 = arith.constant 0 : index
    %c0_99 = arith.constant 0 : index
    %285 = vector.load %arg14[%c0_98, %c0_99] : memref<48x512xbf16, #tpu.memory_space<vmem>>, vector<48x512xbf16>
    %cst_100 = arith.constant dense<0.000000e+00> : vector<32x512xf32>
    %286 = tpu.matmul %269, %285, %cst_100 {dimension_numbers = #tpu.dot_dimension_numbers<[1], [0], [0], [1], [0, 0, 1, 1], [], []>} : vector<32x48xbf16>, vector<48x512xbf16>, vector<32x512xf32> -> vector<32x512xf32>
    %287 = vector.broadcast %284 : vector<1x512xf32> to vector<32x512xf32>
    %288 = arith.addf %287, %286 : vector<32x512xf32>
    %c0_101 = arith.constant 0 : index
    %c0_102 = arith.constant 0 : index
    %289 = vector.load %arg15[%c0_101, %c0_102] : memref<1x512xf32, #tpu.memory_space<vmem>>, vector<1x512xf32>
    %290 = vector.broadcast %289 : vector<1x512xf32> to vector<32x512xf32>
    %291 = arith.addf %288, %290 : vector<32x512xf32>
    %cst_103 = arith.constant 0.000000e+00 : f32
    %292 = vector.broadcast %cst_103 : f32 to vector<32x512xf32>
    %293 = arith.maximumf %291, %292 : vector<32x512xf32>
    %294 = arith.truncf %293 : vector<32x512xf32> to vector<32x512xbf16>
    %c0_104 = arith.constant 0 : index
    %c0_105 = arith.constant 0 : index
    %295 = vector.load %arg16[%c0_104, %c0_105] : memref<512x256xbf16, #tpu.memory_space<vmem>>, vector<512x256xbf16>
    %cst_106 = arith.constant dense<0.000000e+00> : vector<32x256xf32>
    %296 = tpu.matmul %294, %295, %cst_106 {dimension_numbers = #tpu.dot_dimension_numbers<[1], [0], [0], [1], [0, 0, 1, 1], [], []>} : vector<32x512xbf16>, vector<512x256xbf16>, vector<32x256xf32> -> vector<32x256xf32>
    %c0_107 = arith.constant 0 : index
    %c0_108 = arith.constant 0 : index
    %297 = vector.load %arg17[%c0_107, %c0_108] : memref<1x256xf32, #tpu.memory_space<vmem>>, vector<1x256xf32>
    %298 = vector.broadcast %297 : vector<1x256xf32> to vector<32x256xf32>
    %299 = arith.addf %296, %298 : vector<32x256xf32>
    %cst_109 = arith.constant 0.000000e+00 : f32
    %300 = vector.broadcast %cst_109 : f32 to vector<32x256xf32>
    %301 = arith.maximumf %299, %300 : vector<32x256xf32>
    %302 = arith.truncf %301 : vector<32x256xf32> to vector<32x256xbf16>
    %c0_110 = arith.constant 0 : index
    %c0_111 = arith.constant 0 : index
    %303 = vector.load %arg18[%c0_110, %c0_111] : memref<256x128xbf16, #tpu.memory_space<vmem>>, vector<256x128xbf16>
    %cst_112 = arith.constant dense<0.000000e+00> : vector<32x128xf32>
    %304 = tpu.matmul %302, %303, %cst_112 {dimension_numbers = #tpu.dot_dimension_numbers<[1], [0], [0], [1], [0, 0, 1, 1], [], []>} : vector<32x256xbf16>, vector<256x128xbf16>, vector<32x128xf32> -> vector<32x128xf32>
    %c0_113 = arith.constant 0 : index
    %c0_114 = arith.constant 0 : index
    %305 = vector.load %arg19[%c0_113, %c0_114] : memref<1x128xf32, #tpu.memory_space<vmem>>, vector<1x128xf32>
    %306 = vector.broadcast %305 : vector<1x128xf32> to vector<32x128xf32>
    %307 = arith.addf %304, %306 : vector<32x128xf32>
    %c0_115 = arith.constant 0 : index
    %c0_116 = arith.constant 0 : index
    %308 = vector.load %arg20[%c0_115, %c0_116] : memref<32x128xf32, #tpu.memory_space<vmem>>, vector<32x128xf32>
    tpu.vector_store %arg20[%c0_115, %c0_116], %307 {strides = array<i32>} : memref<32x128xf32, #tpu.memory_space<vmem>>, vector<32x128xf32>,
    return
  }
  func.func @transform_0(%arg0: i32) -> (i32, i32) {
    %c0_i32 = arith.constant 0 : i32
    %c0_i32_0 = arith.constant 0 : i32
    return %arg0, %c0_i32 : i32, i32
  }
  func.func @transform_1(%arg0: i32) -> (i32, i32) {
    %c0_i32 = arith.constant 0 : i32
    %c0_i32_0 = arith.constant 0 : i32
    %c0_i32_1 = arith.constant 0 : i32
    return %c0_i32, %c0_i32_0 : i32, i32
  }
  func.func @transform_2(%arg0: i32) -> (i32, i32) {
    %c0_i32 = arith.constant 0 : i32
    %c0_i32_0 = arith.constant 0 : i32
    %c0_i32_1 = arith.constant 0 : i32
    return %c0_i32, %c0_i32_0 : i32, i32
  }
  func.func @transform_3(%arg0: i32) -> (i32, i32) {
    %c0_i32 = arith.constant 0 : i32
    %c0_i32_0 = arith.constant 0 : i32
    %c0_i32_1 = arith.constant 0 : i32
    return %c0_i32, %c0_i32_0 : i32, i32
  }
  func.func @transform_4(%arg0: i32) -> (i32, i32) {
    %c0_i32 = arith.constant 0 : i32
    %c0_i32_0 = arith.constant 0 : i32
    %c0_i32_1 = arith.constant 0 : i32
    return %c0_i32, %c0_i32_0 : i32, i32
  }
  func.func @transform_5(%arg0: i32) -> (i32, i32) {
    %c0_i32 = arith.constant 0 : i32
    %c0_i32_0 = arith.constant 0 : i32
    %c0_i32_1 = arith.constant 0 : i32
    return %c0_i32, %c0_i32_0 : i32, i32
  }
  func.func @transform_6(%arg0: i32) -> (i32, i32) {
    %c0_i32 = arith.constant 0 : i32
    %c0_i32_0 = arith.constant 0 : i32
    %c0_i32_1 = arith.constant 0 : i32
    return %c0_i32, %c0_i32_0 : i32, i32
  }
  func.func @transform_7(%arg0: i32) -> (i32, i32) {
    %c0_i32 = arith.constant 0 : i32
    %c0_i32_0 = arith.constant 0 : i32
    %c0_i32_1 = arith.constant 0 : i32
    return %c0_i32, %c0_i32_0 : i32, i32
  }
  func.func @transform_8(%arg0: i32) -> (i32, i32) {
    %c0_i32 = arith.constant 0 : i32
    %c0_i32_0 = arith.constant 0 : i32
    %c0_i32_1 = arith.constant 0 : i32
    return %c0_i32, %c0_i32_0 : i32, i32
  }
  func.func @transform_9(%arg0: i32) -> (i32, i32) {
    %c0_i32 = arith.constant 0 : i32
    %c0_i32_0 = arith.constant 0 : i32
    %c0_i32_1 = arith.constant 0 : i32
    return %c0_i32, %c0_i32_0 : i32, i32
  }
  func.func @transform_10(%arg0: i32) -> (i32, i32) {
    %c0_i32 = arith.constant 0 : i32
    %c0_i32_0 = arith.constant 0 : i32
    %c0_i32_1 = arith.constant 0 : i32
    return %c0_i32, %c0_i32_0 : i32, i32
  }
  func.func @transform_11(%arg0: i32) -> (i32, i32) {
    %c0_i32 = arith.constant 0 : i32
    %c0_i32_0 = arith.constant 0 : i32
    %c0_i32_1 = arith.constant 0 : i32
    return %c0_i32, %c0_i32_0 : i32, i32
  }
  func.func @transform_12(%arg0: i32) -> (i32, i32) {
    %c0_i32 = arith.constant 0 : i32
    %c0_i32_0 = arith.constant 0 : i32
    %c0_i32_1 = arith.constant 0 : i32
    return %c0_i32, %c0_i32_0 : i32, i32
  }
  func.func @transform_13(%arg0: i32) -> (i32, i32) {
    %c0_i32 = arith.constant 0 : i32
    %c0_i32_0 = arith.constant 0 : i32
    %c0_i32_1 = arith.constant 0 : i32
    return %c0_i32, %c0_i32_0 : i32, i32
  }
  func.func @transform_14(%arg0: i32) -> (i32, i32) {
    %c0_i32 = arith.constant 0 : i32
    %c0_i32_0 = arith.constant 0 : i32
    %c0_i32_1 = arith.constant 0 : i32
    return %c0_i32, %c0_i32_0 : i32, i32
  }
  func.func @transform_15(%arg0: i32) -> (i32, i32) {
    %c0_i32 = arith.constant 0 : i32
    %c0_i32_0 = arith.constant 0 : i32
    %c0_i32_1 = arith.constant 0 : i32
    return %c0_i32, %c0_i32_0 : i32, i32
  }
  func.func @transform_16(%arg0: i32) -> (i32, i32) {
    %c0_i32 = arith.constant 0 : i32
    %c0_i32_0 = arith.constant 0 : i32
    %c0_i32_1 = arith.constant 0 : i32
    return %c0_i32, %c0_i32_0 : i32, i32
  }
  func.func @transform_17(%arg0: i32) -> (i32, i32) {
    %c0_i32 = arith.constant 0 : i32
    %c0_i32_0 = arith.constant 0 : i32
    %c0_i32_1 = arith.constant 0 : i32
    return %c0_i32, %c0_i32_0 : i32, i32
  }
  func.func @transform_18(%arg0: i32) -> (i32, i32) {
    %c0_i32 = arith.constant 0 : i32
    %c0_i32_0 = arith.constant 0 : i32
    %c0_i32_1 = arith.constant 0 : i32
    return %c0_i32, %c0_i32_0 : i32, i32
  }
  func.func @transform_19(%arg0: i32) -> (i32, i32) {
    %c0_i32 = arith.constant 0 : i32
    %c0_i32_0 = arith.constant 0 : i32
    return %arg0, %c0_i32 : i32, i32
  }
}

</mosaic_0001>

<bundles_post_ra>
// kernel: sparse_deep_gcn.1
= control target key start
LH: loop header
LB: loop body
LE: loop exit
PB: predicated region body
PF: predicated region fallthrough
CT: control target
= control target key end

     0   :  { %s11732_s0 = inlined_call_operand.vmem [shape: f32[64,6], index: 0, kind: input, shape index: {}]   ;;  %s11733_s1 = inlined_call_operand.vmem [shape: f32[6,16], index: 1, kind: input, shape index: {}]   ;;  %s11734_s2 = inlined_call_operand.vmem [shape: f32[6,16], index: 2, kind: input, shape index: {}]   ;;  %s11735_s3 = inlined_call_operand.vmem [shape: f32[1,16], index: 3, kind: input, shape index: {}]   ;;  %s11736_s4 = inlined_call_operand.vmem [shape: f32[16,16], index: 4, kind: input, shape index: {}]   ;;  %s11737_s5 = inlined_call_operand.vmem [shape: f32[16,16], index: 5, kind: input, shape index: {}]   ;;  %s11738_s6 = inlined_call_operand.vmem [shape: f32[1,16], index: 6, kind: input, shape index: {}]   ;;  %s11739_s7 = inlined_call_operand.vmem [shape: f32[16,16], index: 7, kind: input, shape index: {}]   ;;  %s11740_s8 = inlined_call_operand.vmem [shape: f32[16,16], index: 8, kind: input, shape index: {}]   ;;  %s11741_s9 = inlined_call_operand.vmem [shape: f32[1,16], index: 9, kind: input, shape index: {}]   ;;  %s11742_s10 = inlined_call_operand.vmem [shape: bf16[48,1024], index: 10, kind: input, shape index: {}]   ;;  %s11743_s11 = inlined_call_operand.vmem [shape: f32[1,1024], index: 11, kind: input, shape index: {}]   ;;  %s11744_s12 = inlined_call_operand.vmem [shape: bf16[1024,512], index: 12, kind: input, shape index: {}]   ;;  %s11745_s13 = inlined_call_operand.vmem [shape: bf16[48,512], index: 13, kind: input, shape index: {}]   ;;  %s11746_s14 = inlined_call_operand.vmem [shape: f32[1,512], index: 14, kind: input, shape index: {}]   ;;  %s11747_s15 = inlined_call_operand.vmem [shape: bf16[512,256], index: 15, kind: input, shape index: {}]   ;;  %s11748_s16 = inlined_call_operand.vmem [shape: f32[1,256], index: 16, kind: input, shape index: {}]   ;;  %s11749_s17 = inlined_call_operand.vmem [shape: bf16[256,128], index: 17, kind: input, shape index: {}]   ;;  %s11750_s18 = inlined_call_operand.vmem [shape: f32[1,128], index: 18, kind: input, shape index: {}]   ;;  %s11751_s19 = inlined_call_operand.vmem [shape: f32[64,128], index: 19, kind: output, shape index: {}]  }
   0x1   :  { %11752 = sst [smem:[#allocation2_spill]] %s11732_s0  ;;  %s8358_s0 = smov 0  }
   0x2   :  { %11753 = sst [smem:[#allocation3_spill]] %s11733_s1 }
   0x3   :  { %11754 = sst [smem:[#allocation4_spill]] %s11734_s2 }
   0x4   :  { %11755 = sst [smem:[#allocation5_spill]] %s11735_s3 }
   0x5 LB: > { %s6167_s30 = sadd.s32 4294967295, %s8253_s0   ;;  %p6171_p0 = scmp.ge.s32.totalorder %s8253_s0, 1  ;;  %s8253_s0 = sphi %s8358_s0, %s29_s0  }
   0x6   : > { %p538_p1 = scmp.lt.s32.totalorder %s8253_s0, 3 }
   0x8   : > { %p539_p2 = pnand %p6171_p0, %p538_p1 }
   0x9   : > { %s6172_s20 = sshll.u32 (!%p539_p2), %s6167_s30, 2  ;;  %s11756_s2 = sld [smem:[#allocation2_spill]] (!%p539_p2) }
   0xa   : > { %542 = sbr.rel (%p539_p2) target bundleno = 5773 (0x168d), region = 96  ;;  %p595_p3 = scmp.lt.s32.totalorder (!%p539_p2), %s6172_s20, 7 }
   0xb   : > { %s11757_s3 = sld [smem:[#allocation4_spill]] (!%p539_p2)  ;;  %s8257_s29 = smov (!%p539_p2), 32  }
   0xc   : > { %s11758_s28 = sld [smem:[#allocation3_spill]] (!%p539_p2) }
   0xd   : > { %s11759_s24 = sld [smem:[#allocation5_spill]] (!%p539_p2) }
   0xf   : > { %s11761_s20 = smov (!%p595_p3, %s6172_s20), 7  ;;  %vm622_vm0 = vcmask 23552   ;;  %v607_v13 = vlaneseq  ;;  %vm688_vm4 = vcmask 261120   ;;  %vm1044_vm6 = vcmask 1045504  }
  0x10   : > { %s6173_s21 = sshll.u32 %s11761_s20, 3  ;;  %vm1035_vm7 = vcmask 48128  }
  0x11   : > { %s598_s23 = scalar_lea.vmem %s11756_s2, %s6173_s21  ;;  %v8410_v14 = vshrl.u32 %v607_v13, 7  ;;  %v8415_v17 = vand.u32 127, %v607_v13  ;;  %v1034_v38 = vld [vmem:[%s11757_s3] sm:$0x3f]  ;;  %s604_s22 = scalar_lea.vmem %s11751_s19, %s6173_s21 }
  0x12   : > { %v8374_v0 = vld [vmem:[%s598_s23 + $0x18] sm:$0xff]  ;;  %v8378_v1 = vld [vmem:[%s598_s23 + $0x10] sm:$0xff]  ;;  %v8382_v2 = vld [vmem:[%s598_s23 + $0x8] sm:$0xff]  ;;  %6200 = vmatpush.msk.msra.mxu1 %vm1044_vm6, %v1034_v38 }
  0x13   : > { %6176 = vmatpush.xpose.msk.msra.mxu0 %vm622_vm0, %v8374_v0  ;;  %v8384_v3 = vld [vmem:[%s598_s23] sm:$0xff]  ;;  %v666_v4 = vmul.f32 %v8378_v1, %v8378_v1  ;;  %v667_v8 = vmul.f32 %v8374_v0, %v8374_v0  ;;  %v665_v9 = vmul.f32 %v8382_v2, %v8382_v2  ;;  %v8413_v16 = vadd.s32 8, %v8410_v14 }
  0x14   : > { %v664_v5 = vmul.f32 %v8384_v3, %v8384_v3  ;;  %v8418_v18 = vadd.s32 16, %v8410_v14  ;;  %vm680_vm2 = vcmp.eq.s32.totalorder %v8410_v14, %v8415_v17  ;;  %v8430_v21 = vadd.s32 24, %v8410_v14  ;;  %6201 = vmatmul.msk.f32.vlgmr.msra.gmra.mxu1 %vm1035_vm7, %v8384_v3 }
  0x15   : > { %v674_v6 = vsel %vm622_vm0, %v666_v4, 0.0  ;;  %v677_v10 = vsel %vm622_vm0, %v667_v8, 0.0  ;;  %v671_v11 = vsel %vm622_vm0, %v665_v9, 0.0  ;;  %vm681_vm1 = vcmp.eq.s32.totalorder %v8413_v16, %v8415_v17 }
  0x16   : > { %v668_v7 = vsel %vm622_vm0, %v664_v5, 0.0  ;;  %675 = vadd.xlane.f32.xlu1 %v674_v6  ;;  %vm682_vm3 = vcmp.eq.s32.totalorder %v8418_v18, %v8415_v17  ;;  %vm683_vm5 = vcmp.eq.s32.totalorder %v8430_v21, %v8415_v17  ;;  %vm616_vm8 = vcmp.ne.s32.totalorder %v8418_v18, %v8415_v17 }
  0x17   : > { %6177 = vmatpush.xpose.msk.msra.mxu0 %vm622_vm0, %v8378_v1  ;;  %669 = vadd.xlane.f32.xlu0 %v668_v7  ;;  %vm614_vm9 = vcmp.ne.s32.totalorder %v8410_v14, %v8415_v17  ;;  %vm617_vm10 = vcmp.ne.s32.totalorder %v8430_v21, %v8415_v17  ;;  %vm615_vm11 = vcmp.ne.s32.totalorder %v8413_v16, %v8415_v17 }
  0x1b   : > { %6178 = vmatpush.xpose.msk.msra.mxu0 %vm622_vm0, %v8382_v2 }
  0x1c   : > { %6202 = vmatmul.msk.f32.gmra.mxu1 %vm1035_vm7, %v8382_v2 }
  0x1e   : > { %678 = vadd.xlane.f32.xlu1 %v677_v10 }
  0x1f   : > { %6179 = vmatpush.xpose.msk.msra.mxu0 %vm622_vm0, %v8384_v3  ;;  %672 = vadd.xlane.f32.xlu0 %v671_v11 }
  0x22   : > { %6180 = vmatmul.msk.f32.vlgmr.msra.gmra.mxu0 %vm622_vm0, %v8384_v3 }
  0x24   : > { %6203 = vmatmul.msk.f32.gmra.mxu1 %vm1035_vm7, %v8378_v1 }
  0x2a   : > { %6181 = vmatmul.msk.f32.gmra.mxu0 %vm622_vm0, %v8382_v2 }
  0x2c   : > { %6204 = vmatmul.msk.f32.gmra.mxu1 %vm1035_vm7, %v8374_v0 }
  0x32   : > { %6182 = vmatmul.msk.f32.gmra.mxu0 %vm622_vm0, %v8378_v1 }
  0x3a   : > { %6183 = vmatmul.msk.f32.gmra.mxu0 %vm622_vm0, %v8374_v0 }
  0x89   : > { %v676_v33 = vpop.xlane.xlu1 %675 }
  0x8a   : > { %v670_v34 = vpop.xlane.xlu0 %669 }
  0x91   : > { %v679_v41 = vpop.xlane.xlu1 %678 }
  0x92   : > { %v673_v42 = vpop.xlane.xlu0 %672 }
  0x9f   : > { %v652_v12 = vpop.f32.mrf.mxu0 }
  0xa0   : > { %v684_v22 = vsel %vm680_vm2, %v652_v12, 0.0  ;;  %v706_v44 = vmul.f32 2.0, %v652_v12 }
  0xa1   : > { %v689_v25 = vsel %vm688_vm4, %v684_v22, 0.0 }
  0xa7   : > { %v655_v15 = vpop.f32.mrf.mxu0 }
  0xa8   : > { %v685_v20 = vsel %vm681_vm1, %v655_v15, 0.0  ;;  %v707_v45 = vmul.f32 2.0, %v655_v15 }
  0xa9   : > { %v690_v24 = vsel %vm688_vm4, %v685_v20, 0.0 }
  0xaa   : > { %v691_v27 = vadd.f32 %v690_v24, %v689_v25 }
  0xaf   : > { %v658_v19 = vpop.f32.mrf.mxu0 }
  0xb0   : > { %v686_v23 = vsel %vm682_vm3, %v658_v19, 0.0  ;;  %v708_v46 = vmul.f32 2.0, %v658_v19 }
  0xb1   : > { %v692_v26 = vsel %vm688_vm4, %v686_v23, 0.0 }
  0xb2   : > { %v693_v29 = vadd.f32 %v692_v26, %v691_v27 }
  0xb7   : > { %v661_v28 = vpop.f32.mrf.mxu0 }
  0xb8   : > { %v687_v30 = vsel %vm683_vm5, %v661_v28, 0.0  ;;  %v709_v47 = vmul.f32 2.0, %v661_v28 }
  0xb9   : > { %v694_v31 = vsel %vm688_vm4, %v687_v30, 0.0  ;;  %v1065_v30 = vpop.f32.mrf.mxu1 }
  0xba   : > { %v695_v32 = vadd.f32 %v694_v31, %v693_v29  ;;  %v1190_v29 = vld [vmem:[%s11758_s28] sm:$0x3f]  ;;  %s8256_s28 = smov 16  }
  0xbb   : > { %6221 = vmatpush.msk.msra.mxu3 %vm1044_vm6, %v1190_v29 }
  0xbc   : > { %v696_v35 = vrot.slane %v695_v32, 4  ;;  %6222 = vmatmul.msk.f32.vlgmr.msra.gmra.mxu3 %vm1035_vm7, %v8384_v3 }
  0xbe   : > { %v697_v36 = vadd.f32 %v696_v35, %v695_v32 }
  0xc0   : > { %v698_v37 = vrot.slane %v697_v36, 2 }
  0xc2   : > { %v699_v39 = vadd.f32 %v698_v37, %v697_v36 }
  0xc4   : > { %v700_v40 = vrot.slane %v699_v39, 1  ;;  %6223 = vmatmul.msk.f32.gmra.mxu3 %vm1035_vm7, %v8382_v2 }
  0xc6   : > { %v701_v43 = vadd.f32 %v700_v40, %v699_v39 }
  0xc8   : > { %v704_v48 = vadd.f32 %v701_v43, %v676_v33  ;;  %v702_v49 = vadd.f32 %v701_v43, %v670_v34  ;;  %v705_v50 = vadd.f32 %v701_v43, %v679_v41  ;;  %v703_v51 = vadd.f32 %v701_v43, %v673_v42  ;;  %v1068_v33 = vpop.f32.mrf.mxu1 }
  0xca   : > { %v712_v52 = vsub.f32 %v704_v48, %v708_v46  ;;  %v710_v53 = vsub.f32 %v702_v49, %v706_v44  ;;  %v713_v54 = vsub.f32 %v705_v50, %v709_v47  ;;  %v711_v55 = vsub.f32 %v703_v51, %v707_v45 }
  0xcc   : > { %v716_v56 = vmax.f32 %v712_v52, 0.0  ;;  %v714_v57 = vmax.f32 %v710_v53, 0.0  ;;  %v717_v58 = vmax.f32 %v713_v54, 0.0  ;;  %v715_v59 = vmax.f32 %v711_v55, 0.0  ;;  %6224 = vmatmul.msk.f32.gmra.mxu3 %vm1035_vm7, %v8378_v1 }
  0xce   : > { %v720_v60 = vsel %vm616_vm8, %v716_v56, 1e+30  ;;  %v718_v61 = vsel %vm614_vm9, %v714_v57, 1e+30  ;;  %v721_v62 = vsel %vm617_vm10, %v717_v58, 1e+30 }
  0xcf   : > { %v728_v63 = vand.u32 4294967264, %v720_v60  ;;  %v726_v4 = vand.u32 4294967264, %v718_v61  ;;  %v729_v5 = vand.u32 4294967264, %v721_v62  ;;  %v719_v6 = vsel %vm615_vm11, %v715_v59, 1e+30 }
  0xd0   : > { %v727_v7 = vand.u32 4294967264, %v719_v6  ;;  %v1071_v2 = vpop.f32.mrf.mxu1  ;;  %v8255_v59 = vmov 0.0  }
  0xd1   : > { %v8476_v8 = vor.u32 %v728_v63, %v8415_v17  ;;  %v8479_v9 = vor.u32 %v726_v4, %v8415_v17  ;;  %v8482_v10 = vor.u32 %v729_v5, %v8415_v17 }
  0xd2   : > { %v8493_v15 = vor.u32 %v727_v7, %v8415_v17 }
  0xd3   : > { %v779_v11 = vsel %vm688_vm4, %v8482_v10, 2147483647  ;;  %v764_v12 = vsel %vm688_vm4, %v8476_v8, 2147483647  ;;  %v734_v13 = vsel %vm688_vm4, %v8479_v9, 2147483647 }
  0xd4   : > { %v781_v19 = vshra.s32 %v779_v11, 16  ;;  %v766_v20 = vshra.s32 %v764_v12, 16  ;;  %v736_v22 = vshra.s32 %v734_v13, 16  ;;  %v749_v26 = vsel %vm688_vm4, %v8493_v15, 2147483647  ;;  %6225 = vmatmul.msk.f32.gmra.mxu3 %vm1035_vm7, %v8374_v0 }
  0xd5   : > { %v751_v27 = vshra.s32 %v749_v26, 16  ;;  %v765_v31 = vand.u32 65535, %v764_v12  ;;  %v735_v32 = vand.u32 65535, %v734_v13  ;;  %v750_v40 = vand.u32 65535, %v749_v26 }
  0xd6   : > { %v783_v23 = vcvt.s32.f32 %v781_v19  ;;  %v768_v24 = vcvt.s32.f32 %v766_v20  ;;  %v738_v25 = vcvt.s32.f32 %v736_v22  ;;  %v780_v41 = vand.u32 65535, %v779_v11 }
  0xd7   : > { %v753_v28 = vcvt.s32.f32 %v751_v27  ;;  %v767_v35 = vcvt.s32.f32 %v765_v31  ;;  %v737_v37 = vcvt.s32.f32 %v735_v32  ;;  %v752_v1 = vcvt.s32.f32 %v750_v40 }
  0xd8   : > { %784 = vmin.xlane.f32.xlu1 %v783_v23  ;;  %769 = vmin.xlane.f32.xlu0 %v768_v24  ;;  %v782_v43 = vcvt.s32.f32 %v780_v41  ;;  %v1074_v46 = vpop.f32.mrf.mxu1 }
  0xd9   : > { %739 = vmin.xlane.f32.xlu2 %v738_v25  ;;  %1137 = vmatpush.msrb.mxu0 %v1074_v46 }
  0xda   : > { %8208 = vmatpush.msra.mxu2 %v1074_v46 }
  0xdb   : > { %1138 = vmatpush.msrb.mxu0 %v1071_v2 }
  0xdc   : > { %8209 = vmatpush.msra.mxu2 %v1071_v2 }
  0xdd   : > { %1139 = vmatpush.msrb.mxu0 %v1068_v33 }
  0xde   : > { %8210 = vmatpush.msra.mxu2 %v1068_v33 }
  0xdf   : > { %1140 = vmatpush.msrb.mxu0 %v1065_v30 }
  0xe0   : > { %8211 = vmatpush.msra.mxu2 %v1065_v30 }
  0xe1   : > { %754 = vmin.xlane.f32.xlu2 %v753_v28 }
 0x14b   : > { %v770_v34 = vpop.xlane.xlu0 %769  ;;  %v785_v3 = vpop.xlane.xlu1 %784 }
 0x14c   : > { %v740_v36 = vpop.xlane.xlu2 %739  ;;  %vm771_vm12 = vcmp.eq.f32.partialorder %v768_v24, %v770_v34  ;;  %vm786_vm14 = vcmp.eq.f32.partialorder %v783_v23, %v785_v3  ;;  %v776_v47 = vcvt.f32.s32 %v770_v34  ;;  %v791_v56 = vcvt.f32.s32 %v785_v3 }
 0x14d   : > { %v772_v38 = vsel %vm771_vm12, %v767_v35, inf  ;;  %vm741_vm13 = vcmp.eq.f32.partialorder %v738_v25, %v740_v36  ;;  %v787_v45 = vsel %vm786_vm14, %v782_v43, inf  ;;  %v746_v0 = vcvt.f32.s32 %v740_v36 }
 0x14e   : > { %773 = vmin.xlane.f32.xlu1 %v772_v38  ;;  %v742_v39 = vsel %vm741_vm13, %v737_v37, inf  ;;  %v777_v49 = vshll.u32 %v776_v47, 16  ;;  %v792_v5 = vshll.u32 %v791_v56, 16 }
 0x14f   : > { %743 = vmin.xlane.f32.xlu2 %v742_v39  ;;  %v747_v52 = vshll.u32 %v746_v0, 16 }
 0x154   : > { %v755_v42 = vpop.xlane.xlu2 %754 }
 0x155   : > { %vm756_vm15 = vcmp.eq.f32.partialorder %v753_v28, %v755_v42  ;;  %v761_v57 = vcvt.f32.s32 %v755_v42 }
 0x156   : > { %v757_v44 = vsel %vm756_vm15, %v752_v1, inf }
 0x157   : > { %758 = vmin.xlane.f32.xlu0 %v757_v44  ;;  %788 = vmin.xlane.f32.xlu2 %v787_v45  ;;  %v762_v12 = vshll.u32 %v761_v57, 16 }
 0x1c1   : > { %v774_v48 = vpop.xlane.xlu1 %773 }
 0x1c2   : > { %v775_v50 = vcvt.f32.s32 %v774_v48  ;;  %v744_v51 = vpop.xlane.xlu2 %743 }
 0x1c3   : > { %v745_v53 = vcvt.f32.s32 %v744_v51 }
 0x1c4   : > { %v778_v54 = vadd.s32 %v777_v49, %v775_v50 }
 0x1c5   : > { %v748_v55 = vadd.s32 %v747_v52, %v745_v53 }
 0x1c6   : > { %vm796_vm0 = vcmp.eq.s32.totalorder %v8476_v8, %v778_v54 }
 0x1c7   : > { %vm794_vm6 = vcmp.eq.s32.totalorder %v8479_v9, %v748_v55  ;;  %v8516_v58 = vsel %vm796_vm0, 2147483647, %v8476_v8 }
 0x1c8   : > { %v6184_v60 = vsel %vm794_vm6, 1.0, %v8255_v59  ;;  %v840_v61 = vsel %vm688_vm4, %v8516_v58, 2147483647  ;;  %v8522_v62 = vsel %vm794_vm6, 2147483647, %v8479_v9 }
 0x1c9   : > { %6205 = vmatmul.msk.f32.vlgmr.msrb.gmra.mxu0 %vm688_vm4, %v6184_v60  ;;  %v842_v63 = vshra.s32 %v840_v61, 16  ;;  %v810_v4 = vsel %vm688_vm4, %v8522_v62, 2147483647  ;;  %v841_v34 = vand.u32 65535, %v840_v61 }
 0x1ca   : > { %v759_v6 = vpop.xlane.xlu0 %758  ;;  %v789_v7 = vpop.xlane.xlu2 %788  ;;  %v812_v11 = vshra.s32 %v810_v4, 16  ;;  %v811_v35 = vand.u32 65535, %v810_v4 }
 0x1cb   : > { %v760_v13 = vcvt.f32.s32 %v759_v6  ;;  %v790_v19 = vcvt.f32.s32 %v789_v7  ;;  %v844_v20 = vcvt.s32.f32 %v842_v63  ;;  %v843_v37 = vcvt.s32.f32 %v841_v34 }
 0x1cc   : > { %v814_v22 = vcvt.s32.f32 %v812_v11  ;;  %v813_v39 = vcvt.s32.f32 %v811_v35 }
 0x1cd   : > { %v763_v23 = vadd.s32 %v762_v12, %v760_v13  ;;  %v793_v24 = vadd.s32 %v792_v5, %v790_v19  ;;  %845 = vmin.xlane.f32.xlu2 %v844_v20 }
 0x1ce   : > { %815 = vmin.xlane.f32.xlu0 %v814_v22 }
 0x1cf   : > { %vm797_vm7 = vcmp.eq.s32.totalorder %v8482_v10, %v793_v24  ;;  %vm795_vm12 = vcmp.eq.s32.totalorder %v8493_v15, %v763_v23 }
 0x1d0   : > { %v6185_v9 = vsel %vm795_vm12, 1.0, %v8255_v59  ;;  %v8531_v25 = vsel %vm795_vm12, 2147483647, %v8493_v15  ;;  %v8536_v26 = vsel %vm797_vm7, 2147483647, %v8482_v10  ;;  %v6186_v15 = vsel %vm796_vm0, 1.0, %v8255_v59 }
 0x1d1   : > { %6206 = vmatmul.msk.f32.vlgmr.msra.gmra.mxu2 %vm688_vm4, %v6185_v9  ;;  %v825_v27 = vsel %vm688_vm4, %v8531_v25, 2147483647  ;;  %v855_v28 = vsel %vm688_vm4, %v8536_v26, 2147483647  ;;  %v6187_v33 = vsel %vm797_vm7, 1.0, %v8255_v59 }
 0x1d2   : > { %v827_v29 = vshra.s32 %v825_v27, 16  ;;  %v857_v30 = vshra.s32 %v855_v28, 16  ;;  %v826_v8 = vand.u32 65535, %v825_v27  ;;  %v856_v41 = vand.u32 65535, %v855_v28 }
 0x1d4   : > { %v829_v31 = vcvt.s32.f32 %v827_v29  ;;  %v859_v32 = vcvt.s32.f32 %v857_v30  ;;  %v828_v10 = vcvt.s32.f32 %v826_v8  ;;  %v858_v1 = vcvt.s32.f32 %v856_v41 }
 0x1d6   : > { %830 = vmin.xlane.f32.xlu1 %v829_v31  ;;  %860 = vmin.xlane.f32.xlu0 %v859_v32 }
 0x1d9   : > { %6207 = vmatmul.msk.f32.gmra.mxu2 %vm688_vm4, %v6186_v15 }
 0x1e1   : > { %6208 = vmatmul.msk.f32.gmra.mxu2 %vm688_vm4, %v6187_v33 }
 0x240   : > { %v846_v36 = vpop.xlane.xlu2 %845 }
 0x241   : > { %v816_v38 = vpop.xlane.xlu0 %815  ;;  %vm847_vm13 = vcmp.eq.f32.partialorder %v844_v20, %v846_v36  ;;  %v852_v45 = vcvt.f32.s32 %v846_v36 }
 0x242   : > { %vm817_vm14 = vcmp.eq.f32.partialorder %v814_v22, %v816_v38  ;;  %v848_v3 = vsel %vm847_vm13, %v843_v37, inf  ;;  %v822_v46 = vcvt.f32.s32 %v816_v38 }
 0x243   : > { %v818_v40 = vsel %vm817_vm14, %v813_v39, inf  ;;  %849 = vmin.xlane.f32.xlu0 %v848_v3  ;;  %v853_v0 = vshll.u32 %v852_v45, 16 }
 0x244   : > { %819 = vmin.xlane.f32.xlu1 %v818_v40  ;;  %v823_v50 = vshll.u32 %v822_v46, 16 }
 0x249   : > { %v831_v2 = vpop.xlane.xlu1 %830  ;;  %v861_v42 = vpop.xlane.xlu0 %860 }
 0x24a   : > { %vm832_vm15 = vcmp.eq.f32.partialorder %v829_v31, %v831_v2  ;;  %vm862_vm0 = vcmp.eq.f32.partialorder %v859_v32, %v861_v42  ;;  %v837_v54 = vcvt.f32.s32 %v831_v2  ;;  %v867_v55 = vcvt.f32.s32 %v861_v42 }
 0x24b   : > { %v833_v43 = vsel %vm832_vm15, %v828_v10, inf  ;;  %v863_v44 = vsel %vm862_vm0, %v858_v1, inf }
 0x24c   : > { %834 = vmin.xlane.f32.xlu2 %v833_v43  ;;  %864 = vmin.xlane.f32.xlu1 %v863_v44  ;;  %v838_v5 = vshll.u32 %v837_v54, 16  ;;  %v868_v12 = vshll.u32 %v867_v55, 16 }
 0x2b6   : > { %v850_v47 = vpop.xlane.xlu0 %849 }
 0x2b7   : > { %v820_v48 = vpop.xlane.xlu1 %819  ;;  %v851_v49 = vcvt.f32.s32 %v850_v47 }
 0x2b8   : > { %v821_v51 = vcvt.f32.s32 %v820_v48 }
 0x2b9   : > { %v854_v52 = vadd.s32 %v853_v0, %v851_v49 }
 0x2ba   : > { %v824_v53 = vadd.s32 %v823_v50, %v821_v51 }
 0x2bb   : > { %vm872_vm6 = vcmp.eq.s32.totalorder %v8516_v58, %v854_v52 }
 0x2bc   : > { %vm870_vm7 = vcmp.eq.s32.totalorder %v8522_v62, %v824_v53  ;;  %v8556_v56 = vsel %vm872_vm6, 2147483647, %v8516_v58 }
 0x2bd   : > { %v6188_v57 = vsel %vm870_vm7, 1.0, %v8255_v59  ;;  %v8560_v60 = vsel %vm870_vm7, 2147483647, %v8522_v62  ;;  %v916_v61 = vsel %vm688_vm4, %v8556_v56, 2147483647 }
 0x2be   : > { %6209 = vmatmul.msk.f32.gmra.mxu2 %vm688_vm4, %v6188_v57  ;;  %v886_v63 = vsel %vm688_vm4, %v8560_v60, 2147483647  ;;  %v918_v4 = vshra.s32 %v916_v61, 16  ;;  %v917_v34 = vand.u32 65535, %v916_v61 }
 0x2bf   : > { %v865_v6 = vpop.xlane.xlu1 %864  ;;  %v835_v7 = vpop.xlane.xlu2 %834  ;;  %v888_v11 = vshra.s32 %v886_v63, 16  ;;  %v887_v35 = vand.u32 65535, %v886_v63 }
 0x2c0   : > { %v866_v13 = vcvt.f32.s32 %v865_v6  ;;  %v836_v19 = vcvt.f32.s32 %v835_v7  ;;  %v920_v20 = vcvt.s32.f32 %v918_v4  ;;  %v919_v37 = vcvt.s32.f32 %v917_v34 }
 0x2c1   : > { %v890_v22 = vcvt.s32.f32 %v888_v11  ;;  %v889_v39 = vcvt.s32.f32 %v887_v35 }
 0x2c2   : > { %v869_v62 = vadd.s32 %v868_v12, %v866_v13  ;;  %v839_v23 = vadd.s32 %v838_v5, %v836_v19  ;;  %921 = vmin.xlane.f32.xlu1 %v920_v20 }
 0x2c3   : > { %891 = vmin.xlane.f32.xlu2 %v890_v22 }
 0x2c4   : > { %vm873_vm12 = vcmp.eq.s32.totalorder %v8536_v26, %v869_v62  ;;  %vm871_vm13 = vcmp.eq.s32.totalorder %v8531_v25, %v839_v23 }
 0x2c5   : > { %v6189_v24 = vsel %vm871_vm13, 1.0, %v8255_v59  ;;  %v8571_v9 = vsel %vm871_vm13, 2147483647, %v8531_v25  ;;  %v8576_v27 = vsel %vm873_vm12, 2147483647, %v8536_v26  ;;  %v6190_v25 = vsel %vm872_vm6, 1.0, %v8255_v59 }
 0x2c6   : > { %6210 = vmatmul.msk.f32.gmra.mxu2 %vm688_vm4, %v6189_v24  ;;  %v931_v28 = vsel %vm688_vm4, %v8576_v27, 2147483647  ;;  %v901_v29 = vsel %vm688_vm4, %v8571_v9, 2147483647  ;;  %v6191_v33 = vsel %vm873_vm12, 1.0, %v8255_v59 }
 0x2c7   : > { %v933_v30 = vshra.s32 %v931_v28, 16  ;;  %v903_v31 = vshra.s32 %v901_v29, 16  ;;  %v902_v40 = vand.u32 65535, %v901_v29  ;;  %v932_v8 = vand.u32 65535, %v931_v28 }
 0x2c9   : > { %v935_v32 = vcvt.s32.f32 %v933_v30  ;;  %v905_v15 = vcvt.s32.f32 %v903_v31  ;;  %v904_v26 = vcvt.s32.f32 %v902_v40  ;;  %v934_v42 = vcvt.s32.f32 %v932_v8 }
 0x2cb   : > { %936 = vmin.xlane.f32.xlu2 %v935_v32  ;;  %906 = vmin.xlane.f32.xlu0 %v905_v15 }
 0x2ce   : > { %6211 = vmatmul.msk.f32.gmra.mxu2 %vm688_vm4, %v6190_v25 }
 0x2d6   : > { %6212 = vmatmul.msk.f32.gmra.mxu2 %vm688_vm4, %v6191_v33 }
 0x335   : > { %v922_v36 = vpop.xlane.xlu1 %921 }
 0x336   : > { %v892_v38 = vpop.xlane.xlu2 %891  ;;  %vm923_vm14 = vcmp.eq.f32.partialorder %v920_v20, %v922_v36  ;;  %v928_v43 = vcvt.f32.s32 %v922_v36 }
 0x337   : > { %v924_v3 = vsel %vm923_vm14, %v919_v37, inf  ;;  %vm893_vm15 = vcmp.eq.f32.partialorder %v890_v22, %v892_v38  ;;  %v898_v44 = vcvt.f32.s32 %v892_v38 }
 0x338   : > { %925 = vmin.xlane.f32.xlu2 %v924_v3  ;;  %v894_v58 = vsel %vm893_vm15, %v889_v39, inf  ;;  %v929_v46 = vshll.u32 %v928_v43, 16 }
 0x339   : > { %895 = vmin.xlane.f32.xlu0 %v894_v58  ;;  %v899_v48 = vshll.u32 %v898_v44, 16 }
 0x33e   : > { %v907_v41 = vpop.xlane.xlu0 %906  ;;  %v937_v2 = vpop.xlane.xlu2 %936 }
 0x33f   : > { %vm908_vm0 = vcmp.eq.f32.partialorder %v905_v15, %v907_v41  ;;  %vm938_vm6 = vcmp.eq.f32.partialorder %v935_v32, %v937_v2  ;;  %v913_v52 = vcvt.f32.s32 %v907_v41  ;;  %v943_v53 = vcvt.f32.s32 %v937_v2 }
 0x340   : > { %v909_v10 = vsel %vm908_vm0, %v904_v26, inf  ;;  %v939_v1 = vsel %vm938_vm6, %v934_v42, inf }
 0x341   : > { %910 = vmin.xlane.f32.xlu1 %v909_v10  ;;  %940 = vmin.xlane.f32.xlu0 %v939_v1  ;;  %v914_v5 = vshll.u32 %v913_v52, 16  ;;  %v944_v12 = vshll.u32 %v943_v53, 16 }
 0x3ab   : > { %v926_v45 = vpop.xlane.xlu2 %925 }
 0x3ac   : > { %v896_v47 = vpop.xlane.xlu0 %895  ;;  %v927_v0 = vcvt.f32.s32 %v926_v45 }
 0x3ad   : > { %v897_v49 = vcvt.f32.s32 %v896_v47 }
 0x3ae   : > { %v930_v50 = vadd.s32 %v929_v46, %v927_v0 }
 0x3af   : > { %v900_v51 = vadd.s32 %v899_v48, %v897_v49 }
 0x3b0   : > { %vm948_vm7 = vcmp.eq.s32.totalorder %v8556_v56, %v930_v50 }
 0x3b1   : > { %vm946_vm12 = vcmp.eq.s32.totalorder %v8560_v60, %v900_v51  ;;  %v8596_v54 = vsel %vm948_vm7, 2147483647, %v8556_v56 }
 0x3b2   : > { %v6192_v55 = vsel %vm946_vm12, 1.0, %v8255_v59  ;;  %v8600_v57 = vsel %vm946_vm12, 2147483647, %v8560_v60  ;;  %v992_v61 = vsel %vm688_vm4, %v8596_v54, 2147483647 }
 0x3b3   : > { %6213 = vmatmul.msk.f32.gmra.mxu2 %vm688_vm4, %v6192_v55  ;;  %v962_v63 = vsel %vm688_vm4, %v8600_v57, 2147483647  ;;  %v994_v4 = vshra.s32 %v992_v61, 16  ;;  %v993_v34 = vand.u32 65535, %v992_v61 }
 0x3b4   : > { %v911_v6 = vpop.xlane.xlu1 %910  ;;  %v941_v7 = vpop.xlane.xlu0 %940  ;;  %v964_v11 = vshra.s32 %v962_v63, 16  ;;  %v963_v35 = vand.u32 65535, %v962_v63 }
 0x3b5   : > { %v912_v13 = vcvt.f32.s32 %v911_v6  ;;  %v942_v19 = vcvt.f32.s32 %v941_v7  ;;  %v996_v20 = vcvt.s32.f32 %v994_v4  ;;  %v995_v37 = vcvt.s32.f32 %v993_v34 }
 0x3b6   : > { %v966_v22 = vcvt.s32.f32 %v964_v11  ;;  %v965_v39 = vcvt.s32.f32 %v963_v35 }
 0x3b7   : > { %v915_v60 = vadd.s32 %v914_v5, %v912_v13  ;;  %v945_v62 = vadd.s32 %v944_v12, %v942_v19  ;;  %997 = vmin.xlane.f32.xlu0 %v996_v20  ;;  %v1145_v13 = vpop.f32.mrf.mxu2 }
 0x3b8   : > { %967 = vmin.xlane.f32.xlu1 %v966_v22 }
 0x3b9   : > { %vm949_vm13 = vcmp.eq.s32.totalorder %v8576_v27, %v945_v62  ;;  %vm947_vm14 = vcmp.eq.s32.totalorder %v8571_v9, %v915_v60 }
 0x3ba   : > { %v6193_v23 = vsel %vm947_vm14, 1.0, %v8255_v59  ;;  %v959_v24 = vsel %vm947_vm14, 2147483647, %v8571_v9  ;;  %v8614_v28 = vsel %vm949_vm13, 2147483647, %v8576_v27  ;;  %v6194_v9 = vsel %vm948_vm7, 1.0, %v8255_v59 }
 0x3bb   : > { %6214 = vmatmul.msk.f32.gmra.mxu2 %vm688_vm4, %v6193_v23  ;;  %v977_v29 = vsel %vm688_vm4, %v959_v24, 2147483647  ;;  %v1007_v30 = vsel %vm688_vm4, %v8614_v28, 2147483647  ;;  %v6195_v33 = vsel %vm949_vm13, 1.0, %v8255_v59 }
 0x3bc   : > { %v979_v31 = vshra.s32 %v977_v29, 16  ;;  %v1009_v32 = vshra.s32 %v1007_v30, 16  ;;  %v1008_v56 = vand.u32 65535, %v1007_v30  ;;  %v978_v40 = vand.u32 65535, %v977_v29  ;;  %v1679_v29 = vld [vmem:[%s11737_s5 + $0x8] sm:$0xff] }
 0x3bd   : > { %1694 = vmatpush.msrb.mxu3 %v1679_v29 }
 0x3be   : > { %v981_v15 = vcvt.s32.f32 %v979_v31  ;;  %v1011_v25 = vcvt.s32.f32 %v1009_v32  ;;  %v1010_v27 = vcvt.s32.f32 %v1008_v56  ;;  %v980_v2 = vcvt.s32.f32 %v978_v40  ;;  %v1215_v31 = vpop.f32.mrf.mxu3  ;;  %v8243_v32 = vld [vmem:[%s11759_s24] ss:$0 sm:$0xff] }
 0x3bf   : > { %v1148_v19 = vpop.f32.mrf.mxu2 }
 0x3c0   : > { %982 = vmin.xlane.f32.xlu2 %v981_v15  ;;  %1012 = vmin.xlane.f32.xlu1 %v1011_v25 }
 0x3c3   : > { %6215 = vmatmul.msk.f32.gmra.mxu2 %vm688_vm4, %v6194_v9  ;;  %v1142_v9 = vpop.f32.mrf.mxu0 }
 0x3cb   : > { %6216 = vmatmul.msk.f32.gmra.mxu2 %vm688_vm4, %v6195_v33 }
 0x42a   : > { %v998_v36 = vpop.xlane.xlu0 %997 }
 0x42b   : > { %v968_v38 = vpop.xlane.xlu1 %967  ;;  %vm999_vm15 = vcmp.eq.f32.partialorder %v996_v20, %v998_v36  ;;  %v1004_v49 = vcvt.f32.s32 %v998_v36  ;;  %v8639_v20 = vpop.f32.mrf.mxu2 }
 0x42c   : > { %vm969_vm0 = vcmp.eq.f32.partialorder %v966_v22, %v968_v38  ;;  %v1000_v3 = vsel %vm999_vm15, %v995_v37, inf  ;;  %v974_v10 = vcvt.f32.s32 %v968_v38 }
 0x42d   : > { %v970_v58 = vsel %vm969_vm0, %v965_v39, inf  ;;  %1001 = vmin.xlane.f32.xlu1 %v1000_v3  ;;  %v1005_v55 = vshll.u32 %v1004_v49, 16  ;;  %vm1271_vm0 = vcmask 130048  }
 0x42e   : > { %971 = vmin.xlane.f32.xlu2 %v970_v58  ;;  %v975_v43 = vshll.u32 %v974_v10, 16 }
 0x433   : > { %v1013_v8 = vpop.xlane.xlu1 %1012  ;;  %v983_v41 = vpop.xlane.xlu2 %982 }
 0x434   : > { %vm1014_vm6 = vcmp.eq.f32.partialorder %v1011_v25, %v1013_v8  ;;  %vm984_vm7 = vcmp.eq.f32.partialorder %v981_v15, %v983_v41  ;;  %v989_v46 = vcvt.f32.s32 %v983_v41  ;;  %v1154_v22 = vpop.f32.mrf.mxu2  ;;  %v1216_v15 = vadd.f32 %v8243_v32, %v1215_v31  ;;  %v1218_v25 = vpop.f32.mrf.mxu3 }
 0x435   : > { %v1015_v26 = vsel %vm1014_vm6, %v1010_v27, inf  ;;  %v985_v42 = vsel %vm984_vm7, %v980_v2, inf  ;;  %v1219_v39 = vadd.f32 %v8243_v32, %v1218_v25 }
 0x436   : > { %1016 = vmin.xlane.f32.xlu2 %v1015_v26  ;;  %986 = vmin.xlane.f32.xlu0 %v985_v42  ;;  %v990_v50 = vshll.u32 %v989_v46, 16  ;;  %v1235_v34 = vadd.f32 %v1216_v15, %v1154_v22  ;;  %v1227_v35 = vadd.f32 %v1216_v15, %v1142_v9 }
 0x437   : > { %v1228_v27 = vadd.f32 %v1219_v39, %v1145_v13 }
 0x438   : > { %v1239_v37 = vmax.f32 %v1235_v34, 0.0  ;;  %v1231_v38 = vmax.f32 %v1227_v35, 0.0 }
 0x43a   : > { %v1243_v56 = vmax.f32 %v1231_v38, %v1239_v37  ;;  %v1823_v37 = vld [vmem:[%s11736_s4 + $0x8] sm:$0xff]  ;;  %v1822_v38 = vld [vmem:[%s11736_s4] sm:$0xff] }
 0x43c   : > { %v1157_v60 = vpop.f32.mrf.mxu2  ;;  %v1221_v41 = vpop.f32.mrf.mxu3 }
 0x43d   : > { %v1236_v40 = vadd.f32 %v1219_v39, %v1157_v60 }
 0x43f   : > { %v1240_v10 = vmax.f32 %v1236_v40, 0.0 }
 0x444   : > { %v1160_v62 = vpop.f32.mrf.mxu2 }
 0x4a0   : > { %v1002_v0 = vpop.xlane.xlu1 %1001 }
 0x4a1   : > { %v972_v1 = vpop.xlane.xlu2 %971  ;;  %v1003_v52 = vcvt.f32.s32 %v1002_v0 }
 0x4a2   : > { %v973_v44 = vcvt.f32.s32 %v972_v1 }
 0x4a3   : > { %v1006_v63 = vadd.s32 %v1005_v55, %v1003_v52 }
 0x4a4   : > { %v976_v45 = vadd.s32 %v975_v43, %v973_v44  ;;  %v1232_v43 = vmax.f32 %v1228_v27, 0.0  ;;  %v1222_v44 = vadd.f32 %v8243_v32, %v1221_v41 }
 0x4a5   : > { %vm1024_vm14 = vcmp.eq.s32.totalorder %v8596_v54, %v1006_v63  ;;  %v1163_v54 = vpop.f32.mrf.mxu2 }
 0x4a6   : > { %vm1022_vm12 = vcmp.eq.s32.totalorder %v8600_v57, %v976_v45  ;;  %v1019_v57 = vcvt.f32.s32 %v1013_v8  ;;  %v6198_v7 = vsel %vm1024_vm14, 1.0, %v8255_v59  ;;  %v1244_v0 = vmax.f32 %v1232_v43, %v1240_v10 }
 0x4a7   : > { %v6196_v47 = vsel %vm1022_vm12, 1.0, %v8255_v59 }
 0x4a8   : > { %6217 = vmatmul.msk.f32.gmra.mxu2 %vm688_vm4, %v6196_v47  ;;  %v1020_v6 = vshll.u32 %v1019_v57, 16 }
 0x4a9   : > { %v987_v48 = vpop.xlane.xlu0 %986  ;;  %v1017_v4 = vpop.xlane.xlu2 %1016 }
 0x4aa   : > { %v988_v51 = vcvt.f32.s32 %v987_v48  ;;  %v1018_v5 = vcvt.f32.s32 %v1017_v4  ;;  %v1237_v48 = vadd.f32 %v1222_v44, %v1160_v62 }
 0x4ac   : > { %v991_v53 = vadd.s32 %v990_v50, %v988_v51  ;;  %v1021_v11 = vadd.s32 %v1020_v6, %v1018_v5  ;;  %v1229_v51 = vadd.f32 %v1222_v44, %v1148_v19  ;;  %v1241_v63 = vmax.f32 %v1237_v48, 0.0 }
 0x4ad   : > { %v1166_v23 = vpop.f32.mrf.mxu2 }
 0x4ae   : > { %vm1023_vm13 = vcmp.eq.s32.totalorder %v959_v24, %v991_v53  ;;  %vm1025_vm15 = vcmp.eq.s32.totalorder %v8614_v28, %v1021_v11  ;;  %v1678_v28 = vld [vmem:[%s11737_s5] sm:$0xff]  ;;  %v1247_v36 = vadd.f32 %v1216_v15, %v1166_v23  ;;  %v1233_v57 = vmax.f32 %v1229_v51, 0.0 }
 0x4af   : > { %v6197_v61 = vsel %vm1023_vm13, 1.0, %v8255_v59  ;;  %v6199_v12 = vsel %vm1025_vm15, 1.0, %v8255_v59  ;;  %1695 = vmatpush.msrb.mxu3 %v1678_v28 }
 0x4b0   : > { %6218 = vmatmul.msk.f32.gmra.mxu2 %vm688_vm4, %v6197_v61  ;;  %v1251_v3 = vmax.f32 %v1247_v36, 0.0  ;;  %v1224_v61 = vpop.f32.mrf.mxu3 }
 0x4b1   : > { %v1225_v5 = vadd.f32 %v8243_v32, %v1224_v61 }
 0x4b2   : > { %v1255_v2 = vmax.f32 %v1243_v56, %v1251_v3 }
 0x4b3   : > { %v1238_v13 = vadd.f32 %v1225_v5, %v1163_v54  ;;  %v1230_v60 = vadd.f32 %v1225_v5, %v8639_v20 }
 0x4b5   : > { %v1169_v24 = vpop.f32.mrf.mxu2  ;;  %v1242_v29 = vmax.f32 %v1238_v13, 0.0 }
 0x4b6   : > { %v1248_v26 = vadd.f32 %v1219_v39, %v1169_v24 }
 0x4b8   : > { %6219 = vmatmul.msk.f32.gmra.mxu2 %vm688_vm4, %v6198_v7  ;;  %v1252_v45 = vmax.f32 %v1248_v26, 0.0 }
 0x4ba   : > { %v1256_v52 = vmax.f32 %v1244_v0, %v1252_v45 }
 0x4bd   : > { %v1172_v30 = vpop.f32.mrf.mxu2 }
 0x4be   : > { %v1249_v53 = vadd.f32 %v1222_v44, %v1172_v30  ;;  %v1234_v30 = vmax.f32 %v1230_v60, 0.0 }
 0x4c0   : > { %6220 = vmatmul.msk.f32.gmra.mxu2 %vm688_vm4, %v6199_v12  ;;  %v1253_v6 = vmax.f32 %v1249_v53, 0.0  ;;  %v1245_v12 = vmax.f32 %v1233_v57, %v1241_v63 }
 0x4c2   : > { %v1257_v62 = vmax.f32 %v1245_v12, %v1253_v6 }
 0x4c5   : > { %v1175_v33 = vpop.f32.mrf.mxu2 }
 0x4c6   : > { %v1250_v23 = vadd.f32 %v1225_v5, %v1175_v33 }
 0x4c8   : > { %v1254_v31 = vmax.f32 %v1250_v23, 0.0 }
 0x52b   : > { %v1178_v58 = vpop.f32.mrf.mxu2 }
 0x52c   : > { %v1259_v8 = vadd.f32 %v1216_v15, %v1178_v58  ;;  %v1246_v15 = vmax.f32 %v1234_v30, %v1242_v29 }
 0x52e   : > { %v1263_v42 = vmax.f32 %v1259_v8, 0.0  ;;  %v1258_v20 = vmax.f32 %v1246_v15, %v1254_v31 }
 0x530   : > { %v8650_v1 = vmax.f32 %v1255_v2, %v1263_v42 }
 0x532   : > { %6250 = vmatmul.msk.f32.vlgmr.msrb.gmra.mxu3 %vm1271_vm0, %v8650_v1  ;;  %v1313_v46 = vmul.f32 %v8650_v1, %v8650_v1 }
 0x533   : > { %v1181_v47 = vpop.f32.mrf.mxu2 }
 0x534   : > { %v1260_v49 = vadd.f32 %v1219_v39, %v1181_v47  ;;  %v1317_v50 = vsel %vm1271_vm0, %v1313_v46, 0.0 }
 0x535   : > { %1318 = vadd.xlane.f32.xlu0 %v1317_v50 }
 0x536   : > { %v1264_v55 = vmax.f32 %v1260_v49, 0.0 }
 0x538   : > { %v8657_v4 = vmax.f32 %v1256_v52, %v1264_v55 }
 0x53a   : > { %6251 = vmatmul.msk.f32.gmra.mxu3 %vm1271_vm0, %v8657_v4  ;;  %v1314_v7 = vmul.f32 %v8657_v4, %v8657_v4 }
 0x53b   : > { %v1184_v11 = vpop.f32.mrf.mxu2 }
 0x53c   : > { %v1261_v19 = vadd.f32 %v1222_v44, %v1184_v11  ;;  %v1320_v22 = vsel %vm1271_vm0, %v1314_v7, 0.0 }
 0x53d   : > { %1321 = vadd.xlane.f32.xlu1 %v1320_v22 }
 0x53e   : > { %v1265_v24 = vmax.f32 %v1261_v19, 0.0 }
 0x540   : > { %v8665_v28 = vmax.f32 %v1257_v62, %v1265_v24 }
 0x542   : > { %6252 = vmatmul.msk.f32.gmra.mxu3 %vm1271_vm0, %v8665_v28  ;;  %v1315_v54 = vmul.f32 %v8665_v28, %v8665_v28 }
 0x543   : > { %v1187_v32 = vpop.f32.mrf.mxu2 }
 0x544   : > { %v1262_v25 = vadd.f32 %v1225_v5, %v1187_v32  ;;  %v1323_v9 = vsel %vm1271_vm0, %v1315_v54, 0.0 }
 0x545   : > { %1324 = vadd.xlane.f32.xlu2 %v1323_v9 }
 0x546   : > { %v1266_v33 = vmax.f32 %v1262_v25, 0.0 }
 0x548   : > { %v8672_v34 = vmax.f32 %v1258_v20, %v1266_v33 }
 0x54a   : > { %6226 = vmatpush.xpose.msk.msrb.mxu1 %vm1271_vm0, %v8672_v34  ;;  %6253 = vmatmul.msk.f32.gmra.mxu3 %vm1271_vm0, %v8672_v34  ;;  %v1316_v35 = vmul.f32 %v8672_v34, %v8672_v34 }
 0x54c   : > { %v1326_v36 = vsel %vm1271_vm0, %v1316_v35, 0.0 }
 0x54d   : > { %1327 = vadd.xlane.f32.xlu0 %v1326_v36 }
 0x54e   : > { %6227 = vmatpush.xpose.msk.msrb.mxu1 %vm1271_vm0, %v8665_v28 }
 0x552   : > { %6228 = vmatpush.xpose.msk.msrb.mxu1 %vm1271_vm0, %v8657_v4 }
 0x556   : > { %6229 = vmatpush.xpose.msk.msrb.mxu1 %vm1271_vm0, %v8650_v1 }
 0x559   : > { %6230 = vmatmul.msk.f32.vlgmr.msrb.gmra.mxu1 %vm1271_vm0, %v8650_v1 }
 0x55a   : > { %1842 = vmatpush.msra.mxu1 %v1823_v37 }
 0x55c   : > { %1843 = vmatpush.msra.mxu1 %v1822_v38 }
 0x561   : > { %6231 = vmatmul.msk.f32.gmra.mxu1 %vm1271_vm0, %v8657_v4 }
 0x569   : > { %6232 = vmatmul.msk.f32.gmra.mxu1 %vm1271_vm0, %v8665_v28 }
 0x571   : > { %6233 = vmatmul.msk.f32.gmra.mxu1 %vm1271_vm0, %v8672_v34 }
 0x579   : > { %6270 = vmatmul.msk.f32.vlgmr.msra.gmra.mxu1 %vm1271_vm0, %v8650_v1 }
 0x581   : > { %6271 = vmatmul.msk.f32.gmra.mxu1 %vm1271_vm0, %v8657_v4 }
 0x589   : > { %6272 = vmatmul.msk.f32.gmra.mxu1 %vm1271_vm0, %v8665_v28 }
 0x591   : > { %6273 = vmatmul.msk.f32.gmra.mxu1 %vm1271_vm0, %v8672_v34 }
 0x5a8   : > { %v1319_v51 = vpop.xlane.xlu0 %1318 }
 0x5b0   : > { %v1322_v63 = vpop.xlane.xlu1 %1321 }
 0x5b5   : > { %v1697_v39 = vpop.f32.mrf.mxu3 }
 0x5b8   : > { %v1325_v7 = vpop.xlane.xlu2 %1324 }
 0x5bd   : > { %v1700_v3 = vpop.f32.mrf.mxu3 }
 0x5c0   : > { %v1328_v57 = vpop.xlane.xlu0 %1327 }
 0x5c5   : > { %v1703_v58 = vpop.f32.mrf.mxu3 }
 0x5cd   : > { %v1706_v56 = vpop.f32.mrf.mxu3 }
 0x5ce   : > { %1769 = vmatpush.msra.mxu0 %v1706_v56 }
 0x5d0   : > { %1770 = vmatpush.msra.mxu0 %v1703_v58 }
 0x5d2   : > { %1771 = vmatpush.msra.mxu0 %v1700_v3 }
 0x5d4   : > { %1772 = vmatpush.msra.mxu0 %v1697_v39 }
 0x5d6   : > { %v1301_v40 = vpop.f32.mrf.mxu1 }
 0x5d7   : > { %v1329_v2 = vsel %vm680_vm2, %v1301_v40, 0.0  ;;  %v1350_v5 = vmul.f32 2.0, %v1301_v40 }
 0x5d8   : > { %v1333_v10 = vsel %vm688_vm4, %v1329_v2, 0.0 }
 0x5de   : > { %v1304_v8 = vpop.f32.mrf.mxu1 }
 0x5df   : > { %v1330_v27 = vsel %vm681_vm1, %v1304_v8, 0.0  ;;  %v1351_v6 = vmul.f32 2.0, %v1304_v8 }
 0x5e0   : > { %v1334_v42 = vsel %vm688_vm4, %v1330_v27, 0.0 }
 0x5e1   : > { %v1335_v44 = vadd.f32 %v1334_v42, %v1333_v10 }
 0x5e6   : > { %v1307_v41 = vpop.f32.mrf.mxu1 }
 0x5e7   : > { %v1331_v26 = vsel %vm682_vm3, %v1307_v41, 0.0  ;;  %v1352_v22 = vmul.f32 2.0, %v1307_v41 }
 0x5e8   : > { %v1336_v43 = vsel %vm688_vm4, %v1331_v26, 0.0 }
 0x5e9   : > { %v1337_v46 = vadd.f32 %v1336_v43, %v1335_v44 }
 0x5ee   : > { %v1310_v45 = vpop.f32.mrf.mxu1 }
 0x5ef   : > { %v1332_v47 = vsel %vm683_vm5, %v1310_v45, 0.0  ;;  %v1353_v12 = vmul.f32 2.0, %v1310_v45 }
 0x5f0   : > { %v1338_v0 = vsel %vm688_vm4, %v1332_v47, 0.0 }
 0x5f1   : > { %v1339_v48 = vadd.f32 %v1338_v0, %v1337_v46 }
 0x5f3   : > { %v1340_v49 = vrot.slane %v1339_v48, 4 }
 0x5f5   : > { %v1341_v50 = vadd.f32 %v1340_v49, %v1339_v48 }
 0x5f7   : > { %v1342_v52 = vrot.slane %v1341_v50, 2 }
 0x5f9   : > { %v1343_v53 = vadd.f32 %v1342_v52, %v1341_v50 }
 0x5fb   : > { %v1344_v55 = vrot.slane %v1343_v53, 1 }
 0x5fd   : > { %v1345_v61 = vadd.f32 %v1344_v55, %v1343_v53 }
 0x5ff   : > { %v1349_v11 = vadd.f32 %v1345_v61, %v1328_v57  ;;  %v1347_v13 = vadd.f32 %v1345_v61, %v1322_v63  ;;  %v1346_v19 = vadd.f32 %v1345_v61, %v1319_v51  ;;  %v1348_v60 = vadd.f32 %v1345_v61, %v1325_v7 }
 0x601   : > { %v1357_v62 = vsub.f32 %v1349_v11, %v1353_v12  ;;  %v1355_v23 = vsub.f32 %v1347_v13, %v1351_v6  ;;  %v1354_v24 = vsub.f32 %v1346_v19, %v1350_v5  ;;  %v1356_v29 = vsub.f32 %v1348_v60, %v1352_v22 }
 0x603   : > { %v1361_v30 = vmax.f32 %v1357_v62, 0.0  ;;  %v1359_v31 = vmax.f32 %v1355_v23, 0.0  ;;  %v1358_v54 = vmax.f32 %v1354_v24, 0.0  ;;  %v1360_v32 = vmax.f32 %v1356_v29, 0.0 }
 0x605   : > { %v1365_v15 = vsel %vm617_vm10, %v1361_v30, 1e+30  ;;  %v1363_v25 = vsel %vm615_vm11, %v1359_v31, 1e+30  ;;  %v1362_v9 = vsel %vm614_vm9, %v1358_v54, 1e+30 }
 0x606   : > { %v1373_v20 = vand.u32 4294967264, %v1365_v15  ;;  %v1371_v33 = vand.u32 4294967264, %v1363_v25  ;;  %v1370_v35 = vand.u32 4294967264, %v1362_v9  ;;  %v1364_v36 = vsel %vm616_vm8, %v1360_v32, 1e+30 }
 0x607   : > { %v1372_v37 = vand.u32 4294967264, %v1364_v36 }
 0x608   : > { %v8738_v38 = vor.u32 %v1371_v33, %v8415_v17  ;;  %v8741_v39 = vor.u32 %v1370_v35, %v8415_v17  ;;  %v8751_v40 = vor.u32 %v1373_v20, %v8415_v17 }
 0x609   : > { %v8744_v3 = vor.u32 %v1372_v37, %v8415_v17 }
 0x60a   : > { %v1393_v58 = vsel %vm688_vm4, %v8738_v38, 2147483647  ;;  %v1378_v56 = vsel %vm688_vm4, %v8741_v39, 2147483647  ;;  %v1423_v43 = vsel %vm688_vm4, %v8751_v40, 2147483647 }
 0x60b   : > { %v1395_v8 = vshra.s32 %v1393_v58, 16  ;;  %v1380_v41 = vshra.s32 %v1378_v56, 16  ;;  %v1408_v27 = vsel %vm688_vm4, %v8744_v3, 2147483647  ;;  %v1425_v44 = vshra.s32 %v1423_v43, 16 }
 0x60c   : > { %v1410_v2 = vshra.s32 %v1408_v27, 16  ;;  %v1379_v46 = vand.u32 65535, %v1378_v56  ;;  %v1394_v47 = vand.u32 65535, %v1393_v58  ;;  %v1409_v0 = vand.u32 65535, %v1408_v27 }
 0x60d   : > { %v1397_v26 = vcvt.s32.f32 %v1395_v8  ;;  %v1382_v42 = vcvt.s32.f32 %v1380_v41  ;;  %v1427_v45 = vcvt.s32.f32 %v1425_v44  ;;  %v1424_v57 = vand.u32 65535, %v1423_v43 }
 0x60e   : > { %v1412_v10 = vcvt.s32.f32 %v1410_v2  ;;  %v1381_v50 = vcvt.s32.f32 %v1379_v46  ;;  %v1396_v51 = vcvt.s32.f32 %v1394_v47  ;;  %v1411_v53 = vcvt.s32.f32 %v1409_v0 }
 0x60f   : > { %1398 = vmin.xlane.f32.xlu2 %v1397_v26  ;;  %1383 = vmin.xlane.f32.xlu1 %v1382_v42  ;;  %v1426_v6 = vcvt.s32.f32 %v1424_v57 }
 0x610   : > { %1413 = vmin.xlane.f32.xlu0 %v1412_v10 }
 0x617   : > { %1428 = vmin.xlane.f32.xlu1 %v1427_v45 }
 0x682   : > { %v1384_v48 = vpop.xlane.xlu1 %1383  ;;  %v1399_v49 = vpop.xlane.xlu2 %1398 }
 0x683   : > { %v1414_v52 = vpop.xlane.xlu0 %1413  ;;  %vm1385_vm6 = vcmp.eq.f32.partialorder %v1382_v42, %v1384_v48  ;;  %vm1400_vm7 = vcmp.eq.f32.partialorder %v1397_v26, %v1399_v49  ;;  %v1390_v11 = vcvt.f32.s32 %v1384_v48  ;;  %v1405_v12 = vcvt.f32.s32 %v1399_v49 }
 0x684   : > { %v1386_v55 = vsel %vm1385_vm6, %v1381_v50, inf  ;;  %vm1415_vm12 = vcmp.eq.f32.partialorder %v1412_v10, %v1414_v52  ;;  %v1401_v61 = vsel %vm1400_vm7, %v1396_v51, inf  ;;  %v1420_v13 = vcvt.f32.s32 %v1414_v52 }
 0x685   : > { %1387 = vmin.xlane.f32.xlu2 %v1386_v55  ;;  %v1416_v63 = vsel %vm1415_vm12, %v1411_v53, inf  ;;  %1402 = vmin.xlane.f32.xlu0 %v1401_v61  ;;  %v1391_v60 = vshll.u32 %v1390_v11, 16  ;;  %v1406_v62 = vshll.u32 %v1405_v12, 16 }
 0x686   : > { %1417 = vmin.xlane.f32.xlu1 %v1416_v63  ;;  %v1421_v30 = vshll.u32 %v1420_v13, 16 }
 0x68a   : > { %v1429_v5 = vpop.xlane.xlu1 %1428 }
 0x68b   : > { %vm1430_vm13 = vcmp.eq.f32.partialorder %v1427_v45, %v1429_v5  ;;  %v1435_v25 = vcvt.f32.s32 %v1429_v5 }
 0x68c   : > { %v1431_v7 = vsel %vm1430_vm13, %v1426_v6, inf }
 0x68d   : > { %1432 = vmin.xlane.f32.xlu2 %v1431_v7  ;;  %v1436_v41 = vshll.u32 %v1435_v25, 16 }
 0x6f8   : > { %v1403_v19 = vpop.xlane.xlu0 %1402  ;;  %v1388_v22 = vpop.xlane.xlu2 %1387 }
 0x6f9   : > { %v1418_v23 = vpop.xlane.xlu1 %1417  ;;  %v1404_v24 = vcvt.f32.s32 %v1403_v19  ;;  %v1389_v29 = vcvt.f32.s32 %v1388_v22 }
 0x6fa   : > { %v1419_v31 = vcvt.f32.s32 %v1418_v23 }
 0x6fb   : > { %v1407_v54 = vadd.s32 %v1406_v62, %v1404_v24  ;;  %v1392_v32 = vadd.s32 %v1391_v60, %v1389_v29 }
 0x6fc   : > { %v1422_v15 = vadd.s32 %v1421_v30, %v1419_v31 }
 0x6fd   : > { %vm1439_vm14 = vcmp.eq.s32.totalorder %v8738_v38, %v1407_v54  ;;  %vm1438_vm15 = vcmp.eq.s32.totalorder %v8741_v39, %v1392_v32 }
 0x6fe   : > { %vm1440_vm6 = vcmp.eq.s32.totalorder %v8744_v3, %v1422_v15  ;;  %v6234_v9 = vsel %vm1438_vm15, 1.0, %v8255_v59  ;;  %v8764_v20 = vsel %vm1439_vm14, 2147483647, %v8738_v38  ;;  %v8767_v33 = vsel %vm1438_vm15, 2147483647, %v8741_v39 }
 0x6ff   : > { %6254 = vmatmul.msk.f32.vlgmr.msra.gmra.mxu0 %vm688_vm4, %v6234_v9  ;;  %v8773_v35 = vsel %vm1440_vm6, 2147483647, %v8744_v3  ;;  %v1469_v36 = vsel %vm688_vm4, %v8764_v20, 2147483647  ;;  %v1454_v37 = vsel %vm688_vm4, %v8767_v33, 2147483647 }
 0x700   : > { %v1433_v58 = vpop.xlane.xlu2 %1432  ;;  %v1484_v56 = vsel %vm688_vm4, %v8773_v35, 2147483647  ;;  %v1471_v8 = vshra.s32 %v1469_v36, 16  ;;  %v1456_v39 = vshra.s32 %v1454_v37, 16  ;;  %v6235_v44 = vsel %vm1439_vm14, 1.0, %v8255_v59 }
 0x701   : > { %v1434_v27 = vcvt.f32.s32 %v1433_v58  ;;  %v1486_v2 = vshra.s32 %v1484_v56, 16  ;;  %v6236_v48 = vsel %vm1440_vm6, 1.0, %v8255_v59  ;;  %v1455_v49 = vand.u32 65535, %v1454_v37 }
 0x702   : > { %v1473_v26 = vcvt.s32.f32 %v1471_v8  ;;  %v1458_v42 = vcvt.s32.f32 %v1456_v39  ;;  %v1485_v50 = vand.u32 65535, %v1484_v56 }
 0x703   : > { %v1437_v10 = vadd.s32 %v1436_v41, %v1434_v27  ;;  %v1488_v43 = vcvt.s32.f32 %v1486_v2  ;;  %v1457_v55 = vcvt.s32.f32 %v1455_v49 }
 0x704   : > { %1474 = vmin.xlane.f32.xlu1 %v1473_v26  ;;  %1459 = vmin.xlane.f32.xlu0 %v1458_v42  ;;  %v1487_v63 = vcvt.s32.f32 %v1485_v50 }
 0x705   : > { %vm1441_vm7 = vcmp.eq.s32.totalorder %v8751_v40, %v1437_v10  ;;  %1489 = vmin.xlane.f32.xlu2 %v1488_v43 }
 0x706   : > { %v8786_v45 = vsel %vm1441_vm7, 2147483647, %v8751_v40  ;;  %v6237_v38 = vsel %vm1441_vm7, 1.0, %v8255_v59  ;;  %v1470_v40 = vand.u32 65535, %v1469_v36 }
 0x707   : > { %6255 = vmatmul.msk.f32.gmra.mxu0 %vm688_vm4, %v6235_v44  ;;  %v1499_v46 = vsel %vm688_vm4, %v8786_v45, 2147483647 }
 0x708   : > { %v1501_v47 = vshra.s32 %v1499_v46, 16  ;;  %v1472_v53 = vcvt.s32.f32 %v1470_v40  ;;  %v1500_v6 = vand.u32 65535, %v1499_v46 }
 0x70a   : > { %v1503_v0 = vcvt.s32.f32 %v1501_v47  ;;  %v1502_v11 = vcvt.s32.f32 %v1500_v6 }
 0x70c   : > { %1504 = vmin.xlane.f32.xlu0 %v1503_v0 }
 0x70f   : > { %6256 = vmatmul.msk.f32.gmra.mxu0 %vm688_vm4, %v6236_v48 }
 0x717   : > { %6257 = vmatmul.msk.f32.gmra.mxu0 %vm688_vm4, %v6237_v38 }
 0x777   : > { %v1475_v51 = vpop.xlane.xlu1 %1474  ;;  %v1460_v52 = vpop.xlane.xlu0 %1459 }
 0x778   : > { %v1490_v61 = vpop.xlane.xlu2 %1489  ;;  %vm1476_vm12 = vcmp.eq.f32.partialorder %v1473_v26, %v1475_v51  ;;  %vm1461_vm13 = vcmp.eq.f32.partialorder %v1458_v42, %v1460_v52  ;;  %v1481_v13 = vcvt.f32.s32 %v1475_v51  ;;  %v1466_v19 = vcvt.f32.s32 %v1460_v52 }
 0x779   : > { %v1477_v57 = vsel %vm1476_vm12, %v1472_v53, inf  ;;  %v1462_v3 = vsel %vm1461_vm13, %v1457_v55, inf  ;;  %vm1491_vm14 = vcmp.eq.f32.partialorder %v1488_v43, %v1490_v61  ;;  %v1496_v22 = vcvt.f32.s32 %v1490_v61 }
 0x77a   : > { %1478 = vmin.xlane.f32.xlu2 %v1477_v57  ;;  %1463 = vmin.xlane.f32.xlu1 %v1462_v3  ;;  %v1492_v5 = vsel %vm1491_vm14, %v1487_v63, inf  ;;  %v1482_v23 = vshll.u32 %v1481_v13, 16  ;;  %v1467_v24 = vshll.u32 %v1466_v19, 16 }
 0x77b   : > { %1493 = vmin.xlane.f32.xlu0 %v1492_v5  ;;  %v1497_v54 = vshll.u32 %v1496_v22, 16 }
 0x77f   : > { %v1505_v7 = vpop.xlane.xlu0 %1504 }
 0x780   : > { %vm1506_vm15 = vcmp.eq.f32.partialorder %v1503_v0, %v1505_v7  ;;  %v1511_v36 = vcvt.f32.s32 %v1505_v7 }
 0x781   : > { %v1507_v12 = vsel %vm1506_vm15, %v1502_v11, inf }
 0x782   : > { %1508 = vmin.xlane.f32.xlu1 %v1507_v12  ;;  %v1512_v42 = vshll.u32 %v1511_v36, 16 }
 0x7ed   : > { %v1464_v60 = vpop.xlane.xlu1 %1463  ;;  %v1479_v62 = vpop.xlane.xlu2 %1478 }
 0x7ee   : > { %v1465_v29 = vcvt.f32.s32 %v1464_v60  ;;  %v1494_v30 = vpop.xlane.xlu0 %1493  ;;  %v1480_v31 = vcvt.f32.s32 %v1479_v62 }
 0x7ef   : > { %v1495_v32 = vcvt.f32.s32 %v1494_v30 }
 0x7f0   : > { %v1468_v15 = vadd.s32 %v1467_v24, %v1465_v29  ;;  %v1483_v25 = vadd.s32 %v1482_v23, %v1480_v31 }
 0x7f1   : > { %v1498_v9 = vadd.s32 %v1497_v54, %v1495_v32 }
 0x7f2   : > { %vm1515_vm6 = vcmp.eq.s32.totalorder %v8764_v20, %v1483_v25  ;;  %vm1514_vm7 = vcmp.eq.s32.totalorder %v8767_v33, %v1468_v15 }
 0x7f3   : > { %vm1516_vm12 = vcmp.eq.s32.totalorder %v8773_v35, %v1498_v9  ;;  %v6238_v37 = vsel %vm1514_vm7, 1.0, %v8255_v59  ;;  %v8802_v58 = vsel %vm1514_vm7, 2147483647, %v8767_v33  ;;  %v8807_v56 = vsel %vm1515_vm6, 2147483647, %v8764_v20 }
 0x7f4   : > { %6258 = vmatmul.msk.f32.gmra.mxu0 %vm688_vm4, %v6238_v37  ;;  %v1530_v8 = vsel %vm688_vm4, %v8802_v58, 2147483647  ;;  %v8815_v39 = vsel %vm1516_vm12, 2147483647, %v8773_v35  ;;  %v1545_v41 = vsel %vm688_vm4, %v8807_v56, 2147483647 }
 0x7f5   : > { %v1509_v33 = vpop.xlane.xlu1 %1508  ;;  %v1532_v27 = vshra.s32 %v1530_v8, 16  ;;  %v1560_v2 = vsel %vm688_vm4, %v8815_v39, 2147483647  ;;  %v1547_v26 = vshra.s32 %v1545_v41, 16  ;;  %v6239_v48 = vsel %vm1515_vm6, 1.0, %v8255_v59 }
 0x7f6   : > { %v1510_v10 = vcvt.f32.s32 %v1509_v33  ;;  %v1562_v43 = vshra.s32 %v1560_v2, 16  ;;  %v6240_v51 = vsel %vm1516_vm12, 1.0, %v8255_v59  ;;  %v1531_v52 = vand.u32 65535, %v1530_v8 }
 0x7f7   : > { %v1534_v44 = vcvt.s32.f32 %v1532_v27  ;;  %v1549_v46 = vcvt.s32.f32 %v1547_v26  ;;  %v1561_v53 = vand.u32 65535, %v1560_v2 }
 0x7f8   : > { %v1513_v47 = vadd.s32 %v1512_v42, %v1510_v10  ;;  %v1564_v0 = vcvt.s32.f32 %v1562_v43  ;;  %v1533_v57 = vcvt.s32.f32 %v1531_v52 }
 0x7f9   : > { %1535 = vmin.xlane.f32.xlu2 %v1534_v44  ;;  %1550 = vmin.xlane.f32.xlu0 %v1549_v46  ;;  %v1563_v5 = vcvt.s32.f32 %v1561_v53 }
 0x7fa   : > { %vm1517_vm13 = vcmp.eq.s32.totalorder %v8786_v45, %v1513_v47  ;;  %1565 = vmin.xlane.f32.xlu1 %v1564_v0 }
 0x7fb   : > { %v8826_v38 = vsel %vm1517_vm13, 2147483647, %v8786_v45  ;;  %v6241_v20 = vsel %vm1517_vm13, 1.0, %v8255_v59  ;;  %v1546_v45 = vand.u32 65535, %v1545_v41 }
 0x7fc   : > { %6259 = vmatmul.msk.f32.gmra.mxu0 %vm688_vm4, %v6239_v48  ;;  %v1575_v40 = vsel %vm688_vm4, %v8826_v38, 2147483647 }
 0x7fd   : > { %v1577_v49 = vshra.s32 %v1575_v40, 16  ;;  %v1548_v63 = vcvt.s32.f32 %v1546_v45  ;;  %v1576_v11 = vand.u32 65535, %v1575_v40 }
 0x7ff   : > { %v1579_v50 = vcvt.s32.f32 %v1577_v49  ;;  %v1578_v13 = vcvt.s32.f32 %v1576_v11 }
 0x801   : > { %1580 = vmin.xlane.f32.xlu2 %v1579_v50 }
 0x804   : > { %6260 = vmatmul.msk.f32.gmra.mxu0 %vm688_vm4, %v6240_v51 }
 0x80c   : > { %6261 = vmatmul.msk.f32.gmra.mxu0 %vm688_vm4, %v6241_v20 }
 0x86c   : > { %v1551_v55 = vpop.xlane.xlu0 %1550  ;;  %v1536_v61 = vpop.xlane.xlu2 %1535 }
 0x86d   : > { %v1566_v3 = vpop.xlane.xlu1 %1565  ;;  %vm1552_vm14 = vcmp.eq.f32.partialorder %v1549_v46, %v1551_v55  ;;  %vm1537_vm15 = vcmp.eq.f32.partialorder %v1534_v44, %v1536_v61  ;;  %v1557_v22 = vcvt.f32.s32 %v1551_v55  ;;  %v1542_v60 = vcvt.f32.s32 %v1536_v61 }
 0x86e   : > { %vm1567_vm6 = vcmp.eq.f32.partialorder %v1564_v0, %v1566_v3  ;;  %v1553_v35 = vsel %vm1552_vm14, %v1548_v63, inf  ;;  %v1538_v6 = vsel %vm1537_vm15, %v1533_v57, inf  ;;  %v1572_v62 = vcvt.f32.s32 %v1566_v3 }
 0x86f   : > { %v1568_v7 = vsel %vm1567_vm6, %v1563_v5, inf  ;;  %1554 = vmin.xlane.f32.xlu1 %v1553_v35  ;;  %1539 = vmin.xlane.f32.xlu0 %v1538_v6  ;;  %v1558_v29 = vshll.u32 %v1557_v22, 16  ;;  %v1543_v30 = vshll.u32 %v1542_v60, 16 }
 0x870   : > { %1569 = vmin.xlane.f32.xlu2 %v1568_v7  ;;  %v1573_v15 = vshll.u32 %v1572_v62, 16 }
 0x874   : > { %v1581_v12 = vpop.xlane.xlu2 %1580 }
 0x875   : > { %vm1582_vm7 = vcmp.eq.f32.partialorder %v1579_v50, %v1581_v12  ;;  %v1587_v8 = vcvt.f32.s32 %v1581_v12 }
 0x876   : > { %v1583_v19 = vsel %vm1582_vm7, %v1578_v13, inf }
 0x877   : > { %1584 = vmin.xlane.f32.xlu0 %v1583_v19  ;;  %v1588_v46 = vshll.u32 %v1587_v8, 16 }
 0x8e2   : > { %v1555_v23 = vpop.xlane.xlu1 %1554  ;;  %v1540_v24 = vpop.xlane.xlu0 %1539 }
 0x8e3   : > { %v1556_v31 = vcvt.f32.s32 %v1555_v23  ;;  %v1541_v54 = vcvt.f32.s32 %v1540_v24  ;;  %v1570_v32 = vpop.xlane.xlu2 %1569 }
 0x8e4   : > { %v1571_v25 = vcvt.f32.s32 %v1570_v32 }
 0x8e5   : > { %v1559_v9 = vadd.s32 %v1558_v29, %v1556_v31  ;;  %v1544_v36 = vadd.s32 %v1543_v30, %v1541_v54 }
 0x8e6   : > { %v1574_v37 = vadd.s32 %v1573_v15, %v1571_v25 }
 0x8e7   : > { %vm1591_vm12 = vcmp.eq.s32.totalorder %v8807_v56, %v1559_v9  ;;  %vm1590_vm13 = vcmp.eq.s32.totalorder %v8802_v58, %v1544_v36 }
 0x8e8   : > { %vm1592_vm14 = vcmp.eq.s32.totalorder %v8815_v39, %v1574_v37  ;;  %v6242_v41 = vsel %vm1590_vm13, 1.0, %v8255_v59  ;;  %v8842_v33 = vsel %vm1590_vm13, 2147483647, %v8802_v58  ;;  %v8847_v27 = vsel %vm1591_vm12, 2147483647, %v8807_v56 }
 0x8e9   : > { %6262 = vmatmul.msk.f32.gmra.mxu0 %vm688_vm4, %v6242_v41  ;;  %v1621_v2 = vsel %vm688_vm4, %v8847_v27, 2147483647  ;;  %v1606_v26 = vsel %vm688_vm4, %v8842_v33, 2147483647  ;;  %v8857_v42 = vsel %vm1592_vm14, 2147483647, %v8815_v39 }
 0x8ea   : > { %v1585_v58 = vpop.xlane.xlu0 %1584  ;;  %v1623_v10 = vshra.s32 %v1621_v2, 16  ;;  %v1608_v43 = vshra.s32 %v1606_v26, 16  ;;  %v1636_v44 = vsel %vm688_vm4, %v8857_v42, 2147483647  ;;  %v6243_v51 = vsel %vm1591_vm12, 1.0, %v8255_v59 }
 0x8eb   : > { %v1586_v47 = vcvt.f32.s32 %v1585_v58  ;;  %v1638_v0 = vshra.s32 %v1636_v44, 16  ;;  %v6244_v55 = vsel %vm1592_vm14, 1.0, %v8255_v59  ;;  %v1622_v61 = vand.u32 65535, %v1621_v2 }
 0x8ec   : > { %v1625_v48 = vcvt.s32.f32 %v1623_v10  ;;  %v1610_v40 = vcvt.s32.f32 %v1608_v43  ;;  %v1637_v63 = vand.u32 65535, %v1636_v44  ;;  %v1774_v43 = vpop.f32.mrf.mxu0 }
 0x8ed   : > { %v1589_v49 = vadd.s32 %v1588_v46, %v1586_v47  ;;  %v1640_v50 = vcvt.s32.f32 %v1638_v0  ;;  %v1624_v35 = vcvt.s32.f32 %v1622_v61 }
 0x8ee   : > { %1626 = vmin.xlane.f32.xlu2 %v1625_v48  ;;  %1611 = vmin.xlane.f32.xlu1 %v1610_v40  ;;  %v1639_v7 = vcvt.s32.f32 %v1637_v63 }
 0x8ef   : > { %vm1593_vm15 = vcmp.eq.s32.totalorder %v8826_v38, %v1589_v49  ;;  %1641 = vmin.xlane.f32.xlu0 %v1640_v50 }
 0x8f0   : > { %v8866_v20 = vsel %vm1593_vm15, 2147483647, %v8826_v38  ;;  %v6245_v56 = vsel %vm1593_vm15, 1.0, %v8255_v59  ;;  %v1607_v38 = vand.u32 65535, %v1606_v26 }
 0x8f1   : > { %6263 = vmatmul.msk.f32.gmra.mxu0 %vm688_vm4, %v6243_v51  ;;  %v1651_v45 = vsel %vm688_vm4, %v8866_v20, 2147483647 }
 0x8f2   : > { %v1653_v52 = vshra.s32 %v1651_v45, 16  ;;  %v1609_v5 = vcvt.s32.f32 %v1607_v38  ;;  %v1652_v13 = vand.u32 65535, %v1651_v45  ;;  %v8244_v38 = vld [vmem:[%s11738_s6] ss:$0 sm:$0xff] }
 0x8f4   : > { %v1655_v53 = vcvt.s32.f32 %v1653_v52  ;;  %v1654_v22 = vcvt.s32.f32 %v1652_v13 }
 0x8f6   : > { %1656 = vmin.xlane.f32.xlu1 %v1655_v53 }
 0x8f9   : > { %6264 = vmatmul.msk.f32.gmra.mxu0 %vm688_vm4, %v6244_v55  ;;  %v1845_v55 = vpop.f32.mrf.mxu1 }
 0x8fa   : > { %v1846_v61 = vadd.f32 %v8244_v38, %v1845_v55 }
 0x901   : > { %6265 = vmatmul.msk.f32.gmra.mxu0 %vm688_vm4, %v6245_v56  ;;  %v1848_v63 = vpop.f32.mrf.mxu1 }
 0x961   : > { %v1612_v57 = vpop.xlane.xlu1 %1611  ;;  %v1627_v3 = vpop.xlane.xlu2 %1626 }
 0x962   : > { %v1642_v6 = vpop.xlane.xlu0 %1641  ;;  %vm1613_vm6 = vcmp.eq.f32.partialorder %v1610_v40, %v1612_v57  ;;  %vm1628_vm7 = vcmp.eq.f32.partialorder %v1625_v48, %v1627_v3  ;;  %v1618_v62 = vcvt.f32.s32 %v1612_v57  ;;  %v1633_v30 = vcvt.f32.s32 %v1627_v3 }
 0x963   : > { %v1614_v11 = vsel %vm1613_vm6, %v1609_v5, inf  ;;  %vm1643_vm12 = vcmp.eq.f32.partialorder %v1640_v50, %v1642_v6  ;;  %v1629_v39 = vsel %vm1628_vm7, %v1624_v35, inf  ;;  %v1648_v37 = vcvt.f32.s32 %v1642_v6 }
 0x964   : > { %1615 = vmin.xlane.f32.xlu2 %v1614_v11  ;;  %v1644_v12 = vsel %vm1643_vm12, %v1639_v7, inf  ;;  %1630 = vmin.xlane.f32.xlu0 %v1629_v39  ;;  %v1619_v29 = vshll.u32 %v1618_v62, 16  ;;  %v1634_v15 = vshll.u32 %v1633_v30, 16  ;;  %v1857_v5 = vadd.f32 %v1846_v61, %v1774_v43 }
 0x965   : > { %1645 = vmin.xlane.f32.xlu1 %v1644_v12  ;;  %v1649_v41 = vshll.u32 %v1648_v37, 16  ;;  %v1849_v7 = vadd.f32 %v8244_v38, %v1848_v63 }
 0x966   : > { %v1861_v11 = vmax.f32 %v1857_v5, 0.0 }
 0x969   : > { %v1657_v19 = vpop.xlane.xlu1 %1656 }
 0x96a   : > { %vm1658_vm13 = vcmp.eq.f32.partialorder %v1655_v53, %v1657_v19  ;;  %v1663_v10 = vcvt.f32.s32 %v1657_v19  ;;  %v2516_v53 = vld [vmem:[%s11740_s8 + $0x8] sm:$0xff] }
 0x96b   : > { %v1659_v60 = vsel %vm1658_vm13, %v1654_v22, inf  ;;  %2531 = vmatpush.msrb.mxu1 %v2516_v53 }
 0x96c   : > { %1660 = vmin.xlane.f32.xlu2 %v1659_v60  ;;  %v1664_v44 = vshll.u32 %v1663_v10, 16  ;;  %v1851_v60 = vpop.f32.mrf.mxu1 }
 0x9d7   : > { %v1631_v23 = vpop.xlane.xlu0 %1630  ;;  %v1616_v24 = vpop.xlane.xlu2 %1615 }
 0x9d8   : > { %v1617_v31 = vcvt.f32.s32 %v1616_v24  ;;  %v1632_v54 = vcvt.f32.s32 %v1631_v23  ;;  %v1646_v36 = vpop.xlane.xlu1 %1645 }
 0x9d9   : > { %v1647_v8 = vcvt.f32.s32 %v1646_v36 }
 0x9da   : > { %v1620_v32 = vadd.s32 %v1619_v29, %v1617_v31  ;;  %v1635_v9 = vadd.s32 %v1634_v15, %v1632_v54  ;;  %v2660_v54 = vld [vmem:[%s11739_s7 + $0x8] sm:$0xff]  ;;  %v1852_v15 = vadd.f32 %v8244_v38, %v1851_v60 }
 0x9db   : > { %v1650_v26 = vadd.s32 %v1649_v41, %v1647_v8 }
 0x9dc   : > { %vm1666_vm14 = vcmp.eq.s32.totalorder %v8842_v33, %v1620_v32  ;;  %vm1667_vm15 = vcmp.eq.s32.totalorder %v8847_v27, %v1635_v9  ;;  %v1777_v27 = vpop.f32.mrf.mxu0  ;;  %v2659_v32 = vld [vmem:[%s11739_s7] sm:$0xff] }
 0x9dd   : > { %v6246_v25 = vsel %vm1666_vm14, 1.0, %v8255_v59  ;;  %v6247_v2 = vsel %vm1667_vm15, 1.0, %v8255_v59  ;;  %vm1668_vm6 = vcmp.eq.s32.totalorder %v8857_v42, %v1650_v26  ;;  %v1858_v62 = vadd.f32 %v1849_v7, %v1777_v27 }
 0x9de   : > { %6266 = vmatmul.msk.f32.gmra.mxu0 %vm688_vm4, %v6246_v25  ;;  %v6248_v46 = vsel %vm1668_vm6, 1.0, %v8255_v59 }
 0x9df   : > { %v1661_v58 = vpop.xlane.xlu2 %1660  ;;  %v1862_v25 = vmax.f32 %v1858_v62, 0.0 }
 0x9e0   : > { %v1662_v33 = vcvt.f32.s32 %v1661_v58 }
 0x9e2   : > { %v1665_v47 = vadd.s32 %v1664_v44, %v1662_v33 }
 0x9e4   : > { %vm1669_vm7 = vcmp.eq.s32.totalorder %v8866_v20, %v1665_v47  ;;  %v1780_v48 = vpop.f32.mrf.mxu0  ;;  %v2515_v20 = vld [vmem:[%s11740_s8] sm:$0xff] }
 0x9e5   : > { %v6249_v0 = vsel %vm1669_vm7, 1.0, %v8255_v59  ;;  %2532 = vmatpush.msrb.mxu1 %v2515_v20  ;;  %v1859_v58 = vadd.f32 %v1852_v15, %v1780_v48 }
 0x9e6   : > { %6267 = vmatmul.msk.f32.gmra.mxu0 %vm688_vm4, %v6247_v2 }
 0x9e7   : > { %2679 = vmatpush.msra.mxu1 %v2660_v54 }
 0x9e9   : > { %2680 = vmatpush.msra.mxu1 %v2659_v32 }
 0x9ec   : > { %v8889_v40 = vpop.f32.mrf.mxu0 }
 0x9ee   : > { %6268 = vmatmul.msk.f32.gmra.mxu0 %vm688_vm4, %v6248_v46  ;;  %v1854_v46 = vpop.f32.mrf.mxu1 }
 0x9f4   : > { %v1786_v49 = vpop.f32.mrf.mxu0 }
 0x9f5   : > { %v1865_v3 = vadd.f32 %v1846_v61, %v1786_v49  ;;  %v1863_v49 = vmax.f32 %v1859_v58, 0.0 }
 0x9f6   : > { %6269 = vmatmul.msk.f32.gmra.mxu0 %vm688_vm4, %v6249_v0  ;;  %v1855_v0 = vadd.f32 %v8244_v38, %v1854_v46 }
 0x9f7   : > { %v1869_v6 = vmax.f32 %v1865_v3, 0.0 }
 0x9f8   : > { %v1860_v55 = vadd.f32 %v1855_v0, %v8889_v40 }
 0x9f9   : > { %v1873_v13 = vmax.f32 %v1861_v11, %v1869_v6 }
 0x9fc   : > { %v1789_v50 = vpop.f32.mrf.mxu0 }
 0x9fd   : > { %v1866_v19 = vadd.f32 %v1849_v7, %v1789_v50 }
 0x9ff   : > { %v1870_v30 = vmax.f32 %v1866_v19, 0.0 }
 0xa01   : > { %v1874_v8 = vmax.f32 %v1862_v25, %v1870_v30 }
 0xa04   : > { %v1792_v51 = vpop.f32.mrf.mxu0 }
 0xa05   : > { %v1867_v41 = vadd.f32 %v1852_v15, %v1792_v51 }
 0xa07   : > { %v1871_v47 = vmax.f32 %v1867_v41, 0.0 }
 0xa0c   : > { %v1795_v42 = vpop.f32.mrf.mxu0 }
 0xa0d   : > { %v1868_v53 = vadd.f32 %v1855_v0, %v1795_v42 }
 0xa0f   : > { %v1872_v3 = vmax.f32 %v1868_v53, 0.0 }
 0xa14   : > { %v1798_v45 = vpop.f32.mrf.mxu0 }
 0xa15   : > { %v1877_v35 = vadd.f32 %v1846_v61, %v1798_v45 }
 0xa17   : > { %v1881_v39 = vmax.f32 %v1877_v35, 0.0  ;;  %v1864_v35 = vmax.f32 %v1860_v55, 0.0 }
 0xa19   : > { %v1885_v23 = vmax.f32 %v1873_v13, %v1881_v39  ;;  %v1876_v11 = vmax.f32 %v1864_v35, %v1872_v3 }
 0xa1c   : > { %v1801_v52 = vpop.f32.mrf.mxu0 }
 0xa1d   : > { %v1878_v24 = vadd.f32 %v1849_v7, %v1801_v52  ;;  %v1875_v52 = vmax.f32 %v1863_v49, %v1871_v47 }
 0xa1f   : > { %v1882_v9 = vmax.f32 %v1878_v24, 0.0 }
 0xa21   : > { %v1886_v10 = vmax.f32 %v1874_v8, %v1882_v9 }
 0xa24   : > { %v1804_v56 = vpop.f32.mrf.mxu0 }
 0xa25   : > { %v1879_v43 = vadd.f32 %v1852_v15, %v1804_v56 }
 0xa27   : > { %v1883_v50 = vmax.f32 %v1879_v43, 0.0 }
 0xa29   : > { %v1887_v56 = vmax.f32 %v1875_v52, %v1883_v50 }
 0xa2c   : > { %v1807_v57 = vpop.f32.mrf.mxu0 }
 0xa5b   : > { %v1810_v12 = vpop.f32.mrf.mxu0 }
 0xa5c   : > { %v1889_v22 = vadd.f32 %v1846_v61, %v1810_v12  ;;  %v1880_v61 = vadd.f32 %v1855_v0, %v1807_v57 }
 0xa5e   : > { %v1893_v29 = vmax.f32 %v1889_v22, 0.0  ;;  %v1884_v6 = vmax.f32 %v1880_v61, 0.0 }
 0xa60   : > { %v1897_v31 = vmax.f32 %v1885_v23, %v1893_v29  ;;  %v1888_v57 = vmax.f32 %v1876_v11, %v1884_v6 }
 0xa62   : > { %v8907_v36 = vadd.f32 %v1897_v31, %v8650_v1 }
 0xa63   : > { %v1813_v37 = vpop.f32.mrf.mxu0 }
 0xa64   : > { %v1890_v2 = vadd.f32 %v1849_v7, %v1813_v37  ;;  %6298 = vmatmul.msk.f32.vlgmr.msrb.gmra.mxu1 %vm1271_vm0, %v8907_v36  ;;  %v1946_v26 = vmul.f32 %v8907_v36, %v8907_v36 }
 0xa66   : > { %v1894_v33 = vmax.f32 %v1890_v2, 0.0  ;;  %v1950_v44 = vsel %vm1271_vm0, %v1946_v26, 0.0 }
 0xa67   : > { %1951 = vadd.xlane.f32.xlu0 %v1950_v44 }
 0xa68   : > { %v1898_v27 = vmax.f32 %v1886_v10, %v1894_v33 }
 0xa6a   : > { %v8915_v51 = vadd.f32 %v1898_v27, %v8657_v4 }
 0xa6b   : > { %v1816_v45 = vpop.f32.mrf.mxu0 }
 0xa6c   : > { %v1891_v20 = vadd.f32 %v1852_v15, %v1816_v45  ;;  %6299 = vmatmul.msk.f32.gmra.mxu1 %vm1271_vm0, %v8915_v51  ;;  %v1947_v48 = vmul.f32 %v8915_v51, %v8915_v51 }
 0xa6e   : > { %v1895_v38 = vmax.f32 %v1891_v20, 0.0  ;;  %v1953_v63 = vsel %vm1271_vm0, %v1947_v48, 0.0 }
 0xa6f   : > { %1954 = vadd.xlane.f32.xlu1 %v1953_v63 }
 0xa70   : > { %v1899_v5 = vmax.f32 %v1887_v56, %v1895_v38 }
 0xa72   : > { %v8924_v42 = vadd.f32 %v1899_v5, %v8665_v28 }
 0xa73   : > { %v1819_v7 = vpop.f32.mrf.mxu0 }
 0xa74   : > { %v1892_v39 = vadd.f32 %v1855_v0, %v1819_v7  ;;  %6300 = vmatmul.msk.f32.gmra.mxu1 %vm1271_vm0, %v8924_v42  ;;  %v1948_v40 = vmul.f32 %v8924_v42, %v8924_v42 }
 0xa76   : > { %v1896_v12 = vmax.f32 %v1892_v39, 0.0  ;;  %v1956_v13 = vsel %vm1271_vm0, %v1948_v40, 0.0 }
 0xa77   : > { %1957 = vadd.xlane.f32.xlu2 %v1956_v13 }
 0xa78   : > { %v1900_v19 = vmax.f32 %v1888_v57, %v1896_v12 }
 0xa7a   : > { %v8932_v22 = vadd.f32 %v1900_v19, %v8672_v34 }
 0xa7c   : > { %6274 = vmatpush.xpose.msk.msra.mxu3 %vm1271_vm0, %v8932_v22  ;;  %6301 = vmatmul.msk.f32.gmra.mxu1 %vm1271_vm0, %v8932_v22  ;;  %v1949_v60 = vmul.f32 %v8932_v22, %v8932_v22 }
 0xa7e   : > { %v1959_v62 = vsel %vm1271_vm0, %v1949_v60, 0.0 }
 0xa7f   : > { %1960 = vadd.xlane.f32.xlu0 %v1959_v62 }
 0xa80   : > { %6275 = vmatpush.xpose.msk.msra.mxu3 %vm1271_vm0, %v8924_v42 }
 0xa84   : > { %6276 = vmatpush.xpose.msk.msra.mxu3 %vm1271_vm0, %v8915_v51  ;;  %6318 = vmatmul.msk.f32.vlgmr.msra.gmra.mxu1 %vm1271_vm0, %v8907_v36 }
 0xa88   : > { %6277 = vmatpush.xpose.msk.msra.mxu3 %vm1271_vm0, %v8907_v36 }
 0xa8b   : > { %6278 = vmatmul.msk.f32.vlgmr.msra.gmra.mxu3 %vm1271_vm0, %v8907_v36 }
 0xa8c   : > { %6319 = vmatmul.msk.f32.gmra.mxu1 %vm1271_vm0, %v8915_v51 }
 0xa93   : > { %6279 = vmatmul.msk.f32.gmra.mxu3 %vm1271_vm0, %v8915_v51 }
 0xa94   : > { %6320 = vmatmul.msk.f32.gmra.mxu1 %vm1271_vm0, %v8924_v42 }
 0xa9b   : > { %6280 = vmatmul.msk.f32.gmra.mxu3 %vm1271_vm0, %v8924_v42 }
 0xa9c   : > { %6321 = vmatmul.msk.f32.gmra.mxu1 %vm1271_vm0, %v8932_v22 }
 0xaa3   : > { %6281 = vmatmul.msk.f32.gmra.mxu3 %vm1271_vm0, %v8932_v22 }
 0xada   : > { %v1952_v47 = vpop.xlane.xlu0 %1951 }
 0xae1   : > { %v2534_v23 = vpop.f32.mrf.mxu1 }
 0xae2   : > { %v1955_v50 = vpop.xlane.xlu1 %1954 }
 0xae9   : > { %v2537_v24 = vpop.f32.mrf.mxu1 }
 0xaea   : > { %v1958_v52 = vpop.xlane.xlu2 %1957 }
 0xaf1   : > { %v2540_v29 = vpop.f32.mrf.mxu1 }
 0xaf2   : > { %v1961_v53 = vpop.xlane.xlu0 %1960 }
 0xaf9   : > { %v2543_v30 = vpop.f32.mrf.mxu1 }
 0xafa   : > { %2606 = vmatpush.msrb.mxu3 %v2543_v30 }
 0xafc   : > { %2607 = vmatpush.msrb.mxu3 %v2540_v29 }
 0xafe   : > { %2608 = vmatpush.msrb.mxu3 %v2537_v24 }
 0xb00   : > { %2609 = vmatpush.msrb.mxu3 %v2534_v23 }
 0xb0e   : > { %v1934_v31 = vpop.f32.mrf.mxu3 }
 0xb0f   : > { %v1962_v25 = vsel %vm680_vm2, %v1934_v31, 0.0  ;;  %v1983_v20 = vmul.f32 2.0, %v1934_v31 }
 0xb10   : > { %v1966_v8 = vsel %vm688_vm4, %v1962_v25, 0.0 }
 0xb16   : > { %v1937_v54 = vpop.f32.mrf.mxu3 }
 0xb17   : > { %v1963_v15 = vsel %vm681_vm1, %v1937_v54, 0.0  ;;  %v1984_v48 = vmul.f32 2.0, %v1937_v54 }
 0xb18   : > { %v1967_v37 = vsel %vm688_vm4, %v1963_v15, 0.0 }
 0xb19   : > { %v1968_v2 = vadd.f32 %v1967_v37, %v1966_v8 }
 0xb1e   : > { %v1940_v32 = vpop.f32.mrf.mxu3 }
 0xb1f   : > { %v1964_v9 = vsel %vm682_vm3, %v1940_v32, 0.0  ;;  %v1985_v55 = vmul.f32 2.0, %v1940_v32 }
 0xb20   : > { %v1969_v41 = vsel %vm688_vm4, %v1964_v9, 0.0 }
 0xb21   : > { %v1970_v58 = vadd.f32 %v1969_v41, %v1968_v2 }
 0xb26   : > { %v1943_v26 = vpop.f32.mrf.mxu3 }
 0xb27   : > { %v1965_v10 = vsel %vm683_vm5, %v1943_v26, 0.0  ;;  %v1986_v56 = vmul.f32 2.0, %v1943_v26 }
 0xb28   : > { %v1971_v43 = vsel %vm688_vm4, %v1965_v10, 0.0 }
 0xb29   : > { %v1972_v33 = vadd.f32 %v1971_v43, %v1970_v58 }
 0xb2b   : > { %v1973_v44 = vrot.slane %v1972_v33, 4 }
 0xb2d   : > { %v1974_v46 = vadd.f32 %v1973_v44, %v1972_v33 }
 0xb2f   : > { %v1975_v27 = vrot.slane %v1974_v46, 2 }
 0xb31   : > { %v1976_v0 = vadd.f32 %v1975_v27, %v1974_v46 }
 0xb33   : > { %v1977_v49 = vrot.slane %v1976_v0, 1 }
 0xb35   : > { %v1978_v45 = vadd.f32 %v1977_v49, %v1976_v0 }
 0xb37   : > { %v1982_v61 = vadd.f32 %v1978_v45, %v1961_v53  ;;  %v1980_v38 = vadd.f32 %v1978_v45, %v1955_v50  ;;  %v1979_v63 = vadd.f32 %v1978_v45, %v1952_v47  ;;  %v1981_v3 = vadd.f32 %v1978_v45, %v1958_v52 }
 0xb39   : > { %v1990_v5 = vsub.f32 %v1982_v61, %v1986_v56  ;;  %v1988_v35 = vsub.f32 %v1980_v38, %v1984_v48  ;;  %v1987_v6 = vsub.f32 %v1979_v63, %v1983_v20  ;;  %v1989_v7 = vsub.f32 %v1981_v3, %v1985_v55 }
 0xb3b   : > { %v1994_v11 = vmax.f32 %v1990_v5, 0.0  ;;  %v1992_v39 = vmax.f32 %v1988_v35, 0.0  ;;  %v1991_v40 = vmax.f32 %v1987_v6, 0.0  ;;  %v1993_v57 = vmax.f32 %v1989_v7, 0.0 }
 0xb3d   : > { %v1998_v12 = vsel %vm617_vm10, %v1994_v11, 1e+30  ;;  %v1996_v13 = vsel %vm615_vm11, %v1992_v39, 1e+30  ;;  %v1995_v19 = vsel %vm614_vm9, %v1991_v40, 1e+30 }
 0xb3e   : > { %v2006_v60 = vand.u32 4294967264, %v1998_v12  ;;  %v2004_v62 = vand.u32 4294967264, %v1996_v13  ;;  %v2003_v23 = vand.u32 4294967264, %v1995_v19  ;;  %v1997_v24 = vsel %vm616_vm8, %v1993_v57, 1e+30 }
 0xb3f   : > { %v2005_v29 = vand.u32 4294967264, %v1997_v24 }
 0xb40   : > { %v8992_v30 = vor.u32 %v2004_v62, %v8415_v17  ;;  %v8995_v21 = vor.u32 %v2003_v23, %v8415_v17  ;;  %v9005_v54 = vor.u32 %v2006_v60, %v8415_v17 }
 0xb41   : > { %v8998_v16 = vor.u32 %v2005_v29, %v8415_v17 }
 0xb42   : > { %v2026_v14 = vsel %vm688_vm4, %v8992_v30, 2147483647  ;;  %v2011_v31 = vsel %vm688_vm4, %v8995_v21, 2147483647  ;;  %v2056_v41 = vsel %vm688_vm4, %v9005_v54, 2147483647 }
 0xb43   : > { %v2028_v18 = vshra.s32 %v2026_v14, 16  ;;  %v2013_v32 = vshra.s32 %v2011_v31, 16  ;;  %v2041_v15 = vsel %vm688_vm4, %v8998_v16, 2147483647  ;;  %v2058_v2 = vshra.s32 %v2056_v41, 16 }
 0xb44   : > { %v2043_v25 = vshra.s32 %v2041_v15, 16  ;;  %v2012_v17 = vand.u32 65535, %v2011_v31  ;;  %v2027_v58 = vand.u32 65535, %v2026_v14  ;;  %v2042_v10 = vand.u32 65535, %v2041_v15 }
 0xb45   : > { %v2030_v9 = vcvt.s32.f32 %v2028_v18  ;;  %v2015_v37 = vcvt.s32.f32 %v2013_v32  ;;  %v2060_v26 = vcvt.s32.f32 %v2058_v2  ;;  %v2057_v45 = vand.u32 65535, %v2056_v41 }
 0xb46   : > { %v2045_v8 = vcvt.s32.f32 %v2043_v25  ;;  %v2014_v44 = vcvt.s32.f32 %v2012_v17  ;;  %v2029_v46 = vcvt.s32.f32 %v2027_v58  ;;  %v2044_v27 = vcvt.s32.f32 %v2042_v10 }
 0xb47   : > { %2031 = vmin.xlane.f32.xlu2 %v2030_v9  ;;  %2016 = vmin.xlane.f32.xlu1 %v2015_v37  ;;  %v2059_v53 = vcvt.s32.f32 %v2057_v45 }
 0xb48   : > { %2046 = vmin.xlane.f32.xlu0 %v2045_v8 }
 0xb4f   : > { %2061 = vmin.xlane.f32.xlu1 %v2060_v26 }
 0xbba   : > { %v2017_v43 = vpop.xlane.xlu1 %2016  ;;  %v2032_v33 = vpop.xlane.xlu2 %2031 }
 0xbbb   : > { %v2047_v47 = vpop.xlane.xlu0 %2046  ;;  %vm2018_vm1 = vcmp.eq.f32.partialorder %v2015_v37, %v2017_v43  ;;  %vm2033_vm2 = vcmp.eq.f32.partialorder %v2030_v9, %v2032_v33  ;;  %v2023_v48 = vcvt.f32.s32 %v2017_v43  ;;  %v2038_v55 = vcvt.f32.s32 %v2032_v33 }
 0xbbc   : > { %v2019_v0 = vsel %vm2018_vm1, %v2014_v44, inf  ;;  %vm2048_vm3 = vcmp.eq.f32.partialorder %v2045_v8, %v2047_v47  ;;  %v2034_v49 = vsel %vm2033_vm2, %v2029_v46, inf  ;;  %v2053_v56 = vcvt.f32.s32 %v2047_v47 }
 0xbbd   : > { %2020 = vmin.xlane.f32.xlu2 %v2019_v0  ;;  %v2049_v50 = vsel %vm2048_vm3, %v2044_v27, inf  ;;  %2035 = vmin.xlane.f32.xlu0 %v2034_v49  ;;  %v2024_v63 = vshll.u32 %v2023_v48, 16  ;;  %v2039_v3 = vshll.u32 %v2038_v55, 16 }
 0xbbe   : > { %2050 = vmin.xlane.f32.xlu1 %v2049_v50  ;;  %v2054_v7 = vshll.u32 %v2053_v56, 16 }
 0xbc2   : > { %v2062_v52 = vpop.xlane.xlu1 %2061 }
 0xbc3   : > { %vm2063_vm5 = vcmp.eq.f32.partialorder %v2060_v26, %v2062_v52  ;;  %v2068_v12 = vcvt.f32.s32 %v2062_v52 }
 0xbc4   : > { %v2064_v20 = vsel %vm2063_vm5, %v2059_v53, inf }
 0xbc5   : > { %2065 = vmin.xlane.f32.xlu2 %v2064_v20  ;;  %v2069_v18 = vshll.u32 %v2068_v12, 16 }
 0xc30   : > { %v2036_v61 = vpop.xlane.xlu0 %2035  ;;  %v2021_v38 = vpop.xlane.xlu2 %2020 }
 0xc31   : > { %v2051_v5 = vpop.xlane.xlu1 %2050  ;;  %v2037_v35 = vcvt.f32.s32 %v2036_v61  ;;  %v2022_v6 = vcvt.f32.s32 %v2021_v38 }
 0xc32   : > { %v2052_v11 = vcvt.f32.s32 %v2051_v5 }
 0xc33   : > { %v2040_v39 = vadd.s32 %v2039_v3, %v2037_v35  ;;  %v2025_v40 = vadd.s32 %v2024_v63, %v2022_v6 }
 0xc34   : > { %v2055_v57 = vadd.s32 %v2054_v7, %v2052_v11 }
 0xc35   : > { %vm2072_vm8 = vcmp.eq.s32.totalorder %v8992_v30, %v2040_v39  ;;  %vm2071_vm9 = vcmp.eq.s32.totalorder %v8995_v21, %v2025_v40 }
 0xc36   : > { %vm2073_vm10 = vcmp.eq.s32.totalorder %v8998_v16, %v2055_v57  ;;  %v6282_v13 = vsel %vm2071_vm9, 1.0, %v8255_v59  ;;  %v9018_v19 = vsel %vm2072_vm8, 2147483647, %v8992_v30  ;;  %v9021_v60 = vsel %vm2071_vm9, 2147483647, %v8995_v21 }
 0xc37   : > { %6302 = vmatmul.msk.f32.vlgmr.msrb.gmra.mxu3 %vm688_vm4, %v6282_v13  ;;  %v9027_v62 = vsel %vm2073_vm10, 2147483647, %v8998_v16  ;;  %v2102_v23 = vsel %vm688_vm4, %v9018_v19, 2147483647  ;;  %v2087_v24 = vsel %vm688_vm4, %v9021_v60, 2147483647 }
 0xc38   : > { %v2066_v29 = vpop.xlane.xlu2 %2065  ;;  %v2117_v14 = vsel %vm688_vm4, %v9027_v62, 2147483647  ;;  %v2104_v31 = vshra.s32 %v2102_v23, 16  ;;  %v2089_v21 = vshra.s32 %v2087_v24, 16  ;;  %v6283_v41 = vsel %vm2072_vm8, 1.0, %v8255_v59 }
 0xc39   : > { %v2067_v32 = vcvt.f32.s32 %v2066_v29  ;;  %v2119_v15 = vshra.s32 %v2117_v14, 16  ;;  %v6284_v10 = vsel %vm2073_vm10, 1.0, %v8255_v59  ;;  %v2088_v43 = vand.u32 65535, %v2087_v24 }
 0xc3a   : > { %v2106_v25 = vcvt.s32.f32 %v2104_v31  ;;  %v2091_v9 = vcvt.s32.f32 %v2089_v21  ;;  %v2118_v33 = vand.u32 65535, %v2117_v14 }
 0xc3b   : > { %v2070_v37 = vadd.s32 %v2069_v18, %v2067_v32  ;;  %v2121_v8 = vcvt.s32.f32 %v2119_v15  ;;  %v2090_v27 = vcvt.s32.f32 %v2088_v43 }
 0xc3c   : > { %2107 = vmin.xlane.f32.xlu1 %v2106_v25  ;;  %2092 = vmin.xlane.f32.xlu0 %v2091_v9  ;;  %v2120_v49 = vcvt.s32.f32 %v2118_v33 }
 0xc3d   : > { %vm2074_vm11 = vcmp.eq.s32.totalorder %v9005_v54, %v2070_v37  ;;  %2122 = vmin.xlane.f32.xlu2 %v2121_v8 }
 0xc3e   : > { %v9040_v2 = vsel %vm2074_vm11, 2147483647, %v9005_v54  ;;  %v6285_v30 = vsel %vm2074_vm11, 1.0, %v8255_v59  ;;  %v2103_v54 = vand.u32 65535, %v2102_v23 }
 0xc3f   : > { %6303 = vmatmul.msk.f32.gmra.mxu3 %vm688_vm4, %v6283_v41  ;;  %v2132_v26 = vsel %vm688_vm4, %v9040_v2, 2147483647 }
 0xc40   : > { %v2134_v17 = vshra.s32 %v2132_v26, 16  ;;  %v2105_v47 = vcvt.s32.f32 %v2103_v54  ;;  %v2133_v52 = vand.u32 65535, %v2132_v26 }
 0xc42   : > { %v2136_v58 = vcvt.s32.f32 %v2134_v17  ;;  %v2135_v20 = vcvt.s32.f32 %v2133_v52 }
 0xc44   : > { %2137 = vmin.xlane.f32.xlu0 %v2136_v58 }
 0xc47   : > { %6304 = vmatmul.msk.f32.gmra.mxu3 %vm688_vm4, %v6284_v10 }
 0xc4f   : > { %6305 = vmatmul.msk.f32.gmra.mxu3 %vm688_vm4, %v6285_v30 }
 0xcaf   : > { %v2108_v44 = vpop.xlane.xlu1 %2107  ;;  %v2093_v46 = vpop.xlane.xlu0 %2092 }
 0xcb0   : > { %v2123_v0 = vpop.xlane.xlu2 %2122  ;;  %vm2109_vm12 = vcmp.eq.f32.partialorder %v2106_v25, %v2108_v44  ;;  %vm2094_vm13 = vcmp.eq.f32.partialorder %v2091_v9, %v2093_v46  ;;  %v2114_v55 = vcvt.f32.s32 %v2108_v44  ;;  %v2099_v56 = vcvt.f32.s32 %v2093_v46 }
 0xcb1   : > { %v2110_v50 = vsel %vm2109_vm12, %v2105_v47, inf  ;;  %v2095_v16 = vsel %vm2094_vm13, %v2090_v27, inf  ;;  %vm2124_vm14 = vcmp.eq.f32.partialorder %v2121_v8, %v2123_v0  ;;  %v2129_v61 = vcvt.f32.s32 %v2123_v0 }
 0xcb2   : > { %2111 = vmin.xlane.f32.xlu2 %v2110_v50  ;;  %2096 = vmin.xlane.f32.xlu1 %v2095_v16  ;;  %v2125_v45 = vsel %vm2124_vm14, %v2120_v49, inf  ;;  %v2115_v3 = vshll.u32 %v2114_v55, 16  ;;  %v2100_v5 = vshll.u32 %v2099_v56, 16 }
 0xcb3   : > { %2126 = vmin.xlane.f32.xlu0 %v2125_v45  ;;  %v2130_v11 = vshll.u32 %v2129_v61, 16 }
 0xcb7   : > { %v2138_v53 = vpop.xlane.xlu0 %2137 }
 0xcb8   : > { %vm2139_vm15 = vcmp.eq.f32.partialorder %v2136_v58, %v2138_v53  ;;  %v2144_v13 = vcvt.f32.s32 %v2138_v53 }
 0xcb9   : > { %v2140_v48 = vsel %vm2139_vm15, %v2135_v20, inf }
 0xcba   : > { %2141 = vmin.xlane.f32.xlu1 %v2140_v48 }
 0xd25   : > { %v2097_v38 = vpop.xlane.xlu1 %2096  ;;  %v2112_v63 = vpop.xlane.xlu2 %2111 }
 0xd26   : > { %v2098_v35 = vcvt.f32.s32 %v2097_v38  ;;  %v2127_v6 = vpop.xlane.xlu0 %2126  ;;  %v2113_v7 = vcvt.f32.s32 %v2112_v63 }
 0xd27   : > { %v2128_v39 = vcvt.f32.s32 %v2127_v6 }
 0xd28   : > { %v2101_v40 = vadd.s32 %v2100_v5, %v2098_v35  ;;  %v2116_v57 = vadd.s32 %v2115_v3, %v2113_v7 }
 0xd29   : > { %v2131_v12 = vadd.s32 %v2130_v11, %v2128_v39 }
 0xd2a   : > { %vm2147_vm6 = vcmp.eq.s32.totalorder %v9021_v60, %v2101_v40  ;;  %vm2148_vm7 = vcmp.eq.s32.totalorder %v9018_v19, %v2116_v57 }
 0xd2b   : > { %vm2149_vm1 = vcmp.eq.s32.totalorder %v9027_v62, %v2131_v12  ;;  %v9055_v23 = vsel %vm2147_vm6, 2147483647, %v9021_v60  ;;  %v9058_v24 = vsel %vm2148_vm7, 2147483647, %v9018_v19  ;;  %v2145_v60 = vshll.u32 %v2144_v13, 16 }
 0xd2c   : > { %v2155_v29 = vsel %vm688_vm4, %v9055_v23, 2147483647  ;;  %v9063_v14 = vsel %vm2149_vm1, 2147483647, %v9027_v62  ;;  %v2170_v31 = vsel %vm688_vm4, %v9058_v24, 2147483647 }
 0xd2d   : > { %v2142_v21 = vpop.xlane.xlu1 %2141  ;;  %v2157_v18 = vshra.s32 %v2155_v29, 16  ;;  %v2185_v32 = vsel %vm688_vm4, %v9063_v14, 2147483647  ;;  %v2172_v15 = vshra.s32 %v2170_v31, 16  ;;  %v2171_v10 = vand.u32 65535, %v2170_v31 }
 0xd2e   : > { %v2143_v25 = vcvt.f32.s32 %v2142_v21  ;;  %v2187_v9 = vshra.s32 %v2185_v32, 16  ;;  %v2156_v30 = vand.u32 65535, %v2155_v29  ;;  %v2186_v54 = vand.u32 65535, %v2185_v32 }
 0xd2f   : > { %v2159_v19 = vcvt.s32.f32 %v2157_v18  ;;  %v2174_v37 = vcvt.s32.f32 %v2172_v15  ;;  %v2173_v44 = vcvt.s32.f32 %v2171_v10 }
 0xd30   : > { %v2146_v8 = vadd.s32 %v2145_v60, %v2143_v25  ;;  %v2189_v41 = vcvt.s32.f32 %v2187_v9  ;;  %v2158_v46 = vcvt.s32.f32 %v2156_v30  ;;  %v2188_v27 = vcvt.s32.f32 %v2186_v54 }
 0xd31   : > { %2160 = vmin.xlane.f32.xlu2 %v2159_v19  ;;  %2175 = vmin.xlane.f32.xlu0 %v2174_v37 }
 0xd32   : > { %vm2150_vm2 = vcmp.eq.s32.totalorder %v9040_v2, %v2146_v8  ;;  %2190 = vmin.xlane.f32.xlu1 %v2189_v41 }
 0xd33   : > { %v9071_v62 = vsel %vm2150_vm2, 2147483647, %v9040_v2 }
 0xd34   : > { %v2200_v26 = vsel %vm688_vm4, %v9071_v62, 2147483647 }
 0xd35   : > { %v2202_v17 = vshra.s32 %v2200_v26, 16  ;;  %v2201_v50 = vand.u32 65535, %v2200_v26 }
 0xd37   : > { %v2204_v58 = vcvt.s32.f32 %v2202_v17  ;;  %v2203_v45 = vcvt.s32.f32 %v2201_v50  ;;  %v2682_v50 = vpop.f32.mrf.mxu1 }
 0xd39   : > { %2205 = vmin.xlane.f32.xlu2 %v2204_v58 }
 0xda4   : > { %v2176_v43 = vpop.xlane.xlu0 %2175  ;;  %v2161_v33 = vpop.xlane.xlu2 %2160 }
 0xda5   : > { %v2191_v47 = vpop.xlane.xlu1 %2190  ;;  %vm2177_vm3 = vcmp.eq.f32.partialorder %v2174_v37, %v2176_v43  ;;  %vm2162_vm5 = vcmp.eq.f32.partialorder %v2159_v19, %v2161_v33  ;;  %v2182_v53 = vcvt.f32.s32 %v2176_v43  ;;  %v2167_v20 = vcvt.f32.s32 %v2161_v33 }
 0xda6   : > { %vm2192_vm8 = vcmp.eq.f32.partialorder %v2189_v41, %v2191_v47  ;;  %v2178_v2 = vsel %vm2177_vm3, %v2173_v44, inf  ;;  %v2163_v0 = vsel %vm2162_vm5, %v2158_v46, inf  ;;  %v2197_v48 = vcvt.f32.s32 %v2191_v47 }
 0xda7   : > { %v2193_v49 = vsel %vm2192_vm8, %v2188_v27, inf  ;;  %2179 = vmin.xlane.f32.xlu1 %v2178_v2  ;;  %2164 = vmin.xlane.f32.xlu0 %v2163_v0  ;;  %v2183_v61 = vshll.u32 %v2182_v53, 16  ;;  %v2168_v38 = vshll.u32 %v2167_v20, 16 }
 0xda8   : > { %2194 = vmin.xlane.f32.xlu2 %v2193_v49  ;;  %v2198_v35 = vshll.u32 %v2197_v48, 16  ;;  %v9122_v48 = vld [vmem:[%s11741_s9] ss:$0 sm:$0xff] }
 0xdac   : > { %v2206_v16 = vpop.xlane.xlu2 %2205 }
 0xdad   : > { %vm2207_vm9 = vcmp.eq.f32.partialorder %v2204_v58, %v2206_v16  ;;  %v2212_v40 = vcvt.f32.s32 %v2206_v16 }
 0xdae   : > { %v2208_v52 = vsel %vm2207_vm9, %v2203_v45, inf }
 0xdaf   : > { %2209 = vmin.xlane.f32.xlu0 %v2208_v52  ;;  %v2213_v60 = vshll.u32 %v2212_v40, 16 }
 0xe1a   : > { %v2180_v55 = vpop.xlane.xlu1 %2179  ;;  %v2165_v56 = vpop.xlane.xlu0 %2164 }
 0xe1b   : > { %v2181_v63 = vcvt.f32.s32 %v2180_v55  ;;  %v2166_v3 = vcvt.f32.s32 %v2165_v56  ;;  %v2195_v5 = vpop.xlane.xlu2 %2194  ;;  %v9125_v56 = vadd.f32 %v9122_v48, %v2682_v50 }
 0xe1c   : > { %v2196_v6 = vcvt.f32.s32 %v2195_v5  ;;  %v9128_v5 = vpop.f32.mrf.mxu1 }
 0xe1d   : > { %v2184_v7 = vadd.s32 %v2183_v61, %v2181_v63  ;;  %v2169_v11 = vadd.s32 %v2168_v38, %v2166_v3 }
 0xe1e   : > { %v2199_v39 = vadd.s32 %v2198_v35, %v2196_v6 }
 0xe1f   : > { %vm2216_vm10 = vcmp.eq.s32.totalorder %v9058_v24, %v2184_v7  ;;  %vm2215_vm11 = vcmp.eq.s32.totalorder %v9055_v23, %v2169_v11 }
 0xe20   : > { %vm2217_vm12 = vcmp.eq.s32.totalorder %v9063_v14, %v2199_v39  ;;  %v6286_v57 = vsel %vm2215_vm11, 1.0, %v8255_v59  ;;  %v9080_v12 = vsel %vm2215_vm11, 2147483647, %v9055_v23  ;;  %v9085_v13 = vsel %vm2216_vm10, 2147483647, %v9058_v24 }
 0xe21   : > { %6306 = vmatmul.msk.f32.gmra.mxu3 %vm688_vm4, %v6286_v57  ;;  %v2246_v29 = vsel %vm688_vm4, %v9085_v13, 2147483647  ;;  %v2231_v31 = vsel %vm688_vm4, %v9080_v12, 2147483647  ;;  %v9095_v21 = vsel %vm2217_vm12, 2147483647, %v9063_v14 }
 0xe22   : > { %v2210_v23 = vpop.xlane.xlu0 %2209  ;;  %v2248_v18 = vshra.s32 %v2246_v29, 16  ;;  %v2233_v32 = vshra.s32 %v2231_v31, 16  ;;  %v2261_v15 = vsel %vm688_vm4, %v9095_v21, 2147483647  ;;  %v6287_v26 = vsel %vm2216_vm10, 1.0, %v8255_v59 }
 0xe23   : > { %v2211_v25 = vcvt.f32.s32 %v2210_v23  ;;  %v2263_v9 = vshra.s32 %v2261_v15, 16  ;;  %v6288_v54 = vsel %vm2217_vm12, 1.0, %v8255_v59  ;;  %v2232_v44 = vand.u32 65535, %v2231_v31 }
 0xe24   : > { %v2250_v19 = vcvt.s32.f32 %v2248_v18  ;;  %v2235_v37 = vcvt.s32.f32 %v2233_v32  ;;  %v2247_v46 = vand.u32 65535, %v2246_v29  ;;  %v2262_v47 = vand.u32 65535, %v2261_v15  ;;  %v2688_v57 = vpop.f32.mrf.mxu1 }
 0xe25   : > { %v2214_v8 = vadd.s32 %v2213_v60, %v2211_v25  ;;  %v2265_v41 = vcvt.s32.f32 %v2263_v9  ;;  %v2234_v0 = vcvt.s32.f32 %v2232_v44  ;;  %v9136_v29 = vadd.f32 %v9122_v48, %v2688_v57 }
 0xe26   : > { %2251 = vmin.xlane.f32.xlu2 %v2250_v19  ;;  %2236 = vmin.xlane.f32.xlu1 %v2235_v37  ;;  %v2249_v49 = vcvt.s32.f32 %v2247_v46  ;;  %v2264_v16 = vcvt.s32.f32 %v2262_v47 }
 0xe27   : > { %vm2218_vm13 = vcmp.eq.s32.totalorder %v9071_v62, %v2214_v8  ;;  %2266 = vmin.xlane.f32.xlu0 %v2265_v41 }
 0xe28   : > { %v9104_v17 = vsel %vm2218_vm13, 2147483647, %v9071_v62  ;;  %v6289_v24 = vsel %vm2218_vm13, 1.0, %v8255_v59  ;;  %v2611_v62 = vpop.f32.mrf.mxu3 }
 0xe29   : > { %6307 = vmatmul.msk.f32.gmra.mxu3 %vm688_vm4, %v6287_v26  ;;  %v2276_v58 = vsel %vm688_vm4, %v9104_v17, 2147483647  ;;  %v2694_v63 = vadd.f32 %v9125_v56, %v2611_v62 }
 0xe2a   : > { %v2278_v10 = vshra.s32 %v2276_v58, 16  ;;  %v2277_v55 = vand.u32 65535, %v2276_v58 }
 0xe2b   : > { %v2698_v7 = vmax.f32 %v2694_v63, 0.0 }
 0xe2c   : > { %v2280_v30 = vcvt.s32.f32 %v2278_v10  ;;  %v2279_v38 = vcvt.s32.f32 %v2277_v55 }
 0xe2e   : > { %2281 = vmin.xlane.f32.xlu1 %v2280_v30 }
 0xe30   : > { %v9115_v43 = vpop.f32.mrf.mxu3 }
 0xe31   : > { %6308 = vmatmul.msk.f32.gmra.mxu3 %vm688_vm4, %v6288_v54 }
 0xe38   : > { %v2617_v33 = vpop.f32.mrf.mxu3 }
 0xe39   : > { %6309 = vmatmul.msk.f32.gmra.mxu3 %vm688_vm4, %v6289_v24  ;;  %v2696_v31 = vadd.f32 %v9136_v29, %v2617_v33 }
 0xe3b   : > { %v2700_v32 = vmax.f32 %v2696_v31, 0.0 }
 0xe40   : > { %v9117_v53 = vpop.f32.mrf.mxu3 }
 0xe99   : > { %v2237_v27 = vpop.xlane.xlu1 %2236  ;;  %v2252_v2 = vpop.xlane.xlu2 %2251 }
 0xe9a   : > { %v2267_v14 = vpop.xlane.xlu0 %2266  ;;  %vm2238_vm14 = vcmp.eq.f32.partialorder %v2235_v37, %v2237_v27  ;;  %vm2253_vm15 = vcmp.eq.f32.partialorder %v2250_v19, %v2252_v2  ;;  %v2243_v25 = vcvt.f32.s32 %v2237_v27  ;;  %v2258_v9 = vcvt.f32.s32 %v2252_v2 }
 0xe9b   : > { %v2239_v45 = vsel %vm2238_vm14, %v2234_v0, inf  ;;  %vm2268_vm6 = vcmp.eq.f32.partialorder %v2265_v41, %v2267_v14  ;;  %v2254_v52 = vsel %vm2253_vm15, %v2249_v49, inf  ;;  %v2273_v19 = vcvt.f32.s32 %v2267_v14 }
 0xe9c   : > { %2240 = vmin.xlane.f32.xlu2 %v2239_v45  ;;  %v2269_v20 = vsel %vm2268_vm6, %v2264_v16, inf  ;;  %2255 = vmin.xlane.f32.xlu0 %v2254_v52  ;;  %v2244_v41 = vshll.u32 %v2243_v25, 16  ;;  %v2259_v26 = vshll.u32 %v2258_v9, 16 }
 0xe9d   : > { %2270 = vmin.xlane.f32.xlu1 %v2269_v20  ;;  %v2274_v54 = vshll.u32 %v2273_v19, 16 }
 0xea1   : > { %v2282_v61 = vpop.xlane.xlu1 %2281 }
 0xea2   : > { %vm2283_vm7 = vcmp.eq.f32.partialorder %v2280_v30, %v2282_v61  ;;  %v2288_v46 = vcvt.f32.s32 %v2282_v61 }
 0xea3   : > { %v2284_v3 = vsel %vm2283_vm7, %v2279_v38, inf }
 0xea4   : > { %v2623_v35 = vpop.f32.mrf.mxu3  ;;  %2285 = vmin.xlane.f32.xlu2 %v2284_v3 }
 0xea5   : > { %v2702_v6 = vadd.f32 %v9125_v56, %v2623_v35 }
 0xea7   : > { %v2706_v11 = vmax.f32 %v2702_v6, 0.0 }
 0xea9   : > { %v9131_v39 = vmax.f32 %v2698_v7, %v2706_v11 }
 0xeac   : > { %v9133_v40 = vpop.f32.mrf.mxu3 }
 0xeb4   : > { %v2629_v23 = vpop.f32.mrf.mxu3 }
 0xeb5   : > { %v2704_v18 = vadd.f32 %v9136_v29, %v2629_v23 }
 0xeb7   : > { %v2708_v15 = vmax.f32 %v2704_v18, 0.0 }
 0xeb9   : > { %v9140_v60 = vmax.f32 %v2700_v32, %v2708_v15 }
 0xf0f   : > { %v2256_v37 = vpop.xlane.xlu0 %2255  ;;  %v2241_v8 = vpop.xlane.xlu2 %2240 }
 0xf10   : > { %v2271_v58 = vpop.xlane.xlu1 %2270  ;;  %v2257_v10 = vcvt.f32.s32 %v2256_v37  ;;  %v2242_v30 = vcvt.f32.s32 %v2241_v8 }
 0xf11   : > { %v2272_v24 = vcvt.f32.s32 %v2271_v58 }
 0xf12   : > { %v2260_v62 = vadd.s32 %v2259_v26, %v2257_v10  ;;  %v2245_v33 = vadd.s32 %v2244_v41, %v2242_v30 }
 0xf13   : > { %v2275_v44 = vadd.s32 %v2274_v54, %v2272_v24 }
 0xf14   : > { %vm2292_vm1 = vcmp.eq.s32.totalorder %v9085_v13, %v2260_v62  ;;  %vm2291_vm2 = vcmp.eq.s32.totalorder %v9080_v12, %v2245_v33 }
 0xf15   : > { %vm2293_vm3 = vcmp.eq.s32.totalorder %v9095_v21, %v2275_v44  ;;  %v9146_v47 = vsel %vm2292_vm1, 2147483647, %v9085_v13  ;;  %v9149_v27 = vsel %vm2291_vm2, 2147483647, %v9080_v12  ;;  %v2289_v13 = vshll.u32 %v2288_v46, 16 }
 0xf16   : > { %v9152_v2 = vsel %vm2293_vm3, 2147483647, %v9095_v21  ;;  %v2314_v0 = vsel %vm688_vm4, %v9146_v47, 2147483647  ;;  %v2299_v49 = vsel %vm688_vm4, %v9149_v27, 2147483647 }
 0xf17   : > { %v2286_v50 = vpop.xlane.xlu2 %2285  ;;  %v2329_v14 = vsel %vm688_vm4, %v9152_v2, 2147483647  ;;  %v2316_v16 = vshra.s32 %v2314_v0, 16  ;;  %v2301_v45 = vshra.s32 %v2299_v49, 16  ;;  %v2315_v6 = vand.u32 65535, %v2314_v0 }
 0xf18   : > { %v2287_v52 = vcvt.f32.s32 %v2286_v50  ;;  %v2331_v20 = vshra.s32 %v2329_v14, 16  ;;  %v2300_v7 = vand.u32 65535, %v2299_v49  ;;  %v2330_v11 = vand.u32 65535, %v2329_v14 }
 0xf19   : > { %v2318_v12 = vcvt.s32.f32 %v2316_v16  ;;  %v2303_v55 = vcvt.s32.f32 %v2301_v45  ;;  %v2317_v23 = vcvt.s32.f32 %v2315_v6 }
 0xf1a   : > { %v2290_v61 = vadd.s32 %v2289_v13, %v2287_v52  ;;  %v2333_v21 = vcvt.s32.f32 %v2331_v20  ;;  %v2302_v18 = vcvt.s32.f32 %v2300_v7  ;;  %v2332_v15 = vcvt.s32.f32 %v2330_v11 }
 0xf1b   : > { %2319 = vmin.xlane.f32.xlu1 %v2318_v12  ;;  %2304 = vmin.xlane.f32.xlu0 %v2303_v55 }
 0xf1c   : > { %vm2294_vm5 = vcmp.eq.s32.totalorder %v9104_v17, %v2290_v61  ;;  %2334 = vmin.xlane.f32.xlu2 %v2333_v21 }
 0xf1d   : > { %v9162_v38 = vsel %vm2294_vm5, 2147483647, %v9104_v17 }
 0xf1e   : > { %v2344_v63 = vsel %vm688_vm4, %v9162_v38, 2147483647 }
 0xf1f   : > { %v2346_v3 = vshra.s32 %v2344_v63, 16  ;;  %v2345_v19 = vand.u32 65535, %v2344_v63 }
 0xf21   : > { %v2348_v35 = vcvt.s32.f32 %v2346_v3  ;;  %v2347_v8 = vcvt.s32.f32 %v2345_v19 }
 0xf23   : > { %2349 = vmin.xlane.f32.xlu0 %v2348_v35 }
 0xf8e   : > { %v2320_v57 = vpop.xlane.xlu1 %2319  ;;  %v2305_v31 = vpop.xlane.xlu0 %2304 }
 0xf8f   : > { %v2335_v32 = vpop.xlane.xlu2 %2334  ;;  %vm2321_vm8 = vcmp.eq.f32.partialorder %v2318_v12, %v2320_v57  ;;  %vm2306_vm9 = vcmp.eq.f32.partialorder %v2303_v55, %v2305_v31  ;;  %v2326_v26 = vcvt.f32.s32 %v2320_v57  ;;  %v2311_v58 = vcvt.f32.s32 %v2305_v31 }
 0xf90   : > { %v2322_v25 = vsel %vm2321_vm8, %v2317_v23, inf  ;;  %v2307_v17 = vsel %vm2306_vm9, %v2302_v18, inf  ;;  %vm2336_vm10 = vcmp.eq.f32.partialorder %v2333_v21, %v2335_v32  ;;  %v2341_v10 = vcvt.f32.s32 %v2335_v32 }
 0xf91   : > { %2323 = vmin.xlane.f32.xlu2 %v2322_v25  ;;  %2308 = vmin.xlane.f32.xlu1 %v2307_v17  ;;  %v2337_v9 = vsel %vm2336_vm10, %v2332_v15, inf  ;;  %v2327_v24 = vshll.u32 %v2326_v26, 16  ;;  %v2312_v62 = vshll.u32 %v2311_v58, 16 }
 0xf92   : > { %2338 = vmin.xlane.f32.xlu0 %v2337_v9  ;;  %v2342_v0 = vshll.u32 %v2341_v10, 16 }
 0xf96   : > { %v2350_v37 = vpop.xlane.xlu0 %2349 }
 0xf97   : > { %vm2351_vm11 = vcmp.eq.f32.partialorder %v2348_v35, %v2350_v37  ;;  %v2356_v45 = vcvt.f32.s32 %v2350_v37 }
 0xf98   : > { %v2352_v41 = vsel %vm2351_vm11, %v2347_v8, inf }
 0xf99   : > { %2353 = vmin.xlane.f32.xlu1 %v2352_v41  ;;  %v2357_v35 = vshll.u32 %v2356_v45, 16 }
0x1004   : > { %v2309_v30 = vpop.xlane.xlu1 %2308  ;;  %v2324_v54 = vpop.xlane.xlu2 %2323 }
0x1005   : > { %v2310_v33 = vcvt.f32.s32 %v2309_v30  ;;  %v2339_v44 = vpop.xlane.xlu0 %2338  ;;  %v2325_v46 = vcvt.f32.s32 %v2324_v54 }
0x1006   : > { %v2340_v49 = vcvt.f32.s32 %v2339_v44 }
0x1007   : > { %v2313_v50 = vadd.s32 %v2312_v62, %v2310_v33  ;;  %v2328_v14 = vadd.s32 %v2327_v24, %v2325_v46 }
0x1008   : > { %v2343_v16 = vadd.s32 %v2342_v0, %v2340_v49 }
0x1009   : > { %vm2360_vm12 = vcmp.eq.s32.totalorder %v9146_v47, %v2328_v14  ;;  %vm2359_vm13 = vcmp.eq.s32.totalorder %v9149_v27, %v2313_v50 }
0x100a   : > { %vm2361_vm14 = vcmp.eq.s32.totalorder %v9152_v2, %v2343_v16  ;;  %v6290_v13 = vsel %vm2359_vm13, 1.0, %v8255_v59  ;;  %v9171_v52 = vsel %vm2359_vm13, 2147483647, %v9149_v27  ;;  %v9176_v20 = vsel %vm2360_vm12, 2147483647, %v9146_v47 }
0x100b   : > { %6310 = vmatmul.msk.f32.gmra.mxu3 %vm688_vm4, %v6290_v13  ;;  %v2375_v12 = vsel %vm688_vm4, %v9171_v52, 2147483647  ;;  %v9184_v55 = vsel %vm2361_vm14, 2147483647, %v9152_v2  ;;  %v2390_v61 = vsel %vm688_vm4, %v9176_v20, 2147483647 }
0x100c   : > { %v2354_v27 = vpop.xlane.xlu1 %2353  ;;  %v2377_v21 = vshra.s32 %v2375_v12, 16  ;;  %v2405_v63 = vsel %vm688_vm4, %v9184_v55, 2147483647  ;;  %v2392_v3 = vshra.s32 %v2390_v61, 16  ;;  %v6291_v18 = vsel %vm2360_vm12, 1.0, %v8255_v59 }
0x100d   : > { %v2355_v6 = vcvt.f32.s32 %v2354_v27  ;;  %v2407_v7 = vshra.s32 %v2405_v63, 16  ;;  %v6292_v9 = vsel %vm2361_vm14, 1.0, %v8255_v59  ;;  %v2376_v19 = vand.u32 65535, %v2375_v12 }
0x100e   : > { %v2379_v11 = vcvt.s32.f32 %v2377_v21  ;;  %v2394_v57 = vcvt.s32.f32 %v2392_v3  ;;  %v2406_v37 = vand.u32 65535, %v2405_v63 }
0x100f   : > { %v2358_v31 = vadd.s32 %v2357_v35, %v2355_v6  ;;  %v2409_v23 = vcvt.s32.f32 %v2407_v7  ;;  %v2378_v58 = vcvt.s32.f32 %v2376_v19 }
0x1010   : > { %2380 = vmin.xlane.f32.xlu2 %v2379_v11  ;;  %2395 = vmin.xlane.f32.xlu0 %v2394_v57  ;;  %v2408_v30 = vcvt.s32.f32 %v2406_v37 }
0x1011   : > { %vm2362_vm15 = vcmp.eq.s32.totalorder %v9162_v38, %v2358_v31  ;;  %2410 = vmin.xlane.f32.xlu1 %v2409_v23 }
0x1012   : > { %v9195_v32 = vsel %vm2362_vm15, 2147483647, %v9162_v38  ;;  %v6293_v47 = vsel %vm2362_vm15, 1.0, %v8255_v59  ;;  %v2391_v38 = vand.u32 65535, %v2390_v61 }
0x1013   : > { %6311 = vmatmul.msk.f32.gmra.mxu3 %vm688_vm4, %v6291_v18  ;;  %v2420_v15 = vsel %vm688_vm4, %v9195_v32, 2147483647 }
0x1014   : > { %v2422_v25 = vshra.s32 %v2420_v15, 16  ;;  %v2393_v26 = vcvt.s32.f32 %v2391_v38  ;;  %v2421_v62 = vand.u32 65535, %v2420_v15 }
0x1016   : > { %v2424_v17 = vcvt.s32.f32 %v2422_v25  ;;  %v2423_v44 = vcvt.s32.f32 %v2421_v62 }
0x1018   : > { %2425 = vmin.xlane.f32.xlu2 %v2424_v17 }
0x101b   : > { %6312 = vmatmul.msk.f32.gmra.mxu3 %vm688_vm4, %v6292_v9 }
0x1023   : > { %6313 = vmatmul.msk.f32.gmra.mxu3 %vm688_vm4, %v6293_v47 }
0x1083   : > { %v2396_v8 = vpop.xlane.xlu0 %2395  ;;  %v2381_v41 = vpop.xlane.xlu2 %2380 }
0x1084   : > { %v2411_v10 = vpop.xlane.xlu1 %2410  ;;  %vm2397_vm6 = vcmp.eq.f32.partialorder %v2394_v57, %v2396_v8  ;;  %vm2382_vm7 = vcmp.eq.f32.partialorder %v2379_v11, %v2381_v41  ;;  %v2402_v0 = vcvt.f32.s32 %v2396_v8  ;;  %v2387_v49 = vcvt.f32.s32 %v2381_v41 }
0x1085   : > { %vm2412_vm1 = vcmp.eq.f32.partialorder %v2409_v23, %v2411_v10  ;;  %v2398_v2 = vsel %vm2397_vm6, %v2393_v26, inf  ;;  %v2383_v54 = vsel %vm2382_vm7, %v2378_v58, inf  ;;  %v2417_v50 = vcvt.f32.s32 %v2411_v10 }
0x1086   : > { %v2413_v24 = vsel %vm2412_vm1, %v2408_v30, inf  ;;  %2399 = vmin.xlane.f32.xlu1 %v2398_v2  ;;  %2384 = vmin.xlane.f32.xlu0 %v2383_v54  ;;  %v2403_v45 = vshll.u32 %v2402_v0, 16  ;;  %v2388_v13 = vshll.u32 %v2387_v49, 16  ;;  %vm2942_vm1 = vcmask 392192  }
0x1087   : > { %2414 = vmin.xlane.f32.xlu2 %v2413_v24  ;;  %v2418_v21 = vshll.u32 %v2417_v50, 16 }
0x108b   : > { %v2426_v33 = vpop.xlane.xlu2 %2425 }
0x108c   : > { %vm2427_vm2 = vcmp.eq.f32.partialorder %v2424_v17, %v2426_v33  ;;  %v2432_v7 = vcvt.f32.s32 %v2426_v33 }
0x108d   : > { %v2428_v46 = vsel %vm2427_vm2, %v2423_v44, inf }
0x108e   : > { %2429 = vmin.xlane.f32.xlu0 %v2428_v46 }
0x10f9   : > { %v2400_v14 = vpop.xlane.xlu1 %2399  ;;  %v2385_v16 = vpop.xlane.xlu0 %2384 }
0x10fa   : > { %v2401_v12 = vcvt.f32.s32 %v2400_v14  ;;  %v2386_v61 = vcvt.f32.s32 %v2385_v16  ;;  %v2415_v27 = vpop.xlane.xlu2 %2414 }
0x10fb   : > { %v2416_v63 = vcvt.f32.s32 %v2415_v27 }
0x10fc   : > { %v2404_v3 = vadd.s32 %v2403_v45, %v2401_v12  ;;  %v2389_v35 = vadd.s32 %v2388_v13, %v2386_v61  ;;  %v8223_v13 = vpack.i.bf16 %v8915_v51, %v8907_v36  ;;  %v8233_v12 = vpack.i.bf16 %v8932_v22, %v8924_v42 }
0x10fd   : > { %v2419_v6 = vadd.s32 %v2418_v21, %v2416_v63 }
0x10fe   : > { %vm2436_vm3 = vcmp.eq.s32.totalorder %v9176_v20, %v2404_v3  ;;  %vm2435_vm5 = vcmp.eq.s32.totalorder %v9171_v52, %v2389_v35 }
0x10ff   : > { %vm2437_vm8 = vcmp.eq.s32.totalorder %v9184_v55, %v2419_v6  ;;  %v9210_v11 = vsel %vm2436_vm3, 2147483647, %v9176_v20  ;;  %v9213_v57 = vsel %vm2435_vm5, 2147483647, %v9171_v52  ;;  %v2433_v20 = vshll.u32 %v2432_v7, 16 }
0x1100   : > { %v2458_v31 = vsel %vm688_vm4, %v9210_v11, 2147483647  ;;  %v2443_v23 = vsel %vm688_vm4, %v9213_v57, 2147483647  ;;  %v9220_v18 = vsel %vm2437_vm8, 2147483647, %v9184_v55 }
0x1101   : > { %v2430_v15 = vpop.xlane.xlu0 %2429  ;;  %v2460_v25 = vshra.s32 %v2458_v31, 16  ;;  %v2445_v17 = vshra.s32 %v2443_v23, 16  ;;  %v2473_v9 = vsel %vm688_vm4, %v9220_v18, 2147483647  ;;  %v2444_v10 = vand.u32 65535, %v2443_v23 }
0x1102   : > { %v2431_v47 = vcvt.f32.s32 %v2430_v15  ;;  %v2475_v38 = vshra.s32 %v2473_v9, 16  ;;  %v2459_v30 = vand.u32 65535, %v2458_v31  ;;  %v2474_v2 = vand.u32 65535, %v2473_v9 }
0x1103   : > { %v2462_v52 = vcvt.s32.f32 %v2460_v25  ;;  %v2447_v19 = vcvt.s32.f32 %v2445_v17  ;;  %v2446_v62 = vcvt.s32.f32 %v2444_v10 }
0x1104   : > { %v2434_v37 = vadd.s32 %v2433_v20, %v2431_v47  ;;  %v2477_v8 = vcvt.s32.f32 %v2475_v38  ;;  %v2461_v33 = vcvt.s32.f32 %v2459_v30  ;;  %v2476_v46 = vcvt.s32.f32 %v2474_v2 }
0x1105   : > { %2463 = vmin.xlane.f32.xlu2 %v2462_v52  ;;  %2448 = vmin.xlane.f32.xlu1 %v2447_v19 }
0x1106   : > { %vm2438_vm9 = vcmp.eq.s32.totalorder %v9195_v32, %v2434_v37  ;;  %2478 = vmin.xlane.f32.xlu0 %v2477_v8 }
0x1107   : > { %v9226_v55 = vsel %vm2438_vm9, 2147483647, %v9195_v32 }
0x1108   : > { %v2488_v41 = vsel %vm688_vm4, %v9226_v55, 2147483647 }
0x1109   : > { %v2490_v26 = vshra.s32 %v2488_v41, 16  ;;  %v2489_v50 = vand.u32 65535, %v2488_v41 }
0x110b   : > { %v2492_v58 = vcvt.s32.f32 %v2490_v26  ;;  %v2491_v16 = vcvt.s32.f32 %v2489_v50  ;;  %v2632_v26 = vpop.f32.mrf.mxu3  ;;  %v7852_v50 = vld [vmem:[%s11742_s10 + $0x84] sm:$0xf] }
0x110d   : > { %2493 = vmin.xlane.f32.xlu1 %v2492_v58 }
0x1178   : > { %v2449_v54 = vpop.xlane.xlu1 %2448  ;;  %v2464_v24 = vpop.xlane.xlu2 %2463 }
0x1179   : > { %v2479_v44 = vpop.xlane.xlu0 %2478  ;;  %vm2450_vm10 = vcmp.eq.f32.partialorder %v2447_v19, %v2449_v54  ;;  %vm2465_vm11 = vcmp.eq.f32.partialorder %v2462_v52, %v2464_v24  ;;  %v2455_v61 = vcvt.f32.s32 %v2449_v54  ;;  %v2470_v3 = vcvt.f32.s32 %v2464_v24 }
0x117a   : > { %v2451_v0 = vsel %vm2450_vm10, %v2446_v62, inf  ;;  %vm2480_vm12 = vcmp.eq.f32.partialorder %v2477_v8, %v2479_v44  ;;  %v2466_v32 = vsel %vm2465_vm11, %v2461_v33, inf  ;;  %v2485_v17 = vcvt.f32.s32 %v2479_v44 }
0x117b   : > { %2452 = vmin.xlane.f32.xlu2 %v2451_v0  ;;  %v2481_v49 = vsel %vm2480_vm12, %v2476_v46, inf  ;;  %2467 = vmin.xlane.f32.xlu0 %v2466_v32  ;;  %v2456_v63 = vshll.u32 %v2455_v61, 16  ;;  %v2471_v31 = vshll.u32 %v2470_v3, 16  ;;  %v6388_v0 = vld [vmem:[%s11742_s10 + $0x80] sm:$0xf] }
0x117c   : > { %2482 = vmin.xlane.f32.xlu1 %v2481_v49  ;;  %v2486_v20 = vshll.u32 %v2485_v17, 16  ;;  %v6398_v49 = vld [vmem:[%s11742_s10 + $0xa8] sm:$0xf0]  ;;  %v6358_v61 = vld [vmem:[%s11742_s10 + $0x60] sm:$0xf0] }
0x1180   : > { %v2494_v14 = vpop.xlane.xlu1 %2493 }
0x1181   : > { %vm2495_vm13 = vcmp.eq.f32.partialorder %v2492_v58, %v2494_v14  ;;  %v2500_v19 = vcvt.f32.s32 %v2494_v14  ;;  %v2635_v58 = vpop.f32.mrf.mxu3  ;;  %v6390_v14 = vld [vmem:[%s11742_s10 + $0xa0] sm:$0xf0] }
0x1182   : > { %v2496_v45 = vsel %vm2495_vm13, %v2491_v16, inf  ;;  %v2714_v24 = vadd.f32 %v9125_v56, %v2635_v58 }
0x1183   : > { %2497 = vmin.xlane.f32.xlu2 %v2496_v45 }
0x1184   : > { %v2718_v44 = vmax.f32 %v2714_v24, 0.0 }
0x1189   : > { %v2638_v10 = vpop.f32.mrf.mxu3 }
0x118f   : > { %8224 = vrot.lane.b32.xlu0 %v8223_v13, %s8256_s28  ;;  %v6393_v13 = vor.u32 %v7852_v50, %v6390_v14  ;;  %v6404_v50 = vld [vmem:[%s11742_s10 + $0x90] sm:$0xf] }
0x1191   : > { %v2641_v30 = vpop.f32.mrf.mxu3  ;;  %2973 = vmatpush.bf16.msrb.mxu1 %v6393_v13  ;;  %v7859_v13 = vld [vmem:[%s11742_s10 + $0xb4] sm:$0xf0] }
0x1199   : > { %v2644_v2 = vpop.f32.mrf.mxu3 }
0x119b   : > { %8234 = vrot.lane.b32.xlu2 %v8233_v12, %s8256_s28  ;;  %v7844_v12 = vld [vmem:[%s11742_s10 + $0x44] sm:$0xf] }
0x11ee   : > { %v2468_v27 = vpop.xlane.xlu0 %2467  ;;  %v2453_v21 = vpop.xlane.xlu2 %2452 }
0x11ef   : > { %v2454_v35 = vcvt.f32.s32 %v2453_v21  ;;  %v2469_v6 = vcvt.f32.s32 %v2468_v27  ;;  %v2483_v25 = vpop.xlane.xlu1 %2482  ;;  %v7845_v27 = vld [vmem:[%s11742_s10 + $0x4c] sm:$0xf] }
0x11f0   : > { %v2484_v9 = vcvt.f32.s32 %v2483_v25 }
0x11f1   : > { %v2457_v7 = vadd.s32 %v2456_v63, %v2454_v35  ;;  %v2472_v15 = vadd.s32 %v2471_v31, %v2469_v6  ;;  %v6366_v35 = vld [vmem:[%s11742_s10 + $0x68] sm:$0xf0] }
0x11f2   : > { %v2487_v38 = vadd.s32 %v2486_v20, %v2484_v9  ;;  %v6369_v31 = vor.u32 %v7845_v27, %v6366_v35  ;;  %v6364_v27 = vld [vmem:[%s11742_s10 + $0x48] sm:$0xf]  ;;  %v7850_v35 = vld [vmem:[%s11742_s10 + $0x6c] sm:$0xf0] }
0x11f3   : > { %vm2503_vm14 = vcmp.eq.s32.totalorder %v9213_v57, %v2457_v7  ;;  %vm2504_vm15 = vcmp.eq.s32.totalorder %v9210_v11, %v2472_v15  ;;  %v2501_v57 = vshll.u32 %v2500_v19, 16  ;;  %v6361_v7 = vor.u32 %v7844_v12, %v6358_v61 }
0x11f4   : > { %v6294_v23 = vsel %vm2503_vm14, 1.0, %v8255_v59  ;;  %v6295_v47 = vsel %vm2504_vm15, 1.0, %v8255_v59  ;;  %vm2505_vm6 = vcmp.eq.s32.totalorder %v9220_v18, %v2487_v38  ;;  %v2686_v18 = vadd.f32 %v9122_v48, %v9128_v5  ;;  %v7856_v5 = vld [vmem:[%s11742_s10 + $0x9c] sm:$0xf0] }
0x11f5   : > { %6314 = vmatmul.msk.f32.gmra.mxu3 %vm688_vm4, %v6294_v23  ;;  %v6296_v8 = vsel %vm2505_vm6, 1.0, %v8255_v59  ;;  %v6389_v32 = vor.u32 %v7856_v5, %v6388_v0  ;;  %v2722_v15 = vmax.f32 %v9131_v39, %v2718_v44  ;;  %2974 = vmatpush.bf16.msrb.mxu1 %v6361_v7  ;;  %v7840_v0 = vld [vmem:[%s11742_s10 + $0x1c] sm:$0xf0]  ;;  %v7851_v7 = vld [vmem:[%s11742_s10 + $0x74] sm:$0xf0] }
0x11f6   : > { %v2498_v52 = vpop.xlane.xlu2 %2497  ;;  %v2703_v54 = vadd.f32 %v2686_v18, %v9133_v40  ;;  %v2695_v33 = vadd.f32 %v2686_v18, %v9115_v43  ;;  %v6356_v40 = vld [vmem:[%s11742_s10 + $0x40] sm:$0xf] }
0x11f7   : > { %v2499_v37 = vcvt.f32.s32 %v2498_v52  ;;  %v7848_v43 = vld [vmem:[%s11742_s10 + $0x5c] sm:$0xf0]  ;;  %2954 = vmatpush.bf16.msrb.mxu2 %v6389_v32  ;;  %v6334_v32 = vld [vmem:[%s11742_s10 + $0x28] sm:$0xf0] }
0x11f8   : > { %v6357_v16 = vor.u32 %v7848_v43, %v6356_v40  ;;  %v2699_v21 = vmax.f32 %v2695_v33, 0.0 }
0x11f9   : > { %v2502_v41 = vadd.s32 %v2501_v57, %v2499_v37 }
0x11fb   : > { %vm2506_vm7 = vcmp.eq.s32.totalorder %v9226_v55, %v2502_v41  ;;  %v2707_v55 = vmax.f32 %v2703_v54, 0.0  ;;  %2955 = vmatpush.bf16.msrb.mxu2 %v6357_v16  ;;  %v2716_v41 = vadd.f32 %v9136_v29, %v2641_v30  ;;  %v7858_v16 = vld [vmem:[%s11742_s10 + $0xac] sm:$0xf0] }
0x11fc   : > { %v6297_v11 = vsel %vm2506_vm7, 1.0, %v8255_v59  ;;  %v2715_v59 = vadd.f32 %v2686_v18, %v2638_v10  ;;  %v6405_v12 = vor.u32 %v7858_v16, %v6404_v50  ;;  %v7890_v16 = vld [vmem:[%s11744_s12 + $0xec] sm:$0xf0] }
0x11fd   : > { %6315 = vmatmul.msk.f32.gmra.mxu3 %vm688_vm4, %v6295_v47  ;;  %v2711_v23 = vmax.f32 %v2699_v21, %v2707_v55  ;;  %v2691_v47 = vpop.f32.mrf.mxu1  ;;  %v2720_v54 = vmax.f32 %v2716_v41, 0.0  ;;  %v7849_v21 = vld [vmem:[%s11742_s10 + $0x64] sm:$0xf0] }
0x11fe   : > { %v2719_v63 = vmax.f32 %v2715_v59, 0.0  ;;  %v2692_v52 = vadd.f32 %v9122_v48, %v2691_v47  ;;  %v6348_v47 = vld [vmem:[%s11742_s10 + $0x18] sm:$0xf] }
0x1200   : > { %v2723_v17 = vmax.f32 %v2711_v23, %v2719_v63  ;;  %v2717_v58 = vadd.f32 %v2692_v52, %v2644_v2  ;;  %v6372_v63 = vld [vmem:[%s11742_s10 + $0x50] sm:$0xf] }
0x1201   : > { %v6373_v23 = vor.u32 %v7850_v35, %v6372_v63  ;;  %v7878_v35 = vld [vmem:[%s11744_s12 + $0x8c] sm:$0xf0] }
0x1202   : > { %v2721_v48 = vmax.f32 %v2717_v58, 0.0 }
0x1205   : > { %6316 = vmatmul.msk.f32.gmra.mxu3 %vm688_vm4, %v6296_v8  ;;  %v2705_v8 = vadd.f32 %v2692_v52, %v2632_v26 }
0x120d   : > { %6317 = vmatmul.msk.f32.gmra.mxu3 %vm688_vm4, %v6297_v11  ;;  %v2697_v11 = vadd.f32 %v2692_v52, %v9117_v53 }
0x120f   : > { %v2701_v24 = vmax.f32 %v2697_v11, 0.0 }
0x1278   : > { %v2647_v62 = vpop.f32.mrf.mxu3 }
0x1279   : > { %v2726_v46 = vadd.f32 %v9125_v56, %v2647_v62  ;;  %v7853_v56 = vld [vmem:[%s11742_s10 + $0x8c] sm:$0xf] }
0x127a   : > { %v6401_v45 = vor.u32 %v7853_v56, %v6398_v49  ;;  %v6396_v56 = vld [vmem:[%s11742_s10 + $0x88] sm:$0xf] }
0x127b   : > { %v2730_v3 = vmax.f32 %v2726_v46, 0.0  ;;  %v6324_v46 = vld [vmem:[%s11742_s10] sm:$0xf]  ;;  %v7857_v49 = vld [vmem:[%s11742_s10 + $0xa4] sm:$0xf0] }
0x127c   : > { %3011 = vmatpush.bf16.msrb.mxu0 %v6401_v45  ;;  %v6325_v5 = vor.u32 %v7840_v0, %v6324_v46  ;;  %v6397_v14 = vor.u32 %v7857_v49, %v6396_v56  ;;  %v6412_v45 = vld [vmem:[%s11742_s10 + $0x98] sm:$0xf]  ;;  %v6374_v46 = vld [vmem:[%s11742_s10 + $0x70] sm:$0xf0]  ;;  %v6350_v56 = vld [vmem:[%s11742_s10 + $0x38] sm:$0xf0] }
0x127d   : > { %v2734_v9 = vmax.f32 %v2722_v15, %v2730_v3  ;;  %v6413_v61 = vor.u32 %v7859_v13, %v6412_v45  ;;  %v6365_v3 = vor.u32 %v7849_v21, %v6364_v27  ;;  %v6532_v45 = vld [vmem:[%s11744_s12 + $0xc0] sm:$0xf]  ;;  %v7882_v21 = vld [vmem:[%s11744_s12 + $0xac] sm:$0xf0] }
0x127e   : > { %2956 = vmatpush.bf16.msrb.mxu2 %v6325_v5  ;;  %v6382_v5 = vld [vmem:[%s11742_s10 + $0x78] sm:$0xf0]  ;;  %v6516_v27 = vld [vmem:[%s11744_s12 + $0xa0] sm:$0xf] }
0x127f   : > { %v2738_v19 = vadd.f32 %v2734_v9, %v8907_v36  ;;  %v6340_v9 = vld [vmem:[%s11742_s10 + $0x10] sm:$0xf]  ;;  %v6517_v63 = vor.u32 %v7882_v21, %v6516_v27 }
0x1280   : > { %v2650_v6 = vpop.f32.mrf.mxu3  ;;  %3012 = vmatpush.bf16.msrb.mxu0 %v6369_v31  ;;  %v8225_v31 = vpop.permute.xlu0 %8224 }
0x1281   : > { %v2727_v25 = vadd.f32 %v2686_v18, %v2650_v6  ;;  %v2709_v18 = vmax.f32 %v2705_v8, 0.0  ;;  %v6380_v6 = vld [vmem:[%s11742_s10 + $0x58] sm:$0xf] }
0x1282   : > { %2992 = vmatpush.bf16.msra.mxu2 %v6397_v14  ;;  %v6381_v15 = vor.u32 %v7851_v7, %v6380_v6  ;;  %v6548_v14 = vld [vmem:[%s11744_s12 + $0xe0] sm:$0xf] }
0x1283   : > { %v2731_v20 = vmax.f32 %v2727_v25, 0.0  ;;  %v2713_v33 = vmax.f32 %v2701_v24, %v2709_v18  ;;  %v6332_v25 = vld [vmem:[%s11742_s10 + $0x8] sm:$0xf]  ;;  %v6549_v13 = vor.u32 %v7890_v16, %v6548_v14  ;;  %v6484_v7 = vld [vmem:[%s11744_s12 + $0x60] sm:$0xf] }
0x1284   : > { %v6868_v14 = vld [vmem:[%s11744_s12 + $0x360] sm:$0xf] }
0x1285   : > { %v2735_v38 = vmax.f32 %v2723_v17, %v2731_v20  ;;  %v2725_v55 = vmax.f32 %v2713_v33, %v2721_v48  ;;  %v7841_v17 = vld [vmem:[%s11742_s10 + $0x24] sm:$0xf0]  ;;  %v7842_v20 = vld [vmem:[%s11742_s10 + $0x2c] sm:$0xf0]  ;;  %4749 = vmatpush.bf16.msra.mxu3 %v6549_v13  ;;  %v7028_v13 = vld [vmem:[%s11744_s12 + $0x4a0] sm:$0xf] }
0x1286   : > { %2993 = vmatpush.bf16.msra.mxu2 %v6365_v3  ;;  %v6500_v3 = vld [vmem:[%s11744_s12 + $0x80] sm:$0xf] }
0x1287   : > { %v2739_v37 = vadd.f32 %v2735_v38, %v8915_v51  ;;  %v2724_v51 = vmax.f32 %v9140_v60, %v2720_v54  ;;  %v7836_v60 = vld [vmem:[%s11742_s10 + $0x4] sm:$0xf]  ;;  %v7843_v38 = vld [vmem:[%s11742_s10 + $0x34] sm:$0xf0]  ;;  %v6501_v6 = vor.u32 %v7878_v35, %v6500_v3  ;;  %v6772_v3 = vld [vmem:[%s11744_s12 + $0x2a0] sm:$0xf] }
0x1288   : > { %v2653_v57 = vpop.f32.mrf.mxu3  ;;  %v6349_v8 = vor.u32 %v7843_v38, %v6348_v47  ;;  %v6932_v47 = vld [vmem:[%s11744_s12 + $0x3e0] sm:$0xf]  ;;  %v7946_v35 = vld [vmem:[%s11744_s12 + $0x2ac] sm:$0xf0] }
0x1289   : > { %v8228_v39 = vpack.i.bf16 %v2739_v37, %v2738_v19  ;;  %v2728_v10 = vadd.f32 %v9136_v29, %v2653_v57  ;;  %v8226_v19 = vunpack.i.l.bf16 %v8225_v31  ;;  %v6333_v37 = vor.u32 %v7841_v17, %v6332_v25  ;;  %v7870_v25 = vld [vmem:[%s11744_s12 + $0x4c] sm:$0xf0] }
0x128a   : > { %v6341_v57 = vor.u32 %v7842_v20, %v6340_v9  ;;  %v6676_v9 = vld [vmem:[%s11744_s12 + $0x1e0] sm:$0xf]  ;;  %v7922_v20 = vld [vmem:[%s11744_s12 + $0x1ec] sm:$0xf0] }
0x128b   : > { %8229 = vrot.lane.b32.xlu1 %v8228_v39, %s8257_s29  ;;  %v2732_v62 = vmax.f32 %v2728_v10, 0.0  ;;  %v2770_v10 = vsel %vm1271_vm0, %v8650_v1, %v8226_v19  ;;  %2994 = vmatpush.bf16.msra.mxu2 %v6333_v37  ;;  %v8235_v1 = vpop.permute.xlu2 %8234  ;;  %v6677_v38 = vor.u32 %v7922_v20, %v6676_v9  ;;  %v6452_v37 = vld [vmem:[%s11744_s12 + $0x20] sm:$0xf]  ;;  %v8006_v20 = vld [vmem:[%s11744_s12 + $0x48c] sm:$0xf0] }
0x128c   : > { %v8236_v48 = vunpack.i.l.bf16 %v8235_v1  ;;  %v7012_v9 = vld [vmem:[%s11744_s12 + $0x480] sm:$0xf] }
0x128d   : > { %v2736_v30 = vmax.f32 %v2724_v51, %v2732_v62 }
0x128f   : > { %v2740_v53 = vadd.f32 %v2736_v30, %v8924_v42  ;;  %v6326_v42 = vld [vmem:[%s11742_s10 + $0x20] sm:$0xf0] }
0x1290   : > { %v2656_v36 = vpop.f32.mrf.mxu3  ;;  %v6329_v40 = vor.u32 %v7836_v60, %v6326_v42  ;;  %v7847_v60 = vld [vmem:[%s11742_s10 + $0x5c] sm:$0xf] }
0x1291   : > { %v2729_v26 = vadd.f32 %v2692_v52, %v2656_v36  ;;  %v8227_v52 = vunpack.i.h.bf16 %v8225_v31  ;;  %v7874_v31 = vld [vmem:[%s11744_s12 + $0x6c] sm:$0xf0] }
0x1292   : > { %2975 = vmatpush.bf16.msrb.mxu1 %v6329_v40  ;;  %v6342_v40 = vld [vmem:[%s11742_s10 + $0x30] sm:$0xf0] }
0x1293   : > { %v2733_v44 = vmax.f32 %v2729_v26, 0.0  ;;  %v2771_v58 = vsel %vm1271_vm0, %v8657_v4, %v8227_v52  ;;  %v8237_v4 = vunpack.i.h.bf16 %v8235_v1  ;;  %v2772_v26 = vsel %vm1271_vm0, %v8665_v28, %v8236_v48  ;;  %v6406_v28 = vld [vmem:[%s11742_s10 + $0xb0] sm:$0xf0]  ;;  %v7986_v52 = vld [vmem:[%s11744_s12 + $0x3ec] sm:$0xf0] }
0x1294   : > { %v6933_v19 = vor.u32 %v7986_v52, %v6932_v47  ;;  %v7862_v1 = vld [vmem:[%s11744_s12 + $0xc] sm:$0xf0]  ;;  %v6644_v48 = vld [vmem:[%s11744_s12 + $0x1a0] sm:$0xf]  ;;  %v7013_v47 = vor.u32 %v8006_v20, %v7012_v9 }
0x1295   : > { %v2737_v59 = vmax.f32 %v2725_v55, %v2733_v44  ;;  %v2773_v51 = vsel %vm1271_vm0, %v8672_v34, %v8237_v4  ;;  %v7854_v34 = vld [vmem:[%s11742_s10 + $0x94] sm:$0xf]  ;;  %v7942_v52 = vld [vmem:[%s11744_s12 + $0x28c] sm:$0xf0] }
0x1296   : > { %3030 = vmatpush.bf16.msra.mxu1 %v6405_v12  ;;  %v7886_v12 = vld [vmem:[%s11744_s12 + $0xcc] sm:$0xf0] }
0x1297   : > { %v2741_v29 = vadd.f32 %v2737_v59, %v8932_v22  ;;  %v7837_v22 = vld [vmem:[%s11742_s10 + $0xc] sm:$0xf]  ;;  %v7855_v59 = vld [vmem:[%s11742_s10 + $0x9c] sm:$0xf] }
0x1298   : > { %v6337_v43 = vor.u32 %v7837_v22, %v6334_v32  ;;  %v6385_v22 = vor.u32 %v7847_v60, %v6382_v5  ;;  %v7838_v32 = vld [vmem:[%s11742_s10 + $0x14] sm:$0xf]  ;;  %v7974_v60 = vld [vmem:[%s11744_s12 + $0x38c] sm:$0xf0]  ;;  %v7044_v5 = vld [vmem:[%s11744_s12 + $0x4c0] sm:$0xf] }
0x1299   : > { %v8238_v2 = vpack.i.bf16 %v2741_v29, %v2740_v53  ;;  %v6409_v53 = vor.u32 %v7854_v34, %v6406_v28  ;;  %v6414_v29 = vld [vmem:[%s11742_s10 + $0xb8] sm:$0xf0]  ;;  %v6345_v49 = vor.u32 %v7838_v32, %v6342_v40  ;;  %v6804_v28 = vld [vmem:[%s11744_s12 + $0x2e0] sm:$0xf] }
0x129a   : > { %3013 = vmatpush.bf16.msrb.mxu0 %v6337_v43  ;;  %3031 = vmatpush.bf16.msra.mxu1 %v6373_v23  ;;  %v6417_v0 = vor.u32 %v7855_v59, %v6414_v29  ;;  %v7839_v43 = vld [vmem:[%s11742_s10 + $0x1c] sm:$0xf]  ;;  %v6485_v23 = vor.u32 %v7874_v31, %v6484_v7  ;;  %v7954_v59 = vld [vmem:[%s11744_s12 + $0x2ec] sm:$0xf0]  ;;  %v6628_v29 = vld [vmem:[%s11744_s12 + $0x180] sm:$0xf] }
0x129b   : > { %8239 = vrot.lane.b32.xlu0 %v8238_v2, %s8257_s29  ;;  %v7846_v2 = vld [vmem:[%s11742_s10 + $0x54] sm:$0xf]  ;;  %v6353_v50 = vor.u32 %v7839_v43, %v6350_v56  ;;  %v6788_v40 = vld [vmem:[%s11744_s12 + $0x2c0] sm:$0xf]  ;;  %v7950_v43 = vld [vmem:[%s11744_s12 + $0x2cc] sm:$0xf0] }
0x129c   : > { %v6377_v42 = vor.u32 %v7846_v2, %v6374_v46  ;;  %v7910_v2 = vld [vmem:[%s11744_s12 + $0x18c] sm:$0xf0]  ;;  %v6884_v46 = vld [vmem:[%s11744_s12 + $0x380] sm:$0xf]  ;;  %v6789_v56 = vor.u32 %v7950_v43, %v6788_v40 }
0x129d   : > { %v6596_v7 = vld [vmem:[%s11744_s12 + $0x140] sm:$0xf]  ;;  %v7902_v31 = vld [vmem:[%s11744_s12 + $0x14c] sm:$0xf0] }
0x129e   : > { %3068 = vmatpush.bf16.msra.mxu0 %v6413_v61  ;;  %3032 = vmatpush.bf16.msra.mxu1 %v6341_v57  ;;  %v6533_v61 = vor.u32 %v7886_v12, %v6532_v45  ;;  %v7866_v57 = vld [vmem:[%s11744_s12 + $0x2c] sm:$0xf0] }
0x129f   : > { %v7970_v45 = vld [vmem:[%s11744_s12 + $0x36c] sm:$0xf0] }
0x12a0   : > { %4750 = vmatpush.bf16.msra.mxu3 %v6533_v61  ;;  %v8010_v12 = vld [vmem:[%s11744_s12 + $0x4ac] sm:$0xf0]  ;;  %v6869_v27 = vor.u32 %v7970_v45, %v6868_v14 }
0x12a1   : > { %v7029_v21 = vor.u32 %v8010_v12, %v7028_v13  ;;  %v7930_v14 = vld [vmem:[%s11744_s12 + $0x22c] sm:$0xf0]  ;;  %v6948_v13 = vld [vmem:[%s11744_s12 + $0x400] sm:$0xf] }
0x12a2   : > { %3069 = vmatpush.bf16.msra.mxu0 %v6381_v15  ;;  %v6468_v15 = vld [vmem:[%s11744_s12 + $0x40] sm:$0xf]  ;;  %v7990_v12 = vld [vmem:[%s11744_s12 + $0x40c] sm:$0xf0] }
0x12a3   : > { %v6469_v17 = vor.u32 %v7870_v25, %v6468_v15  ;;  %v6852_v15 = vld [vmem:[%s11744_s12 + $0x340] sm:$0xf]  ;;  %v7966_v25 = vld [vmem:[%s11744_s12 + $0x34c] sm:$0xf0] }
0x12a4   : > { %4751 = vmatpush.bf16.msra.mxu3 %v6517_v63 }
0x12a6   : > { %3070 = vmatpush.bf16.msra.mxu0 %v6349_v8  ;;  %v6453_v8 = vor.u32 %v7866_v57, %v6452_v37  ;;  %v6580_v57 = vld [vmem:[%s11744_s12 + $0x120] sm:$0xf] }
0x12a8   : > { %4752 = vmatpush.bf16.msra.mxu3 %v6501_v6  ;;  %v6773_v6 = vor.u32 %v7946_v35, %v6772_v3  ;;  %v6949_v3 = vor.u32 %v7990_v12, %v6948_v13  ;;  %v7444_v35 = vld [vmem:[%s11744_s12 + $0x7e0] sm:$0xf] }
0x12ac   : > { %4753 = vmatpush.bf16.msra.mxu3 %v6485_v23  ;;  %v6597_v23 = vor.u32 %v7902_v31, %v6596_v7 }
0x12b0   : > { %4754 = vmatpush.bf16.msra.mxu3 %v6469_v17  ;;  %v6853_v17 = vor.u32 %v7966_v25, %v6852_v15 }
0x12b4   : > { %4755 = vmatpush.bf16.msra.mxu3 %v6453_v8  ;;  %v7898_v8 = vld [vmem:[%s11744_s12 + $0x12c] sm:$0xf0] }
0x12fd   : > { %v8230_v41 = vpop.permute.xlu1 %8229 }
0x12fe   : > { %v8232_v39 = vunpack.i.h.bf16 %v8230_v41  ;;  %v8231_v11 = vunpack.i.l.bf16 %v8230_v41  ;;  %v6660_v41 = vld [vmem:[%s11744_s12 + $0x1c0] sm:$0xf] }
0x1300   : > { %v2775_v18 = vsel %vm688_vm4, %v2771_v58, %v8232_v39  ;;  %v2774_v54 = vsel %vm688_vm4, %v2770_v10, %v8231_v11  ;;  %v7918_v39 = vld [vmem:[%s11744_s12 + $0x1cc] sm:$0xf0]  ;;  %v6916_v11 = vld [vmem:[%s11744_s12 + $0x3c0] sm:$0xf] }
0x1301   : > { %v9376_v24 = vpack.c.bf16 %v2775_v18, %v2774_v54  ;;  %v6661_v58 = vor.u32 %v7918_v39, %v6660_v41  ;;  %v7982_v10 = vld [vmem:[%s11744_s12 + $0x3cc] sm:$0xf0]  ;;  %v6436_v54 = vld [vmem:[%s11744_s12] sm:$0xf]  ;;  %v6581_v39 = vor.u32 %v7898_v8, %v6580_v57 }
0x1302   : > { %v6917_v18 = vor.u32 %v7982_v10, %v6916_v11  ;;  %v6437_v4 = vor.u32 %v7862_v1, %v6436_v54  ;;  %v6836_v41 = vld [vmem:[%s11744_s12 + $0x320] sm:$0xf]  ;;  %v7962_v11 = vld [vmem:[%s11744_s12 + $0x32c] sm:$0xf0] }
0x1303   : > { %6418 = vmatmul.msk.bf16.vlgmr.msrb.gmra.mxu2 %vm2942_vm1, %v9376_v24  ;;  %6420 = vmatmul.msk.bf16.vlgmr.msrb.gmra.mxu1 %vm2942_vm1, %v9376_v24  ;;  %v8002_v10 = vld [vmem:[%s11744_s12 + $0x46c] sm:$0xf0]  ;;  %v6837_v54 = vor.u32 %v7962_v11, %v6836_v41  ;;  %v7428_v41 = vld [vmem:[%s11744_s12 + $0x7c0] sm:$0xf] }
0x1304   : > { %6424 = vmatmul.msk.bf16.vlgmr.msrb.gmra.mxu0 %vm2942_vm1, %v9376_v24  ;;  %3049 = vmatpush.bf16.msrb.mxu2 %v6409_v53  ;;  %v6805_v53 = vor.u32 %v7954_v59, %v6804_v28  ;;  %v9670_v28 = vld [vmem:[%s11743_s11] sm:$0xff] }
0x1305   : > { %3087 = vmatpush.bf16.msrb.mxu1 %v6417_v0  ;;  %4756 = vmatpush.bf16.msra.mxu3 %v6437_v4  ;;  %v6629_v0 = vor.u32 %v7910_v2, %v6628_v29  ;;  %v6724_v2 = vld [vmem:[%s11744_s12 + $0x240] sm:$0xf]  ;;  %v2809_v40 = vperm.slane %v9670_v28, 3  ;;  %v2806_v15 = vperm.slane %v9670_v28, 0 }
0x1306   : > { %4775 = vmatpush.bf16.msrb.mxu0 %v6805_v53  ;;  %v7998_v53 = vld [vmem:[%s11744_s12 + $0x44c] sm:$0xf0] }
0x1308   : > { %3050 = vmatpush.bf16.msrb.mxu2 %v6377_v42  ;;  %v8014_v42 = vld [vmem:[%s11744_s12 + $0x4cc] sm:$0xf0] }
0x1309   : > { %3088 = vmatpush.bf16.msrb.mxu1 %v6385_v22  ;;  %v6885_v22 = vor.u32 %v7974_v60, %v6884_v46  ;;  %v7045_v32 = vor.u32 %v8014_v42, %v7044_v5  ;;  %v7934_v46 = vld [vmem:[%s11744_s12 + $0x24c] sm:$0xf0]  ;;  %v6964_v5 = vld [vmem:[%s11744_s12 + $0x420] sm:$0xf] }
0x130a   : > { %4776 = vmatpush.bf16.msrb.mxu0 %v6789_v56  ;;  %v6725_v60 = vor.u32 %v7934_v46, %v6724_v2  ;;  %v7994_v42 = vld [vmem:[%s11744_s12 + $0x42c] sm:$0xf0]  ;;  %v7412_v2 = vld [vmem:[%s11744_s12 + $0x7a0] sm:$0xf] }
0x130b   : > { %v8106_v46 = vld [vmem:[%s11744_s12 + $0x7ac] sm:$0xf0] }
0x130c   : > { %3051 = vmatpush.bf16.msrb.mxu2 %v6345_v49  ;;  %v6612_v49 = vld [vmem:[%s11744_s12 + $0x160] sm:$0xf] }
0x130d   : > { %v8240_v62 = vpop.permute.xlu0 %8239  ;;  %3089 = vmatpush.bf16.msrb.mxu1 %v6353_v50  ;;  %v7906_v50 = vld [vmem:[%s11744_s12 + $0x16c] sm:$0xf0] }
0x130e   : > { %v8242_v36 = vunpack.i.h.bf16 %v8240_v62  ;;  %v8241_v33 = vunpack.i.l.bf16 %v8240_v62  ;;  %v7914_v62 = vld [vmem:[%s11744_s12 + $0x1ac] sm:$0xf0]  ;;  %v6613_v16 = vor.u32 %v7906_v50, %v6612_v49  ;;  %4777 = vmatpush.bf16.msrb.mxu0 %v6773_v6  ;;  %v6708_v50 = vld [vmem:[%s11744_s12 + $0x220] sm:$0xf] }
0x130f   : > { %v6709_v45 = vor.u32 %v7930_v14, %v6708_v50  ;;  %v8114_v6 = vld [vmem:[%s11744_s12 + $0x7ec] sm:$0xf0]  ;;  %v7284_v14 = vld [vmem:[%s11744_s12 + $0x6a0] sm:$0xf] }
0x1310   : > { %v2776_v55 = vsel %vm688_vm4, %v2772_v26, %v8241_v33  ;;  %v2777_v30 = vsel %vm688_vm4, %v2773_v51, %v8242_v36  ;;  %v6900_v36 = vld [vmem:[%s11744_s12 + $0x3a0] sm:$0xf]  ;;  %v6645_v33 = vor.u32 %v7914_v62, %v6644_v48  ;;  %v7978_v51 = vld [vmem:[%s11744_s12 + $0x3ac] sm:$0xf0] }
0x1311   : > { %v9390_v44 = vpack.c.bf16 %v2777_v30, %v2776_v55  ;;  %v7060_v26 = vld [vmem:[%s11744_s12 + $0x4e0] sm:$0xf]  ;;  %v8018_v55 = vld [vmem:[%s11744_s12 + $0x4ec] sm:$0xf0]  ;;  %v6901_v30 = vor.u32 %v7978_v51, %v6900_v36 }
0x1312   : > { %v7061_v34 = vor.u32 %v8018_v55, %v7060_v26  ;;  %v6740_v48 = vld [vmem:[%s11744_s12 + $0x260] sm:$0xf]  ;;  %v7938_v62 = vld [vmem:[%s11744_s12 + $0x26c] sm:$0xf0] }
0x1313   : > { %6419 = vmatmul.msk.bf16.gmra.mxu2 %vm2942_vm1, %v9390_v44  ;;  %6421 = vmatmul.msk.bf16.gmra.mxu1 %vm2942_vm1, %v9390_v44  ;;  %v6741_v36 = vor.u32 %v7938_v62, %v6740_v48  ;;  %v7894_v51 = vld [vmem:[%s11744_s12 + $0x10c] sm:$0xf0]  ;;  %v6820_v26 = vld [vmem:[%s11744_s12 + $0x300] sm:$0xf] }
0x1314   : > { %6425 = vmatmul.msk.bf16.gmra.mxu0 %vm2942_vm1, %v9390_v44  ;;  %4801 = vmatpush.bf16.msrb.mxu3 %v7061_v34  ;;  %v6980_v34 = vld [vmem:[%s11744_s12 + $0x440] sm:$0xf] }
0x1315   : > { %v6981_v29 = vor.u32 %v7998_v53, %v6980_v34 }
0x1318   : > { %4802 = vmatpush.bf16.msrb.mxu3 %v7045_v32  ;;  %v6965_v32 = vor.u32 %v7994_v42, %v6964_v5  ;;  %v7413_v5 = vor.u32 %v8106_v46, %v7412_v2  ;;  %v7124_v2 = vld [vmem:[%s11744_s12 + $0x560] sm:$0xf]  ;;  %v8034_v46 = vld [vmem:[%s11744_s12 + $0x56c] sm:$0xf0] }
0x131c   : > { %4803 = vmatpush.bf16.msrb.mxu3 %v7029_v21 }
0x1320   : > { %4804 = vmatpush.bf16.msrb.mxu3 %v7013_v47 }
0x1323   : > { %6422 = vmatmul.msk.bf16.vlgmr.msra.gmra.mxu2 %vm2942_vm1, %v9376_v24  ;;  %6426 = vmatmul.msk.bf16.vlgmr.msra.gmra.mxu1 %vm2942_vm1, %v9376_v24 }
0x1324   : > { %6430 = vmatmul.msk.bf16.vlgmr.msra.gmra.mxu0 %vm2942_vm1, %v9376_v24  ;;  %4762 = vmatpush.bf16.msra.mxu2 %v6677_v38  ;;  %v6756_v38 = vld [vmem:[%s11744_s12 + $0x280] sm:$0xf] }
0x1325   : > { %4788 = vmatpush.bf16.msra.mxu1 %v6933_v19  ;;  %v6757_v37 = vor.u32 %v7942_v52, %v6756_v38  ;;  %v8082_v38 = vld [vmem:[%s11744_s12 + $0x6ec] sm:$0xf0] }
0x1327   : > { %4778 = vmatpush.bf16.msrb.mxu0 %v6757_v37 }
0x1328   : > { %4763 = vmatpush.bf16.msra.mxu2 %v6661_v58  ;;  %v6996_v58 = vld [vmem:[%s11744_s12 + $0x460] sm:$0xf] }
0x1329   : > { %4789 = vmatpush.bf16.msra.mxu1 %v6917_v18  ;;  %v6997_v1 = vor.u32 %v8002_v10, %v6996_v58 }
0x132b   : > { %4805 = vmatpush.bf16.msrb.mxu3 %v6997_v1  ;;  %4779 = vmatpush.bf16.msrb.mxu0 %v6741_v36  ;;  %v7188_v36 = vld [vmem:[%s11744_s12 + $0x5e0] sm:$0xf] }
0x132c   : > { %4764 = vmatpush.bf16.msra.mxu2 %v6645_v33  ;;  %v6564_v33 = vld [vmem:[%s11744_s12 + $0x100] sm:$0xf] }
0x132d   : > { %4790 = vmatpush.bf16.msra.mxu1 %v6901_v30  ;;  %v6565_v55 = vor.u32 %v7894_v51, %v6564_v33  ;;  %v7958_v30 = vld [vmem:[%s11744_s12 + $0x30c] sm:$0xf0] }
0x132e   : > { %v6821_v59 = vor.u32 %v7958_v30, %v6820_v26  ;;  %v8050_v33 = vld [vmem:[%s11744_s12 + $0x5ec] sm:$0xf0] }
0x132f   : > { %4806 = vmatpush.bf16.msrb.mxu3 %v6981_v29  ;;  %4780 = vmatpush.bf16.msrb.mxu0 %v6725_v60  ;;  %v8078_v30 = vld [vmem:[%s11744_s12 + $0x6cc] sm:$0xf0] }
0x1330   : > { %4765 = vmatpush.bf16.msra.mxu2 %v6629_v0 }
0x1331   : > { %4791 = vmatpush.bf16.msra.mxu1 %v6885_v22  ;;  %v2807_v22 = vperm.slane %v9670_v28, 1 }
0x1333   : > { %6423 = vmatmul.msk.bf16.gmra.mxu2 %vm2942_vm1, %v9390_v44  ;;  %6427 = vmatmul.msk.bf16.gmra.mxu1 %vm2942_vm1, %v9390_v44 }
0x1334   : > { %6431 = vmatmul.msk.bf16.gmra.mxu0 %vm2942_vm1, %v9390_v44  ;;  %4766 = vmatpush.bf16.msra.mxu2 %v6613_v16 }
0x1335   : > { %4792 = vmatpush.bf16.msra.mxu1 %v6869_v27  ;;  %4807 = vmatpush.bf16.msrb.mxu3 %v6965_v32 }
0x1336   : > { %4781 = vmatpush.bf16.msrb.mxu0 %v6709_v45 }
0x1338   : > { %4767 = vmatpush.bf16.msra.mxu2 %v6597_v23  ;;  %v7445_v23 = vor.u32 %v8114_v6, %v7444_v35 }
0x1339   : > { %4793 = vmatpush.bf16.msra.mxu1 %v6853_v17  ;;  %v7926_v17 = vld [vmem:[%s11744_s12 + $0x20c] sm:$0xf0]  ;;  %4808 = vmatpush.bf16.msrb.mxu3 %v6949_v3 }
0x133a   : > { %v8102_v3 = vld [vmem:[%s11744_s12 + $0x78c] sm:$0xf0] }
0x133c   : > { %4768 = vmatpush.bf16.msra.mxu2 %v6581_v39  ;;  %v8110_v39 = vld [vmem:[%s11744_s12 + $0x7cc] sm:$0xf0] }
0x133d   : > { %4794 = vmatpush.bf16.msra.mxu1 %v6837_v54 }
0x1340   : > { %4769 = vmatpush.bf16.msra.mxu2 %v6565_v55  ;;  %v7189_v55 = vor.u32 %v8050_v33, %v7188_v36 }
0x1341   : > { %4795 = vmatpush.bf16.msra.mxu1 %v6821_v59 }
0x1343   : > { %6428 = vmatmul.msk.bf16.vlgmr.msrb.gmra.mxu2 %vm2942_vm1, %v9376_v24  ;;  %6432 = vmatmul.msk.bf16.vlgmr.msrb.gmra.mxu1 %vm2942_vm1, %v9376_v24 }
0x1344   : > { %4814 = vmatpush.bf16.msrb.mxu2 %v7189_v55  ;;  %v8094_v55 = vld [vmem:[%s11744_s12 + $0x74c] sm:$0xf0] }
0x1345   : > { %4840 = vmatpush.bf16.msrb.mxu1 %v7445_v23 }
0x1353   : > { %6429 = vmatmul.msk.bf16.gmra.mxu2 %vm2942_vm1, %v9390_v44  ;;  %6433 = vmatmul.msk.bf16.gmra.mxu1 %vm2942_vm1, %v9390_v44 }
0x1380   : > { %v9592_v61 = vpop.f32.mrf.mxu1 }
0x1381   : > { %v9594_v63 = vpop.f32.mrf.mxu0  ;;  %v2978_v27 = vadd.f32 %v9592_v61, %v2807_v22  ;;  %v6692_v61 = vld [vmem:[%s11744_s12 + $0x200] sm:$0xf] }
0x1382   : > { %v3016_v7 = vadd.f32 %v9594_v63, %v2809_v40  ;;  %v6693_v47 = vor.u32 %v7926_v17, %v6692_v61  ;;  %v7316_v63 = vld [vmem:[%s11744_s12 + $0x6e0] sm:$0xf]  ;;  %v8042_v17 = vld [vmem:[%s11744_s12 + $0x5ac] sm:$0xf0] }
0x1383   : > { %v3102_v52 = vmax.f32 %v2978_v27, 0.0  ;;  %v7317_v8 = vor.u32 %v8082_v38, %v7316_v63  ;;  %v8070_v63 = vld [vmem:[%s11744_s12 + $0x68c] sm:$0xf0] }
0x1384   : > { %v3104_v11 = vmax.f32 %v3016_v7, 0.0  ;;  %4782 = vmatpush.bf16.msrb.mxu0 %v6693_v47  ;;  %v7268_v47 = vld [vmem:[%s11744_s12 + $0x680] sm:$0xf] }
0x1386   : > { %v9626_v19 = vpop.f32.mrf.mxu2 }
0x1387   : > { %v2959_v54 = vadd.f32 %v9626_v19, %v2806_v15  ;;  %v7300_v19 = vld [vmem:[%s11744_s12 + $0x6c0] sm:$0xf] }
0x1388   : > { %v2979_v18 = vpop.f32.mrf.mxu1  ;;  %4827 = vmatpush.bf16.msra.mxu0 %v7317_v8  ;;  %v7301_v29 = vor.u32 %v8078_v30, %v7300_v19  ;;  %v8098_v8 = vld [vmem:[%s11744_s12 + $0x76c] sm:$0xf0] }
0x1389   : > { %v3017_v4 = vpop.f32.mrf.mxu0  ;;  %v2980_v56 = vadd.f32 %v2979_v18, %v2807_v22  ;;  %v7429_v18 = vor.u32 %v8110_v39, %v7428_v41  ;;  %v3101_v42 = vmax.f32 %v2959_v54, 0.0 }
0x138a   : > { %v3018_v16 = vadd.f32 %v3017_v4, %v2809_v40 }
0x138b   : > { %v3110_v25 = vmax.f32 %v2980_v56, 0.0  ;;  %4841 = vmatpush.bf16.msrb.mxu1 %v7429_v18  ;;  %v8038_v18 = vld [vmem:[%s11744_s12 + $0x58c] sm:$0xf0] }
0x138c   : > { %v3112_v9 = vmax.f32 %v3018_v16, 0.0  ;;  %4828 = vmatpush.bf16.msra.mxu0 %v7301_v29  ;;  %v8074_v16 = vld [vmem:[%s11744_s12 + $0x6ac] sm:$0xf0] }
0x138d   : > { %v3142_v1 = vmax.f32 %v3102_v52, %v3110_v25  ;;  %v7285_v27 = vor.u32 %v8074_v16, %v7284_v14  ;;  %v6550_v14 = vld [vmem:[%s11744_s12 + $0xf0] sm:$0xf0] }
0x138e   : > { %v2960_v0 = vpop.f32.mrf.mxu2  ;;  %v3160_v51 = vmax.f32 %v3104_v11, %v3112_v9 }
0x138f   : > { %v2961_v37 = vadd.f32 %v2960_v0, %v2806_v15  ;;  %4842 = vmatpush.bf16.msrb.mxu1 %v7413_v5  ;;  %v7236_v5 = vld [vmem:[%s11744_s12 + $0x640] sm:$0xf] }
0x1390   : > { %v2982_v43 = vpop.f32.mrf.mxu1  ;;  %4829 = vmatpush.bf16.msra.mxu0 %v7285_v27 }
0x1391   : > { %v3020_v49 = vpop.f32.mrf.mxu0  ;;  %v2983_v21 = vadd.f32 %v2982_v43, %v2807_v22  ;;  %v3109_v34 = vmax.f32 %v2961_v37, 0.0  ;;  %v8046_v43 = vld [vmem:[%s11744_s12 + $0x5cc] sm:$0xf0]  ;;  %v7269_v37 = vor.u32 %v8070_v63, %v7268_v47  ;;  %v7984_v47 = vld [vmem:[%s11744_s12 + $0x3e4] sm:$0xf] }
0x1392   : > { %v3021_v31 = vadd.f32 %v3020_v49, %v2809_v40  ;;  %v6934_v63 = vld [vmem:[%s11744_s12 + $0x3f0] sm:$0xf0] }
0x1393   : > { %v3118_v57 = vmax.f32 %v2983_v21, 0.0  ;;  %v3133_v45 = vmax.f32 %v3101_v42, %v3109_v34  ;;  %v7396_v21 = vld [vmem:[%s11744_s12 + $0x780] sm:$0xf]  ;;  %v8062_v42 = vld [vmem:[%s11744_s12 + $0x64c] sm:$0xf0] }
0x1394   : > { %v3120_v58 = vmax.f32 %v3021_v31, 0.0  ;;  %v7397_v7 = vor.u32 %v8102_v3, %v7396_v21  ;;  %4830 = vmatpush.bf16.msra.mxu0 %v7269_v37  ;;  %v7220_v3 = vld [vmem:[%s11744_s12 + $0x620] sm:$0xf] }
0x1395   : > { %v3143_v59 = vmax.f32 %v3142_v1, %v3118_v57  ;;  %v7380_v57 = vld [vmem:[%s11744_s12 + $0x760] sm:$0xf] }
0x1396   : > { %v2963_v20 = vpop.f32.mrf.mxu2  ;;  %v3161_v0 = vmax.f32 %v3160_v51, %v3120_v58  ;;  %4843 = vmatpush.bf16.msrb.mxu1 %v7397_v7  ;;  %v7381_v39 = vor.u32 %v8098_v8, %v7380_v57  ;;  %v7884_v8 = vld [vmem:[%s11744_s12 + $0xc4] sm:$0xf] }
0x1397   : > { %v2964_v4 = vadd.f32 %v2963_v20, %v2806_v15 }
0x1398   : > { %v2984_v10 = vpop.f32.mrf.mxu1 }
0x1399   : > { %v2985_v48 = vadd.f32 %v2984_v10, %v2807_v22  ;;  %v3022_v62 = vpop.f32.mrf.mxu0  ;;  %v3117_v22 = vmax.f32 %v2964_v4, 0.0  ;;  %v7140_v10 = vld [vmem:[%s11744_s12 + $0x580] sm:$0xf] }
0x139a   : > { %v3023_v26 = vadd.f32 %v3022_v62, %v2809_v40  ;;  %v7172_v40 = vld [vmem:[%s11744_s12 + $0x5c0] sm:$0xf]  ;;  %4844 = vmatpush.bf16.msrb.mxu1 %v7381_v39  ;;  %v7141_v4 = vor.u32 %v8038_v18, %v7140_v10  ;;  %v8066_v62 = vld [vmem:[%s11744_s12 + $0x66c] sm:$0xf0]  ;;  %v6937_v39 = vor.u32 %v7984_v47, %v6934_v63  ;;  %v7972_v63 = vld [vmem:[%s11744_s12 + $0x384] sm:$0xf] }
0x139b   : > { %v3126_v53 = vmax.f32 %v2985_v48, 0.0  ;;  %v7173_v50 = vor.u32 %v8046_v43, %v7172_v40  ;;  %v3134_v31 = vmax.f32 %v3133_v45, %v3117_v22  ;;  %v7252_v48 = vld [vmem:[%s11744_s12 + $0x660] sm:$0xf]  ;;  %v7237_v40 = vor.u32 %v8062_v42, %v7236_v5 }
0x139c   : > { %v3128_v60 = vmax.f32 %v3023_v26, 0.0  ;;  %v7253_v51 = vor.u32 %v8066_v62, %v7252_v48  ;;  %v7364_v26 = vld [vmem:[%s11744_s12 + $0x740] sm:$0xf]  ;;  %v8054_v48 = vld [vmem:[%s11744_s12 + $0x60c] sm:$0xf0] }
0x139d   : > { %v3144_v32 = vmax.f32 %v3143_v59, %v3126_v53  ;;  %4815 = vmatpush.bf16.msrb.mxu2 %v7173_v50  ;;  %v7365_v34 = vor.u32 %v8094_v55, %v7364_v26  ;;  %v7348_v43 = vld [vmem:[%s11744_s12 + $0x720] sm:$0xf]  ;;  %v7888_v50 = vld [vmem:[%s11744_s12 + $0xe4] sm:$0xf]  ;;  %v2812_v26 = vperm.slane %v9670_v28, 6 }
0x139e   : > { %v3162_v56 = vmax.f32 %v3161_v0, %v3128_v60  ;;  %v2965_v49 = vpop.f32.mrf.mxu2  ;;  %4831 = vmatpush.bf16.msra.mxu0 %v7253_v51  ;;  %v7125_v60 = vor.u32 %v8034_v46, %v7124_v2  ;;  %v7204_v10 = vld [vmem:[%s11744_s12 + $0x600] sm:$0xf]  ;;  %v7980_v51 = vld [vmem:[%s11744_s12 + $0x3c4] sm:$0xf]  ;;  %v8022_v46 = vld [vmem:[%s11744_s12 + $0x50c] sm:$0xf0] }
0x139f   : > { %v3145_v13 = vrot.slane %v3144_v32, 4  ;;  %v2966_v12 = vadd.f32 %v2965_v49, %v2806_v15  ;;  %v7156_v15 = vld [vmem:[%s11744_s12 + $0x5a0] sm:$0xf]  ;;  %4845 = vmatpush.bf16.msrb.mxu1 %v7365_v34 }
0x13a0   : > { %v3163_v35 = vrot.slane %v3162_v56, 4  ;;  %v9765_v6 = vpop.f32.mrf.mxu1  ;;  %v7157_v20 = vor.u32 %v8042_v17, %v7156_v15  ;;  %v8086_v15 = vld [vmem:[%s11744_s12 + $0x70c] sm:$0xf0]  ;;  %v7076_v2 = vld [vmem:[%s11744_s12 + $0x500] sm:$0xf] }
0x13a1   : > { %v3146_v23 = vmax.f32 %v3144_v32, %v3145_v13  ;;  %v3125_v25 = vmax.f32 %v2966_v12, 0.0  ;;  %v9767_v61 = vpop.f32.mrf.mxu0  ;;  %v7108_v13 = vld [vmem:[%s11744_s12 + $0x540] sm:$0xf]  ;;  %v8030_v12 = vld [vmem:[%s11744_s12 + $0x54c] sm:$0xf0]  ;;  %v7077_v42 = vor.u32 %v8022_v46, %v7076_v2 }
0x13a2   : > { %v3164_v9 = vmax.f32 %v3162_v56, %v3163_v35  ;;  %4816 = vmatpush.bf16.msrb.mxu2 %v7157_v20  ;;  %v8090_v56 = vld [vmem:[%s11744_s12 + $0x72c] sm:$0xf0]  ;;  %4832 = vmatpush.bf16.msra.mxu0 %v7237_v40  ;;  %v7109_v21 = vor.u32 %v8030_v12, %v7108_v13  ;;  %v6502_v12 = vld [vmem:[%s11744_s12 + $0x90] sm:$0xf0] }
0x13a3   : > { %v3147_v38 = vrot.slane %v3146_v23, 2  ;;  %v3135_v52 = vmax.f32 %v3134_v31, %v3125_v25  ;;  %v7349_v16 = vor.u32 %v8090_v56, %v7348_v43  ;;  %v8058_v35 = vld [vmem:[%s11744_s12 + $0x62c] sm:$0xf0]  ;;  %v2810_v31 = vperm.slane %v9670_v28, 4  ;;  %v7332_v25 = vld [vmem:[%s11744_s12 + $0x700] sm:$0xf] }
0x13a4   : > { %v3165_v41 = vrot.slane %v3164_v9, 2  ;;  %v7333_v20 = vor.u32 %v8086_v15, %v7332_v25  ;;  %v6470_v2 = vld [vmem:[%s11744_s12 + $0x50] sm:$0xf0] }
0x13a5   : > { %v3148_v11 = vmax.f32 %v3146_v23, %v3147_v38  ;;  %v3136_v58 = vrot.slane %v3135_v52, 4  ;;  %4846 = vmatpush.bf16.msrb.mxu1 %v7349_v16  ;;  %v7221_v23 = vor.u32 %v8058_v35, %v7220_v3  ;;  %v3035_v18 = vadd.f32 %v9765_v6, %v2810_v31  ;;  %v6902_v16 = vld [vmem:[%s11744_s12 + $0x3b0] sm:$0xf0] }
0x13a6   : > { %v3166_v54 = vmax.f32 %v3164_v9, %v3165_v41  ;;  %v9793_v1 = vpop.f32.mrf.mxu2  ;;  %4817 = vmatpush.bf16.msrb.mxu2 %v7141_v4  ;;  %v6553_v9 = vor.u32 %v7888_v50, %v6550_v14  ;;  %v6534_v41 = vld [vmem:[%s11744_s12 + $0xd0] sm:$0xf0]  ;;  %v7205_v6 = vor.u32 %v8054_v48, %v7204_v10  ;;  %v7976_v14 = vld [vmem:[%s11744_s12 + $0x3a4] sm:$0xf] }
0x13a7   : > { %v3149_v36 = vrot.slane %v3148_v11, 1  ;;  %v3137_v33 = vmax.f32 %v3135_v52, %v3136_v58  ;;  %v9867_v52 = vperm.slane %v9670_v28, 2  ;;  %4833 = vmatpush.bf16.msra.mxu0 %v7221_v23  ;;  %v8026_v58 = vld [vmem:[%s11744_s12 + $0x52c] sm:$0xf0]  ;;  %v6537_v62 = vor.u32 %v7884_v8, %v6534_v41  ;;  %v6662_v23 = vld [vmem:[%s11744_s12 + $0x1d0] sm:$0xf0] }
0x13a8   : > { %v3167_v19 = vrot.slane %v3166_v54, 1  ;;  %v3036_v30 = vpop.f32.mrf.mxu1 }
0x13a9   : > { %v3150_v59 = vmax.f32 %v3148_v11, %v3149_v36  ;;  %v3138_v53 = vrot.slane %v3137_v33, 2  ;;  %v9807_v29 = vpop.f32.mrf.mxu0  ;;  %v3037_v37 = vadd.f32 %v3036_v30, %v2810_v31  ;;  %v7092_v11 = vld [vmem:[%s11744_s12 + $0x520] sm:$0xf]  ;;  %4847 = vmatpush.bf16.msrb.mxu1 %v7333_v20  ;;  %v7880_v36 = vld [vmem:[%s11744_s12 + $0xa4] sm:$0xf]  ;;  %v2997_v30 = vadd.f32 %v9793_v1, %v9867_v52 }
0x13aa   : > { %v3168_v0 = vmax.f32 %v3166_v54, %v3167_v19  ;;  %4818 = vmatpush.bf16.msrb.mxu2 %v7125_v60  ;;  %v7093_v4 = vor.u32 %v8026_v58, %v7092_v11  ;;  %v6918_v19 = vld [vmem:[%s11744_s12 + $0x3d0] sm:$0xf0]  ;;  %v3105_v60 = vmax.f32 %v3035_v18, 0.0  ;;  %v3075_v40 = vadd.f32 %v9807_v29, %v2812_v26  ;;  %v7876_v29 = vld [vmem:[%s11744_s12 + $0x84] sm:$0xf] }
0x13ab   : > { %v9821_v22 = vpack.c.bf16 %v3150_v59, %v3150_v59  ;;  %v3139_v32 = vmax.f32 %v3137_v33, %v3138_v53  ;;  %v6518_v33 = vld [vmem:[%s11744_s12 + $0xb0] sm:$0xf0]  ;;  %v3113_v55 = vmax.f32 %v3037_v37, 0.0  ;;  %4834 = vmatpush.bf16.msra.mxu0 %v7205_v6  ;;  %v6921_v53 = vor.u32 %v7980_v51, %v6918_v19  ;;  %v7968_v19 = vld [vmem:[%s11744_s12 + $0x364] sm:$0xf] }
0x13ac   : > { %v9829_v49 = vpack.c.bf16 %v3168_v0, %v3168_v0  ;;  %v7920_v0 = vld [vmem:[%s11744_s12 + $0x1e4] sm:$0xf]  ;;  %v6521_v1 = vor.u32 %v7880_v36, %v6518_v33  ;;  %v3103_v3 = vmax.f32 %v2997_v30, 0.0  ;;  %v3115_v20 = vmax.f32 %v3075_v40, 0.0  ;;  %v6886_v37 = vld [vmem:[%s11744_s12 + $0x390] sm:$0xf0] }
0x13ad   : > { %v3140_v45 = vrot.slane %v3139_v32, 1  ;;  %4770 = vmatmul.bf16.vlgmr.msra.gmra.mxu2 %v9821_v22  ;;  %v6889_v11 = vor.u32 %v7972_v63, %v6886_v37  ;;  %v6870_v30 = vld [vmem:[%s11744_s12 + $0x370] sm:$0xf0]  ;;  %v8016_v63 = vld [vmem:[%s11744_s12 + $0x4e4] sm:$0xf] }
0x13ae   : > { %4796 = vmatmul.bf16.vlgmr.msra.gmra.mxu1 %v9829_v49  ;;  %v2998_v27 = vpop.f32.mrf.mxu2  ;;  %4819 = vmatpush.bf16.msrb.mxu2 %v7109_v21  ;;  %v3073_v21 = vadd.f32 %v9767_v61, %v2812_v26  ;;  %v6505_v61 = vor.u32 %v7876_v29, %v6502_v12  ;;  %v6873_v46 = vor.u32 %v7968_v19, %v6870_v30  ;;  %v7062_v37 = vld [vmem:[%s11744_s12 + $0x4f0] sm:$0xf0] }
0x13af   : > { %v3141_v7 = vmax.f32 %v3139_v32, %v3140_v45  ;;  %4892 = vmatpush.bf16.msra.mxu1 %v6937_v39  ;;  %v2999_v34 = vadd.f32 %v2998_v27, %v9867_v52  ;;  %v6678_v32 = vld [vmem:[%s11744_s12 + $0x1f0] sm:$0xf0]  ;;  %v3169_v45 = vmax.f32 %v3105_v60, %v3113_v55  ;;  %v6905_v27 = vor.u32 %v7976_v14, %v6902_v16 }
0x13b0   : > { %v3039_v17 = vpop.f32.mrf.mxu1  ;;  %v6681_v50 = vor.u32 %v7920_v0, %v6678_v32  ;;  %v6486_v39 = vld [vmem:[%s11744_s12 + $0x70] sm:$0xf0]  ;;  %v3107_v58 = vmax.f32 %v3073_v21, 0.0  ;;  %v7908_v0 = vld [vmem:[%s11744_s12 + $0x184] sm:$0xf] }
0x13b1   : > { %v9864_v38 = vpack.c.bf16 %v3141_v7, %v3141_v7  ;;  %v3077_v57 = vpop.f32.mrf.mxu0  ;;  %v3040_v54 = vadd.f32 %v3039_v17, %v2810_v31  ;;  %v3111_v35 = vmax.f32 %v2999_v34, 0.0  ;;  %v6630_v60 = vld [vmem:[%s11744_s12 + $0x190] sm:$0xf0] }
0x13b2   : > { %4820 = vmatpush.bf16.msrb.mxu2 %v7093_v4  ;;  %v3078_v15 = vadd.f32 %v3077_v57, %v2812_v26  ;;  %v7872_v57 = vld [vmem:[%s11744_s12 + $0x64] sm:$0xf]  ;;  %v6646_v4 = vld [vmem:[%s11744_s12 + $0x1b0] sm:$0xf0]  ;;  %v3187_v6 = vmax.f32 %v3107_v58, %v3115_v20  ;;  %v6633_v32 = vor.u32 %v7908_v0, %v6630_v60 }
0x13b3   : > { %4757 = vmatmul.bf16.vlgmr.msra.gmra.mxu3 %v9864_v38  ;;  %v3121_v5 = vmax.f32 %v3040_v54, 0.0  ;;  %4893 = vmatpush.bf16.msra.mxu1 %v6921_v53  ;;  %v3151_v10 = vmax.f32 %v3103_v3, %v3111_v35  ;;  %v7912_v54 = vld [vmem:[%s11744_s12 + $0x1a4] sm:$0xf]  ;;  %v6489_v55 = vor.u32 %v7872_v57, %v6486_v39  ;;  %v6614_v21 = vld [vmem:[%s11744_s12 + $0x170] sm:$0xf0] }
0x13b4   : > { %4853 = vmatpush.bf16.msra.mxu3 %v6553_v9  ;;  %v3123_v48 = vmax.f32 %v3078_v15, 0.0  ;;  %v6649_v33 = vor.u32 %v7912_v54, %v6646_v4  ;;  %v7960_v15 = vld [vmem:[%s11744_s12 + $0x324] sm:$0xf]  ;;  %v6598_v57 = vld [vmem:[%s11744_s12 + $0x150] sm:$0xf0] }
0x13b5   : > { %v3170_v25 = vmax.f32 %v3169_v45, %v3121_v5  ;;  %v7864_v45 = vld [vmem:[%s11744_s12 + $0x24] sm:$0xf]  ;;  %v6822_v54 = vld [vmem:[%s11744_s12 + $0x310] sm:$0xf0] }
0x13b6   : > { %v3001_v59 = vpop.f32.mrf.mxu2  ;;  %4821 = vmatpush.bf16.msrb.mxu2 %v7077_v42  ;;  %v3188_v5 = vmax.f32 %v3187_v6, %v3123_v48  ;;  %v7046_v19 = vld [vmem:[%s11744_s12 + $0x4d0] sm:$0xf0] }
0x13b7   : > { %v3002_v43 = vadd.f32 %v3001_v59, %v9867_v52  ;;  %4894 = vmatpush.bf16.msra.mxu1 %v6905_v27  ;;  %v7904_v27 = vld [vmem:[%s11744_s12 + $0x164] sm:$0xf] }
0x13b8   : > { %4854 = vmatpush.bf16.msra.mxu3 %v6537_v62  ;;  %v3041_v56 = vpop.f32.mrf.mxu1 }
0x13b9   : > { %v3042_v13 = vadd.f32 %v3041_v56, %v2810_v31  ;;  %v3079_v7 = vpop.f32.mrf.mxu0  ;;  %v7916_v31 = vld [vmem:[%s11744_s12 + $0x1c4] sm:$0xf]  ;;  %v3119_v47 = vmax.f32 %v3002_v43, 0.0  ;;  %v6854_v56 = vld [vmem:[%s11744_s12 + $0x350] sm:$0xf0] }
0x13ba   : > { %4866 = vmatpush.bf16.msra.mxu2 %v6681_v50  ;;  %v6665_v9 = vor.u32 %v7916_v31, %v6662_v23  ;;  %v3080_v41 = vadd.f32 %v3079_v7, %v2812_v26  ;;  %v7964_v43 = vld [vmem:[%s11744_s12 + $0x344] sm:$0xf]  ;;  %v6617_v7 = vor.u32 %v7904_v27, %v6614_v21  ;;  %v6774_v27 = vld [vmem:[%s11744_s12 + $0x2b0] sm:$0xf0] }
0x13bb   : > { %v3129_v17 = vmax.f32 %v3042_v13, 0.0  ;;  %v3152_v51 = vmax.f32 %v3151_v10, %v3119_v47  ;;  %4895 = vmatpush.bf16.msra.mxu1 %v6889_v11  ;;  %v6454_v13 = vld [vmem:[%s11744_s12 + $0x30] sm:$0xf0]  ;;  %v6857_v29 = vor.u32 %v7964_v43, %v6854_v56  ;;  %v7892_v56 = vld [vmem:[%s11744_s12 + $0x104] sm:$0xf] }
0x13bc   : > { %4855 = vmatpush.bf16.msra.mxu3 %v6521_v1  ;;  %v3131_v59 = vmax.f32 %v3080_v41, 0.0  ;;  %v6457_v23 = vor.u32 %v7864_v45, %v6454_v13  ;;  %v7900_v41 = vld [vmem:[%s11744_s12 + $0x144] sm:$0xf]  ;;  %v7030_v43 = vld [vmem:[%s11744_s12 + $0x4b0] sm:$0xf0]  ;;  %v2811_v45 = vperm.slane %v9670_v28, 5 }
0x13bd   : > { %v3171_v8 = vmax.f32 %v3170_v25, %v3129_v17  ;;  %v7860_v25 = vld [vmem:[%s11744_s12 + $0x4] sm:$0xf]  ;;  %v6838_v17 = vld [vmem:[%s11744_s12 + $0x330] sm:$0xf0]  ;;  %v6601_v58 = vor.u32 %v7900_v41, %v6598_v57 }
0x13be   : > { %v3003_v18 = vpop.f32.mrf.mxu2  ;;  %4867 = vmatpush.bf16.msra.mxu2 %v6665_v9  ;;  %v3189_v14 = vmax.f32 %v3188_v5, %v3131_v59  ;;  %v7896_v59 = vld [vmem:[%s11744_s12 + $0x124] sm:$0xf] }
0x13bf   : > { %v3172_v62 = vrot.slane %v3171_v8, 4  ;;  %v3004_v36 = vadd.f32 %v3003_v18, %v9867_v52  ;;  %v7868_v52 = vld [vmem:[%s11744_s12 + $0x44] sm:$0xf]  ;;  %4896 = vmatpush.bf16.msra.mxu1 %v6873_v46 }
0x13c0   : > { %4856 = vmatpush.bf16.msra.mxu3 %v6505_v61  ;;  %v9957_v26 = vpop.f32.mrf.mxu1  ;;  %v6473_v40 = vor.u32 %v7868_v52, %v6470_v2  ;;  %v3190_v20 = vrot.slane %v3189_v14, 4  ;;  %v6438_v61 = vld [vmem:[%s11744_s12 + $0x10] sm:$0xf0]  ;;  %v7956_v18 = vld [vmem:[%s11744_s12 + $0x304] sm:$0xf] }
0x13c1   : > { %v3173_v34 = vmax.f32 %v3171_v8, %v3172_v62  ;;  %v3127_v53 = vmax.f32 %v3004_v36, 0.0  ;;  %v6841_v8 = vor.u32 %v7960_v15, %v6838_v17  ;;  %v6441_v10 = vor.u32 %v7860_v25, %v6438_v61  ;;  %v7952_v36 = vld [vmem:[%s11744_s12 + $0x2e4] sm:$0xf] }
0x13c2   : > { %4868 = vmatpush.bf16.msra.mxu2 %v6649_v33  ;;  %v3191_v4 = vmax.f32 %v3189_v14, %v3190_v20  ;;  %v7065_v62 = vor.u32 %v8016_v63, %v7062_v37  ;;  %v6806_v33 = vld [vmem:[%s11744_s12 + $0x2f0] sm:$0xf0]  ;;  %v6825_v6 = vor.u32 %v7956_v18, %v6822_v54  ;;  %v7940_v61 = vld [vmem:[%s11744_s12 + $0x284] sm:$0xf] }
0x13c3   : > { %v3174_v1 = vrot.slane %v3173_v34, 2  ;;  %v3153_v42 = vmax.f32 %v3152_v51, %v3127_v53  ;;  %4897 = vmatpush.bf16.msra.mxu1 %v6857_v29  ;;  %v6582_v53 = vld [vmem:[%s11744_s12 + $0x130] sm:$0xf0]  ;;  %v6809_v2 = vor.u32 %v7952_v36, %v6806_v33  ;;  %v7944_v29 = vld [vmem:[%s11744_s12 + $0x2a4] sm:$0xf] }
0x13c4   : > { %4857 = vmatpush.bf16.msra.mxu3 %v6489_v55  ;;  %v8012_v55 = vld [vmem:[%s11744_s12 + $0x4c4] sm:$0xf]  ;;  %v6585_v46 = vor.u32 %v7896_v59, %v6582_v53  ;;  %v3192_v0 = vrot.slane %v3191_v4, 2  ;;  %v6777_v20 = vor.u32 %v7944_v29, %v6774_v27  ;;  %v6758_v63 = vld [vmem:[%s11744_s12 + $0x290] sm:$0xf0] }
0x13c5   : > { %v3175_v50 = vmax.f32 %v3173_v34, %v3174_v1  ;;  %v3154_v16 = vrot.slane %v3153_v42, 4  ;;  %v2813_v34 = vperm.slane %v9670_v28, 7  ;;  %v7049_v1 = vor.u32 %v8012_v55, %v7046_v19  ;;  %v7014_v28 = vld [vmem:[%s11744_s12 + $0x490] sm:$0xf0]  ;;  %v7996_v55 = vld [vmem:[%s11744_s12 + $0x444] sm:$0xf] }
0x13c6   : > { %v9989_v12 = vpop.f32.mrf.mxu2  ;;  %4869 = vmatpush.bf16.msra.mxu2 %v6633_v32  ;;  %v6790_v32 = vld [vmem:[%s11744_s12 + $0x2d0] sm:$0xf0]  ;;  %v3193_v21 = vmax.f32 %v3191_v4, %v3192_v0  ;;  %v6761_v54 = vor.u32 %v7940_v61, %v6758_v63 }
0x13c7   : > { %v3176_v3 = vrot.slane %v3175_v50, 1  ;;  %v3155_v35 = vmax.f32 %v3153_v42, %v3154_v16  ;;  %4898 = vmatpush.bf16.msra.mxu1 %v6841_v8  ;;  %v7948_v42 = vld [vmem:[%s11744_s12 + $0x2c4] sm:$0xf]  ;;  %v6566_v16 = vld [vmem:[%s11744_s12 + $0x110] sm:$0xf0]  ;;  %v3054_v17 = vadd.f32 %v9989_v12, %v2811_v45 }
0x13c8   : > { %4858 = vmatpush.bf16.msra.mxu3 %v6473_v40  ;;  %v3093_v31 = vpop.f32.mrf.mxu1  ;;  %v8008_v40 = vld [vmem:[%s11744_s12 + $0x4a4] sm:$0xf]  ;;  %v6793_v13 = vor.u32 %v7948_v42, %v6790_v32  ;;  %v3194_v37 = vrot.slane %v3193_v21, 1  ;;  %v6982_v19 = vld [vmem:[%s11744_s12 + $0x450] sm:$0xf0] }
0x13c9   : > { %v3177_v9 = vmax.f32 %v3175_v50, %v3176_v3  ;;  %v3156_v47 = vrot.slane %v3155_v35, 2  ;;  %v3094_v5 = vadd.f32 %v3093_v31, %v2813_v34  ;;  %v3092_v50 = vadd.f32 %v9957_v26, %v2813_v34  ;;  %v8000_v12 = vld [vmem:[%s11744_s12 + $0x464] sm:$0xf]  ;;  %v6726_v32 = vld [vmem:[%s11744_s12 + $0x250] sm:$0xf0] }
0x13ca   : > { %4870 = vmatpush.bf16.msra.mxu2 %v6617_v7  ;;  %v6569_v26 = vor.u32 %v7892_v56, %v6566_v16  ;;  %v8004_v7 = vld [vmem:[%s11744_s12 + $0x484] sm:$0xf]  ;;  %v3195_v36 = vmax.f32 %v3193_v21, %v3194_v37  ;;  %v3106_v33 = vmax.f32 %v3054_v17, 0.0  ;;  %v6710_v27 = vld [vmem:[%s11744_s12 + $0x230] sm:$0xf0] }
0x13cb   : > { %v10021_v39 = vpack.c.bf16 %v3177_v9, %v3177_v9  ;;  %v3157_v11 = vmax.f32 %v3155_v35, %v3156_v47  ;;  %4899 = vmatpush.bf16.msra.mxu1 %v6825_v6  ;;  %v3116_v3 = vmax.f32 %v3094_v5, 0.0  ;;  %v7033_v35 = vor.u32 %v8008_v40, %v7030_v43  ;;  %v7932_v42 = vld [vmem:[%s11744_s12 + $0x244] sm:$0xf]  ;;  %v6966_v43 = vld [vmem:[%s11744_s12 + $0x430] sm:$0xf0] }
0x13cc   : > { %4859 = vmatpush.bf16.msra.mxu3 %v6457_v23  ;;  %v3108_v23 = vmax.f32 %v3092_v50, 0.0  ;;  %v7017_v47 = vor.u32 %v8004_v7, %v7014_v28  ;;  %v7992_v40 = vld [vmem:[%s11744_s12 + $0x424] sm:$0xf]  ;;  %v6950_v21 = vld [vmem:[%s11744_s12 + $0x410] sm:$0xf0] }
0x13cd   : > { %v3158_v48 = vrot.slane %v3157_v11, 1  ;;  %4809 = vmatmul.bf16.vlgmr.msrb.gmra.mxu3 %v10021_v39  ;;  %v7928_v16 = vld [vmem:[%s11744_s12 + $0x224] sm:$0xf]  ;;  %v6969_v29 = vor.u32 %v7992_v40, %v6966_v43  ;;  %v7286_v40 = vld [vmem:[%s11744_s12 + $0x6b0] sm:$0xf0] }
0x13ce   : > { %v3055_v51 = vpop.f32.mrf.mxu2  ;;  %4871 = vmatpush.bf16.msra.mxu2 %v6601_v58  ;;  %v3196_v8 = vmax.f32 %v3108_v23, %v3116_v3  ;;  %v8112_v3 = vld [vmem:[%s11744_s12 + $0x7e4] sm:$0xf]  ;;  %v7891_v23 = vld [vmem:[%s11744_s12 + $0xf4] sm:$0xf0] }
0x13cf   : > { %v3159_v30 = vmax.f32 %v3157_v11, %v3158_v48  ;;  %v3056_v25 = vadd.f32 %v3055_v51, %v2811_v45  ;;  %v6998_v11 = vld [vmem:[%s11744_s12 + $0x470] sm:$0xf0]  ;;  %v7936_v48 = vld [vmem:[%s11744_s12 + $0x264] sm:$0xf] }
0x13d0   : > { %4860 = vmatpush.bf16.msra.mxu3 %v6441_v10  ;;  %v3096_v52 = vpop.f32.mrf.mxu1  ;;  %v7001_v4 = vor.u32 %v8000_v12, %v6998_v11  ;;  %v8080_v37 = vld [vmem:[%s11744_s12 + $0x6e4] sm:$0xf]  ;;  %v7430_v11 = vld [vmem:[%s11744_s12 + $0x7d0] sm:$0xf0] }
0x13d1   : > { %v10049_v60 = vpack.c.bf16 %v3159_v30, %v3159_v30  ;;  %v3097_v14 = vadd.f32 %v3096_v52, %v2813_v34  ;;  %v3114_v58 = vmax.f32 %v3056_v25, 0.0  ;;  %v6713_v25 = vor.u32 %v7928_v16, %v6710_v27  ;;  %v8100_v43 = vld [vmem:[%s11744_s12 + $0x784] sm:$0xf] }
0x13d2   : > { %4872 = vmatpush.bf16.msra.mxu2 %v6585_v46  ;;  %v10110_v46 = vpack.c.bf16 %v3195_v36, %v3195_v36 }
0x13d3   : > { %4783 = vmatmul.bf16.vlgmr.msrb.gmra.mxu0 %v10049_v60  ;;  %v3124_v15 = vmax.f32 %v3097_v14, 0.0  ;;  %v6729_v14 = vor.u32 %v7932_v42, %v6726_v32  ;;  %v8072_v32 = vld [vmem:[%s11744_s12 + $0x6a4] sm:$0xf] }
0x13d4   : > { %4905 = vmatpush.bf16.msrb.mxu3 %v7065_v62  ;;  %4879 = vmatpush.bf16.msrb.mxu0 %v6809_v2  ;;  %v6742_v62 = vld [vmem:[%s11744_s12 + $0x270] sm:$0xf0]  ;;  %v6985_v2 = vor.u32 %v7996_v55, %v6982_v19  ;;  %v8104_v55 = vld [vmem:[%s11744_s12 + $0x7a4] sm:$0xf] }
0x13d5   : > { %v3197_v10 = vmax.f32 %v3196_v8, %v3124_v15  ;;  %v6745_v52 = vor.u32 %v7936_v48, %v6742_v62  ;;  %v7318_v8 = vld [vmem:[%s11744_s12 + $0x6f0] sm:$0xf0]  ;;  %v8048_v48 = vld [vmem:[%s11744_s12 + $0x5e4] sm:$0xf] }
0x13d6   : > { %v3058_v31 = vpop.f32.mrf.mxu2  ;;  %4873 = vmatpush.bf16.msra.mxu2 %v6569_v26  ;;  %v7988_v26 = vld [vmem:[%s11744_s12 + $0x404] sm:$0xf]  ;;  %v7190_v62 = vld [vmem:[%s11744_s12 + $0x5f0] sm:$0xf0] }
0x13d7   : > { %v3059_v41 = vadd.f32 %v3058_v31, %v2811_v45  ;;  %v6556_v31 = vld [vmem:[%s11744_s12 + $0xe8] sm:$0xf] }
0x13d8   : > { %4906 = vmatpush.bf16.msrb.mxu3 %v7049_v1  ;;  %4880 = vmatpush.bf16.msrb.mxu0 %v6793_v13  ;;  %v3098_v9 = vpop.f32.mrf.mxu1  ;;  %v6557_v63 = vor.u32 %v7891_v23, %v6556_v31  ;;  %v7875_v31 = vld [vmem:[%s11744_s12 + $0x74] sm:$0xf0] }
0x13d9   : > { %v3099_v57 = vadd.f32 %v3098_v9, %v2813_v34  ;;  %v3122_v6 = vmax.f32 %v3059_v41, 0.0  ;;  %v3178_v34 = vmax.f32 %v3106_v33, %v3114_v58  ;;  %v6953_v9 = vor.u32 %v7988_v26, %v6950_v21  ;;  %v8108_v41 = vld [vmem:[%s11744_s12 + $0x7c4] sm:$0xf]  ;;  %v6540_v58 = vld [vmem:[%s11744_s12 + $0xc8] sm:$0xf] }
0x13da   : > { %v7433_v36 = vor.u32 %v8108_v41, %v7430_v11  ;;  %v8068_v21 = vld [vmem:[%s11744_s12 + $0x684] sm:$0xf]  ;;  %v7871_v41 = vld [vmem:[%s11744_s12 + $0x54] sm:$0xf0] }
0x13db   : > { %v3132_v18 = vmax.f32 %v3099_v57, 0.0  ;;  %v3179_v0 = vmax.f32 %v3178_v34, %v3122_v6  ;;  %v8076_v6 = vld [vmem:[%s11744_s12 + $0x6c4] sm:$0xf]  ;;  %v6524_v34 = vld [vmem:[%s11744_s12 + $0xa8] sm:$0xf] }
0x13dc   : > { %4907 = vmatpush.bf16.msrb.mxu3 %v7033_v35  ;;  %4881 = vmatpush.bf16.msrb.mxu0 %v6777_v20  ;;  %v7446_v35 = vld [vmem:[%s11744_s12 + $0x7f0] sm:$0xf0]  ;;  %v7924_v20 = vld [vmem:[%s11744_s12 + $0x204] sm:$0xf] }
0x13dd   : > { %v3198_v51 = vmax.f32 %v3197_v10, %v3132_v18  ;;  %4861 = vmatmul.bf16.vlgmr.msra.gmra.mxu3 %v9864_v38  ;;  %v7449_v61 = vor.u32 %v8112_v3, %v7446_v35  ;;  %v7887_v10 = vld [vmem:[%s11744_s12 + $0xd4] sm:$0xf0]  ;;  %v7270_v3 = vld [vmem:[%s11744_s12 + $0x690] sm:$0xf0]  ;;  %v8096_v35 = vld [vmem:[%s11744_s12 + $0x764] sm:$0xf] }
0x13de   : > { %v3060_v30 = vpop.f32.mrf.mxu2  ;;  %v6541_v33 = vor.u32 %v7887_v10, %v6540_v58  ;;  %v8032_v58 = vld [vmem:[%s11744_s12 + $0x564] sm:$0xf]  ;;  %v7126_v10 = vld [vmem:[%s11744_s12 + $0x570] sm:$0xf0] }
0x13df   : > { %v3199_v59 = vrot.slane %v3198_v51, 4  ;;  %v3061_v53 = vadd.f32 %v3060_v30, %v2811_v45  ;;  %v7414_v30 = vld [vmem:[%s11744_s12 + $0x7b0] sm:$0xf0] }
0x13e0   : > { %4908 = vmatpush.bf16.msrb.mxu3 %v7017_v47  ;;  %4882 = vmatpush.bf16.msrb.mxu0 %v6761_v54  ;;  %v6694_v47 = vld [vmem:[%s11744_s12 + $0x210] sm:$0xf0] }
0x13e1   : > { %v3200_v5 = vmax.f32 %v3198_v51, %v3199_v59  ;;  %v3130_v1 = vmax.f32 %v3061_v53, 0.0  ;;  %v6697_v18 = vor.u32 %v7924_v20, %v6694_v47  ;;  %v7302_v51 = vld [vmem:[%s11744_s12 + $0x6d0] sm:$0xf0]  ;;  %v7883_v59 = vld [vmem:[%s11744_s12 + $0xb4] sm:$0xf0]  ;;  %v7193_v53 = vor.u32 %v8048_v48, %v7190_v62 }
0x13e2   : > { %v6525_v42 = vor.u32 %v7883_v59, %v6524_v34  ;;  %v8064_v47 = vld [vmem:[%s11744_s12 + $0x664] sm:$0xf]  ;;  %v7238_v48 = vld [vmem:[%s11744_s12 + $0x650] sm:$0xf0] }
0x13e3   : > { %v3201_v56 = vrot.slane %v3200_v5, 2  ;;  %v3180_v50 = vmax.f32 %v3179_v0, %v3130_v1  ;;  %4835 = vmatmul.bf16.vlgmr.msra.gmra.mxu0 %v10110_v46  ;;  %v8044_v0 = vld [vmem:[%s11744_s12 + $0x5c4] sm:$0xf]  ;;  %v7417_v1 = vor.u32 %v8104_v55, %v7414_v30  ;;  %v7110_v30 = vld [vmem:[%s11744_s12 + $0x550] sm:$0xf0] }
0x13e4   : > { %4909 = vmatpush.bf16.msrb.mxu3 %v7001_v4  ;;  %4883 = vmatpush.bf16.msrb.mxu0 %v6745_v52  ;;  %v7321_v4 = vor.u32 %v8080_v37, %v7318_v8  ;;  %v7366_v37 = vld [vmem:[%s11744_s12 + $0x750] sm:$0xf0]  ;;  %v6476_v8 = vld [vmem:[%s11744_s12 + $0x48] sm:$0xf]  ;;  %v8088_v62 = vld [vmem:[%s11744_s12 + $0x724] sm:$0xf] }
0x13e5   : > { %v3202_v45 = vmax.f32 %v3200_v5, %v3201_v56  ;;  %v3181_v13 = vrot.slane %v3180_v50, 4  ;;  %v7174_v5 = vld [vmem:[%s11744_s12 + $0x5d0] sm:$0xf0]  ;;  %v8056_v34 = vld [vmem:[%s11744_s12 + $0x624] sm:$0xf] }
0x13e6   : > { %v7398_v56 = vld [vmem:[%s11744_s12 + $0x790] sm:$0xf0]  ;;  %v7177_v16 = vor.u32 %v8044_v0, %v7174_v5  ;;  %v8084_v0 = vld [vmem:[%s11744_s12 + $0x704] sm:$0xf] }
0x13e7   : > { %v3203_v7 = vrot.slane %v3202_v45, 1  ;;  %v3182_v28 = vmax.f32 %v3180_v50, %v3181_v13  ;;  %v6508_v50 = vld [vmem:[%s11744_s12 + $0x88] sm:$0xf]  ;;  %v8040_v13 = vld [vmem:[%s11744_s12 + $0x5a4] sm:$0xf]  ;;  %v7401_v27 = vor.u32 %v8100_v43, %v7398_v56 }
0x13e8   : > { %4910 = vmatpush.bf16.msrb.mxu3 %v6985_v2  ;;  %4884 = vmatpush.bf16.msrb.mxu0 %v6729_v14  ;;  %v7305_v2 = vor.u32 %v8076_v6, %v7302_v51  ;;  %v7879_v14 = vld [vmem:[%s11744_s12 + $0x94] sm:$0xf0]  ;;  %v7129_v51 = vor.u32 %v8032_v58, %v7126_v10  ;;  %v7334_v5 = vld [vmem:[%s11744_s12 + $0x710] sm:$0xf0]  ;;  %v7068_v56 = vld [vmem:[%s11744_s12 + $0x4e8] sm:$0xf] }
0x13e9   : > { %v3204_v15 = vmax.f32 %v3202_v45, %v3203_v7  ;;  %v3183_v17 = vrot.slane %v3182_v28, 2  ;;  %v7289_v45 = vor.u32 %v8072_v32, %v7286_v40  ;;  %v6509_v26 = vor.u32 %v7879_v14, %v6508_v50  ;;  %v7382_v7 = vld [vmem:[%s11744_s12 + $0x770] sm:$0xf0]  ;;  %v7867_v6 = vld [vmem:[%s11744_s12 + $0x34] sm:$0xf0] }
0x13ea   : > { %v6940_v32 = vld [vmem:[%s11744_s12 + $0x3e8] sm:$0xf]  ;;  %v7987_v43 = vld [vmem:[%s11744_s12 + $0x3f4] sm:$0xf0] }
0x13eb   : > { %v10164_v57 = vpack.c.bf16 %v3204_v15, %v3204_v15  ;;  %v3184_v12 = vmax.f32 %v3182_v28, %v3183_v17  ;;  %v6492_v28 = vld [vmem:[%s11744_s12 + $0x68] sm:$0xf]  ;;  %v8036_v15 = vld [vmem:[%s11744_s12 + $0x584] sm:$0xf]  ;;  %v7142_v17 = vld [vmem:[%s11744_s12 + $0x590] sm:$0xf0] }
0x13ec   : > { %4911 = vmatpush.bf16.msrb.mxu3 %v6969_v29  ;;  %4885 = vmatpush.bf16.msrb.mxu0 %v6713_v25  ;;  %v7158_v29 = vld [vmem:[%s11744_s12 + $0x5b0] sm:$0xf0]  ;;  %v7273_v25 = vor.u32 %v8068_v21, %v7270_v3  ;;  %v6493_v20 = vor.u32 %v7875_v31, %v6492_v28  ;;  %v8019_v50 = vld [vmem:[%s11744_s12 + $0x4f4] sm:$0xf0]  ;;  %v6941_v21 = vor.u32 %v7987_v43, %v6940_v32  ;;  %v6924_v28 = vld [vmem:[%s11744_s12 + $0x3c8] sm:$0xf] }
0x13ed   : > { %v3185_v54 = vrot.slane %v3184_v12, 1  ;;  %4848 = vmatmul.bf16.vlgmr.msrb.gmra.mxu1 %v10164_v57  ;;  %v7161_v23 = vor.u32 %v8040_v13, %v7158_v29  ;;  %v7337_v13 = vor.u32 %v8084_v0, %v7334_v5  ;;  %v7069_v3 = vor.u32 %v8019_v50, %v7068_v56  ;;  %v7979_v10 = vld [vmem:[%s11744_s12 + $0x3b4] sm:$0xf0]  ;;  %v6652_v0 = vld [vmem:[%s11744_s12 + $0x1a8] sm:$0xf] }
0x13ee   : > { %4944 = vmatpush.bf16.msrb.mxu1 %v7449_v61  ;;  %v7254_v61 = vld [vmem:[%s11744_s12 + $0x670] sm:$0xf0]  ;;  %v7915_v5 = vld [vmem:[%s11744_s12 + $0x1b4] sm:$0xf0]  ;;  %v6764_v32 = vld [vmem:[%s11744_s12 + $0x288] sm:$0xf] }
0x13ef   : > { %v3186_v19 = vmax.f32 %v3184_v12, %v3185_v54  ;;  %v7145_v12 = vor.u32 %v8036_v15, %v7142_v17  ;;  %v7257_v11 = vor.u32 %v8064_v47, %v7254_v61  ;;  %v6477_v54 = vor.u32 %v7871_v41, %v6476_v8  ;;  %v8015_v15 = vld [vmem:[%s11744_s12 + $0x4d4] sm:$0xf0]  ;;  %v6684_v61 = vld [vmem:[%s11744_s12 + $0x1e8] sm:$0xf] }
0x13f0   : > { %4912 = vmatpush.bf16.msrb.mxu3 %v6953_v9  ;;  %4886 = vmatpush.bf16.msrb.mxu0 %v6697_v18  ;;  %v7385_v9 = vor.u32 %v8096_v35, %v7382_v7  ;;  %v6812_v35 = vld [vmem:[%s11744_s12 + $0x2e8] sm:$0xf]  ;;  %v7955_v7 = vld [vmem:[%s11744_s12 + $0x2f4] sm:$0xf0] }
0x13f1   : > { %v10201_v52 = vpack.c.bf16 %v3186_v19, %v3186_v19  ;;  %v8028_v19 = vld [vmem:[%s11744_s12 + $0x544] sm:$0xf]  ;;  %v6813_v47 = vor.u32 %v7955_v7, %v6812_v35  ;;  %v6796_v41 = vld [vmem:[%s11744_s12 + $0x2c8] sm:$0xf]  ;;  %v7971_v56 = vld [vmem:[%s11744_s12 + $0x374] sm:$0xf0] }
0x13f2   : > { %4945 = vmatpush.bf16.msrb.mxu1 %v7433_v36  ;;  %v7350_v36 = vld [vmem:[%s11744_s12 + $0x730] sm:$0xf0]  ;;  %v7113_v40 = vor.u32 %v8028_v19, %v7110_v30  ;;  %v6892_v19 = vld [vmem:[%s11744_s12 + $0x388] sm:$0xf]  ;;  %v7975_v30 = vld [vmem:[%s11744_s12 + $0x394] sm:$0xf0] }
0x13f3   : > { %4913 = vmatmul.bf16.vlgmr.msrb.gmra.mxu3 %v10021_v39  ;;  %4822 = vmatmul.bf16.vlgmr.msrb.gmra.mxu2 %v10201_v52  ;;  %v7353_v59 = vor.u32 %v8088_v62, %v7350_v36  ;;  %v6668_v62 = vld [vmem:[%s11744_s12 + $0x1c8] sm:$0xf]  ;;  %v7919_v36 = vld [vmem:[%s11744_s12 + $0x1d4] sm:$0xf0] }
0x13f4   : > { %4957 = vmatpush.bf16.msra.mxu3 %v6557_v63  ;;  %4931 = vmatpush.bf16.msra.mxu0 %v7321_v4  ;;  %v8092_v63 = vld [vmem:[%s11744_s12 + $0x744] sm:$0xf]  ;;  %v6876_v43 = vld [vmem:[%s11744_s12 + $0x368] sm:$0xf]  ;;  %v7967_v7 = vld [vmem:[%s11744_s12 + $0x354] sm:$0xf0] }
0x13f5   : > { %4887 = vmatmul.bf16.vlgmr.msrb.gmra.mxu0 %v10049_v60  ;;  %4918 = vmatpush.bf16.msrb.mxu2 %v7193_v53  ;;  %v7369_v18 = vor.u32 %v8092_v63, %v7366_v37  ;;  %v8060_v4 = vld [vmem:[%s11744_s12 + $0x644] sm:$0xf]  ;;  %v7923_v63 = vld [vmem:[%s11744_s12 + $0x1f4] sm:$0xf0]  ;;  %v7004_v50 = vld [vmem:[%s11744_s12 + $0x468] sm:$0xf] }
0x13f6   : > { %4946 = vmatpush.bf16.msrb.mxu1 %v7417_v1  ;;  %v7241_v55 = vor.u32 %v8060_v4, %v7238_v48  ;;  %v6444_v1 = vld [vmem:[%s11744_s12 + $0x8] sm:$0xf]  ;;  %v6685_v4 = vor.u32 %v7923_v63, %v6684_v61  ;;  %v7935_v61 = vld [vmem:[%s11744_s12 + $0x254] sm:$0xf0] }
0x13f7   : > { %v6860_v35 = vld [vmem:[%s11744_s12 + $0x348] sm:$0xf] }
0x13f8   : > { %4958 = vmatpush.bf16.msra.mxu3 %v6541_v33  ;;  %4932 = vmatpush.bf16.msra.mxu0 %v7305_v2  ;;  %v6460_v33 = vld [vmem:[%s11744_s12 + $0x28] sm:$0xf]  ;;  %v7222_v2 = vld [vmem:[%s11744_s12 + $0x630] sm:$0xf0] }
0x13f9   : > { %4919 = vmatpush.bf16.msrb.mxu2 %v7177_v16  ;;  %v6461_v53 = vor.u32 %v7867_v6, %v6460_v33  ;;  %v7225_v14 = vor.u32 %v8056_v34, %v7222_v2  ;;  %v8024_v16 = vld [vmem:[%s11744_s12 + $0x524] sm:$0xf]  ;;  %v7020_v34 = vld [vmem:[%s11744_s12 + $0x488] sm:$0xf] }
0x13fa   : > { %4947 = vmatpush.bf16.msrb.mxu1 %v7401_v27  ;;  %v8052_v27 = vld [vmem:[%s11744_s12 + $0x604] sm:$0xf]  ;;  %v6844_v63 = vld [vmem:[%s11744_s12 + $0x328] sm:$0xf] }
0x13fc   : > { %4959 = vmatpush.bf16.msra.mxu3 %v6525_v42  ;;  %4933 = vmatpush.bf16.msra.mxu0 %v7289_v45  ;;  %v7863_v42 = vld [vmem:[%s11744_s12 + $0x14] sm:$0xf0]  ;;  %v7094_v45 = vld [vmem:[%s11744_s12 + $0x530] sm:$0xf0] }
0x13fd   : > { %4920 = vmatpush.bf16.msrb.mxu2 %v7161_v23  ;;  %4900 = vmatmul.bf16.vlgmr.msra.gmra.mxu1 %v9829_v49  ;;  %v6445_v29 = vor.u32 %v7863_v42, %v6444_v1  ;;  %v7097_v31 = vor.u32 %v8024_v16, %v7094_v45  ;;  %v7983_v23 = vld [vmem:[%s11744_s12 + $0x3d4] sm:$0xf0]  ;;  %v6893_v1 = vor.u32 %v7975_v30, %v6892_v19  ;;  %v7889_v30 = vld [vmem:[%s11744_s12 + $0xec] sm:$0xf] }
0x13fe   : > { %4948 = vmatpush.bf16.msrb.mxu1 %v7385_v9  ;;  %v8020_v9 = vld [vmem:[%s11744_s12 + $0x504] sm:$0xf]  ;;  %v6925_v37 = vor.u32 %v7983_v23, %v6924_v28  ;;  %v6653_v16 = vor.u32 %v7915_v5, %v6652_v0  ;;  %v6988_v28 = vld [vmem:[%s11744_s12 + $0x448] sm:$0xf]  ;;  %v8115_v19 = vld [vmem:[%s11744_s12 + $0x7f4] sm:$0xf0] }
0x1400   : > { %4960 = vmatpush.bf16.msra.mxu3 %v6509_v26  ;;  %4934 = vmatpush.bf16.msra.mxu0 %v7273_v25  ;;  %v7206_v26 = vld [vmem:[%s11744_s12 + $0x610] sm:$0xf0]  ;;  %v7052_v25 = vld [vmem:[%s11744_s12 + $0x4c8] sm:$0xf] }
0x1401   : > { %4921 = vmatpush.bf16.msrb.mxu2 %v7145_v12  ;;  %v7209_v17 = vor.u32 %v8052_v27, %v7206_v26  ;;  %v7053_v8 = vor.u32 %v8015_v15, %v7052_v25  ;;  %v7951_v12 = vld [vmem:[%s11744_s12 + $0x2d4] sm:$0xf0]  ;;  %v6877_v27 = vor.u32 %v7971_v56, %v6876_v43  ;;  %v6620_v15 = vld [vmem:[%s11744_s12 + $0x168] sm:$0xf] }
0x1402   : > { %4949 = vmatpush.bf16.msrb.mxu1 %v7369_v18  ;;  %v7036_v18 = vld [vmem:[%s11744_s12 + $0x4a8] sm:$0xf]  ;;  %v6797_v48 = vor.u32 %v7951_v12, %v6796_v41  ;;  %v7995_v41 = vld [vmem:[%s11744_s12 + $0x434] sm:$0xf0] }
0x1403   : > { %4874 = vmatmul.bf16.vlgmr.msra.gmra.mxu2 %v9821_v22  ;;  %v7324_v43 = vld [vmem:[%s11744_s12 + $0x6e8] sm:$0xf]  ;;  %v8083_v56 = vld [vmem:[%s11744_s12 + $0x6f4] sm:$0xf0] }
0x1404   : > { %4961 = vmatpush.bf16.msra.mxu3 %v6493_v20  ;;  %4935 = vmatpush.bf16.msra.mxu0 %v7257_v11  ;;  %v7078_v20 = vld [vmem:[%s11744_s12 + $0x510] sm:$0xf0]  ;;  %v6908_v11 = vld [vmem:[%s11744_s12 + $0x3a8] sm:$0xf] }
0x1405   : > { %4922 = vmatpush.bf16.msrb.mxu2 %v7129_v51  ;;  %v7081_v58 = vor.u32 %v8020_v9, %v7078_v20  ;;  %v6909_v33 = vor.u32 %v7979_v10, %v6908_v11  ;;  %v6780_v51 = vld [vmem:[%s11744_s12 + $0x2a8] sm:$0xf]  ;;  %v6861_v9 = vor.u32 %v7967_v7, %v6860_v35  ;;  %v7903_v10 = vld [vmem:[%s11744_s12 + $0x154] sm:$0xf0] }
0x1406   : > { %4950 = vmatpush.bf16.msrb.mxu1 %v7353_v59  ;;  %v8007_v59 = vld [vmem:[%s11744_s12 + $0x494] sm:$0xf0] }
0x1407   : > { %v7021_v42 = vor.u32 %v8007_v59, %v7020_v34  ;;  %v6558_v34 = vld [vmem:[%s11744_s12 + $0xf8] sm:$0xf0]  ;;  %v8051_v35 = vld [vmem:[%s11744_s12 + $0x5f4] sm:$0xf0] }
0x1408   : > { %4962 = vmatpush.bf16.msra.mxu3 %v6477_v54  ;;  %4936 = vmatpush.bf16.msra.mxu0 %v7241_v55  ;;  %v8011_v54 = vld [vmem:[%s11744_s12 + $0x4b4] sm:$0xf0] }
0x1409   : > { %4923 = vmatpush.bf16.msrb.mxu2 %v7113_v40  ;;  %v7037_v6 = vor.u32 %v8011_v54, %v7036_v18  ;;  %v7947_v55 = vld [vmem:[%s11744_s12 + $0x2b4] sm:$0xf0]  ;;  %v6716_v18 = vld [vmem:[%s11744_s12 + $0x228] sm:$0xf] }
0x140a   : > { %4951 = vmatpush.bf16.msrb.mxu1 %v7337_v13  ;;  %v6781_v2 = vor.u32 %v7947_v55, %v6780_v51  ;;  %v7943_v40 = vld [vmem:[%s11744_s12 + $0x294] sm:$0xf0]  ;;  %v6636_v13 = vld [vmem:[%s11744_s12 + $0x188] sm:$0xf] }
0x140b   : > { %v6765_v45 = vor.u32 %v7943_v40, %v6764_v32  ;;  %v7452_v51 = vld [vmem:[%s11744_s12 + $0x7e8] sm:$0xf]  ;;  %v6561_v40 = vor.u32 %v7889_v30, %v6558_v34 }
0x140c   : > { %4963 = vmatpush.bf16.msra.mxu3 %v6461_v53  ;;  %4937 = vmatpush.bf16.msra.mxu0 %v7225_v14  ;;  %v6669_v53 = vor.u32 %v7919_v36, %v6668_v62  ;;  %v8003_v14 = vld [vmem:[%s11744_s12 + $0x474] sm:$0xf0]  ;;  %v6828_v62 = vld [vmem:[%s11744_s12 + $0x308] sm:$0xf]  ;;  %v7453_v32 = vor.u32 %v8115_v19, %v7452_v51 }
0x140d   : > { %4924 = vmatpush.bf16.msrb.mxu2 %v7097_v31  ;;  %4952 = vmatmul.bf16.vlgmr.msrb.gmra.mxu1 %v10164_v57  ;;  %v7005_v26 = vor.u32 %v8003_v14, %v7004_v50  ;;  %v7999_v31 = vld [vmem:[%s11744_s12 + $0x454] sm:$0xf0]  ;;  %v7436_v50 = vld [vmem:[%s11744_s12 + $0x7c8] sm:$0xf] }
0x140e   : > { %4996 = vmatpush.bf16.msra.mxu1 %v6941_v21  ;;  %v6748_v21 = vld [vmem:[%s11744_s12 + $0x268] sm:$0xf]  ;;  %v6989_v20 = vor.u32 %v7999_v31, %v6988_v28  ;;  %v7959_v36 = vld [vmem:[%s11744_s12 + $0x314] sm:$0xf0] }
0x140f   : > { %v6829_v0 = vor.u32 %v7959_v36, %v6828_v62  ;;  %v7308_v31 = vld [vmem:[%s11744_s12 + $0x6c8] sm:$0xf]  ;;  %v8071_v19 = vld [vmem:[%s11744_s12 + $0x694] sm:$0xf0] }
0x1410   : > { %4964 = vmatpush.bf16.msra.mxu3 %v6445_v29  ;;  %4938 = vmatpush.bf16.msra.mxu0 %v7209_v17  ;;  %v7911_v29 = vld [vmem:[%s11744_s12 + $0x194] sm:$0xf0]  ;;  %v7164_v36 = vld [vmem:[%s11744_s12 + $0x5a8] sm:$0xf] }
0x1411   : > { %4925 = vmatpush.bf16.msrb.mxu2 %v7081_v58  ;;  %v6637_v23 = vor.u32 %v7911_v29, %v6636_v13  ;;  %v7907_v17 = vld [vmem:[%s11744_s12 + $0x174] sm:$0xf0]  ;;  %v6604_v58 = vld [vmem:[%s11744_s12 + $0x148] sm:$0xf]  ;;  %v6542_v13 = vld [vmem:[%s11744_s12 + $0xd8] sm:$0xf0] }
0x1412   : > { %4997 = vmatpush.bf16.msra.mxu1 %v6925_v37  ;;  %v7963_v37 = vld [vmem:[%s11744_s12 + $0x334] sm:$0xf0]  ;;  %v6621_v12 = vor.u32 %v7907_v17, %v6620_v15  ;;  %v6605_v55 = vor.u32 %v7903_v10, %v6604_v58  ;;  %v7420_v15 = vld [vmem:[%s11744_s12 + $0x7a8] sm:$0xf] }
0x1413   : > { %4965 = vmatmul.bf16.vlgmr.msra.gmra.mxu3 %v9864_v38  ;;  %4939 = vmatmul.bf16.vlgmr.msra.gmra.mxu0 %v10110_v46  ;;  %v6845_v54 = vor.u32 %v7963_v37, %v6844_v63  ;;  %v8107_v17 = vld [vmem:[%s11744_s12 + $0x7b4] sm:$0xf0]  ;;  %v7180_v37 = vld [vmem:[%s11744_s12 + $0x5c8] sm:$0xf] }
0x1414   : > { %5009 = vmatpush.bf16.msrb.mxu3 %v7069_v3  ;;  %4983 = vmatpush.bf16.msrb.mxu0 %v6813_v47  ;;  %v7939_v3 = vld [vmem:[%s11744_s12 + $0x274] sm:$0xf0]  ;;  %v6732_v47 = vld [vmem:[%s11744_s12 + $0x248] sm:$0xf] }
0x1415   : > { %4970 = vmatpush.bf16.msra.mxu2 %v6685_v4  ;;  %v6749_v25 = vor.u32 %v7939_v3, %v6748_v21  ;;  %v6733_v11 = vor.u32 %v7935_v61, %v6732_v47  ;;  %v7325_v21 = vor.u32 %v8083_v56, %v7324_v43  ;;  %v7196_v3 = vld [vmem:[%s11744_s12 + $0x5e8] sm:$0xf]  ;;  %v6526_v47 = vld [vmem:[%s11744_s12 + $0xb8] sm:$0xf0]  ;;  %v8067_v56 = vld [vmem:[%s11744_s12 + $0x674] sm:$0xf0] }
0x1416   : > { %4998 = vmatpush.bf16.msra.mxu1 %v6909_v33  ;;  %4926 = vmatmul.bf16.vlgmr.msrb.gmra.mxu2 %v10201_v52  ;;  %v6956_v33 = vld [vmem:[%s11744_s12 + $0x408] sm:$0xf] }
0x1417   : > { %v7404_v10 = vld [vmem:[%s11744_s12 + $0x788] sm:$0xf] }
0x1418   : > { %5010 = vmatpush.bf16.msrb.mxu3 %v7053_v8  ;;  %4984 = vmatpush.bf16.msrb.mxu0 %v6797_v48  ;;  %v6972_v8 = vld [vmem:[%s11744_s12 + $0x428] sm:$0xf]  ;;  %v7931_v48 = vld [vmem:[%s11744_s12 + $0x234] sm:$0xf0] }
0x1419   : > { %4971 = vmatpush.bf16.msra.mxu2 %v6669_v53  ;;  %v6973_v4 = vor.u32 %v7995_v41, %v6972_v8  ;;  %v6717_v59 = vor.u32 %v7931_v48, %v6716_v18  ;;  %v6588_v53 = vld [vmem:[%s11744_s12 + $0x128] sm:$0xf]  ;;  %v8047_v8 = vld [vmem:[%s11744_s12 + $0x5d4] sm:$0xf0]  ;;  %v7421_v41 = vor.u32 %v8107_v17, %v7420_v15  ;;  %v6510_v48 = vld [vmem:[%s11744_s12 + $0x98] sm:$0xf0] }
0x141a   : > { %4999 = vmatpush.bf16.msra.mxu1 %v6893_v1  ;;  %v6700_v1 = vld [vmem:[%s11744_s12 + $0x208] sm:$0xf]  ;;  %v8103_v18 = vld [vmem:[%s11744_s12 + $0x794] sm:$0xf0] }
0x141b   : > { %v7405_v51 = vor.u32 %v8103_v18, %v7404_v10  ;;  %v7388_v34 = vld [vmem:[%s11744_s12 + $0x768] sm:$0xf]  ;;  %v8091_v17 = vld [vmem:[%s11744_s12 + $0x734] sm:$0xf0] }
0x141c   : > { %5011 = vmatpush.bf16.msrb.mxu3 %v7037_v6  ;;  %4985 = vmatpush.bf16.msrb.mxu0 %v6781_v2  ;;  %v7991_v6 = vld [vmem:[%s11744_s12 + $0x414] sm:$0xf0]  ;;  %v7260_v43 = vld [vmem:[%s11744_s12 + $0x668] sm:$0xf] }
0x141d   : > { %4972 = vmatpush.bf16.msra.mxu2 %v6653_v16  ;;  %v7899_v2 = vld [vmem:[%s11744_s12 + $0x134] sm:$0xf0]  ;;  %v6957_v5 = vor.u32 %v7991_v6, %v6956_v33  ;;  %v7356_v15 = vld [vmem:[%s11744_s12 + $0x728] sm:$0xf] }
0x141e   : > { %5000 = vmatpush.bf16.msra.mxu1 %v6877_v27  ;;  %v6589_v14 = vor.u32 %v7899_v2, %v6588_v53  ;;  %v8111_v16 = vld [vmem:[%s11744_s12 + $0x7d4] sm:$0xf0]  ;;  %v6572_v27 = vld [vmem:[%s11744_s12 + $0x108] sm:$0xf]  ;;  %v7873_v2 = vld [vmem:[%s11744_s12 + $0x6c] sm:$0xf] }
0x141f   : > { %v7437_v7 = vor.u32 %v8111_v16, %v7436_v50  ;;  %v8043_v33 = vld [vmem:[%s11744_s12 + $0x5b4] sm:$0xf0] }
0x1420   : > { %5012 = vmatpush.bf16.msrb.mxu3 %v7021_v42  ;;  %4986 = vmatpush.bf16.msrb.mxu0 %v6765_v45  ;;  %v7927_v42 = vld [vmem:[%s11744_s12 + $0x214] sm:$0xf0]  ;;  %v7885_v45 = vld [vmem:[%s11744_s12 + $0xcc] sm:$0xf]  ;;  %v7165_v53 = vor.u32 %v8043_v33, %v7164_v36  ;;  %v6942_v33 = vld [vmem:[%s11744_s12 + $0x3f8] sm:$0xf0] }
0x1421   : > { %4973 = vmatpush.bf16.msra.mxu2 %v6637_v23  ;;  %v6701_v29 = vor.u32 %v7927_v42, %v6700_v1  ;;  %v6545_v28 = vor.u32 %v7885_v45, %v6542_v13  ;;  %v8079_v23 = vld [vmem:[%s11744_s12 + $0x6d4] sm:$0xf0]  ;;  %v7148_v42 = vld [vmem:[%s11744_s12 + $0x588] sm:$0xf]  ;;  %v7985_v36 = vld [vmem:[%s11744_s12 + $0x3ec] sm:$0xf] }
0x1422   : > { %5001 = vmatpush.bf16.msra.mxu1 %v6861_v9  ;;  %v7197_v9 = vor.u32 %v8051_v35, %v7196_v3  ;;  %v7309_v63 = vor.u32 %v8079_v23, %v7308_v31  ;;  %v8095_v16 = vld [vmem:[%s11744_s12 + $0x754] sm:$0xf0]  ;;  %v7132_v3 = vld [vmem:[%s11744_s12 + $0x568] sm:$0xf] }
0x1423   : > { %v8035_v35 = vld [vmem:[%s11744_s12 + $0x574] sm:$0xf0]  ;;  %v7244_v31 = vld [vmem:[%s11744_s12 + $0x648] sm:$0xf] }
0x1424   : > { %5013 = vmatpush.bf16.msrb.mxu3 %v7005_v26  ;;  %4987 = vmatpush.bf16.msrb.mxu0 %v6749_v25  ;;  %v7895_v26 = vld [vmem:[%s11744_s12 + $0x114] sm:$0xf0] }
0x1425   : > { %4974 = vmatpush.bf16.msra.mxu2 %v6621_v12  ;;  %v6573_v25 = vor.u32 %v7895_v26, %v6572_v27  ;;  %v7292_v12 = vld [vmem:[%s11744_s12 + $0x6a8] sm:$0xf]  ;;  %v6478_v27 = vld [vmem:[%s11744_s12 + $0x58] sm:$0xf0]  ;;  %v8063_v23 = vld [vmem:[%s11744_s12 + $0x654] sm:$0xf0] }
0x1426   : > { %5002 = vmatpush.bf16.msra.mxu1 %v6845_v54  ;;  %v7181_v54 = vor.u32 %v8047_v8, %v7180_v37  ;;  %v7116_v37 = vld [vmem:[%s11744_s12 + $0x548] sm:$0xf]  ;;  %v8031_v8 = vld [vmem:[%s11744_s12 + $0x554] sm:$0xf0] }
0x1427   : > { %v8087_v18 = vld [vmem:[%s11744_s12 + $0x714] sm:$0xf0] }
0x1428   : > { %5014 = vmatpush.bf16.msrb.mxu3 %v6989_v20  ;;  %4988 = vmatpush.bf16.msrb.mxu0 %v6733_v11  ;;  %v7881_v20 = vld [vmem:[%s11744_s12 + $0xac] sm:$0xf]  ;;  %v8075_v11 = vld [vmem:[%s11744_s12 + $0x6b4] sm:$0xf0] }
0x1429   : > { %4975 = vmatpush.bf16.msra.mxu2 %v6605_v55  ;;  %v6529_v58 = vor.u32 %v7881_v20, %v6526_v47  ;;  %v7293_v62 = vor.u32 %v8075_v11, %v7292_v12  ;;  %v7276_v55 = vld [vmem:[%s11744_s12 + $0x688] sm:$0xf]  ;;  %v7865_v20 = vld [vmem:[%s11744_s12 + $0x2c] sm:$0xf]  ;;  %v6462_v47 = vld [vmem:[%s11744_s12 + $0x38] sm:$0xf0] }
0x142a   : > { %5003 = vmatpush.bf16.msra.mxu1 %v6829_v0  ;;  %v6494_v0 = vld [vmem:[%s11744_s12 + $0x78] sm:$0xf0]  ;;  %v7277_v1 = vor.u32 %v8071_v19, %v7276_v55  ;;  %v7228_v12 = vld [vmem:[%s11744_s12 + $0x628] sm:$0xf]  ;;  %v8059_v11 = vld [vmem:[%s11744_s12 + $0x634] sm:$0xf0]  ;;  %v6465_v10 = vor.u32 %v7865_v20, %v6462_v47 }
0x142b   : > { %v10597_v61 = vpop.f32.mrf.mxu1  ;;  %v6497_v50 = vor.u32 %v7873_v2, %v6494_v0  ;;  %v7070_v55 = vld [vmem:[%s11744_s12 + $0x4f8] sm:$0xf0]  ;;  %v7100_v19 = vld [vmem:[%s11744_s12 + $0x528] sm:$0xf]  ;;  %v6945_v0 = vor.u32 %v7985_v36, %v6942_v33  ;;  %v7917_v20 = vld [vmem:[%s11744_s12 + $0x1cc] sm:$0xf] }
0x142c   : > { %5015 = vmatpush.bf16.msrb.mxu3 %v6973_v4  ;;  %4989 = vmatpush.bf16.msrb.mxu0 %v6717_v59  ;;  %v7877_v4 = vld [vmem:[%s11744_s12 + $0x8c] sm:$0xf]  ;;  %v8099_v59 = vld [vmem:[%s11744_s12 + $0x774] sm:$0xf0]  ;;  %v6670_v47 = vld [vmem:[%s11744_s12 + $0x1d8] sm:$0xf0] }
0x142d   : > { %4976 = vmatpush.bf16.msra.mxu2 %v6589_v14  ;;  %5004 = vmatmul.bf16.vlgmr.msra.gmra.mxu1 %v9829_v49  ;;  %v6513_v30 = vor.u32 %v7877_v4, %v6510_v48  ;;  %v7372_v14 = vld [vmem:[%s11744_s12 + $0x748] sm:$0xf]  ;;  %v6446_v4 = vld [vmem:[%s11744_s12 + $0x18] sm:$0xf0] }
0x142e   : > { %5048 = vmatpush.bf16.msrb.mxu1 %v7453_v32  ;;  %v8039_v32 = vld [vmem:[%s11744_s12 + $0x594] sm:$0xf0]  ;;  %v6766_v36 = vld [vmem:[%s11744_s12 + $0x298] sm:$0xf0] }
0x142f   : > { %v7149_v13 = vor.u32 %v8039_v32, %v7148_v42 }
0x1430   : > { %5016 = vmatpush.bf16.msrb.mxu3 %v6957_v5  ;;  %4990 = vmatpush.bf16.msrb.mxu0 %v6701_v29  ;;  %v4771_v6 = vpop.f32.mrf.mxu2  ;;  %v7869_v29 = vld [vmem:[%s11744_s12 + $0x4c] sm:$0xf] }
0x1431   : > { %4977 = vmatpush.bf16.msra.mxu2 %v6573_v25  ;;  %v6481_v25 = vor.u32 %v7869_v29, %v6478_v27  ;;  %v7921_v29 = vld [vmem:[%s11744_s12 + $0x1ec] sm:$0xf]  ;;  %v6686_v27 = vld [vmem:[%s11744_s12 + $0x1f8] sm:$0xf0] }
0x1432   : > { %5049 = vmatpush.bf16.msrb.mxu1 %v7437_v7 }
0x1433   : > { %5017 = vmatmul.bf16.vlgmr.msrb.gmra.mxu3 %v10021_v39  ;;  %4991 = vmatmul.bf16.vlgmr.msrb.gmra.mxu0 %v10049_v60  ;;  %v4799_v5 = vpop.f32.mrf.mxu1 }
0x1434   : > { %5061 = vmatpush.bf16.msra.mxu3 %v6561_v40  ;;  %5035 = vmatpush.bf16.msra.mxu0 %v7325_v21  ;;  %v7389_v40 = vor.u32 %v8099_v59, %v7388_v34  ;;  %v7261_v21 = vor.u32 %v8067_v56, %v7260_v43  ;;  %v7212_v59 = vld [vmem:[%s11744_s12 + $0x608] sm:$0xf]  ;;  %v7953_v5 = vld [vmem:[%s11744_s12 + $0x2ec] sm:$0xf]  ;;  %v6926_v43 = vld [vmem:[%s11744_s12 + $0x3d8] sm:$0xf0] }
0x1435   : > { %5022 = vmatpush.bf16.msrb.mxu2 %v7197_v9  ;;  %v7133_v9 = vor.u32 %v8035_v35, %v7132_v3  ;;  %v8013_v56 = vld [vmem:[%s11744_s12 + $0x4cc] sm:$0xf]  ;;  %v6798_v35 = vld [vmem:[%s11744_s12 + $0x2d8] sm:$0xf0] }
0x1436   : > { %4978 = vmatmul.bf16.vlgmr.msra.gmra.mxu2 %v9821_v22  ;;  %5050 = vmatpush.bf16.msrb.mxu1 %v7421_v41  ;;  %v4758_v45 = vpop.f32.mrf.mxu3  ;;  %v7357_v41 = vor.u32 %v8091_v17, %v7356_v15  ;;  %v7949_v3 = vld [vmem:[%s11744_s12 + $0x2cc] sm:$0xf]  ;;  %v7038_v17 = vld [vmem:[%s11744_s12 + $0x4b8] sm:$0xf0] }
0x1437   : > { %v10673_v26 = vadd.f32 %v4771_v6, %v4758_v45  ;;  %v8017_v6 = vld [vmem:[%s11744_s12 + $0x4ec] sm:$0xf]  ;;  %v8023_v45 = vld [vmem:[%s11744_s12 + $0x514] sm:$0xf0] }
0x1438   : > { %5062 = vmatpush.bf16.msra.mxu3 %v6545_v28  ;;  %5036 = vmatpush.bf16.msra.mxu0 %v7309_v63  ;;  %v4773_v7 = vpop.f32.mrf.mxu2  ;;  %v7373_v28 = vor.u32 %v8095_v16, %v7372_v14  ;;  %v7245_v63 = vor.u32 %v8063_v23, %v7244_v31  ;;  %v7073_v42 = vor.u32 %v8017_v6, %v7070_v55  ;;  %v7054_v14 = vld [vmem:[%s11744_s12 + $0x4d8] sm:$0xf0]  ;;  %v7084_v16 = vld [vmem:[%s11744_s12 + $0x508] sm:$0xf]  ;;  %v7977_v31 = vld [vmem:[%s11744_s12 + $0x3ac] sm:$0xf] }
0x1439   : > { %5023 = vmatpush.bf16.msrb.mxu2 %v7181_v54  ;;  %v7861_v54 = vld [vmem:[%s11744_s12 + $0xc] sm:$0xf]  ;;  %v7057_v7 = vor.u32 %v8013_v56, %v7054_v14  ;;  %v6910_v23 = vld [vmem:[%s11744_s12 + $0x3b8] sm:$0xf0] }
0x143a   : > { %5051 = vmatpush.bf16.msrb.mxu1 %v7405_v51  ;;  %v7229_v51 = vor.u32 %v8059_v11, %v7228_v12  ;;  %v6449_v2 = vor.u32 %v7861_v54, %v6446_v4  ;;  %v8009_v15 = vld [vmem:[%s11744_s12 + $0x4ac] sm:$0xf]  ;;  %v6894_v12 = vld [vmem:[%s11744_s12 + $0x398] sm:$0xf0]  ;;  %v6673_v11 = vor.u32 %v7917_v20, %v6670_v47 }
0x143b   : > { %v7913_v54 = vld [vmem:[%s11744_s12 + $0x1ac] sm:$0xf]  ;;  %v6654_v4 = vld [vmem:[%s11744_s12 + $0x1b8] sm:$0xf0] }
0x143c   : > { %5063 = vmatpush.bf16.msra.mxu3 %v6529_v58  ;;  %5037 = vmatpush.bf16.msra.mxu0 %v7293_v62  ;;  %v7340_v58 = vld [vmem:[%s11744_s12 + $0x708] sm:$0xf]  ;;  %v7117_v62 = vor.u32 %v8031_v8, %v7116_v37  ;;  %v7945_v37 = vld [vmem:[%s11744_s12 + $0x2ac] sm:$0xf]  ;;  %v7041_v8 = vor.u32 %v8009_v15, %v7038_v17  ;;  %v6657_v55 = vor.u32 %v7913_v54, %v6654_v4  ;;  %v6606_v47 = vld [vmem:[%s11744_s12 + $0x158] sm:$0xf0] }
0x143d   : > { %5024 = vmatpush.bf16.msrb.mxu2 %v7165_v53  ;;  %v7341_v34 = vor.u32 %v8087_v18, %v7340_v58  ;;  %v8055_v53 = vld [vmem:[%s11744_s12 + $0x614] sm:$0xf0]  ;;  %v8005_v58 = vld [vmem:[%s11744_s12 + $0x48c] sm:$0xf]  ;;  %v7454_v54 = vld [vmem:[%s11744_s12 + $0x7f8] sm:$0xf0] }
0x143e   : > { %5052 = vmatpush.bf16.msrb.mxu1 %v7389_v40  ;;  %v4760_v48 = vpop.f32.mrf.mxu3  ;;  %v7981_v40 = vld [vmem:[%s11744_s12 + $0x3cc] sm:$0xf] }
0x143f   : > { %v7969_v6 = vld [vmem:[%s11744_s12 + $0x36c] sm:$0xf] }
0x1440   : > { %5064 = vmatpush.bf16.msra.mxu3 %v6513_v30  ;;  %5038 = vmatpush.bf16.msra.mxu0 %v7277_v1  ;;  %v8027_v30 = vld [vmem:[%s11744_s12 + $0x534] sm:$0xf0]  ;;  %v6814_v1 = vld [vmem:[%s11744_s12 + $0x2f8] sm:$0xf0]  ;;  %v7997_v14 = vld [vmem:[%s11744_s12 + $0x44c] sm:$0xf] }
0x1441   : > { %5025 = vmatpush.bf16.msrb.mxu2 %v7149_v13  ;;  %v7101_v32 = vor.u32 %v8027_v30, %v7100_v19  ;;  %v6817_v13 = vor.u32 %v7953_v5, %v6814_v1  ;;  %v8001_v19 = vld [vmem:[%s11744_s12 + $0x46c] sm:$0xf]  ;;  %v7006_v30 = vld [vmem:[%s11744_s12 + $0x478] sm:$0xf0] }
0x1442   : > { %5053 = vmatpush.bf16.msrb.mxu1 %v7373_v28  ;;  %v7085_v28 = vor.u32 %v8023_v45, %v7084_v16  ;;  %v6990_v16 = vld [vmem:[%s11744_s12 + $0x458] sm:$0xf0]  ;;  %v7901_v20 = vld [vmem:[%s11744_s12 + $0x14c] sm:$0xf] }
0x1443   : > { %v7897_v4 = vld [vmem:[%s11744_s12 + $0x12c] sm:$0xf] }
0x1444   : > { %5065 = vmatpush.bf16.msra.mxu3 %v6497_v50  ;;  %5039 = vmatpush.bf16.msra.mxu0 %v7261_v21  ;;  %v7213_v50 = vor.u32 %v8055_v53, %v7212_v59  ;;  %v6929_v21 = vor.u32 %v7981_v40, %v6926_v43  ;;  %v7009_v40 = vor.u32 %v8001_v19, %v7006_v30  ;;  %v7965_v43 = vld [vmem:[%s11744_s12 + $0x34c] sm:$0xf] }
0x1445   : > { %5026 = vmatpush.bf16.msrb.mxu2 %v7133_v9  ;;  %v6801_v9 = vor.u32 %v7949_v3, %v6798_v35  ;;  %v6734_v3 = vld [vmem:[%s11744_s12 + $0x258] sm:$0xf0]  ;;  %v6993_v35 = vor.u32 %v7997_v14, %v6990_v16  ;;  %v7476_v14 = vld [vmem:[%s11745_s13 + $0x20] sm:$0xf]  ;;  %v8122_v16 = vld [vmem:[%s11745_s13 + $0x2c] sm:$0xf0] }
0x1446   : > { %5054 = vmatpush.bf16.msrb.mxu1 %v7357_v41  ;;  %v7973_v41 = vld [vmem:[%s11744_s12 + $0x38c] sm:$0xf] }
0x1447   : > { %v6897_v48 = vor.u32 %v7973_v41, %v6894_v12  ;;  %v6830_v12 = vld [vmem:[%s11744_s12 + $0x318] sm:$0xf0] }
0x1448   : > { %5066 = vmatpush.bf16.msra.mxu3 %v6481_v25  ;;  %5040 = vmatpush.bf16.msra.mxu0 %v7245_v63  ;;  %v6689_v25 = vor.u32 %v7921_v29, %v6686_v27  ;;  %v6913_v63 = vor.u32 %v7977_v31, %v6910_v23  ;;  %v7993_v23 = vld [vmem:[%s11744_s12 + $0x42c] sm:$0xf] }
0x1449   : > { %5027 = vmatpush.bf16.msrb.mxu2 %v7117_v62  ;;  %v7941_v62 = vld [vmem:[%s11744_s12 + $0x28c] sm:$0xf] }
0x144a   : > { %5055 = vmatpush.bf16.msrb.mxu1 %v7341_v34  ;;  %v6769_v53 = vor.u32 %v7941_v62, %v6766_v36  ;;  %v6590_v62 = vld [vmem:[%s11744_s12 + $0x138] sm:$0xf0]  ;;  %v7492_v36 = vld [vmem:[%s11745_s13 + $0x40] sm:$0xf] }
0x144c   : > { %5067 = vmatpush.bf16.msra.mxu3 %v6465_v10  ;;  %5041 = vmatpush.bf16.msra.mxu0 %v7229_v51  ;;  %v7022_v10 = vld [vmem:[%s11744_s12 + $0x498] sm:$0xf0] }
0x144d   : > { %5028 = vmatpush.bf16.msrb.mxu2 %v7101_v32  ;;  %5056 = vmatmul.bf16.vlgmr.msrb.gmra.mxu1 %v10164_v57  ;;  %v7025_v33 = vor.u32 %v8005_v58, %v7022_v10  ;;  %v6878_v51 = vld [vmem:[%s11744_s12 + $0x378] sm:$0xf0]  ;;  %v6609_v10 = vor.u32 %v7901_v20, %v6606_v47 }
0x144e   : > { %5100 = vmatpush.bf16.msra.mxu1 %v6945_v0  ;;  %v6638_v0 = vld [vmem:[%s11744_s12 + $0x198] sm:$0xf0]  ;;  %v6881_v1 = vor.u32 %v7969_v6, %v6878_v51  ;;  %v7925_v51 = vld [vmem:[%s11744_s12 + $0x20c] sm:$0xf] }
0x144f   : > { %v6750_v32 = vld [vmem:[%s11744_s12 + $0x278] sm:$0xf0] }
0x1450   : > { %5068 = vmatpush.bf16.msra.mxu3 %v6449_v2  ;;  %5042 = vmatpush.bf16.msra.mxu0 %v7213_v50  ;;  %v4784_v34 = vpop.f32.mrf.mxu0  ;;  %v4810_v59 = vpop.f32.mrf.mxu3  ;;  %v7909_v2 = vld [vmem:[%s11744_s12 + $0x18c] sm:$0xf]  ;;  %v6958_v58 = vld [vmem:[%s11744_s12 + $0x418] sm:$0xf0] }
0x1451   : > { %5029 = vmatpush.bf16.msrb.mxu2 %v7085_v28  ;;  %v4785_v5 = vadd.f32 %v4784_v34, %v10673_v26  ;;  %v6862_v26 = vld [vmem:[%s11744_s12 + $0x358] sm:$0xf0]  ;;  %v6641_v50 = vor.u32 %v7909_v2, %v6638_v0  ;;  %v8081_v34 = vld [vmem:[%s11744_s12 + $0x6ec] sm:$0xf] }
0x1452   : > { %5101 = vmatpush.bf16.msra.mxu1 %v6929_v21  ;;  %v6865_v27 = vor.u32 %v7965_v43, %v6862_v26  ;;  %v7933_v21 = vld [vmem:[%s11744_s12 + $0x24c] sm:$0xf]  ;;  %v6846_v28 = vld [vmem:[%s11744_s12 + $0x338] sm:$0xf0] }
0x1453   : > { %5069 = vmatmul.bf16.vlgmr.msra.gmra.mxu3 %v9864_v38  ;;  %v6782_v38 = vld [vmem:[%s11744_s12 + $0x2b8] sm:$0xf0]  ;;  %5043 = vmatmul.bf16.vlgmr.msra.gmra.mxu0 %v10110_v46  ;;  %v4798_v56 = vadd.f32 %v10597_v61, %v4785_v5  ;;  %v8109_v2 = vld [vmem:[%s11744_s12 + $0x7cc] sm:$0xf] }
0x1454   : > { %5113 = vmatpush.bf16.msrb.mxu3 %v7073_v42  ;;  %5087 = vmatpush.bf16.msrb.mxu0 %v6817_v13  ;;  %v6785_v18 = vor.u32 %v7945_v37, %v6782_v38  ;;  %v7937_v42 = vld [vmem:[%s11744_s12 + $0x26c] sm:$0xf]  ;;  %v6622_v61 = vld [vmem:[%s11744_s12 + $0x178] sm:$0xf0] }
0x1455   : > { %5074 = vmatpush.bf16.msra.mxu2 %v6689_v25  ;;  %v6753_v45 = vor.u32 %v7937_v42, %v6750_v32  ;;  %v7905_v13 = vld [vmem:[%s11744_s12 + $0x16c] sm:$0xf]  ;;  %v10879_v29 = vadd.f32 %v4810_v59, %v4798_v56  ;;  %v6974_v25 = vld [vmem:[%s11744_s12 + $0x438] sm:$0xf0] }
0x1456   : > { %5030 = vmatmul.bf16.vlgmr.msrb.gmra.mxu2 %v10201_v52  ;;  %5102 = vmatpush.bf16.msra.mxu1 %v6913_v63  ;;  %v6625_v31 = vor.u32 %v7905_v13, %v6622_v61  ;;  %v7929_v37 = vld [vmem:[%s11744_s12 + $0x22c] sm:$0xf]  ;;  %v6718_v38 = vld [vmem:[%s11744_s12 + $0x238] sm:$0xf0]  ;;  %v6977_v41 = vor.u32 %v7993_v23, %v6974_v25  ;;  %v7460_v25 = vld [vmem:[%s11745_s13] sm:$0xf] }
0x1457   : > { %v7326_v59 = vld [vmem:[%s11744_s12 + $0x6f8] sm:$0xf0]  ;;  %v7893_v32 = vld [vmem:[%s11744_s12 + $0x10c] sm:$0xf] }
0x1458   : > { %5114 = vmatpush.bf16.msrb.mxu3 %v7057_v7  ;;  %5088 = vmatpush.bf16.msrb.mxu0 %v6801_v9  ;;  %v7961_v7 = vld [vmem:[%s11744_s12 + $0x32c] sm:$0xf]  ;;  %v4786_v15 = vpop.f32.mrf.mxu0  ;;  %v4812_v17 = vpop.f32.mrf.mxu3  ;;  %v6737_v9 = vor.u32 %v7933_v21, %v6734_v3  ;;  %v7438_v0 = vld [vmem:[%s11744_s12 + $0x7d8] sm:$0xf0]  ;;  %v7329_v56 = vor.u32 %v8081_v34, %v7326_v59 }
0x1459   : > { %5075 = vmatpush.bf16.msra.mxu2 %v6673_v11  ;;  %v6849_v63 = vor.u32 %v7961_v7, %v6846_v28  ;;  %v7989_v11 = vld [vmem:[%s11744_s12 + $0x40c] sm:$0xf]  ;;  %v7310_v61 = vld [vmem:[%s11744_s12 + $0x6d8] sm:$0xf0]  ;;  %v7477_v28 = vor.u32 %v8122_v16, %v7476_v14 }
0x145a   : > { %5103 = vmatpush.bf16.msra.mxu1 %v6897_v48  ;;  %v6721_v48 = vor.u32 %v7929_v37, %v6718_v38  ;;  %v6961_v19 = vor.u32 %v7989_v11, %v6958_v58  ;;  %v8049_v43 = vld [vmem:[%s11744_s12 + $0x5ec] sm:$0xf]  ;;  %v7422_v3 = vld [vmem:[%s11744_s12 + $0x7b8] sm:$0xf0] }
0x145b   : > { %v8077_v13 = vld [vmem:[%s11744_s12 + $0x6cc] sm:$0xf]  ;;  %v7182_v23 = vld [vmem:[%s11744_s12 + $0x5d8] sm:$0xf0] }
0x145c   : > { %5115 = vmatpush.bf16.msrb.mxu3 %v7041_v8  ;;  %5089 = vmatpush.bf16.msrb.mxu0 %v6785_v18  ;;  %v7957_v8 = vld [vmem:[%s11744_s12 + $0x30c] sm:$0xf]  ;;  %v7294_v17 = vld [vmem:[%s11744_s12 + $0x6b8] sm:$0xf0] }
0x145d   : > { %5076 = vmatpush.bf16.msra.mxu2 %v6657_v55  ;;  %v8113_v18 = vld [vmem:[%s11744_s12 + $0x7ec] sm:$0xf]  ;;  %v6833_v6 = vor.u32 %v7957_v8, %v6830_v12  ;;  %v6702_v55 = vld [vmem:[%s11744_s12 + $0x218] sm:$0xf0] }
0x145e   : > { %5104 = vmatpush.bf16.msra.mxu1 %v6881_v1  ;;  %v7457_v30 = vor.u32 %v8113_v18, %v7454_v54  ;;  %v6705_v42 = vor.u32 %v7925_v51, %v6702_v55  ;;  %v8105_v21 = vld [vmem:[%s11744_s12 + $0x7ac] sm:$0xf]  ;;  %v7406_v20 = vld [vmem:[%s11744_s12 + $0x798] sm:$0xf0] }
0x145f   : > { %v8045_v7 = vld [vmem:[%s11744_s12 + $0x5cc] sm:$0xf]  ;;  %v7425_v15 = vor.u32 %v8105_v21, %v7422_v3  ;;  %v7374_v55 = vld [vmem:[%s11744_s12 + $0x758] sm:$0xf0] }
0x1460   : > { %5116 = vmatpush.bf16.msrb.mxu3 %v7025_v33  ;;  %5090 = vmatpush.bf16.msrb.mxu0 %v6769_v53  ;;  %v8126_v33 = vld [vmem:[%s11745_s13 + $0x4c] sm:$0xf0]  ;;  %v6593_v53 = vor.u32 %v7897_v4, %v6590_v62  ;;  %v10959_v1 = vpop.f32.mrf.mxu0  ;;  %v10970_v26 = vpop.f32.mrf.mxu3  ;;  %v8069_v58 = vld [vmem:[%s11744_s12 + $0x68c] sm:$0xf]  ;;  %v7150_v62 = vld [vmem:[%s11744_s12 + $0x598] sm:$0xf0] }
0x1461   : > { %5077 = vmatpush.bf16.msra.mxu2 %v6641_v50  ;;  %v7493_v5 = vor.u32 %v8126_v33, %v7492_v36  ;;  %v7198_v50 = vld [vmem:[%s11744_s12 + $0x5f8] sm:$0xf0]  ;;  %v8097_v18 = vld [vmem:[%s11744_s12 + $0x76c] sm:$0xf] }
0x1462   : > { %5105 = vmatpush.bf16.msra.mxu1 %v6865_v27  ;;  %v8065_v33 = vld [vmem:[%s11744_s12 + $0x66c] sm:$0xf]  ;;  %v7118_v16 = vld [vmem:[%s11744_s12 + $0x558] sm:$0xf0] }
0x1463   : > { %v8093_v51 = vld [vmem:[%s11744_s12 + $0x74c] sm:$0xf] }
0x1464   : > { %5117 = vmatpush.bf16.msrb.mxu3 %v7009_v40  ;;  %5091 = vmatpush.bf16.msrb.mxu0 %v6753_v45  ;;  %v6574_v40 = vld [vmem:[%s11744_s12 + $0x118] sm:$0xf0]  ;;  %v7441_v45 = vor.u32 %v8109_v2, %v7438_v0  ;;  %v8033_v59 = vld [vmem:[%s11744_s12 + $0x56c] sm:$0xf]  ;;  %v7377_v0 = vor.u32 %v8093_v51, %v7374_v55 }
0x1465   : > { %5078 = vmatpush.bf16.msra.mxu2 %v6625_v31  ;;  %v6577_v27 = vor.u32 %v7893_v32, %v6574_v40  ;;  %v7313_v31 = vor.u32 %v8077_v13, %v7310_v61  ;;  %v8089_v40 = vld [vmem:[%s11744_s12 + $0x72c] sm:$0xf] }
0x1466   : > { %5106 = vmatpush.bf16.msra.mxu1 %v6849_v63  ;;  %v7185_v63 = vor.u32 %v8045_v7, %v7182_v23  ;;  %v8029_v14 = vld [vmem:[%s11744_s12 + $0x54c] sm:$0xf]  ;;  %v7502_v23 = vld [vmem:[%s11745_s13 + $0x58] sm:$0xf0] }
0x1467   : > { %v8057_v61 = vld [vmem:[%s11744_s12 + $0x62c] sm:$0xf] }
0x1468   : > { %5118 = vmatpush.bf16.msrb.mxu3 %v6993_v35  ;;  %5092 = vmatpush.bf16.msrb.mxu0 %v6737_v9  ;;  %v7201_v35 = vor.u32 %v8049_v43, %v7198_v50  ;;  %v8101_v9 = vld [vmem:[%s11744_s12 + $0x78c] sm:$0xf]  ;;  %v4838_v47 = vpop.f32.mrf.mxu0  ;;  %v4864_v38 = vpop.f32.mrf.mxu3  ;;  %v7358_v43 = vld [vmem:[%s11744_s12 + $0x738] sm:$0xf0] }
0x1469   : > { %5079 = vmatpush.bf16.msra.mxu2 %v6609_v10  ;;  %v7409_v11 = vor.u32 %v8101_v9, %v7406_v20  ;;  %v7278_v10 = vld [vmem:[%s11744_s12 + $0x698] sm:$0xf0]  ;;  %v7361_v13 = vor.u32 %v8089_v40, %v7358_v43  ;;  %v8085_v3 = vld [vmem:[%s11744_s12 + $0x70c] sm:$0xf]  ;;  %v8127_v38 = vld [vmem:[%s11745_s13 + $0x54] sm:$0xf0] }
0x146a   : > { %5107 = vmatpush.bf16.msra.mxu1 %v6833_v6  ;;  %v11027_v12 = vpop.f32.mrf.mxu1  ;;  %v7281_v4 = vor.u32 %v8069_v58, %v7278_v10  ;;  %v7262_v6 = vld [vmem:[%s11744_s12 + $0x678] sm:$0xf0]  ;;  %v8053_v9 = vld [vmem:[%s11744_s12 + $0x60c] sm:$0xf]  ;;  %v8116_v40 = vld [vmem:[%s11745_s13 + $0x4] sm:$0xf] }
0x146b   : > { %v7265_v34 = vor.u32 %v8065_v33, %v7262_v6  ;;  %v7086_v58 = vld [vmem:[%s11744_s12 + $0x518] sm:$0xf0]  ;;  %v8117_v33 = vld [vmem:[%s11745_s13 + $0xc] sm:$0xf]  ;;  %v7462_v43 = vld [vmem:[%s11745_s13 + $0x10] sm:$0xf0] }
0x146c   : > { %5119 = vmatpush.bf16.msrb.mxu3 %v6977_v41  ;;  %5093 = vmatpush.bf16.msrb.mxu0 %v6721_v48  ;;  %v7166_v41 = vld [vmem:[%s11744_s12 + $0x5b8] sm:$0xf0]  ;;  %v8037_v48 = vld [vmem:[%s11744_s12 + $0x58c] sm:$0xf] }
0x146d   : > { %5080 = vmatpush.bf16.msra.mxu2 %v6593_v53  ;;  %5108 = vmatmul.bf16.vlgmr.msra.gmra.mxu1 %v9829_v49  ;;  %v8118_v49 = vld [vmem:[%s11745_s13 + $0xc] sm:$0xf0]  ;;  %v7134_v53 = vld [vmem:[%s11744_s12 + $0x578] sm:$0xf0] }
0x146e   : > { %5152 = vmatpush.bf16.msrb.mxu1 %v7457_v30  ;;  %v7461_v37 = vor.u32 %v8118_v49, %v7460_v25  ;;  %v7153_v30 = vor.u32 %v8037_v48, %v7150_v62  ;;  %v8025_v49 = vld [vmem:[%s11744_s12 + $0x52c] sm:$0xf]  ;;  %v7484_v48 = vld [vmem:[%s11745_s13 + $0x28] sm:$0xf]  ;;  %v8123_v62 = vld [vmem:[%s11745_s13 + $0x34] sm:$0xf0] }
0x146f   : > { %v7470_v6 = vld [vmem:[%s11745_s13 + $0x18] sm:$0xf0] }
0x1470   : > { %5120 = vmatpush.bf16.msrb.mxu3 %v6961_v19  ;;  %5094 = vmatpush.bf16.msrb.mxu0 %v6705_v42  ;;  %v7246_v42 = vld [vmem:[%s11744_s12 + $0x658] sm:$0xf0] }
0x1471   : > { %5081 = vmatpush.bf16.msra.mxu2 %v6577_v27  ;;  %v7230_v27 = vld [vmem:[%s11744_s12 + $0x638] sm:$0xf0] }
0x1472   : > { %5153 = vmatpush.bf16.msrb.mxu1 %v7441_v45  ;;  %v11059_v19 = vpop.f32.mrf.mxu0  ;;  %v4851_v2 = vpop.f32.mrf.mxu1  ;;  %v7233_v25 = vor.u32 %v8057_v61, %v7230_v27 }
0x1473   : > { %5121 = vmatmul.bf16.vlgmr.msrb.gmra.mxu3 %v10021_v39  ;;  %v8073_v39 = vld [vmem:[%s11744_s12 + $0x6ac] sm:$0xf]  ;;  %5095 = vmatmul.bf16.vlgmr.msrb.gmra.mxu0 %v10049_v60  ;;  %v7468_v2 = vld [vmem:[%s11745_s13 + $0x8] sm:$0xf] }
0x1474   : > { %5242 = vmatpush.bf16.msra.mxu3 %v7493_v5  ;;  %5139 = vmatpush.bf16.msra.mxu0 %v7329_v56  ;;  %v7297_v8 = vor.u32 %v8073_v39, %v7294_v17  ;;  %v8041_v60 = vld [vmem:[%s11744_s12 + $0x5ac] sm:$0xf]  ;;  %v7137_v56 = vor.u32 %v8033_v59, %v7134_v53  ;;  %v7485_v59 = vor.u32 %v8123_v62, %v7484_v48 }
0x1475   : > { %5126 = vmatpush.bf16.msrb.mxu2 %v7201_v35  ;;  %v7169_v54 = vor.u32 %v8041_v60, %v7166_v41  ;;  %v8061_v5 = vld [vmem:[%s11744_s12 + $0x64c] sm:$0xf]  ;;  %v7342_v35 = vld [vmem:[%s11744_s12 + $0x718] sm:$0xf0]  ;;  %v7473_v53 = vor.u32 %v8117_v33, %v7470_v6  ;;  %v8137_v33 = vld [vmem:[%s11747_s15 + $0x44] sm:$0xf0] }
0x1476   : > { %5082 = vmatmul.bf16.vlgmr.msra.gmra.mxu2 %v9821_v22  ;;  %5154 = vmatpush.bf16.msrb.mxu1 %v7425_v15  ;;  %v7390_v22 = vld [vmem:[%s11744_s12 + $0x778] sm:$0xf0]  ;;  %v11073_v32 = vpop.f32.mrf.mxu3  ;;  %v7249_v50 = vor.u32 %v8061_v5, %v7246_v42  ;;  %v4823_v45 = vpop.f32.mrf.mxu2  ;;  %v7345_v17 = vor.u32 %v8085_v3, %v7342_v35  ;;  %v8121_v60 = vld [vmem:[%s11745_s13 + $0x2c] sm:$0xf] }
0x1477   : > { %v7393_v36 = vor.u32 %v8097_v18, %v7390_v22  ;;  %v4824_v21 = vadd.f32 %v4823_v45, %v10879_v29  ;;  %v7102_v15 = vld [vmem:[%s11744_s12 + $0x538] sm:$0xf0]  ;;  %v8124_v18 = vld [vmem:[%s11745_s13 + $0x44] sm:$0xf]  ;;  %v7494_v22 = vld [vmem:[%s11745_s13 + $0x50] sm:$0xf0] }
0x1478   : > { %5243 = vmatpush.bf16.msra.mxu3 %v7477_v28  ;;  %5140 = vmatpush.bf16.msra.mxu0 %v7313_v31  ;;  %v7121_v28 = vor.u32 %v8029_v14, %v7118_v16  ;;  %v8125_v31 = vld [vmem:[%s11745_s13 + $0x4c] sm:$0xf]  ;;  %v7486_v41 = vld [vmem:[%s11745_s13 + $0x38] sm:$0xf0]  ;;  %v7497_v51 = vor.u32 %v8124_v18, %v7494_v22  ;;  %v7556_v18 = vld [vmem:[%s11747_s15 + $0x50] sm:$0xf] }
0x1479   : > { %5127 = vmatpush.bf16.msrb.mxu2 %v7185_v63  ;;  %v4837_v29 = vadd.f32 %v10959_v1, %v4824_v21  ;;  %v7214_v1 = vld [vmem:[%s11744_s12 + $0x618] sm:$0xf0]  ;;  %v7505_v63 = vor.u32 %v8125_v31, %v7502_v23  ;;  %v8139_v22 = vld [vmem:[%s11747_s15 + $0x54] sm:$0xf0] }
0x147a   : > { %5155 = vmatpush.bf16.msrb.mxu1 %v7409_v11  ;;  %v4890_v7 = vpop.f32.mrf.mxu0  ;;  %v4901_v39 = vpop.f32.mrf.mxu1  ;;  %v8021_v11 = vld [vmem:[%s11744_s12 + $0x50c] sm:$0xf] }
0x147b   : > { %v11122_v20 = vadd.f32 %v11027_v12, %v4837_v29  ;;  %v7217_v12 = vor.u32 %v8053_v9, %v7214_v1 }
0x147c   : > { %5244 = vmatpush.bf16.msra.mxu3 %v7461_v37  ;;  %5141 = vmatpush.bf16.msra.mxu0 %v7297_v8  ;;  %v7500_v37 = vld [vmem:[%s11745_s13 + $0x48] sm:$0xf]  ;;  %v7105_v8 = vor.u32 %v8025_v49, %v7102_v15 }
0x147d   : > { %5128 = vmatpush.bf16.msrb.mxu2 %v7169_v54  ;;  %v7501_v54 = vor.u32 %v8127_v38, %v7500_v37  ;;  %v7572_v37 = vld [vmem:[%s11747_s15 + $0x70] sm:$0xf] }
0x147e   : > { %5156 = vmatpush.bf16.msrb.mxu1 %v7393_v36  ;;  %v4916_v47 = vpop.f32.mrf.mxu3  ;;  %v4825_v10 = vpop.f32.mrf.mxu2  ;;  %v7089_v36 = vor.u32 %v8021_v11, %v7086_v58 }
0x1480   : > { %5142 = vmatpush.bf16.msra.mxu0 %v7281_v4  ;;  %v7489_v4 = vor.u32 %v8121_v60, %v7486_v41  ;;  %v7564_v41 = vld [vmem:[%s11747_s15 + $0x60] sm:$0xf] }
0x1481   : > { %5129 = vmatpush.bf16.msrb.mxu2 %v7153_v30  ;;  %v8120_v30 = vld [vmem:[%s11745_s13 + $0x24] sm:$0xf] }
0x1482   : > { %5157 = vmatpush.bf16.msrb.mxu1 %v7377_v0  ;;  %v4903_v55 = vpop.f32.mrf.mxu1 }
0x1483   : > { %7506 = vmatmul.msk.bf16.vlgmr.msra.gmra.mxu3 %vm2942_vm1, %v9376_v24 }
0x1484   : > { %5143 = vmatpush.bf16.msra.mxu0 %v7265_v34  ;;  %v7478_v34 = vld [vmem:[%s11745_s13 + $0x30] sm:$0xf0] }
0x1485   : > { %5130 = vmatpush.bf16.msrb.mxu2 %v7137_v56  ;;  %v7481_v0 = vor.u32 %v8120_v30, %v7478_v34  ;;  %v7540_v30 = vld [vmem:[%s11747_s15 + $0x30] sm:$0xf]  ;;  %v8135_v34 = vld [vmem:[%s11747_s15 + $0x34] sm:$0xf0] }
0x1486   : > { %5158 = vmatpush.bf16.msrb.mxu1 %v7361_v13  ;;  %v4875_v5 = vpop.f32.mrf.mxu2 }
0x1487   : > { %v4876_v56 = vadd.f32 %v4875_v5, %v10970_v26  ;;  %v8191_v5 = vld [vmem:[%s11747_s15 + $0x1f4] sm:$0xf0] }
0x1488   : > { %5144 = vmatpush.bf16.msra.mxu0 %v7249_v50  ;;  %v7465_v50 = vor.u32 %v8116_v40, %v7462_v43  ;;  %v7524_v40 = vld [vmem:[%s11747_s15 + $0x10] sm:$0xf]  ;;  %v8131_v43 = vld [vmem:[%s11747_s15 + $0x14] sm:$0xf0] }
0x1489   : > { %5131 = vmatpush.bf16.msrb.mxu2 %v7121_v28 }
0x148a   : > { %5159 = vmatpush.bf16.msrb.mxu1 %v7345_v17  ;;  %v4953_v14 = vpop.f32.mrf.mxu1 }
0x148c   : > { %5145 = vmatpush.bf16.msra.mxu0 %v7233_v25 }
0x148d   : > { %5132 = vmatpush.bf16.msrb.mxu2 %v7105_v8  ;;  %5160 = vmatmul.bf16.vlgmr.msrb.gmra.mxu1 %v10164_v57  ;;  %v8119_v57 = vld [vmem:[%s11745_s13 + $0x14] sm:$0xf0] }
0x148e   : > { %5299 = vmatpush.bf16.msra.mxu1 %v7505_v63  ;;  %v7469_v42 = vor.u32 %v8119_v57, %v7468_v2  ;;  %v4877_v61 = vpop.f32.mrf.mxu2  ;;  %v8133_v2 = vld [vmem:[%s11747_s15 + $0x24] sm:$0xf0] }
0x1490   : > { %5146 = vmatpush.bf16.msra.mxu0 %v7217_v12  ;;  %v4940_v45 = vpop.f32.mrf.mxu0  ;;  %v8141_v12 = vld [vmem:[%s11747_s15 + $0x64] sm:$0xf0] }
0x1491   : > { %5133 = vmatpush.bf16.msrb.mxu2 %v7089_v36  ;;  %v7565_v11 = vor.u32 %v8141_v12, %v7564_v41  ;;  %v7548_v36 = vld [vmem:[%s11747_s15 + $0x40] sm:$0xf] }
0x1492   : > { %5300 = vmatpush.bf16.msra.mxu1 %v7489_v4  ;;  %v4955_v26 = vpop.f32.mrf.mxu1  ;;  %v7557_v4 = vor.u32 %v8139_v22, %v7556_v18  ;;  %v7628_v18 = vld [vmem:[%s11747_s15 + $0xe0] sm:$0xf]  ;;  %v8157_v22 = vld [vmem:[%s11747_s15 + $0xe4] sm:$0xf0] }
0x1493   : > { %5147 = vmatmul.bf16.vlgmr.msra.gmra.mxu0 %v10110_v46  ;;  %7507 = vmatmul.msk.bf16.gmra.mxu3 %vm2942_vm1, %v9390_v44  ;;  %v4889_v46 = vadd.f32 %v11059_v19, %v4876_v56  ;;  %v7516_v26 = vld [vmem:[%s11747_s15] sm:$0xf] }
0x1494   : > { %5280 = vmatpush.bf16.msrb.mxu0 %v7501_v54  ;;  %5134 = vmatmul.bf16.vlgmr.msrb.gmra.mxu2 %v10201_v52 }
0x1495   : > { %5261 = vmatpush.bf16.msra.mxu2 %v7497_v51  ;;  %v4902_v16 = vadd.f32 %v4901_v39, %v4889_v46  ;;  %v7549_v51 = vor.u32 %v8137_v33, %v7548_v36  ;;  %v7525_v46 = vor.u32 %v8131_v43, %v7524_v40  ;;  %v8183_v36 = vld [vmem:[%s11747_s15 + $0x1b4] sm:$0xf0]  ;;  %v8138_v33 = vld [vmem:[%s11747_s15 + $0x54] sm:$0xf] }
0x1496   : > { %5301 = vmatpush.bf16.msra.mxu1 %v7473_v53  ;;  %v4966_v27 = vpop.f32.mrf.mxu3  ;;  %v7532_v53 = vld [vmem:[%s11747_s15 + $0x20] sm:$0xf] }
0x1497   : > { %v4915_v13 = vadd.f32 %v11073_v32, %v4902_v16  ;;  %v7533_v57 = vor.u32 %v8133_v2, %v7532_v53  ;;  %v7620_v53 = vld [vmem:[%s11747_s15 + $0xd0] sm:$0xf]  ;;  %v8155_v2 = vld [vmem:[%s11747_s15 + $0xd4] sm:$0xf0] }
0x1498   : > { %5281 = vmatpush.bf16.msrb.mxu0 %v7485_v59  ;;  %v4942_v52 = vpop.f32.mrf.mxu0  ;;  %v7541_v59 = vor.u32 %v8135_v34, %v7540_v30  ;;  %v7668_v34 = vld [vmem:[%s11747_s15 + $0x130] sm:$0xf] }
0x1499   : > { %5262 = vmatpush.bf16.msra.mxu2 %v7481_v0  ;;  %v4927_v19 = vpop.f32.mrf.mxu2  ;;  %v7764_v0 = vld [vmem:[%s11747_s15 + $0x1f0] sm:$0xf]  ;;  %v8129_v52 = vld [vmem:[%s11747_s15 + $0x4] sm:$0xf0] }
0x149a   : > { %v4928_v21 = vadd.f32 %v4927_v19, %v4915_v13  ;;  %v8189_v13 = vld [vmem:[%s11747_s15 + $0x1e4] sm:$0xf0]  ;;  %v7517_v19 = vor.u32 %v8129_v52, %v7516_v26  ;;  %v7716_v52 = vld [vmem:[%s11747_s15 + $0x190] sm:$0xf] }
0x149c   : > { %5282 = vmatpush.bf16.msrb.mxu0 %v7469_v42  ;;  %v4941_v35 = vadd.f32 %v4940_v45, %v4928_v21  ;;  %v7765_v42 = vor.u32 %v8191_v5, %v7764_v0  ;;  %v7756_v45 = vld [vmem:[%s11747_s15 + $0x1e0] sm:$0xf]  ;;  %v7621_v0 = vor.u32 %v8155_v2, %v7620_v53  ;;  %v7702_v53 = vld [vmem:[%s11747_s15 + $0x178] sm:$0xf0] }
0x149d   : > { %5263 = vmatpush.bf16.msra.mxu2 %v7465_v50  ;;  %7512 = vmatmul.msk.bf16.vlgmr.msra.gmra.mxu1 %vm2942_vm1, %v9376_v24  ;;  %v7700_v50 = vld [vmem:[%s11747_s15 + $0x170] sm:$0xf]  ;;  %v7692_v21 = vld [vmem:[%s11747_s15 + $0x160] sm:$0xf] }
0x149e   : > { %v4968_v3 = vpop.f32.mrf.mxu3  ;;  %v11192_v7 = vadd.f32 %v4953_v14, %v4941_v35  ;;  %5830 = vmatpush.bf16.msrb.mxu1 %v7765_v42  ;;  %v8175_v14 = vld [vmem:[%s11747_s15 + $0x174] sm:$0xf0]  ;;  %v7724_v5 = vld [vmem:[%s11747_s15 + $0x1a0] sm:$0xf]  ;;  %v8181_v42 = vld [vmem:[%s11747_s15 + $0x1a4] sm:$0xf0] }
0x149f   : > { %v7701_v16 = vor.u32 %v8175_v14, %v7700_v50  ;;  %v8173_v3 = vld [vmem:[%s11747_s15 + $0x164] sm:$0xf0]  ;;  %v7725_v43 = vor.u32 %v8181_v42, %v7724_v5  ;;  %v7550_v50 = vld [vmem:[%s11747_s15 + $0x48] sm:$0xf0]  ;;  %v8188_v42 = vld [vmem:[%s11747_s15 + $0x1e4] sm:$0xf] }
0x14a0   : > { %v7693_v35 = vor.u32 %v8173_v3, %v7692_v21  ;;  %v8179_v3 = vld [vmem:[%s11747_s15 + $0x194] sm:$0xf0] }
0x14a1   : > { %v4929_v32 = vpop.f32.mrf.mxu2  ;;  %5811 = vmatpush.bf16.msra.mxu0 %v7701_v16  ;;  %v7660_v16 = vld [vmem:[%s11747_s15 + $0x120] sm:$0xf] }
0x14a2   : > { %v7748_v32 = vld [vmem:[%s11747_s15 + $0x1d0] sm:$0xf] }
0x14a3   : > { %7510 = vmatmul.msk.bf16.vlgmr.msrb.gmra.mxu0 %vm2942_vm1, %v9376_v24 }
0x14a4   : > { %7508 = vmatmul.msk.bf16.vlgmr.msra.gmra.mxu2 %vm2942_vm1, %v9376_v24 }
0x14a5   : > { %5812 = vmatpush.bf16.msra.mxu0 %v7693_v35  ;;  %v8134_v35 = vld [vmem:[%s11747_s15 + $0x34] sm:$0xf] }
0x14aa   : > { %v5005_v28 = vpop.f32.mrf.mxu1 }
0x14ad   : > { %7513 = vmatmul.msk.bf16.gmra.mxu1 %vm2942_vm1, %v9390_v44 }
0x14b0   : > { %v4992_v31 = vpop.f32.mrf.mxu0 }
0x14b2   : > { %v5007_v29 = vpop.f32.mrf.mxu1 }
0x14b3   : > { %7511 = vmatmul.msk.bf16.gmra.mxu0 %vm2942_vm1, %v9390_v44  ;;  %v8142_v29 = vld [vmem:[%s11747_s15 + $0x74] sm:$0xf] }
0x14b4   : > { %7509 = vmatmul.msk.bf16.gmra.mxu2 %vm2942_vm1, %v9390_v44  ;;  %v8143_v44 = vld [vmem:[%s11747_s15 + $0x74] sm:$0xf0] }
0x14b5   : > { %v7573_v38 = vor.u32 %v8143_v44, %v7572_v37  ;;  %v8185_v44 = vld [vmem:[%s11747_s15 + $0x1c4] sm:$0xf0] }
0x14b6   : > { %v5018_v23 = vpop.f32.mrf.mxu3 }
0x14b7   : > { %5773 = vmatpush.bf16.msrb.mxu3 %v7573_v38  ;;  %v8140_v38 = vld [vmem:[%s11747_s15 + $0x64] sm:$0xf] }
0x14b8   : > { %v4994_v24 = vpop.f32.mrf.mxu0 }
0x14b9   : > { %v4979_v25 = vpop.f32.mrf.mxu2  ;;  %v7574_v24 = vld [vmem:[%s11747_s15 + $0x78] sm:$0xf0] }
0x14ba   : > { %v4980_v49 = vadd.f32 %v4979_v25, %v4966_v27  ;;  %v7757_v27 = vor.u32 %v8189_v13, %v7756_v45  ;;  %v8165_v45 = vld [vmem:[%s11747_s15 + $0x124] sm:$0xf0]  ;;  %v7612_v13 = vld [vmem:[%s11747_s15 + $0xc0] sm:$0xf] }
0x14bb   : > { %5774 = vmatpush.bf16.msrb.mxu3 %v7565_v11  ;;  %v7661_v26 = vor.u32 %v8165_v45, %v7660_v16 }
0x14bc   : > { %v4993_v15 = vadd.f32 %v4992_v31, %v4980_v49  ;;  %5831 = vmatpush.bf16.msrb.mxu1 %v7757_v27  ;;  %v7577_v49 = vor.u32 %v8142_v29, %v7574_v24  ;;  %v8153_v27 = vld [vmem:[%s11747_s15 + $0xc4] sm:$0xf0]  ;;  %v11398_v24 = vld [vmem:[%s11746_s14] sm:$0xf] }
0x14bd   : > { %v7613_v21 = vor.u32 %v8153_v27, %v7612_v13 }
0x14be   : > { %v5020_v39 = vpop.f32.mrf.mxu3  ;;  %v5006_v17 = vadd.f32 %v5005_v28, %v4993_v15  ;;  %v8187_v28 = vld [vmem:[%s11747_s15 + $0x1d4] sm:$0xf0]  ;;  %v7684_v15 = vld [vmem:[%s11747_s15 + $0x150] sm:$0xf] }
0x14bf   : > { %5775 = vmatpush.bf16.msrb.mxu3 %v7557_v4  ;;  %v8171_v39 = vld [vmem:[%s11747_s15 + $0x154] sm:$0xf0]  ;;  %v7732_v4 = vld [vmem:[%s11747_s15 + $0x1b0] sm:$0xf] }
0x14c0   : > { %v5019_v9 = vadd.f32 %v5018_v23, %v5006_v17  ;;  %v7749_v23 = vor.u32 %v8187_v28, %v7748_v32  ;;  %v7636_v17 = vld [vmem:[%s11747_s15 + $0xf0] sm:$0xf]  ;;  %v7542_v32 = vld [vmem:[%s11747_s15 + $0x38] sm:$0xf0]  ;;  %v11393_v28 = vperm.slane %v11122_v20, 0 }
0x14c1   : > { %v4981_v1 = vpop.f32.mrf.mxu2  ;;  %v7545_v29 = vor.u32 %v8134_v35, %v7542_v32  ;;  %v7604_v20 = vld [vmem:[%s11747_s15 + $0xb0] sm:$0xf]  ;;  %v8186_v32 = vld [vmem:[%s11747_s15 + $0x1d4] sm:$0xf] }
0x14c2   : > { %5832 = vmatpush.bf16.msrb.mxu1 %v7749_v23  ;;  %v7685_v1 = vor.u32 %v8171_v39, %v7684_v15  ;;  %v7717_v23 = vor.u32 %v8179_v3, %v7716_v52  ;;  %v8151_v15 = vld [vmem:[%s11747_s15 + $0xb4] sm:$0xf0]  ;;  %v7694_v52 = vld [vmem:[%s11747_s15 + $0x168] sm:$0xf0]  ;;  %v8145_v3 = vld [vmem:[%s11747_s15 + $0x84] sm:$0xf0] }
0x14c3   : > { %5776 = vmatpush.bf16.msrb.mxu3 %v7549_v51  ;;  %v7558_v51 = vld [vmem:[%s11747_s15 + $0x58] sm:$0xf0] }
0x14c4   : > { %5813 = vmatpush.bf16.msra.mxu0 %v7685_v1  ;;  %v7561_v30 = vor.u32 %v8138_v33, %v7558_v51  ;;  %v7605_v1 = vor.u32 %v8151_v15, %v7604_v20  ;;  %v7526_v33 = vld [vmem:[%s11747_s15 + $0x18] sm:$0xf0] }
0x14c7   : > { %5777 = vmatpush.bf16.msrb.mxu3 %v7541_v59  ;;  %v8167_v59 = vld [vmem:[%s11747_s15 + $0x134] sm:$0xf0] }
0x14ca   : > { %v5057_v47 = vpop.f32.mrf.mxu1 }
0x14cb   : > { %5778 = vmatpush.bf16.msrb.mxu3 %v7533_v57  ;;  %v7669_v57 = vor.u32 %v8167_v59, %v7668_v34  ;;  %v8174_v59 = vld [vmem:[%s11747_s15 + $0x174] sm:$0xf] }
0x14cc   : > { %v7705_v5 = vor.u32 %v8174_v59, %v7702_v53  ;;  %v11550_v59 = vperm.slane %v11398_v24, 3 }
0x14cf   : > { %5779 = vmatpush.bf16.msrb.mxu3 %v7525_v46  ;;  %v8136_v46 = vld [vmem:[%s11747_s15 + $0x44] sm:$0xf] }
0x14d0   : > { %v5044_v63 = vpop.f32.mrf.mxu0  ;;  %v7553_v14 = vor.u32 %v8136_v46, %v7550_v50  ;;  %v7758_v46 = vld [vmem:[%s11747_s15 + $0x1e8] sm:$0xf0]  ;;  %v8128_v50 = vld [vmem:[%s11747_s15 + $0x4] sm:$0xf] }
0x14d1   : > { %v7761_v13 = vor.u32 %v8188_v42, %v7758_v46  ;;  %v7622_v42 = vld [vmem:[%s11747_s15 + $0xd8] sm:$0xf0] }
0x14d2   : > { %v5059_v60 = vpop.f32.mrf.mxu1 }
0x14d3   : > { %5780 = vmatpush.bf16.msrb.mxu3 %v7517_v19  ;;  %v7566_v60 = vld [vmem:[%s11747_s15 + $0x68] sm:$0xf0] }
0x14d4   : > { %v7569_v11 = vor.u32 %v8140_v38, %v7566_v60  ;;  %v11428_v38 = vperm.slane %v11398_v24, 0 }
0x14d6   : > { %v11206_v8 = vpop.f32.mrf.mxu3 }
0x14d7   : > { %5849 = vmatpush.bf16.msra.mxu3 %v7577_v49  ;;  %v8163_v49 = vld [vmem:[%s11747_s15 + $0x114] sm:$0xf0] }
0x14d8   : > { %v5046_v58 = vpop.f32.mrf.mxu0 }
0x14d9   : > { %v5031_v10 = vpop.f32.mrf.mxu2  ;;  %v7676_v58 = vld [vmem:[%s11747_s15 + $0x140] sm:$0xf] }
0x14da   : > { %v5032_v54 = vadd.f32 %v5031_v10, %v5019_v9  ;;  %v8159_v9 = vld [vmem:[%s11747_s15 + $0xf4] sm:$0xf0]  ;;  %v8169_v10 = vld [vmem:[%s11747_s15 + $0x144] sm:$0xf0] }
0x14db   : > { %v7637_v37 = vor.u32 %v8159_v9, %v7636_v17  ;;  %5850 = vmatpush.bf16.msra.mxu3 %v7569_v11  ;;  %v7708_v17 = vld [vmem:[%s11747_s15 + $0x180] sm:$0xf]  ;;  %v8161_v11 = vld [vmem:[%s11747_s15 + $0x104] sm:$0xf0] }
0x14dc   : > { %v5045_v48 = vadd.f32 %v5044_v63, %v5032_v54  ;;  %v7677_v54 = vor.u32 %v8169_v10, %v7676_v58  ;;  %v7596_v58 = vld [vmem:[%s11747_s15 + $0xa0] sm:$0xf]  ;;  %v8149_v10 = vld [vmem:[%s11747_s15 + $0xa4] sm:$0xf0] }
0x14dd   : > { %5792 = vmatpush.bf16.msrb.mxu2 %v7637_v37  ;;  %v7534_v37 = vld [vmem:[%s11747_s15 + $0x28] sm:$0xf0] }
0x14de   : > { %v5072_v62 = vpop.f32.mrf.mxu3  ;;  %v11226_v6 = vadd.f32 %v5057_v47, %v5045_v48  ;;  %v7740_v47 = vld [vmem:[%s11747_s15 + $0x1c0] sm:$0xf]  ;;  %5814 = vmatpush.bf16.msra.mxu0 %v7677_v54 }
0x14df   : > { %v7741_v12 = vor.u32 %v8185_v44, %v7740_v47  ;;  %v7629_v62 = vor.u32 %v8157_v22, %v7628_v18  ;;  %5851 = vmatpush.bf16.msra.mxu3 %v7561_v30  ;;  %v8177_v47 = vld [vmem:[%s11747_s15 + $0x184] sm:$0xf0]  ;;  %v8190_v22 = vld [vmem:[%s11747_s15 + $0x1f4] sm:$0xf] }
0x14e0   : > { %v11570_v46 = vperm.slane %v11226_v6, 0  ;;  %v8164_v6 = vld [vmem:[%s11747_s15 + $0x124] sm:$0xf] }
0x14e1   : > { %v5033_v55 = vpop.f32.mrf.mxu2  ;;  %5833 = vmatpush.bf16.msrb.mxu1 %v7741_v12  ;;  %5793 = vmatpush.bf16.msrb.mxu2 %v7629_v62  ;;  %v7644_v12 = vld [vmem:[%s11747_s15 + $0x100] sm:$0xf]  ;;  %v7766_v62 = vld [vmem:[%s11747_s15 + $0x1f8] sm:$0xf0] }
0x14e2   : > { %v7733_v55 = vor.u32 %v8183_v36, %v7732_v4  ;;  %5815 = vmatpush.bf16.msra.mxu0 %v7669_v57  ;;  %v7645_v18 = vor.u32 %v8161_v11, %v7644_v12  ;;  %v8130_v36 = vld [vmem:[%s11747_s15 + $0x14] sm:$0xf]  ;;  %v7769_v30 = vor.u32 %v8190_v22, %v7766_v62  ;;  %v7588_v57 = vld [vmem:[%s11747_s15 + $0x90] sm:$0xf] }
0x14e3   : > { %5852 = vmatpush.bf16.msra.mxu3 %v7553_v14  ;;  %v7529_v34 = vor.u32 %v8130_v36, %v7526_v33  ;;  %v7518_v14 = vld [vmem:[%s11747_s15 + $0x8] sm:$0xf0]  ;;  %v8182_v62 = vld [vmem:[%s11747_s15 + $0x1b4] sm:$0xf] }
0x14e4   : > { %v7521_v27 = vor.u32 %v8128_v50, %v7518_v14 }
0x14e5   : > { %5834 = vmatpush.bf16.msrb.mxu1 %v7733_v55  ;;  %5794 = vmatpush.bf16.msrb.mxu2 %v7621_v0  ;;  %v8147_v0 = vld [vmem:[%s11747_s15 + $0x94] sm:$0xf0] }
0x14e6   : > { %5816 = vmatpush.bf16.msra.mxu0 %v7661_v26  ;;  %v8172_v26 = vld [vmem:[%s11747_s15 + $0x164] sm:$0xf] }
0x14e7   : > { %5853 = vmatpush.bf16.msra.mxu3 %v7545_v29  ;;  %v7697_v35 = vor.u32 %v8172_v26, %v7694_v52  ;;  %v7662_v26 = vld [vmem:[%s11747_s15 + $0x128] sm:$0xf0] }
0x14e9   : > { %5835 = vmatpush.bf16.msrb.mxu1 %v7725_v43  ;;  %5795 = vmatpush.bf16.msrb.mxu2 %v7613_v21  ;;  %v7589_v43 = vor.u32 %v8147_v0, %v7588_v57  ;;  %v7580_v21 = vld [vmem:[%s11747_s15 + $0x80] sm:$0xf]  ;;  %v7670_v57 = vld [vmem:[%s11747_s15 + $0x138] sm:$0xf0] }
0x14ea   : > { %v11252_v56 = vpop.f32.mrf.mxu1  ;;  %v7581_v29 = vor.u32 %v8145_v3, %v7580_v21 }
0x14ed   : > { %5836 = vmatpush.bf16.msrb.mxu1 %v7717_v23  ;;  %5796 = vmatpush.bf16.msrb.mxu2 %v7605_v1 }
0x14f0   : > { %v11266_v61 = vpop.f32.mrf.mxu0 }
0x14f2   : > { %v5111_v25 = vpop.f32.mrf.mxu1 }
0x14f3   : > { %v7652_v25 = vld [vmem:[%s11747_s15 + $0x110] sm:$0xf] }
0x14f4   : > { %v7653_v39 = vor.u32 %v8163_v49, %v7652_v25  ;;  %v7750_v25 = vld [vmem:[%s11747_s15 + $0x1d8] sm:$0xf0] }
0x14f5   : > { %v7753_v15 = vor.u32 %v8186_v32, %v7750_v25  ;;  %v7614_v32 = vld [vmem:[%s11747_s15 + $0xc8] sm:$0xf0]  ;;  %v8178_v25 = vld [vmem:[%s11747_s15 + $0x194] sm:$0xf] }
0x14f6   : > { %v11286_v31 = vpop.f32.mrf.mxu3  ;;  %5817 = vmatpush.bf16.msra.mxu0 %v7653_v39 }
0x14f8   : > { %v5098_v63 = vpop.f32.mrf.mxu0 }
0x14f9   : > { %v11318_v41 = vpop.f32.mrf.mxu2  ;;  %v8132_v63 = vld [vmem:[%s11747_s15 + $0x24] sm:$0xf] }
0x14fa   : > { %v5084_v9 = vadd.f32 %v11318_v41, %v11206_v8  ;;  %v7709_v8 = vor.u32 %v8177_v47, %v7708_v17  ;;  %v7537_v60 = vor.u32 %v8132_v63, %v7534_v37  ;;  %5818 = vmatpush.bf16.msra.mxu0 %v7645_v18  ;;  %v8170_v17 = vld [vmem:[%s11747_s15 + $0x154] sm:$0xf]  ;;  %v8184_v37 = vld [vmem:[%s11747_s15 + $0x1c4] sm:$0xf]  ;;  %v7678_v18 = vld [vmem:[%s11747_s15 + $0x148] sm:$0xf0] }
0x14fb   : > { %v8158_v47 = vld [vmem:[%s11747_s15 + $0xf4] sm:$0xf] }
0x14fc   : > { %5837 = vmatpush.bf16.msrb.mxu1 %v7709_v8  ;;  %v5097_v54 = vadd.f32 %v11266_v61, %v5084_v9  ;;  %5854 = vmatpush.bf16.msra.mxu3 %v7537_v60  ;;  %v7686_v9 = vld [vmem:[%s11747_s15 + $0x158] sm:$0xf0]  ;;  %v7742_v8 = vld [vmem:[%s11747_s15 + $0x1c8] sm:$0xf0] }
0x14fd   : > { %v7689_v63 = vor.u32 %v8170_v17, %v7686_v9  ;;  %v7745_v11 = vor.u32 %v8184_v37, %v7742_v8  ;;  %v11604_v17 = vperm.slane %v11192_v7, 0  ;;  %v8150_v7 = vld [vmem:[%s11747_s15 + $0xb4] sm:$0xf]  ;;  %v7606_v8 = vld [vmem:[%s11747_s15 + $0xb8] sm:$0xf0] }
0x14fe   : > { %v5124_v48 = vpop.f32.mrf.mxu3  ;;  %5887 = vmatpush.bf16.msrb.mxu0 %v7705_v5  ;;  %v8154_v5 = vld [vmem:[%s11747_s15 + $0xd4] sm:$0xf] }
0x14ff   : > { %v7597_v48 = vor.u32 %v8149_v10, %v7596_v58  ;;  %v8168_v10 = vld [vmem:[%s11747_s15 + $0x144] sm:$0xf]  ;;  %v7625_v50 = vor.u32 %v8154_v5, %v7622_v42 }
0x1500   : > { %5906 = vmatpush.bf16.msra.mxu1 %v7769_v30  ;;  %5855 = vmatpush.bf16.msra.mxu3 %v7529_v34 }
0x1501   : > { %v5085_v40 = vpop.f32.mrf.mxu2  ;;  %5797 = vmatpush.bf16.msrb.mxu2 %v7597_v48  ;;  %v7681_v48 = vor.u32 %v8168_v10, %v7678_v18  ;;  %v7710_v10 = vld [vmem:[%s11747_s15 + $0x188] sm:$0xf0]  ;;  %v8148_v18 = vld [vmem:[%s11747_s15 + $0xa4] sm:$0xf] }
0x1502   : > { %v5110_v40 = vadd.f32 %v11252_v56, %v5097_v54  ;;  %5888 = vmatpush.bf16.msrb.mxu0 %v7697_v35  ;;  %v8156_v54 = vld [vmem:[%s11747_s15 + $0xe4] sm:$0xf] }
0x1503   : > { %v8152_v35 = vld [vmem:[%s11747_s15 + $0xc4] sm:$0xf] }
0x1504   : > { %5907 = vmatpush.bf16.msra.mxu1 %v7761_v13  ;;  %5856 = vmatpush.bf16.msra.mxu3 %v7521_v27  ;;  %v5123_v20 = vadd.f32 %v11286_v31, %v5110_v40  ;;  %v7638_v31 = vld [vmem:[%s11747_s15 + $0xf8] sm:$0xf0]  ;;  %v11577_v27 = vperm.slane %v11398_v24, 2 }
0x1505   : > { %5798 = vmatpush.bf16.msrb.mxu2 %v7589_v43  ;;  %v8180_v43 = vld [vmem:[%s11747_s15 + $0x1a4] sm:$0xf] }
0x1506   : > { %v5246_v19 = vpop.f32.mrf.mxu3  ;;  %5889 = vmatpush.bf16.msrb.mxu0 %v7689_v63  ;;  %v7654_v63 = vld [vmem:[%s11747_s15 + $0x118] sm:$0xf0] }
0x1507   : > { %v5317_v44 = vadd.f32 %v11393_v28, %v5246_v19 }
0x1508   : > { %5908 = vmatpush.bf16.msra.mxu1 %v7753_v15 }
0x1509   : > { %v5343_v51 = vadd.f32 %v11428_v38, %v5317_v44  ;;  %5799 = vmatpush.bf16.msrb.mxu2 %v7581_v29  ;;  %v7641_v44 = vor.u32 %v8158_v47, %v7638_v31  ;;  %v7617_v29 = vor.u32 %v8152_v35, %v7614_v32  ;;  %v8162_v31 = vld [vmem:[%s11747_s15 + $0x114] sm:$0xf] }
0x150a   : > { %v11430_v41 = vpop.f32.mrf.mxu1  ;;  %5890 = vmatpush.bf16.msrb.mxu0 %v7681_v48  ;;  %v8160_v48 = vld [vmem:[%s11747_s15 + $0x104] sm:$0xf] }
0x150b   : > { %v5359_v16 = vmax.f32 %v5343_v51, 0.0 }
0x150c   : > { %5909 = vmatpush.bf16.msra.mxu1 %v7745_v11  ;;  %v7609_v11 = vor.u32 %v8150_v7, %v7606_v8  ;;  %v8195_v7 = vld [vmem:[%s11749_s17 + $0x18] sm:$0xff]  ;;  %v8194_v8 = vld [vmem:[%s11749_s17 + $0x10] sm:$0xff] }
0x150d   : > { %5868 = vmatpush.bf16.msra.mxu2 %v7641_v44 }
0x150e   : > { %v5248_v4 = vpop.f32.mrf.mxu3 }
0x150f   : > { %v5321_v55 = vadd.f32 %v11393_v28, %v5248_v4  ;;  %v7630_v4 = vld [vmem:[%s11747_s15 + $0xe8] sm:$0xf0] }
0x1510   : > { %v5148_v61 = vpop.f32.mrf.mxu0  ;;  %v7633_v33 = vor.u32 %v8156_v54, %v7630_v4  ;;  %v7598_v4 = vld [vmem:[%s11747_s15 + $0xa8] sm:$0xf0] }
0x1511   : > { %v5347_v2 = vadd.f32 %v11428_v38, %v5321_v55 }
0x1512   : > { %v5163_v56 = vpop.f32.mrf.mxu1  ;;  %5869 = vmatpush.bf16.msra.mxu2 %v7633_v33 }
0x1513   : > { %v5363_v45 = vmax.f32 %v5347_v2, 0.0  ;;  %v8166_v2 = vld [vmem:[%s11747_s15 + $0x134] sm:$0xf] }
0x1514   : > { %v7673_v40 = vor.u32 %v8166_v2, %v7670_v57 }
0x1515   : > { %v11491_v19 = vpack.c.bf16 %v5363_v45, %v5359_v16 }
0x1516   : > { %v5251_v23 = vpop.f32.mrf.mxu3  ;;  %5891 = vmatpush.bf16.msrb.mxu0 %v7673_v40  ;;  %5870 = vmatpush.bf16.msra.mxu2 %v7625_v50  ;;  %v7582_v50 = vld [vmem:[%s11747_s15 + $0x88] sm:$0xf0] }
0x1517   : > { %5781 = vmatmul.bf16.vlgmr.msrb.gmra.mxu3 %v11491_v19  ;;  %v5135_v39 = vpop.f32.mrf.mxu2  ;;  %v5325_v60 = vadd.f32 %v11393_v28, %v5251_v23  ;;  %v7665_v23 = vor.u32 %v8164_v6, %v7662_v26 }
0x1518   : > { %v5150_v49 = vpop.f32.mrf.mxu0  ;;  %v5136_v1 = vadd.f32 %v5135_v39, %v5123_v20 }
0x1519   : > { %v5351_v51 = vadd.f32 %v11428_v38, %v5325_v60  ;;  %v7718_v49 = vld [vmem:[%s11747_s15 + $0x198] sm:$0xf0]  ;;  %v7657_v60 = vor.u32 %v8162_v31, %v7654_v63 }
0x151a   : > { %v5149_v12 = vadd.f32 %v5148_v61, %v5136_v1  ;;  %v5303_v58 = vpop.f32.mrf.mxu1  ;;  %5892 = vmatpush.bf16.msrb.mxu0 %v7665_v23  ;;  %v7721_v39 = vor.u32 %v8178_v25, %v7718_v49  ;;  %5871 = vmatpush.bf16.msra.mxu2 %v7617_v29 }
0x151b   : > { %v5367_v14 = vmax.f32 %v5351_v51, 0.0  ;;  %v7601_v51 = vor.u32 %v8148_v18, %v7598_v4  ;;  %v5447_v4 = vld [vmem:[%s11748_s16] sm:$0x3] }
0x151c   : > { %v5162_v22 = vadd.f32 %v11430_v41, %v5149_v12  ;;  %v7734_v41 = vld [vmem:[%s11747_s15 + $0x1b8] sm:$0xf0] }
0x151d   : > { %v7737_v34 = vor.u32 %v8182_v62, %v7734_v41  ;;  %v7646_v62 = vld [vmem:[%s11747_s15 + $0x108] sm:$0xf0] }
0x151e   : > { %v5253_v36 = vpop.f32.mrf.mxu3  ;;  %v11546_v55 = vperm.slane %v5162_v22, 0  ;;  %5893 = vmatpush.bf16.msrb.mxu0 %v7657_v60  ;;  %5872 = vmatpush.bf16.msra.mxu2 %v7609_v11  ;;  %v8193_v60 = vld [vmem:[%s11749_s17 + $0x8] sm:$0xff]  ;;  %v8192_v11 = vld [vmem:[%s11749_s17] sm:$0xff] }
0x151f   : > { %v5329_v61 = vadd.f32 %v11393_v28, %v5253_v36  ;;  %v5137_v53 = vpop.f32.mrf.mxu2  ;;  %5910 = vmatpush.bf16.msra.mxu1 %v7737_v34  ;;  %v5336_v34 = vperm.slane %v11398_v24, 1 }
0x1520   : > { %v5284_v30 = vpop.f32.mrf.mxu0  ;;  %v5320_v0 = vadd.f32 %v11546_v55, %v5303_v58  ;;  %v8176_v58 = vld [vmem:[%s11747_s15 + $0x184] sm:$0xf] }
0x1521   : > { %v5355_v28 = vadd.f32 %v11428_v38, %v5329_v61  ;;  %v7726_v38 = vld [vmem:[%s11747_s15 + $0x1a8] sm:$0xf0]  ;;  %v5319_v13 = vadd.f32 %v11570_v46, %v5284_v30  ;;  %v7713_v54 = vor.u32 %v8176_v58, %v7710_v10  ;;  %v7649_v61 = vor.u32 %v8160_v48, %v7646_v62  ;;  %v8207_v10 = vld [vmem:[%s11749_s17 + $0x78] sm:$0xff] }
0x1522   : > { %v7729_v45 = vor.u32 %v8180_v43, %v7726_v38  ;;  %v5305_v56 = vpop.f32.mrf.mxu1  ;;  %v5346_v52 = vadd.f32 %v11550_v59, %v5320_v0  ;;  %5873 = vmatpush.bf16.msra.mxu2 %v7601_v51  ;;  %v8146_v0 = vld [vmem:[%s11747_s15 + $0x94] sm:$0xf]  ;;  %v8144_v43 = vld [vmem:[%s11747_s15 + $0x84] sm:$0xf]  ;;  %v8205_v48 = vld [vmem:[%s11749_s17 + $0x68] sm:$0xff]  ;;  %v5449_v62 = vperm.slane %v5447_v4, 0 }
0x1523   : > { %v5371_v16 = vmax.f32 %v5355_v28, 0.0  ;;  %v5324_v21 = vadd.f32 %v11546_v55, %v5305_v56  ;;  %v5345_v9 = vadd.f32 %v11577_v27, %v5319_v13  ;;  %5894 = vmatpush.bf16.msrb.mxu0 %v7649_v61  ;;  %v7590_v28 = vld [vmem:[%s11747_s15 + $0x98] sm:$0xf0] }
0x1524   : > { %5911 = vmatpush.bf16.msra.mxu1 %v7729_v45  ;;  %v5362_v37 = vmax.f32 %v5346_v52, 0.0  ;;  %v7593_v40 = vor.u32 %v8146_v0, %v7590_v28  ;;  %v7585_v45 = vor.u32 %v8144_v43, %v7582_v50  ;;  %v8202_v0 = vld [vmem:[%s11749_s17 + $0x50] sm:$0xff] }
0x1525   : > { %v11587_v3 = vpack.c.bf16 %v5371_v16, %v5367_v14  ;;  %v5350_v20 = vadd.f32 %v11550_v59, %v5324_v21  ;;  %v5361_v36 = vmax.f32 %v5345_v9, 0.0 }
0x1526   : > { %5874 = vmatpush.bf16.msra.mxu2 %v7593_v40 }
0x1527   : > { %5786 = vmatmul.bf16.gmra.mxu3 %v11587_v3  ;;  %v5265_v47 = vpop.f32.mrf.mxu2  ;;  %v5366_v44 = vmax.f32 %v5350_v20, 0.0 }
0x1528   : > { %v5286_v15 = vpop.f32.mrf.mxu0  ;;  %5912 = vmatpush.bf16.msra.mxu1 %v7721_v39  ;;  %v5318_v30 = vadd.f32 %v11604_v17, %v5265_v47 }
0x1529   : > { %v5323_v1 = vadd.f32 %v11570_v46, %v5286_v15  ;;  %v11630_v22 = vpack.c.bf16 %v5366_v44, %v5362_v37  ;;  %v8196_v44 = vld [vmem:[%s11749_s17 + $0x20] sm:$0xff] }
0x152a   : > { %v5308_v41 = vpop.f32.mrf.mxu1  ;;  %v5344_v5 = vadd.f32 %v5336_v34, %v5318_v30  ;;  %5875 = vmatpush.bf16.msra.mxu2 %v7585_v45 }
0x152b   : > { %v5349_v12 = vadd.f32 %v11577_v27, %v5323_v1  ;;  %5838 = vmatmul.bf16.vlgmr.msrb.gmra.mxu1 %v11630_v22  ;;  %v5328_v24 = vadd.f32 %v11546_v55, %v5308_v41 }
0x152c   : > { %5913 = vmatpush.bf16.msra.mxu1 %v7713_v54  ;;  %v5360_v13 = vmax.f32 %v5344_v5, 0.0 }
0x152d   : > { %v5365_v33 = vmax.f32 %v5349_v12, 0.0  ;;  %v5354_v56 = vadd.f32 %v11550_v59, %v5328_v24 }
0x152f   : > { %v5377_v53 = vpack.c.bf16 %v5365_v33, %v5361_v36  ;;  %v5267_v57 = vpop.f32.mrf.mxu2  ;;  %v5370_v25 = vmax.f32 %v5354_v56, 0.0  ;;  %v8204_v33 = vld [vmem:[%s11749_s17 + $0x60] sm:$0xff] }
0x1530   : > { %v5289_v2 = vpop.f32.mrf.mxu0  ;;  %v5322_v42 = vadd.f32 %v11604_v17, %v5267_v57  ;;  %v8200_v56 = vld [vmem:[%s11749_s17 + $0x40] sm:$0xff] }
0x1531   : > { %5819 = vmatmul.bf16.vlgmr.msra.gmra.mxu0 %v5377_v53  ;;  %v5327_v14 = vadd.f32 %v11570_v46, %v5289_v2 }
0x1532   : > { %v5348_v38 = vadd.f32 %v5336_v34, %v5322_v42  ;;  %v5310_v16 = vpop.f32.mrf.mxu1 }
0x1533   : > { %v5332_v26 = vadd.f32 %v11546_v55, %v5310_v16  ;;  %v5353_v32 = vadd.f32 %v11577_v27, %v5327_v14 }
0x1534   : > { %v5364_v6 = vmax.f32 %v5348_v38, 0.0  ;;  %v8201_v38 = vld [vmem:[%s11749_s17 + $0x48] sm:$0xff] }
0x1535   : > { %v5358_v21 = vadd.f32 %v11550_v59, %v5332_v26  ;;  %v5369_v39 = vmax.f32 %v5353_v32, 0.0 }
0x1536   : > { %v5376_v52 = vpack.c.bf16 %v5364_v6, %v5360_v13 }
0x1537   : > { %5857 = vmatmul.bf16.vlgmr.msra.gmra.mxu3 %v11491_v19  ;;  %v5270_v29 = vpop.f32.mrf.mxu2  ;;  %v5374_v49 = vmax.f32 %v5358_v21, 0.0 }
0x1538   : > { %v5291_v35 = vpop.f32.mrf.mxu0  ;;  %5800 = vmatmul.bf16.vlgmr.msrb.gmra.mxu2 %v5376_v52  ;;  %v5326_v9 = vadd.f32 %v11604_v17, %v5270_v29 }
0x1539   : > { %v5331_v23 = vadd.f32 %v11570_v46, %v5291_v35  ;;  %v5382_v15 = vpack.c.bf16 %v5374_v49, %v5370_v25  ;;  %6088 = vmatpush.bf16.msrb.mxu2 %v8207_v10 }
0x153a   : > { %v5352_v1 = vadd.f32 %v5336_v34, %v5326_v9 }
0x153b   : > { %v5357_v20 = vadd.f32 %v11577_v27, %v5331_v23  ;;  %5843 = vmatmul.bf16.gmra.mxu1 %v5382_v15  ;;  %v8199_v27 = vld [vmem:[%s11749_s17 + $0x38] sm:$0xff] }
0x153c   : > { %v5368_v31 = vmax.f32 %v5352_v1, 0.0  ;;  %6069 = vmatpush.bf16.msrb.mxu3 %v8199_v27 }
0x153d   : > { %v5373_v55 = vmax.f32 %v5357_v20, 0.0 }
0x153f   : > { %v5381_v59 = vpack.c.bf16 %v5373_v55, %v5369_v39  ;;  %v5272_v19 = vpop.f32.mrf.mxu2  ;;  %v5450_v55 = vperm.slane %v5447_v4, 1 }
0x1540   : > { %v5330_v47 = vadd.f32 %v11604_v17, %v5272_v19  ;;  %v8198_v17 = vld [vmem:[%s11749_s17 + $0x30] sm:$0xff] }
0x1541   : > { %5824 = vmatmul.bf16.gmra.mxu0 %v5381_v59  ;;  %6070 = vmatpush.bf16.msrb.mxu3 %v8198_v17 }
0x1542   : > { %v5356_v46 = vadd.f32 %v5336_v34, %v5330_v47 }
0x1544   : > { %v5372_v63 = vmax.f32 %v5356_v46, 0.0 }
0x1546   : > { %v5380_v37 = vpack.c.bf16 %v5372_v63, %v5368_v31 }
0x1547   : > { %5862 = vmatmul.bf16.gmra.mxu3 %v11587_v3  ;;  %v8197_v3 = vld [vmem:[%s11749_s17 + $0x28] sm:$0xff] }
0x1548   : > { %5805 = vmatmul.bf16.gmra.mxu2 %v5380_v37  ;;  %6071 = vmatpush.bf16.msrb.mxu3 %v8197_v3 }
0x154b   : > { %5914 = vmatmul.bf16.vlgmr.msra.gmra.mxu1 %v11630_v22  ;;  %v8206_v22 = vld [vmem:[%s11749_s17 + $0x70] sm:$0xff] }
0x154c   : > { %6072 = vmatpush.bf16.msrb.mxu3 %v8196_v44  ;;  %6089 = vmatpush.bf16.msrb.mxu2 %v8206_v22 }
0x1550   : > { %6073 = vmatpush.bf16.msrb.mxu3 %v8195_v7  ;;  %6090 = vmatpush.bf16.msrb.mxu2 %v8205_v48 }
0x1551   : > { %5895 = vmatmul.bf16.vlgmr.msrb.gmra.mxu0 %v5377_v53  ;;  %v8203_v53 = vld [vmem:[%s11749_s17 + $0x58] sm:$0xff] }
0x1554   : > { %6074 = vmatpush.bf16.msrb.mxu3 %v8194_v8  ;;  %6091 = vmatpush.bf16.msrb.mxu2 %v8204_v33 }
0x1558   : > { %5876 = vmatmul.bf16.vlgmr.msra.gmra.mxu2 %v5376_v52  ;;  %6075 = vmatpush.bf16.msrb.mxu3 %v8193_v60 }
0x1559   : > { %6092 = vmatpush.bf16.msrb.mxu2 %v8203_v53 }
0x155b   : > { %5919 = vmatmul.bf16.gmra.mxu1 %v5382_v15 }
0x155c   : > { %6076 = vmatpush.bf16.msrb.mxu3 %v8192_v11 }
0x155d   : > { %6093 = vmatpush.bf16.msrb.mxu2 %v8202_v0 }
0x1561   : > { %5900 = vmatmul.bf16.gmra.mxu0 %v5381_v59  ;;  %6094 = vmatpush.bf16.msrb.mxu2 %v8201_v38 }
0x1565   : > { %6095 = vmatpush.bf16.msrb.mxu2 %v8200_v56 }
0x1568   : > { %5881 = vmatmul.bf16.gmra.mxu2 %v5380_v37 }
0x159a   : > { %v5782_v12 = vpop.f32.mrf.mxu3 }
0x159b   : > { %v5783_v61 = vadd.f32 %v5782_v12, %v5449_v62 }
0x15a2   : > { %v5784_v54 = vpop.f32.mrf.mxu3 }
0x15a3   : > { %v5785_v2 = vadd.f32 %v5784_v54, %v5449_v62 }
0x15a8   : > { %v5839_v18 = vpop.f32.mrf.mxu1 }
0x15aa   : > { %v5787_v30 = vpop.f32.mrf.mxu3 }
0x15ab   : > { %v5788_v6 = vadd.f32 %v5787_v30, %v5449_v62 }
0x15ae   : > { %v5820_v58 = vpop.f32.mrf.mxu0 }
0x15b0   : > { %v5841_v41 = vpop.f32.mrf.mxu1 }
0x15b2   : > { %v5789_v50 = vpop.f32.mrf.mxu3 }
0x15b3   : > { %v5790_v23 = vadd.f32 %v5789_v50, %v5449_v62 }
0x15b6   : > { %v5822_v36 = vpop.f32.mrf.mxu0 }
0x15b8   : > { %v5844_v42 = vpop.f32.mrf.mxu1 }
0x15ba   : > { %v5858_v32 = vpop.f32.mrf.mxu3 }
0x15bb   : > { %v5801_v51 = vpop.f32.mrf.mxu2  ;;  %v5859_v31 = vadd.f32 %v5858_v32, %v5450_v55 }
0x15bc   : > { %v5802_v34 = vadd.f32 %v5801_v51, %v5783_v61 }
0x15be   : > { %v5821_v57 = vadd.f32 %v5820_v58, %v5802_v34  ;;  %v5825_v28 = vpop.f32.mrf.mxu0 }
0x15c0   : > { %v5840_v40 = vadd.f32 %v5839_v18, %v5821_v57  ;;  %v5846_v35 = vpop.f32.mrf.mxu1 }
0x15c2   : > { %v5925_v16 = vmax.f32 %v5840_v40, 0.0  ;;  %v5860_v47 = vpop.f32.mrf.mxu3  ;;  %v8246_v40 = vld [vmem:[%s11750_s18] ss:$0 sm:$0xff] }
0x15c3   : > { %v5803_v5 = vpop.f32.mrf.mxu2  ;;  %v5861_v17 = vadd.f32 %v5860_v47, %v5450_v55 }
0x15c4   : > { %v5804_v24 = vadd.f32 %v5803_v5, %v5785_v2 }
0x15c6   : > { %v5823_v43 = vadd.f32 %v5822_v36, %v5804_v24  ;;  %v5827_v52 = vpop.f32.mrf.mxu0 }
0x15c8   : > { %v5842_v14 = vadd.f32 %v5841_v41, %v5823_v43  ;;  %v5915_v59 = vpop.f32.mrf.mxu1 }
0x15ca   : > { %v5927_v45 = vmax.f32 %v5842_v14, 0.0  ;;  %v5863_v60 = vpop.f32.mrf.mxu3 }
0x15cb   : > { %v5806_v13 = vpop.f32.mrf.mxu2  ;;  %v5864_v4 = vadd.f32 %v5863_v60, %v5450_v55 }
0x15cc   : > { %v5933_v26 = vpack.c.bf16 %v5927_v45, %v5925_v16  ;;  %v5807_v21 = vadd.f32 %v5806_v13, %v5788_v6 }
0x15ce   : > { %6077 = vmatmul.bf16.vlgmr.msrb.gmra.mxu3 %v5933_v26  ;;  %v5826_v29 = vadd.f32 %v5825_v28, %v5807_v21  ;;  %v5896_v39 = vpop.f32.mrf.mxu0 }
0x15d0   : > { %v5845_v20 = vadd.f32 %v5844_v42, %v5826_v29  ;;  %v5917_v44 = vpop.f32.mrf.mxu1 }
0x15d2   : > { %v5929_v19 = vmax.f32 %v5845_v20, 0.0  ;;  %v5865_v33 = vpop.f32.mrf.mxu3 }
0x15d3   : > { %v5808_v25 = vpop.f32.mrf.mxu2  ;;  %v5866_v41 = vadd.f32 %v5865_v33, %v5450_v55 }
0x15d4   : > { %v5809_v49 = vadd.f32 %v5808_v25, %v5790_v23 }
0x15d6   : > { %v5828_v15 = vadd.f32 %v5827_v52, %v5809_v49  ;;  %v5898_v27 = vpop.f32.mrf.mxu0 }
0x15d8   : > { %v5847_v9 = vadd.f32 %v5846_v35, %v5828_v15  ;;  %v5920_v62 = vpop.f32.mrf.mxu1 }
0x15da   : > { %v5931_v1 = vmax.f32 %v5847_v9, 0.0 }
0x15db   : > { %v5877_v46 = vpop.f32.mrf.mxu2 }
0x15dc   : > { %v5935_v63 = vpack.c.bf16 %v5931_v1, %v5929_v19  ;;  %v5878_v37 = vadd.f32 %v5877_v46, %v5859_v31 }
0x15de   : > { %6082 = vmatmul.bf16.gmra.mxu3 %v5935_v63  ;;  %v5897_v3 = vadd.f32 %v5896_v39, %v5878_v37  ;;  %v5901_v22 = vpop.f32.mrf.mxu0 }
0x15e0   : > { %v5916_v12 = vadd.f32 %v5915_v59, %v5897_v3  ;;  %v5922_v57 = vpop.f32.mrf.mxu1 }
0x15e2   : > { %v5926_v10 = vmax.f32 %v5916_v12, 0.0 }
0x15e3   : > { %v5879_v7 = vpop.f32.mrf.mxu2 }
0x15e4   : > { %v5880_v8 = vadd.f32 %v5879_v7, %v5861_v17 }
0x15e6   : > { %v5899_v11 = vadd.f32 %v5898_v27, %v5880_v8  ;;  %v5903_v34 = vpop.f32.mrf.mxu0 }
0x15e8   : > { %v5918_v58 = vadd.f32 %v5917_v44, %v5899_v11 }
0x15ea   : > { %v5928_v18 = vmax.f32 %v5918_v58, 0.0 }
0x15eb   : > { %v5882_v54 = vpop.f32.mrf.mxu2 }
0x15ec   : > { %v5934_v48 = vpack.c.bf16 %v5928_v18, %v5926_v10  ;;  %v5883_v36 = vadd.f32 %v5882_v54, %v5864_v4 }
0x15ee   : > { %6096 = vmatmul.bf16.vlgmr.msrb.gmra.mxu2 %v5934_v48  ;;  %v5902_v51 = vadd.f32 %v5901_v22, %v5883_v36 }
0x15f0   : > { %v5921_v53 = vadd.f32 %v5920_v62, %v5902_v51 }
0x15f2   : > { %v5930_v28 = vmax.f32 %v5921_v53, 0.0 }
0x15f3   : > { %v5884_v61 = vpop.f32.mrf.mxu2 }
0x15f4   : > { %v5885_v30 = vadd.f32 %v5884_v61, %v5866_v41 }
0x15f6   : > { %v5904_v2 = vadd.f32 %v5903_v34, %v5885_v30 }
0x15f8   : > { %v5923_v0 = vadd.f32 %v5922_v57, %v5904_v2 }
0x15fa   : > { %v5932_v5 = vmax.f32 %v5923_v0, 0.0 }
0x15fc   : > { %v5936_v24 = vpack.c.bf16 %v5932_v5, %v5930_v28 }
0x15fe   : > { %6101 = vmatmul.bf16.gmra.mxu2 %v5936_v24 }
0x1651   : > { %v6078_v42 = vpop.f32.mrf.mxu3 }
0x1652   : > { %v6079_v43 = vadd.f32 %v8246_v40, %v6078_v42 }
0x1659   : > { %v6080_v50 = vpop.f32.mrf.mxu3 }
0x165a   : > { %v6081_v16 = vadd.f32 %v8246_v40, %v6080_v50 }
0x1661   : > { %v6083_v56 = vpop.f32.mrf.mxu3 }
0x1662   : > { %v6084_v6 = vadd.f32 %v8246_v40, %v6083_v56 }
0x1669   : > { %v6085_v21 = vpop.f32.mrf.mxu3 }
0x166a   : > { %v6086_v35 = vadd.f32 %v8246_v40, %v6085_v21 }
0x1671   : > { %v6097_v38 = vpop.f32.mrf.mxu2 }
0x1672   : > { %v6098_v14 = vadd.f32 %v6097_v38, %v6079_v43 }
0x1674   : > { %6107 = vst [vmem:[%s604_s22] sm:$0xff] %v6098_v14 }
0x1679   : > { %v6099_v45 = vpop.f32.mrf.mxu2 }
0x167a   : > { %v6100_v13 = vadd.f32 %v6099_v45, %v6081_v16 }
0x167c   : > { %6108 = vst [vmem:[%s604_s22 + $0x8] sm:$0xff] %v6100_v13 }
0x1681   : > { %v6102_v26 = vpop.f32.mrf.mxu2 }
0x1682   : > { %v6103_v52 = vadd.f32 %v6102_v26, %v6084_v6 }
0x1684   : > { %6109 = vst [vmem:[%s604_s22 + $0x10] sm:$0xff] %v6103_v52 }
0x1689   : > { %v6104_v32 = vpop.f32.mrf.mxu2 }
0x168a   : > { %v6105_v23 = vadd.f32 %v6104_v32, %v6086_v35 }
0x168c   : > { %6110 = vst [vmem:[%s604_s22 + $0x18] sm:$0xff] %v6105_v23 }
0x168d PF: > { %s29_s0 = sadd.s32 1, %s8253_s0  }
0x168e   : > { %p26_p4 = scmp.ge.s32.totalorder %s29_s0, 4  }
0x1690   :  { %28 = sbr.rel (!%p26_p4) target bundleno = 5 (0x5), region = 126 }

</bundles_post_ra>
